<compile_context>
chip_gen: v6e
topology: v6e:2x2x1
jax: 0.10.0
libtpu: 0.0.40
codegen_flags: <defaults>
</compile_context>

<pallas_src>
import functools

import jax
import jax.numpy as jnp
import numpy as np
from jax.experimental import pallas as pl
from jax.experimental.pallas import tpu as pltpu


# ---------------------------------------------------------------------------
# Pallas kernel: fused (bf16 matmul -> f32) + bias + activation
# ---------------------------------------------------------------------------
def _phase_matmul_kernel(a_ref, w_ref, b_ref, o_ref, *, act):
    # a_ref: (tm, K) bf16, w_ref: (K, tn) bf16 (BN scale pre-folded), b_ref: (1, tn) f32
    acc = jnp.dot(a_ref[...], w_ref[...], preferred_element_type=jnp.float32)
    y = acc + b_ref[...]
    if act == "relu":
        y = jnp.maximum(y, 0.0)
    else:  # sigmoid
        y = jax.nn.sigmoid(y)
    o_ref[...] = y.astype(o_ref.dtype)


def _choose_tiles(M, Nc):
    """Row/col tiles: large blocks, but keep >= 2 grid steps (megacore)."""
    tm = M
    for cand in (1024, 512, 256, 128, 64, 32, 16, 8):
        if M % cand == 0 and M // cand >= 2:
            tm = cand
            break
    tn = Nc
    if M // tm < 2 and Nc % 256 == 0:
        tn = Nc // 2  # split the output columns instead so both TCs get work
    return tm, tn


def fused_phase_matmul(a, w_phase, bias, act, out_dtype):
    """out = act(a @ w_phase + bias); a (M,K) bf16, w_phase (K,Nc) bf16, bias (1,Nc) f32."""
    M, K = a.shape
    Nc = w_phase.shape[1]
    tm, tn = _choose_tiles(M, Nc)
    grid = (M // tm, Nc // tn)
    return pl.pallas_call(
        functools.partial(_phase_matmul_kernel, act=act),
        out_shape=jax.ShapeDtypeStruct((M, Nc), out_dtype),
        grid_spec=pltpu.PrefetchScalarGridSpec(
            num_scalar_prefetch=0,
            grid=grid,
            in_specs=[
                pl.BlockSpec((tm, K), lambda i, j: (i, 0)),
                pl.BlockSpec((K, tn), lambda i, j: (0, j)),
                pl.BlockSpec((1, tn), lambda i, j: (0, j)),
            ],
            out_specs=pl.BlockSpec((tm, tn), lambda i, j: (i, j)),
        ),
        compiler_params=pltpu.CompilerParams(
            dimension_semantics=("parallel", "parallel"),
        ),
    )(a, w_phase, bias)


# ---------------------------------------------------------------------------
# Parameter preparation (done once, outside the hot path)
# ---------------------------------------------------------------------------
def _phase_weight(wf, cout_pad):
    """Build the (4*Cin, 4*Cp) phase weight matrix from the flipped HWIO kernel.

    Row block t = 2*di+dj corresponds to input tap x[i+di, j+dj]; column block
    ph = 2*py+px corresponds to output pixel y[2i+py, 2j+px].
    """
    cin, cout = wf.shape[2], wf.shape[3]
    wb = jnp.zeros((4, cin, 4, cout_pad), wf.dtype)
    for di in range(2):
        for dj in range(2):
            for py in range(2):
                for px in range(2):
                    kh = 2 * di + 1 - py
                    kw = 2 * dj + 1 - px
                    if 0 <= kh < 3 and 0 <= kw < 3:
                        wb = wb.at[2 * di + dj, :, 2 * py + px, :cout].set(wf[kh, kw])
    return wb.reshape(4 * cin, 4 * cout_pad)


def prepare_layer(w, conv_b, gamma, beta, r_mean, r_var, act, out_dtype, eps=1e-5):
    """Fold BN (eval) into weights/bias and build the phase matmul operands."""
    cout = w.shape[1]
    cp = ((cout + 31) // 32) * 32          # 4*cp is a multiple of 128 -> lane-dense
    s = gamma * jax.lax.rsqrt(r_var + eps)
    b = (conv_b - r_mean) * s + beta
    # flipped HWIO kernel with the BN scale folded into the output channels
    wf = jnp.transpose(w, (2, 3, 0, 1))[::-1, ::-1] * s          # (3,3,Cin,Cout)
    w_phase = _phase_weight(wf, cp).astype(jnp.bfloat16)         # (4*Cin, 4*cp)
    bias = jnp.tile(jnp.zeros((cp,), jnp.float32).at[:cout].set(b), 4)[None, :]
    return (w_phase, bias, cout, act, out_dtype)


# ---------------------------------------------------------------------------
# Per-layer forward + full decoder
# ---------------------------------------------------------------------------
def deconv_bn_act_layer(x, w_phase, bias, cout, act, out_dtype):
    """x: (N, H, W, Cin) NHWC -> (N, 2H, 2W, cout)."""
    N, H, W, Cin = x.shape
    cp = w_phase.shape[1] // 4
    # 2x2 neighbourhood gather with a single zero pad (no stride-2 dilation,
    # no 9-tap patch tensor): row (n,i,j) = [x[i,j], x[i,j+1], x[i+1,j], x[i+1,j+1]]
    # Cast to bf16 first so the pad/concat only moves half the bytes.
    xb = x.astype(jnp.bfloat16)
    xp = jnp.pad(xb, ((0, 0), (0, 1), (0, 1), (0, 0)))
    a = jnp.concatenate(
        [xp[:, :H, :W], xp[:, :H, 1:], xp[:, 1:, :W], xp[:, 1:, 1:]], axis=-1
    ).reshape(N * H * W, 4 * Cin)

    out = fused_phase_matmul(a, w_phase, bias, act, out_dtype)   # (N*H*W, 4*cp)

    # pixel-shuffle the phases: (n,i,j,py,px,c) -> (n, 2i+py, 2j+px, c)
    out = out.reshape(N, H, W, 2, 2, cp).transpose(0, 1, 3, 2, 4, 5)
    out = out.reshape(N, 2 * H, 2 * W, cp)
    return out[..., :cout] if cp != cout else out


def decoder_forward(latent_nchw, layers):
    x = jnp.transpose(latent_nchw, (0, 2, 3, 1))                 # NCHW -> NHWC
    for (w_phase, bias, cout, act, out_dtype) in layers:
        x = deconv_bn_act_layer(x, w_phase, bias, cout, act, out_dtype)
    return jnp.transpose(x, (0, 3, 1, 2))                        # NHWC -> NCHW


# ---------------------------------------------------------------------------
# Params / reference / test
# ---------------------------------------------------------------------------
def init_params(key, in_channels=512, out_channels=3):
    chans = [in_channels, 256, 128, 64, 32, out_channels]
    params = []
    for i in range(5):
        cin, cout = chans[i], chans[i + 1]
        key, k1, k2, k3, k4, k5, k6 = jax.random.split(key, 7)
        fan = cin * 9
        w = jax.random.normal(k1, (cin, cout, 3, 3), jnp.float32) / np.sqrt(fan)
        conv_b = 0.01 * jax.random.normal(k2, (cout,), jnp.float32)
        gamma = 1.0 + 0.1 * jax.random.normal(k3, (cout,), jnp.float32)
        beta = 0.1 * jax.random.normal(k4, (cout,), jnp.float32)
        r_mean = 0.1 * jax.random.normal(k5, (cout,), jnp.float32)
        r_var = 1.0 + 0.1 * jax.random.uniform(k6, (cout,), jnp.float32)
        params.append((w, conv_b, gamma, beta, r_mean, r_var))
    return params


def _ref_layer(x, w, conv_b, gamma, beta, r_mean, r_var, act, eps=1e-5):
    """Pure-XLA reference (same bf16 weights/inputs, f32 accumulation)."""
    s = gamma * jax.lax.rsqrt(r_var + eps)
    b = (conv_b - r_mean) * s + beta
    wf = (jnp.transpose(w, (2, 3, 0, 1))[::-1, ::-1] * s).astype(jnp.bfloat16)
    y = jax.lax.conv_general_dilated(
        x.astype(jnp.bfloat16), wf, window_strides=(1, 1), padding=((1, 2), (1, 2)),
        lhs_dilation=(2, 2), dimension_numbers=("NHWC", "HWIO", "NHWC"),
        preferred_element_type=jnp.float32)
    y = y + b
    return jnp.maximum(y, 0.0) if act == "relu" else jax.nn.sigmoid(y)


if __name__ == "__main__":
    key = jax.random.PRNGKey(0)
    kp, kx = jax.random.split(key)
    params = init_params(kp, in_channels=512, out_channels=3)

    # latent in PyTorch NCHW convention: (batch=2, C=512, 2, 2) -> output (2, 3, 64, 64)
    latent = jax.random.normal(kx, (2, 512, 2, 2), jnp.float32)

    acts = ("relu", "relu", "relu", "relu", "sigmoid")
    prepared = [
        prepare_layer(*p, act=a,
                      out_dtype=(jnp.float32 if a == "sigmoid" else jnp.bfloat16))
        for p, a in zip(params, acts)
    ]

    fwd = jax.jit(functools.partial(decoder_forward, layers=prepared))
    out = jax.block_until_ready(fwd(latent))
    assert out.shape == (2, 3, 64, 64), out.shape

    # sanity check against a pure-XLA reference (same bf16 weight quantization)
    xr = jnp.transpose(latent, (0, 2, 3, 1))
    for p, act in zip(params, acts):
        xr = _ref_layer(xr, *p, act=act)
    ref = jnp.transpose(xr, (0, 3, 1, 2))
    np.testing.assert_allclose(np.asarray(out), np.asarray(ref), atol=2e-3, rtol=2e-3)

    print("KERNEL_OK")
</pallas_src>

<mosaic_0001>
module attributes {stable_mosaic.version = 11 : i64} {
  func.func @_phase_matmul_kernel(%arg0: i32, %arg1: i32, %arg2: memref<8x2048xbf16, #tpu.memory_space<vmem>>, %arg3: memref<2048x512xbf16, #tpu.memory_space<vmem>>, %arg4: memref<1x512xf32, #tpu.memory_space<vmem>>, %arg5: memref<8x512xbf16, #tpu.memory_space<vmem>>) attributes {dimension_semantics = [#tpu.dimension_semantics<parallel>, #tpu.dimension_semantics<parallel>], iteration_bounds = array<i64: 1, 2>, scalar_prefetch = 0 : i64, scratch_operands = 0 : i64, tpu.core_type = #tpu.core_type<tc>, window_params = [{transform_indices = @transform_0, window_bounds = array<i64: 8, 2048>}, {transform_indices = @transform_1, window_bounds = array<i64: 2048, 512>}, {transform_indices = @transform_2, window_bounds = array<i64: 1, 512>}, {transform_indices = @transform_3, window_bounds = array<i64: 8, 512>}]} {
    %c0 = arith.constant 0 : index
    %c0_0 = arith.constant 0 : index
    %0 = vector.load %arg2[%c0, %c0_0] : memref<8x2048xbf16, #tpu.memory_space<vmem>>, vector<8x2048xbf16>
    %c0_1 = arith.constant 0 : index
    %c0_2 = arith.constant 0 : index
    %1 = vector.load %arg3[%c0_1, %c0_2] : memref<2048x512xbf16, #tpu.memory_space<vmem>>, vector<2048x512xbf16>
    %cst = arith.constant dense<0.000000e+00> : vector<8x512xf32>
    %2 = tpu.matmul %0, %1, %cst {dimension_numbers = #tpu.dot_dimension_numbers<[1], [0], [0], [1], [0, 0, 1, 1], [], []>} : vector<8x2048xbf16>, vector<2048x512xbf16>, vector<8x512xf32> -> vector<8x512xf32>
    %c0_3 = arith.constant 0 : index
    %c0_4 = arith.constant 0 : index
    %3 = vector.load %arg4[%c0_3, %c0_4] : memref<1x512xf32, #tpu.memory_space<vmem>>, vector<1x512xf32>
    %4 = vector.broadcast %3 : vector<1x512xf32> to vector<8x512xf32>
    %5 = arith.addf %2, %4 : vector<8x512xf32>
    %cst_5 = arith.constant 0.000000e+00 : f32
    %6 = vector.broadcast %cst_5 : f32 to vector<8x512xf32>
    %7 = arith.maximumf %5, %6 : vector<8x512xf32>
    %8 = arith.truncf %7 : vector<8x512xf32> to vector<8x512xbf16>
    %c0_6 = arith.constant 0 : index
    %c0_7 = arith.constant 0 : index
    %9 = vector.load %arg5[%c0_6, %c0_7] : memref<8x512xbf16, #tpu.memory_space<vmem>>, vector<8x512xbf16>
    tpu.vector_store %arg5[%c0_6, %c0_7], %8 {strides = array<i32>} : memref<8x512xbf16, #tpu.memory_space<vmem>>, vector<8x512xbf16>,
    return
  }
  func.func @transform_0(%arg0: i32, %arg1: i32) -> (i32, i32) {
    %c0_i32 = arith.constant 0 : i32
    %c0_i32_0 = arith.constant 0 : i32
    return %arg0, %c0_i32 : i32, i32
  }
  func.func @transform_1(%arg0: i32, %arg1: i32) -> (i32, i32) {
    %c0_i32 = arith.constant 0 : i32
    %c0_i32_0 = arith.constant 0 : i32
    return %c0_i32, %arg1 : i32, i32
  }
  func.func @transform_2(%arg0: i32, %arg1: i32) -> (i32, i32) {
    %c0_i32 = arith.constant 0 : i32
    %c0_i32_0 = arith.constant 0 : i32
    return %c0_i32, %arg1 : i32, i32
  }
  func.func @transform_3(%arg0: i32, %arg1: i32) -> (i32, i32) {
    %c0_i32 = arith.constant 0 : i32
    return %arg0, %arg1 : i32, i32
  }
}

module attributes {stable_mosaic.version = 11 : i64} {
  func.func @_phase_matmul_kernel(%arg0: i32, %arg1: i32, %arg2: memref<16x1024xbf16, #tpu.memory_space<vmem>>, %arg3: memref<1024x512xbf16, #tpu.memory_space<vmem>>, %arg4: memref<1x512xf32, #tpu.memory_space<vmem>>, %arg5: memref<16x512xbf16, #tpu.memory_space<vmem>>) attributes {dimension_semantics = [#tpu.dimension_semantics<parallel>, #tpu.dimension_semantics<parallel>], iteration_bounds = array<i64: 2, 1>, scalar_prefetch = 0 : i64, scratch_operands = 0 : i64, tpu.core_type = #tpu.core_type<tc>, window_params = [{transform_indices = @transform_0, window_bounds = array<i64: 16, 1024>}, {transform_indices = @transform_1, window_bounds = array<i64: 1024, 512>}, {transform_indices = @transform_2, window_bounds = array<i64: 1, 512>}, {transform_indices = @transform_3, window_bounds = array<i64: 16, 512>}]} {
    %c0 = arith.constant 0 : index
    %c0_0 = arith.constant 0 : index
    %0 = vector.load %arg2[%c0, %c0_0] : memref<16x1024xbf16, #tpu.memory_space<vmem>>, vector<16x1024xbf16>
    %c0_1 = arith.constant 0 : index
    %c0_2 = arith.constant 0 : index
    %1 = vector.load %arg3[%c0_1, %c0_2] : memref<1024x512xbf16, #tpu.memory_space<vmem>>, vector<1024x512xbf16>
    %cst = arith.constant dense<0.000000e+00> : vector<16x512xf32>
    %2 = tpu.matmul %0, %1, %cst {dimension_numbers = #tpu.dot_dimension_numbers<[1], [0], [0], [1], [0, 0, 1, 1], [], []>} : vector<16x1024xbf16>, vector<1024x512xbf16>, vector<16x512xf32> -> vector<16x512xf32>
    %c0_3 = arith.constant 0 : index
    %c0_4 = arith.constant 0 : index
    %3 = vector.load %arg4[%c0_3, %c0_4] : memref<1x512xf32, #tpu.memory_space<vmem>>, vector<1x512xf32>
    %4 = vector.broadcast %3 : vector<1x512xf32> to vector<16x512xf32>
    %5 = arith.addf %2, %4 : vector<16x512xf32>
    %cst_5 = arith.constant 0.000000e+00 : f32
    %6 = vector.broadcast %cst_5 : f32 to vector<16x512xf32>
    %7 = arith.maximumf %5, %6 : vector<16x512xf32>
    %8 = arith.truncf %7 : vector<16x512xf32> to vector<16x512xbf16>
    %c0_6 = arith.constant 0 : index
    %c0_7 = arith.constant 0 : index
    %9 = vector.load %arg5[%c0_6, %c0_7] : memref<16x512xbf16, #tpu.memory_space<vmem>>, vector<16x512xbf16>
    tpu.vector_store %arg5[%c0_6, %c0_7], %8 {strides = array<i32>} : memref<16x512xbf16, #tpu.memory_space<vmem>>, vector<16x512xbf16>,
    return
  }
  func.func @transform_0(%arg0: i32, %arg1: i32) -> (i32, i32) {
    %c0_i32 = arith.constant 0 : i32
    %c0_i32_0 = arith.constant 0 : i32
    return %arg0, %c0_i32 : i32, i32
  }
  func.func @transform_1(%arg0: i32, %arg1: i32) -> (i32, i32) {
    %c0_i32 = arith.constant 0 : i32
    %c0_i32_0 = arith.constant 0 : i32
    return %c0_i32, %arg1 : i32, i32
  }
  func.func @transform_2(%arg0: i32, %arg1: i32) -> (i32, i32) {
    %c0_i32 = arith.constant 0 : i32
    %c0_i32_0 = arith.constant 0 : i32
    return %c0_i32, %arg1 : i32, i32
  }
  func.func @transform_3(%arg0: i32, %arg1: i32) -> (i32, i32) {
    %c0_i32 = arith.constant 0 : i32
    return %arg0, %arg1 : i32, i32
  }
}

module attributes {stable_mosaic.version = 11 : i64} {
  func.func @_phase_matmul_kernel(%arg0: i32, %arg1: i32, %arg2: memref<64x512xbf16, #tpu.memory_space<vmem>>, %arg3: memref<512x256xbf16, #tpu.memory_space<vmem>>, %arg4: memref<1x256xf32, #tpu.memory_space<vmem>>, %arg5: memref<64x256xbf16, #tpu.memory_space<vmem>>) attributes {dimension_semantics = [#tpu.dimension_semantics<parallel>, #tpu.dimension_semantics<parallel>], iteration_bounds = array<i64: 2, 1>, scalar_prefetch = 0 : i64, scratch_operands = 0 : i64, tpu.core_type = #tpu.core_type<tc>, window_params = [{transform_indices = @transform_0, window_bounds = array<i64: 64, 512>}, {transform_indices = @transform_1, window_bounds = array<i64: 512, 256>}, {transform_indices = @transform_2, window_bounds = array<i64: 1, 256>}, {transform_indices = @transform_3, window_bounds = array<i64: 64, 256>}]} {
    %c0 = arith.constant 0 : index
    %c0_0 = arith.constant 0 : index
    %0 = vector.load %arg2[%c0, %c0_0] : memref<64x512xbf16, #tpu.memory_space<vmem>>, vector<64x512xbf16>
    %c0_1 = arith.constant 0 : index
    %c0_2 = arith.constant 0 : index
    %1 = vector.load %arg3[%c0_1, %c0_2] : memref<512x256xbf16, #tpu.memory_space<vmem>>, vector<512x256xbf16>
    %cst = arith.constant dense<0.000000e+00> : vector<64x256xf32>
    %2 = tpu.matmul %0, %1, %cst {dimension_numbers = #tpu.dot_dimension_numbers<[1], [0], [0], [1], [0, 0, 1, 1], [], []>} : vector<64x512xbf16>, vector<512x256xbf16>, vector<64x256xf32> -> vector<64x256xf32>
    %c0_3 = arith.constant 0 : index
    %c0_4 = arith.constant 0 : index
    %3 = vector.load %arg4[%c0_3, %c0_4] : memref<1x256xf32, #tpu.memory_space<vmem>>, vector<1x256xf32>
    %4 = vector.broadcast %3 : vector<1x256xf32> to vector<64x256xf32>
    %5 = arith.addf %2, %4 : vector<64x256xf32>
    %cst_5 = arith.constant 0.000000e+00 : f32
    %6 = vector.broadcast %cst_5 : f32 to vector<64x256xf32>
    %7 = arith.maximumf %5, %6 : vector<64x256xf32>
    %8 = arith.truncf %7 : vector<64x256xf32> to vector<64x256xbf16>
    %c0_6 = arith.constant 0 : index
    %c0_7 = arith.constant 0 : index
    %9 = vector.load %arg5[%c0_6, %c0_7] : memref<64x256xbf16, #tpu.memory_space<vmem>>, vector<64x256xbf16>
    tpu.vector_store %arg5[%c0_6, %c0_7], %8 {strides = array<i32>} : memref<64x256xbf16, #tpu.memory_space<vmem>>, vector<64x256xbf16>,
    return
  }
  func.func @transform_0(%arg0: i32, %arg1: i32) -> (i32, i32) {
    %c0_i32 = arith.constant 0 : i32
    %c0_i32_0 = arith.constant 0 : i32
    return %arg0, %c0_i32 : i32, i32
  }
  func.func @transform_1(%arg0: i32, %arg1: i32) -> (i32, i32) {
    %c0_i32 = arith.constant 0 : i32
    %c0_i32_0 = arith.constant 0 : i32
    return %c0_i32, %arg1 : i32, i32
  }
  func.func @transform_2(%arg0: i32, %arg1: i32) -> (i32, i32) {
    %c0_i32 = arith.constant 0 : i32
    %c0_i32_0 = arith.constant 0 : i32
    return %c0_i32, %arg1 : i32, i32
  }
  func.func @transform_3(%arg0: i32, %arg1: i32) -> (i32, i32) {
    %c0_i32 = arith.constant 0 : i32
    return %arg0, %arg1 : i32, i32
  }
}

module attributes {stable_mosaic.version = 11 : i64} {
  func.func @_phase_matmul_kernel(%arg0: i32, %arg1: i32, %arg2: memref<256x256xbf16, #tpu.memory_space<vmem>>, %arg3: memref<256x128xbf16, #tpu.memory_space<vmem>>, %arg4: memref<1x128xf32, #tpu.memory_space<vmem>>, %arg5: memref<256x128xbf16, #tpu.memory_space<vmem>>) attributes {dimension_semantics = [#tpu.dimension_semantics<parallel>, #tpu.dimension_semantics<parallel>], iteration_bounds = array<i64: 2, 1>, scalar_prefetch = 0 : i64, scratch_operands = 0 : i64, tpu.core_type = #tpu.core_type<tc>, window_params = [{transform_indices = @transform_0, window_bounds = array<i64: 256, 256>}, {transform_indices = @transform_1, window_bounds = array<i64: 256, 128>}, {transform_indices = @transform_2, window_bounds = array<i64: 1, 128>}, {transform_indices = @transform_3, window_bounds = array<i64: 256, 128>}]} {
    %c0 = arith.constant 0 : index
    %c0_0 = arith.constant 0 : index
    %0 = vector.load %arg2[%c0, %c0_0] : memref<256x256xbf16, #tpu.memory_space<vmem>>, vector<256x256xbf16>
    %c0_1 = arith.constant 0 : index
    %c0_2 = arith.constant 0 : index
    %1 = vector.load %arg3[%c0_1, %c0_2] : memref<256x128xbf16, #tpu.memory_space<vmem>>, vector<256x128xbf16>
    %cst = arith.constant dense<0.000000e+00> : vector<256x128xf32>
    %2 = tpu.matmul %0, %1, %cst {dimension_numbers = #tpu.dot_dimension_numbers<[1], [0], [0], [1], [0, 0, 1, 1], [], []>} : vector<256x256xbf16>, vector<256x128xbf16>, vector<256x128xf32> -> vector<256x128xf32>
    %c0_3 = arith.constant 0 : index
    %c0_4 = arith.constant 0 : index
    %3 = vector.load %arg4[%c0_3, %c0_4] : memref<1x128xf32, #tpu.memory_space<vmem>>, vector<1x128xf32>
    %4 = vector.broadcast %3 : vector<1x128xf32> to vector<256x128xf32>
    %5 = arith.addf %2, %4 : vector<256x128xf32>
    %cst_5 = arith.constant 0.000000e+00 : f32
    %6 = vector.broadcast %cst_5 : f32 to vector<256x128xf32>
    %7 = arith.maximumf %5, %6 : vector<256x128xf32>
    %8 = arith.truncf %7 : vector<256x128xf32> to vector<256x128xbf16>
    %c0_6 = arith.constant 0 : index
    %c0_7 = arith.constant 0 : index
    %9 = vector.load %arg5[%c0_6, %c0_7] : memref<256x128xbf16, #tpu.memory_space<vmem>>, vector<256x128xbf16>
    tpu.vector_store %arg5[%c0_6, %c0_7], %8 {strides = array<i32>} : memref<256x128xbf16, #tpu.memory_space<vmem>>, vector<256x128xbf16>,
    return
  }
  func.func @transform_0(%arg0: i32, %arg1: i32) -> (i32, i32) {
    %c0_i32 = arith.constant 0 : i32
    %c0_i32_0 = arith.constant 0 : i32
    return %arg0, %c0_i32 : i32, i32
  }
  func.func @transform_1(%arg0: i32, %arg1: i32) -> (i32, i32) {
    %c0_i32 = arith.constant 0 : i32
    %c0_i32_0 = arith.constant 0 : i32
    return %c0_i32, %arg1 : i32, i32
  }
  func.func @transform_2(%arg0: i32, %arg1: i32) -> (i32, i32) {
    %c0_i32 = arith.constant 0 : i32
    %c0_i32_0 = arith.constant 0 : i32
    return %c0_i32, %arg1 : i32, i32
  }
  func.func @transform_3(%arg0: i32, %arg1: i32) -> (i32, i32) {
    %c0_i32 = arith.constant 0 : i32
    return %arg0, %arg1 : i32, i32
  }
}

module attributes {stable_mosaic.version = 11 : i64} {
  func.func @_phase_matmul_kernel(%arg0: i32, %arg1: i32, %arg2: memref<1024x128xbf16, #tpu.memory_space<vmem>>, %arg3: memref<128x128xbf16, #tpu.memory_space<vmem>>, %arg4: memref<1x128xf32, #tpu.memory_space<vmem>>, %arg5: memref<1024x128xf32, #tpu.memory_space<vmem>>) attributes {dimension_semantics = [#tpu.dimension_semantics<parallel>, #tpu.dimension_semantics<parallel>], iteration_bounds = array<i64: 2, 1>, scalar_prefetch = 0 : i64, scratch_operands = 0 : i64, tpu.core_type = #tpu.core_type<tc>, window_params = [{transform_indices = @transform_0, window_bounds = array<i64: 1024, 128>}, {transform_indices = @transform_1, window_bounds = array<i64: 128, 128>}, {transform_indices = @transform_2, window_bounds = array<i64: 1, 128>}, {transform_indices = @transform_3, window_bounds = array<i64: 1024, 128>}]} {
    %c0 = arith.constant 0 : index
    %c0_0 = arith.constant 0 : index
    %0 = vector.load %arg2[%c0, %c0_0] : memref<1024x128xbf16, #tpu.memory_space<vmem>>, vector<1024x128xbf16>
    %c0_1 = arith.constant 0 : index
    %c0_2 = arith.constant 0 : index
    %1 = vector.load %arg3[%c0_1, %c0_2] : memref<128x128xbf16, #tpu.memory_space<vmem>>, vector<128x128xbf16>
    %cst = arith.constant dense<0.000000e+00> : vector<1024x128xf32>
    %2 = tpu.matmul %0, %1, %cst {dimension_numbers = #tpu.dot_dimension_numbers<[1], [0], [0], [1], [0, 0, 1, 1], [], []>} : vector<1024x128xbf16>, vector<128x128xbf16>, vector<1024x128xf32> -> vector<1024x128xf32>
    %c0_3 = arith.constant 0 : index
    %c0_4 = arith.constant 0 : index
    %3 = vector.load %arg4[%c0_3, %c0_4] : memref<1x128xf32, #tpu.memory_space<vmem>>, vector<1x128xf32>
    %4 = vector.broadcast %3 : vector<1x128xf32> to vector<1024x128xf32>
    %5 = arith.addf %2, %4 : vector<1024x128xf32>
    %6 = arith.negf %5 : vector<1024x128xf32>
    %7 = math.exp %6 : vector<1024x128xf32>
    %cst_5 = arith.constant 1.000000e+00 : f32
    %8 = vector.broadcast %cst_5 : f32 to vector<1024x128xf32>
    %9 = arith.addf %8, %7 : vector<1024x128xf32>
    %10 = arith.divf %8, %9 : vector<1024x128xf32>
    %c0_6 = arith.constant 0 : index
    %c0_7 = arith.constant 0 : index
    %11 = vector.load %arg5[%c0_6, %c0_7] : memref<1024x128xf32, #tpu.memory_space<vmem>>, vector<1024x128xf32>
    tpu.vector_store %arg5[%c0_6, %c0_7], %10 {strides = array<i32>} : memref<1024x128xf32, #tpu.memory_space<vmem>>, vector<1024x128xf32>,
    return
  }
  func.func @transform_0(%arg0: i32, %arg1: i32) -> (i32, i32) {
    %c0_i32 = arith.constant 0 : i32
    %c0_i32_0 = arith.constant 0 : i32
    return %arg0, %c0_i32 : i32, i32
  }
  func.func @transform_1(%arg0: i32, %arg1: i32) -> (i32, i32) {
    %c0_i32 = arith.constant 0 : i32
    %c0_i32_0 = arith.constant 0 : i32
    return %c0_i32, %arg1 : i32, i32
  }
  func.func @transform_2(%arg0: i32, %arg1: i32) -> (i32, i32) {
    %c0_i32 = arith.constant 0 : i32
    %c0_i32_0 = arith.constant 0 : i32
    return %c0_i32, %arg1 : i32, i32
  }
  func.func @transform_3(%arg0: i32, %arg1: i32) -> (i32, i32) {
    %c0_i32 = arith.constant 0 : i32
    return %arg0, %arg1 : i32, i32
  }
}

</mosaic_0001>

<bundles_post_ra>
// kernel: decoder_forward.7
= control target key start
LH: loop header
LB: loop body
LE: loop exit
PB: predicated region body
PF: predicated region fallthrough
CT: control target
= control target key end

     0   :  { %s1365_s12 = smov 0   ;;  %s1367_s13 = smov 0   ;;  %s1648_s0 = inlined_call_operand.vmem [shape: bf16[128,512], index: 0, kind: input, shape index: {}]   ;;  %s1649_s1 = inlined_call_operand.vmem [shape: bf16[512,256], index: 1, kind: input, shape index: {}]   ;;  %s1650_s2 = inlined_call_operand.vmem [shape: f32[1,256], index: 2, kind: input, shape index: {}]   ;;  %s1651_s3 = inlined_call_operand.vmem [shape: bf16[128,256], index: 3, kind: output, shape index: {}]  }
   0x1   :  { %s1369_s14 = smov 0  }
   0x2 LB: > { %s25_s15 = sadd.s32 1, %s1339_s13  ;;  %p1070_p0 = scmp.ge.s32.totalorder %s1343_s14, 1  ;;  %s1343_s14 = sphi %s1369_s14, %s13_s14   ;;  %s1339_s13 = sphi %s1367_s13, %s1653_s13   ;;  %s1335_s12 = sphi %s1365_s12, %s1652_s12  }
   0x3   : > { %p27_p1 = scmp.ge.s32.totalorder %s25_s15, 2  ;;  %p174_p2 = scmp.lt.s32.totalorder %s1343_s14, 3 }
   0x5   : > { %s1655_s15 = smov (%p27_p1, %s25_s15), 0  ;;  %p175_p3 = pnand %p1070_p0, %p174_p2 }
   0x6   : > { %s1071_s30 = sshll.u32 (!%p175_p3), %s1335_s12, 3 }
   0x7   : > { %178 = sbr.rel (%p175_p3) target bundleno = 309 (0x135), region = 32  ;;  %p214_p4 = scmp.lt.s32.totalorder (!%p175_p3), %s1071_s30, 15 }
   0xc   : > { %v1201_v0 = vld [vmem:[%s1649_s1 + $0x74] ss:$8 sps:$4 sm:$0xff]   ;;  %v1205_v2 = vld [vmem:[%s1649_s1 + $0x70] ss:$8 sps:$4 sm:$0xff]   ;;  %v1207_v4 = vld [vmem:[%s1649_s1 + $0x64] ss:$8 sps:$4 sm:$0xff]  }
   0xd   : > { %v1203_v1 = vld [vmem:[%s1649_s1 + $0x174] ss:$8 sps:$4 sm:$0xff]   ;;  %735 = vmatprep.subr.bf16.mxu0 %v1201_v0  ;;  %v1206_v3 = vld [vmem:[%s1649_s1 + $0x170] ss:$8 sps:$4 sm:$0xff]   ;;  %v1209_v5 = vld [vmem:[%s1649_s1 + $0x164] ss:$8 sps:$4 sm:$0xff]  }
   0xe   : > { %808 = vmatprep.subr.bf16.mxu1 %v1203_v1  ;;  %736 = vmatpush1.bf16.msra.mxu0 %v1205_v2  ;;  %v1211_v6 = vld [vmem:[%s1649_s1 + $0x60] ss:$8 sps:$4 sm:$0xff]   ;;  %v1213_v8 = vld [vmem:[%s1649_s1 + $0x54] ss:$8 sps:$4 sm:$0xff]   ;;  %v1217_v10 = vld [vmem:[%s1649_s1 + $0x50] ss:$8 sps:$4 sm:$0xff]  }
   0xf   : > { %809 = vmatpush1.bf16.msra.mxu1 %v1206_v3  ;;  %737 = vmatprep.subr.bf16.mxu0 %v1207_v4  ;;  %v1212_v7 = vld [vmem:[%s1649_s1 + $0x160] ss:$8 sps:$4 sm:$0xff]   ;;  %v1215_v9 = vld [vmem:[%s1649_s1 + $0x154] ss:$8 sps:$4 sm:$0xff]   ;;  %v1218_v11 = vld [vmem:[%s1649_s1 + $0x150] ss:$8 sps:$4 sm:$0xff]  }
  0x10   : > { %810 = vmatprep.subr.bf16.mxu1 %v1209_v5  ;;  %v1219_v12 = vld [vmem:[%s1649_s1 + $0x44] ss:$8 sps:$4 sm:$0xff]   ;;  %v1223_v14 = vld [vmem:[%s1649_s1 + $0x40] ss:$8 sps:$4 sm:$0xff]   ;;  %v1225_v16 = vld [vmem:[%s1649_s1 + $0x34] ss:$8 sps:$4 sm:$0xff]  }
  0x11   : > { %v1221_v13 = vld [vmem:[%s1649_s1 + $0x144] ss:$8 sps:$4 sm:$0xff]   ;;  %v1224_v15 = vld [vmem:[%s1649_s1 + $0x140] ss:$8 sps:$4 sm:$0xff]   ;;  %v1227_v17 = vld [vmem:[%s1649_s1 + $0x134] ss:$8 sps:$4 sm:$0xff]  }
  0x12   : > { %738 = vmatpush1.bf16.msra.mxu0 %v1211_v6  ;;  %v1229_v18 = vld [vmem:[%s1649_s1 + $0x30] ss:$8 sps:$4 sm:$0xff]   ;;  %v1231_v20 = vld [vmem:[%s1649_s1 + $0x24] ss:$8 sps:$4 sm:$0xff]   ;;  %v1235_v22 = vld [vmem:[%s1649_s1 + $0x20] ss:$8 sps:$4 sm:$0xff]  }
  0x13   : > { %811 = vmatpush1.bf16.msra.mxu1 %v1212_v7  ;;  %739 = vmatprep.subr.bf16.mxu0 %v1213_v8  ;;  %v1230_v19 = vld [vmem:[%s1649_s1 + $0x130] ss:$8 sps:$4 sm:$0xff]   ;;  %v1233_v21 = vld [vmem:[%s1649_s1 + $0x124] ss:$8 sps:$4 sm:$0xff]   ;;  %v1236_v23 = vld [vmem:[%s1649_s1 + $0x120] ss:$8 sps:$4 sm:$0xff]  }
  0x14   : > { %812 = vmatprep.subr.bf16.mxu1 %v1215_v9  ;;  %v1237_v24 = vld [vmem:[%s1649_s1 + $0x14] ss:$8 sps:$4 sm:$0xff]   ;;  %v1241_v26 = vld [vmem:[%s1649_s1 + $0x10] ss:$8 sps:$4 sm:$0xff]   ;;  %v1243_v28 = vld [vmem:[%s1649_s1 + $0x4] ss:$8 sps:$4 sm:$0xff]  }
  0x15   : > { %v1239_v25 = vld [vmem:[%s1649_s1 + $0x114] ss:$8 sps:$4 sm:$0xff]   ;;  %v1242_v27 = vld [vmem:[%s1649_s1 + $0x110] ss:$8 sps:$4 sm:$0xff]   ;;  %v1245_v29 = vld [vmem:[%s1649_s1 + $0x104] ss:$8 sps:$4 sm:$0xff]  }
  0x16   : > { %740 = vmatpush1.bf16.msra.mxu0 %v1217_v10  ;;  %v1247_v30 = vld [vmem:[%s1649_s1] ss:$8 sps:$4 sm:$0xff]   ;;  %v1249_v32 = vld [vmem:[%s1649_s1 + $0xf4] ss:$8 sps:$4 sm:$0xff]   ;;  %v1253_v34 = vld [vmem:[%s1649_s1 + $0xf0] ss:$8 sps:$4 sm:$0xff]  }
  0x17   : > { %813 = vmatpush1.bf16.msra.mxu1 %v1218_v11  ;;  %741 = vmatprep.subr.bf16.mxu0 %v1219_v12  ;;  %v1248_v31 = vld [vmem:[%s1649_s1 + $0x100] ss:$8 sps:$4 sm:$0xff]   ;;  %v1251_v33 = vld [vmem:[%s1649_s1 + $0x1f4] ss:$8 sps:$4 sm:$0xff]   ;;  %v1254_v35 = vld [vmem:[%s1649_s1 + $0x1f0] ss:$8 sps:$4 sm:$0xff]  }
  0x18   : > { %814 = vmatprep.subr.bf16.mxu1 %v1221_v13  ;;  %v1255_v36 = vld [vmem:[%s1649_s1 + $0xe4] ss:$8 sps:$4 sm:$0xff]   ;;  %s1657_s30 = smov (!%p214_p4, %s1071_s30), 15  ;;  %v1259_v38 = vld [vmem:[%s1649_s1 + $0xe0] ss:$8 sps:$4 sm:$0xff]  }
  0x19   : > { %v1257_v37 = vld [vmem:[%s1649_s1 + $0x1e4] ss:$8 sps:$4 sm:$0xff]   ;;  %v1260_v39 = vld [vmem:[%s1649_s1 + $0x1e0] ss:$8 sps:$4 sm:$0xff]   ;;  %v1261_v40 = vld [vmem:[%s1649_s1 + $0xd4] ss:$8 sps:$4 sm:$0xff]  }
  0x1a   : > { %742 = vmatpush1.bf16.msra.mxu0 %v1223_v14  ;;  %v1263_v41 = vld [vmem:[%s1649_s1 + $0x1d4] ss:$8 sps:$4 sm:$0xff]   ;;  %s1167_s5 = sshll.u32 %s1657_s30, 4  ;;  %v1265_v42 = vld [vmem:[%s1649_s1 + $0xd0] ss:$8 sps:$4 sm:$0xff]  }
  0x1b   : > { %815 = vmatpush1.bf16.msra.mxu1 %v1224_v15  ;;  %743 = vmatprep.subr.bf16.mxu0 %v1225_v16  ;;  %v1266_v43 = vld [vmem:[%s1649_s1 + $0x1d0] ss:$8 sps:$4 sm:$0xff]   ;;  %v1267_v44 = vld [vmem:[%s1649_s1 + $0xc4] ss:$8 sps:$4 sm:$0xff]   ;;  %s1527_s17 = scalar_lea.vmem %s1648_s0, %s1167_s5  ;;  %v1271_v46 = vld [vmem:[%s1649_s1 + $0xc0] ss:$8 sps:$4 sm:$0xff]   ;;  %v325_v16 = vlaneseq }
  0x1c   : > { %816 = vmatprep.subr.bf16.mxu1 %v1227_v17  ;;  %v1269_v45 = vld [vmem:[%s1649_s1 + $0x1c4] ss:$8 sps:$4 sm:$0xff]   ;;  %v1272_v47 = vld [vmem:[%s1649_s1 + $0x1c0] ss:$8 sps:$4 sm:$0xff]   ;;  %v1273_v48 = vld [vmem:[%s1649_s1 + $0xb4] ss:$8 sps:$4 sm:$0xff]  }
  0x1d   : > { %v1299_v49 = vld [vmem:[%s1527_s17 + $0x4] ss:$16 sps:$4 sm:$0xff]   ;;  %v1302_v51 = vld [vmem:[%s1527_s17 + $0xc] ss:$16 sps:$4 sm:$0xff]   ;;  %v1277_v52 = vld [vmem:[%s1649_s1 + $0xb0] ss:$8 sps:$4 sm:$0xff]  }
  0x1e   : > { %744 = vmatpush1.bf16.msra.mxu0 %v1229_v18  ;;  %v1275_v50 = vld [vmem:[%s1649_s1 + $0x1b4] ss:$8 sps:$4 sm:$0xff]   ;;  %767 = vmatprep.mubr.bf16.mxu0 %v1299_v49  ;;  %v1278_v53 = vld [vmem:[%s1649_s1 + $0x1b0] ss:$8 sps:$4 sm:$0xff]   ;;  %v1279_v54 = vld [vmem:[%s1649_s1 + $0xa4] ss:$8 sps:$4 sm:$0xff]  }
  0x1f   : > { %817 = vmatpush1.bf16.msra.mxu1 %v1230_v19  ;;  %745 = vmatprep.subr.bf16.mxu0 %v1231_v20  ;;  %v1281_v55 = vld [vmem:[%s1649_s1 + $0x1a4] ss:$8 sps:$4 sm:$0xff]   ;;  %v1283_v56 = vld [vmem:[%s1649_s1 + $0xa0] ss:$8 sps:$4 sm:$0xff]   ;;  %v1285_v58 = vld [vmem:[%s1649_s1 + $0x94] ss:$8 sps:$4 sm:$0xff]  }
  0x20   : > { %818 = vmatprep.subr.bf16.mxu1 %v1233_v21  ;;  %840 = vmatprep.mubr.bf16.mxu1 %v1302_v51  ;;  %v1284_v57 = vld [vmem:[%s1649_s1 + $0x1a0] ss:$8 sps:$4 sm:$0xff]   ;;  %v1287_v59 = vld [vmem:[%s1649_s1 + $0x194] ss:$8 sps:$4 sm:$0xff]   ;;  %v1289_v60 = vld [vmem:[%s1649_s1 + $0x90] ss:$8 sps:$4 sm:$0xff]  }
  0x21   : > { %v1290_v61 = vld [vmem:[%s1649_s1 + $0x190] ss:$8 sps:$4 sm:$0xff]   ;;  %v1291_v62 = vld [vmem:[%s1649_s1 + $0x84] ss:$8 sps:$4 sm:$0xff]   ;;  %v1295_v0 = vld [vmem:[%s1649_s1 + $0x80] ss:$8 sps:$4 sm:$0xff]  }
  0x22   : > { %746 = vmatpush1.bf16.msra.mxu0 %v1235_v22  ;;  %v1293_v63 = vld [vmem:[%s1649_s1 + $0x184] ss:$8 sps:$4 sm:$0xff]   ;;  %v1296_v1 = vld [vmem:[%s1649_s1 + $0x180] ss:$8 sps:$4 sm:$0xff]   ;;  %v326_v17 = vshrl.u32 %v325_v16, 7 }
  0x23   : > { %819 = vmatpush1.bf16.msra.mxu1 %v1236_v23  ;;  %747 = vmatprep.subr.bf16.mxu0 %v1237_v24  ;;  %v1297_v2 = vld [vmem:[%s1527_s17] ss:$16 sps:$4 sm:$0xff]   ;;  %v1300_v3 = vld [vmem:[%s1527_s17 + $0x8] ss:$16 sps:$4 sm:$0xff]   ;;  %v1303_v4 = vld [vmem:[%s1527_s17 + $0x24] ss:$16 sps:$4 sm:$0xff]  }
  0x24   : > { %820 = vmatprep.subr.bf16.mxu1 %v1239_v25  ;;  %v1305_v5 = vld [vmem:[%s1527_s17 + $0x2c] ss:$16 sps:$4 sm:$0xff]   ;;  %v1307_v6 = vld [vmem:[%s1527_s17 + $0x20] ss:$16 sps:$4 sm:$0xff]   ;;  %v1308_v7 = vld [vmem:[%s1527_s17 + $0x28] ss:$16 sps:$4 sm:$0xff]  }
  0x25   : > { %v1309_v8 = vld [vmem:[%s1527_s17 + $0x44] ss:$16 sps:$4 sm:$0xff]   ;;  %v1311_v9 = vld [vmem:[%s1527_s17 + $0x4c] ss:$16 sps:$4 sm:$0xff]   ;;  %v1313_v10 = vld [vmem:[%s1527_s17 + $0x40] ss:$16 sps:$4 sm:$0xff]  }
  0x26   : > { %748 = vmatpush1.bf16.msra.mxu0 %v1241_v26  ;;  %v1314_v11 = vld [vmem:[%s1527_s17 + $0x48] ss:$16 sps:$4 sm:$0xff]   ;;  %v1315_v12 = vld [vmem:[%s1527_s17 + $0x64] ss:$16 sps:$4 sm:$0xff]   ;;  %v1317_v13 = vld [vmem:[%s1527_s17 + $0x6c] ss:$16 sps:$4 sm:$0xff]  }
  0x27   : > { %821 = vmatpush1.bf16.msra.mxu1 %v1242_v27  ;;  %749 = vmatprep.subr.bf16.mxu0 %v1243_v28  ;;  %v1319_v14 = vld [vmem:[%s1527_s17 + $0x60] ss:$16 sps:$4 sm:$0xff]   ;;  %v1320_v15 = vld [vmem:[%s1527_s17 + $0x68] ss:$16 sps:$4 sm:$0xff]   ;;  %v327_v18 = vsub.s32 0, %v326_v17  ;;  %v331_v20 = vsub.s32 1, %v326_v17 }
  0x28   : > { %822 = vmatprep.subr.bf16.mxu1 %v1245_v29  ;;  %v323_v19 = vld [vmem:[%s1650_s2] sm:$0x3]  ;;  %s1168_s17 = sshll.u32 %s1657_s30, 3 }
  0x29   : > { %v1605_v21 = vrot.slane %v323_v19, %v327_v18  ;;  %v1607_v22 = vrot.slane %v323_v19, %v331_v20  ;;  %s1617_s12 = scalar_lea.vmem %s1651_s3, %s1168_s17 }
  0x2a   : > { %750 = vmatpush1.bf16.msra.mxu0 %v1247_v30 }
  0x2b   : > { %823 = vmatpush1.bf16.msra.mxu1 %v1248_v31  ;;  %751 = vmatprep.subr.bf16.mxu0 %v1249_v32 }
  0x2c   : > { %824 = vmatprep.subr.bf16.mxu1 %v1251_v33 }
  0x2e   : > { %752 = vmatpush2.bf16.msra.mxu0 %v1253_v34 }
  0x2f   : > { %825 = vmatpush2.bf16.msra.mxu1 %v1254_v35  ;;  %753 = vmatprep.subr.bf16.mxu0 %v1255_v36 }
  0x30   : > { %826 = vmatprep.subr.bf16.mxu1 %v1257_v37 }
  0x32   : > { %754 = vmatpush2.bf16.msra.mxu0 %v1259_v38 }
  0x33   : > { %827 = vmatpush2.bf16.msra.mxu1 %v1260_v39  ;;  %755 = vmatprep.subr.bf16.mxu0 %v1261_v40 }
  0x34   : > { %828 = vmatprep.subr.bf16.mxu1 %v1263_v41 }
  0x36   : > { %756 = vmatpush2.bf16.msra.mxu0 %v1265_v42 }
  0x37   : > { %829 = vmatpush2.bf16.msra.mxu1 %v1266_v43  ;;  %757 = vmatprep.subr.bf16.mxu0 %v1267_v44 }
  0x38   : > { %830 = vmatprep.subr.bf16.mxu1 %v1269_v45 }
  0x3a   : > { %758 = vmatpush2.bf16.msra.mxu0 %v1271_v46 }
  0x3b   : > { %831 = vmatpush2.bf16.msra.mxu1 %v1272_v47  ;;  %759 = vmatprep.subr.bf16.mxu0 %v1273_v48 }
  0x3c   : > { %832 = vmatprep.subr.bf16.mxu1 %v1275_v50 }
  0x3e   : > { %760 = vmatpush2.bf16.msra.mxu0 %v1277_v52 }
  0x3f   : > { %833 = vmatpush2.bf16.msra.mxu1 %v1278_v53  ;;  %761 = vmatprep.subr.bf16.mxu0 %v1279_v54 }
  0x40   : > { %834 = vmatprep.subr.bf16.mxu1 %v1281_v55 }
  0x42   : > { %762 = vmatpush2.bf16.msra.mxu0 %v1283_v56 }
  0x43   : > { %835 = vmatpush2.bf16.msra.mxu1 %v1284_v57  ;;  %763 = vmatprep.subr.bf16.mxu0 %v1285_v58 }
  0x44   : > { %836 = vmatprep.subr.bf16.mxu1 %v1287_v59 }
  0x46   : > { %764 = vmatpush2.bf16.msra.mxu0 %v1289_v60 }
  0x47   : > { %837 = vmatpush2.bf16.msra.mxu1 %v1290_v61  ;;  %765 = vmatprep.subr.bf16.mxu0 %v1291_v62 }
  0x48   : > { %838 = vmatprep.subr.bf16.mxu1 %v1293_v63 }
  0x4a   : > { %766 = vmatpush2.bf16.msra.mxu0 %v1295_v0 }
  0x4b   : > { %839 = vmatpush2.bf16.msra.mxu1 %v1296_v1 }
  0x4d   : > { %768 = vmatmul.mubr.bf16.vlgmr.msra.gmra.mxu0 %v1297_v2 }
  0x4e   : > { %841 = vmatmul.mubr.bf16.vlgmr.msra.gmra.mxu1 %v1300_v3  ;;  %777 = vmatprep.mubr.bf16.mxu0 %v1303_v4 }
  0x4f   : > { %850 = vmatprep.mubr.bf16.mxu1 %v1305_v5 }
  0x55   : > { %778 = vmatmul.mubr.bf16.gmra.mxu0 %v1307_v6 }
  0x56   : > { %851 = vmatmul.mubr.bf16.gmra.mxu1 %v1308_v7  ;;  %787 = vmatprep.mubr.bf16.mxu0 %v1309_v8 }
  0x57   : > { %860 = vmatprep.mubr.bf16.mxu1 %v1311_v9 }
  0x5d   : > { %788 = vmatmul.mubr.bf16.gmra.mxu0 %v1313_v10 }
  0x5e   : > { %861 = vmatmul.mubr.bf16.gmra.mxu1 %v1314_v11  ;;  %797 = vmatprep.mubr.bf16.mxu0 %v1315_v12 }
  0x5f   : > { %870 = vmatprep.mubr.bf16.mxu1 %v1317_v13 }
  0x65   : > { %798 = vmatmul.mubr.bf16.gmra.mxu0 %v1319_v14 }
  0x66   : > { %871 = vmatmul.mubr.bf16.gmra.mxu1 %v1320_v15 }
 0x10d   : > { %v769_v23 = vpop.f32.mrf.mxu0 }
 0x10e   : > { %v842_v24 = vpop.f32.mrf.mxu1  ;;  %v770_v25 = vadd.f32 %v769_v23, %v1605_v21 }
 0x10f   : > { %v771_v26 = vpop.f32.mrf.mxu0 }
 0x110   : > { %v844_v27 = vpop.f32.mrf.mxu1  ;;  %v843_v28 = vadd.f32 %v842_v24, %v770_v25  ;;  %v772_v29 = vadd.f32 %v771_v26, %v1607_v22 }
 0x111   : > { %v773_v30 = vpop.f32.mrf.mxu0 }
 0x112   : > { %v846_v31 = vpop.f32.mrf.mxu1  ;;  %v845_v32 = vadd.f32 %v844_v27, %v772_v29  ;;  %v774_v33 = vadd.f32 %v773_v30, %v1605_v21  ;;  %v881_v36 = vmax.f32 %v843_v28, 0.0 }
 0x113   : > { %v775_v34 = vpop.f32.mrf.mxu0 }
 0x114   : > { %v848_v35 = vpop.f32.mrf.mxu1  ;;  %v882_v37 = vmax.f32 %v845_v32, 0.0  ;;  %v847_v38 = vadd.f32 %v846_v31, %v774_v33  ;;  %v776_v39 = vadd.f32 %v775_v34, %v1607_v22 }
 0x115   : > { %v779_v40 = vpop.f32.mrf.mxu0 }
 0x116   : > { %v852_v41 = vpop.f32.mrf.mxu1  ;;  %v1169_v42 = vpack.c.bf16 %v882_v37, %v881_v36  ;;  %v849_v43 = vadd.f32 %v848_v35, %v776_v39  ;;  %v780_v44 = vadd.f32 %v779_v40, %v1605_v21  ;;  %v883_v47 = vmax.f32 %v847_v38, 0.0 }
 0x117   : > { %v781_v45 = vpop.f32.mrf.mxu0 }
 0x118   : > { %v854_v46 = vpop.f32.mrf.mxu1  ;;  %945 = vst [vmem:[%s1617_s12] sm:$0xff] %v1169_v42  ;;  %v884_v48 = vmax.f32 %v849_v43, 0.0  ;;  %v853_v49 = vadd.f32 %v852_v41, %v780_v44  ;;  %v782_v50 = vadd.f32 %v781_v45, %v1607_v22 }
 0x119   : > { %v783_v51 = vpop.f32.mrf.mxu0 }
 0x11a   : > { %v856_v52 = vpop.f32.mrf.mxu1  ;;  %v1170_v53 = vpack.c.bf16 %v884_v48, %v883_v47  ;;  %v855_v54 = vadd.f32 %v854_v46, %v782_v50  ;;  %v784_v55 = vadd.f32 %v783_v51, %v1605_v21  ;;  %v885_v58 = vmax.f32 %v853_v49, 0.0 }
 0x11b   : > { %v785_v56 = vpop.f32.mrf.mxu0 }
 0x11c   : > { %v858_v57 = vpop.f32.mrf.mxu1  ;;  %946 = vst [vmem:[%s1617_s12 + $0x8] sm:$0xff] %v1170_v53  ;;  %v886_v59 = vmax.f32 %v855_v54, 0.0  ;;  %v857_v60 = vadd.f32 %v856_v52, %v784_v55  ;;  %v786_v61 = vadd.f32 %v785_v56, %v1607_v22 }
 0x11d   : > { %v789_v62 = vpop.f32.mrf.mxu0 }
 0x11e   : > { %v862_v63 = vpop.f32.mrf.mxu1  ;;  %v1171_v0 = vpack.c.bf16 %v886_v59, %v885_v58  ;;  %v859_v1 = vadd.f32 %v858_v57, %v786_v61  ;;  %v790_v2 = vadd.f32 %v789_v62, %v1605_v21  ;;  %v887_v5 = vmax.f32 %v857_v60, 0.0 }
 0x11f   : > { %v791_v3 = vpop.f32.mrf.mxu0 }
 0x120   : > { %v864_v4 = vpop.f32.mrf.mxu1  ;;  %947 = vst [vmem:[%s1617_s12 + $0x10] sm:$0xff] %v1171_v0  ;;  %v888_v6 = vmax.f32 %v859_v1, 0.0  ;;  %v863_v7 = vadd.f32 %v862_v63, %v790_v2  ;;  %v792_v8 = vadd.f32 %v791_v3, %v1607_v22 }
 0x121   : > { %v793_v9 = vpop.f32.mrf.mxu0 }
 0x122   : > { %v866_v10 = vpop.f32.mrf.mxu1  ;;  %v1172_v11 = vpack.c.bf16 %v888_v6, %v887_v5  ;;  %v865_v12 = vadd.f32 %v864_v4, %v792_v8  ;;  %v794_v13 = vadd.f32 %v793_v9, %v1605_v21  ;;  %v889_v16 = vmax.f32 %v863_v7, 0.0 }
 0x123   : > { %v795_v14 = vpop.f32.mrf.mxu0 }
 0x124   : > { %v868_v15 = vpop.f32.mrf.mxu1  ;;  %948 = vst [vmem:[%s1617_s12 + $0x18] sm:$0xff] %v1172_v11  ;;  %v890_v17 = vmax.f32 %v865_v12, 0.0  ;;  %v867_v18 = vadd.f32 %v866_v10, %v794_v13  ;;  %v796_v19 = vadd.f32 %v795_v14, %v1607_v22 }
 0x125   : > { %v799_v20 = vpop.f32.mrf.mxu0 }
 0x126   : > { %v872_v23 = vpop.f32.mrf.mxu1  ;;  %v1173_v24 = vpack.c.bf16 %v890_v17, %v889_v16  ;;  %v869_v25 = vadd.f32 %v868_v15, %v796_v19  ;;  %v800_v26 = vadd.f32 %v799_v20, %v1605_v21  ;;  %v891_v29 = vmax.f32 %v867_v18, 0.0 }
 0x127   : > { %v801_v27 = vpop.f32.mrf.mxu0 }
 0x128   : > { %v874_v28 = vpop.f32.mrf.mxu1  ;;  %949 = vst [vmem:[%s1617_s12 + $0x20] sm:$0xff] %v1173_v24  ;;  %v892_v30 = vmax.f32 %v869_v25, 0.0  ;;  %v873_v31 = vadd.f32 %v872_v23, %v800_v26  ;;  %v802_v32 = vadd.f32 %v801_v27, %v1607_v22 }
 0x129   : > { %v803_v33 = vpop.f32.mrf.mxu0 }
 0x12a   : > { %v876_v34 = vpop.f32.mrf.mxu1  ;;  %v1174_v35 = vpack.c.bf16 %v892_v30, %v891_v29  ;;  %v875_v36 = vadd.f32 %v874_v28, %v802_v32  ;;  %v804_v37 = vadd.f32 %v803_v33, %v1605_v21  ;;  %v893_v39 = vmax.f32 %v873_v31, 0.0 }
 0x12b   : > { %v805_v38 = vpop.f32.mrf.mxu0 }
 0x12c   : > { %950 = vst [vmem:[%s1617_s12 + $0x28] sm:$0xff] %v1174_v35  ;;  %v894_v40 = vmax.f32 %v875_v36, 0.0  ;;  %v877_v41 = vadd.f32 %v876_v34, %v804_v37  ;;  %v806_v42 = vadd.f32 %v805_v38, %v1607_v22  ;;  %v878_v43 = vpop.f32.mrf.mxu1 }
 0x12e   : > { %v1175_v44 = vpack.c.bf16 %v894_v40, %v893_v39  ;;  %v879_v45 = vadd.f32 %v878_v43, %v806_v42  ;;  %v895_v46 = vmax.f32 %v877_v41, 0.0 }
 0x130   : > { %951 = vst [vmem:[%s1617_s12 + $0x30] sm:$0xff] %v1175_v44  ;;  %v896_v47 = vmax.f32 %v879_v45, 0.0 }
 0x132   : > { %v1176_v48 = vpack.c.bf16 %v896_v47, %v895_v46 }
 0x134   : > { %952 = vst [vmem:[%s1617_s12 + $0x38] sm:$0xff] %v1176_v48 }
 0x135 PF: > { %s13_s14 = sadd.s32 1, %s1343_s14   ;;  %s1652_s12 = smov %s1339_s13 }
 0x136   : > { %p10_p5 = scmp.ge.s32.totalorder %s13_s14, 4   ;;  %s1653_s13 = smov %s1655_s15 }
 0x138   :  { %12 = sbr.rel (!%p10_p5) target bundleno = 2 (0x2), region = 68 }

// kernel: decoder_forward.6
= control target key start
LH: loop header
LB: loop body
LE: loop exit
PB: predicated region body
PF: predicated region fallthrough
CT: control target
= control target key end

     0   :  { %s3081_s12 = smov 0   ;;  %s3083_s13 = smov 0   ;;  %s3956_s0 = inlined_call_operand.vmem [shape: bf16[32,1024], index: 0, kind: input, shape index: {}]   ;;  %s3957_s1 = inlined_call_operand.vmem [shape: bf16[1024,512], index: 1, kind: input, shape index: {}]   ;;  %s3958_s2 = inlined_call_operand.vmem [shape: f32[1,512], index: 2, kind: input, shape index: {}]   ;;  %s3959_s3 = inlined_call_operand.vmem [shape: bf16[32,512], index: 3, kind: output, shape index: {}]  }
   0x1   :  { %s3085_s14 = smov 0  }
   0x2 LB: > { %s25_s15 = sadd.s32 1, %s3055_s13  ;;  %p2346_p0 = scmp.ge.s32.totalorder %s3059_s14, 1  ;;  %s3059_s14 = sphi %s3085_s14, %s13_s14   ;;  %s3055_s13 = sphi %s3083_s13, %s3961_s13   ;;  %s3051_s12 = sphi %s3081_s12, %s3960_s12  }
   0x3   : > { %p27_p1 = scmp.ge.s32.totalorder %s25_s15, 2  ;;  %p174_p2 = scmp.lt.s32.totalorder %s3059_s14, 3 }
   0x5   : > { %s3963_s15 = smov (%p27_p1, %s25_s15), 0  ;;  %p175_p3 = pnand %p2346_p0, %p174_p2 }
   0x6   : > { %s2347_s30 = sshll.u32 (!%p175_p3), %s3051_s12, 1 }
   0x7   : > { %178 = sbr.rel (%p175_p3) target bundleno = 477 (0x1dd), region = 32  ;;  %p214_p4 = scmp.lt.s32.totalorder (!%p175_p3), %s2347_s30, 3 }
   0xc   : > { %v2653_v0 = vld [vmem:[%s3957_s1 + $0xe4] ss:$16 sps:$4 sm:$0xff]   ;;  %v2657_v2 = vld [vmem:[%s3957_s1 + $0xe0] ss:$16 sps:$4 sm:$0xff]   ;;  %s3965_s30 = smov (!%p214_p4, %s2347_s30), 3 }
   0xd   : > { %v2655_v1 = vld [vmem:[%s3957_s1 + $0x2e4] ss:$16 sps:$4 sm:$0xff]   ;;  %1849 = vmatprep.subr.bf16.mxu0 %v2653_v0  ;;  %v2658_v3 = vld [vmem:[%s3957_s1 + $0x2e0] ss:$16 sps:$4 sm:$0xff]   ;;  %s2623_s29 = sshll.u32 %s3965_s30, 5  ;;  %s2624_s5 = sshll.u32 %s3965_s30, 4 }
   0xe   : > { %1892 = vmatprep.subr.bf16.mxu1 %v2655_v1  ;;  %v2659_v4 = vld [vmem:[%s3957_s1 + $0xc4] ss:$16 sps:$4 sm:$0xff]   ;;  %1850 = vmatpush1.bf16.msra.mxu0 %v2657_v2  ;;  %v2663_v6 = vld [vmem:[%s3957_s1 + $0xc0] ss:$16 sps:$4 sm:$0xff]   ;;  %s3240_s12 = scalar_lea.vmem %s3956_s0, %s2623_s29  ;;  %s3941_s8 = scalar_lea.vmem %s3959_s3, %s2624_s5 }
   0xf   : > { %1893 = vmatpush1.bf16.msra.mxu1 %v2658_v3  ;;  %v2661_v5 = vld [vmem:[%s3957_s1 + $0x2c4] ss:$16 sps:$4 sm:$0xff]   ;;  %1851 = vmatprep.subr.bf16.mxu0 %v2659_v4  ;;  %v2664_v7 = vld [vmem:[%s3957_s1 + $0x2c0] ss:$16 sps:$4 sm:$0xff]   ;;  %v244_v50 = vld [vmem:[%s3240_s12 + $0x8] sm:$0xff] }
  0x10   : > { %1894 = vmatprep.subr.bf16.mxu1 %v2661_v5  ;;  %v2665_v8 = vld [vmem:[%s3957_s1 + $0xa4] ss:$16 sps:$4 sm:$0xff]   ;;  %v2669_v10 = vld [vmem:[%s3957_s1 + $0xa0] ss:$16 sps:$4 sm:$0xff]   ;;  %v248_v51 = vld [vmem:[%s3240_s12 + $0x28] sm:$0xff] }
  0x11   : > { %v2667_v9 = vld [vmem:[%s3957_s1 + $0x2a4] ss:$16 sps:$4 sm:$0xff]   ;;  %v2670_v11 = vld [vmem:[%s3957_s1 + $0x2a0] ss:$16 sps:$4 sm:$0xff]   ;;  %v3266_v55 = vcombine.high %v244_v50, %v248_v51 }
  0x12   : > { %1852 = vmatpush1.bf16.msra.mxu0 %v2663_v6  ;;  %v2671_v12 = vld [vmem:[%s3957_s1 + $0x84] ss:$16 sps:$4 sm:$0xff]   ;;  %v2675_v14 = vld [vmem:[%s3957_s1 + $0x80] ss:$16 sps:$4 sm:$0xff]  }
  0x13   : > { %1895 = vmatpush1.bf16.msra.mxu1 %v2664_v7  ;;  %1853 = vmatprep.subr.bf16.mxu0 %v2665_v8  ;;  %v2673_v13 = vld [vmem:[%s3957_s1 + $0x284] ss:$16 sps:$4 sm:$0xff]   ;;  %v2676_v15 = vld [vmem:[%s3957_s1 + $0x280] ss:$16 sps:$4 sm:$0xff]  }
  0x14   : > { %1896 = vmatprep.subr.bf16.mxu1 %v2667_v9  ;;  %v2677_v16 = vld [vmem:[%s3957_s1 + $0x64] ss:$16 sps:$4 sm:$0xff]   ;;  %v2681_v18 = vld [vmem:[%s3957_s1 + $0x60] ss:$16 sps:$4 sm:$0xff]   ;;  %1924 = vmatprep.mubr.bf16.mxu1 %v3266_v55  ;;  %v3320_v9 = vcombine.low %v244_v50, %v248_v51 }
  0x15   : > { %v2679_v17 = vld [vmem:[%s3957_s1 + $0x264] ss:$16 sps:$4 sm:$0xff]   ;;  %v2682_v19 = vld [vmem:[%s3957_s1 + $0x260] ss:$16 sps:$4 sm:$0xff]  }
  0x16   : > { %1854 = vmatpush1.bf16.msra.mxu0 %v2669_v10  ;;  %v2683_v20 = vld [vmem:[%s3957_s1 + $0x44] ss:$16 sps:$4 sm:$0xff]   ;;  %v2687_v22 = vld [vmem:[%s3957_s1 + $0x40] ss:$16 sps:$4 sm:$0xff]  }
  0x17   : > { %1897 = vmatpush1.bf16.msra.mxu1 %v2670_v11  ;;  %1855 = vmatprep.subr.bf16.mxu0 %v2671_v12  ;;  %v2685_v21 = vld [vmem:[%s3957_s1 + $0x244] ss:$16 sps:$4 sm:$0xff]   ;;  %v2688_v23 = vld [vmem:[%s3957_s1 + $0x240] ss:$16 sps:$4 sm:$0xff]  }
  0x18   : > { %1898 = vmatprep.subr.bf16.mxu1 %v2673_v13  ;;  %v2689_v24 = vld [vmem:[%s3957_s1 + $0x24] ss:$16 sps:$4 sm:$0xff]   ;;  %v2693_v26 = vld [vmem:[%s3957_s1 + $0x20] ss:$16 sps:$4 sm:$0xff]  }
  0x19   : > { %v2691_v25 = vld [vmem:[%s3957_s1 + $0x224] ss:$16 sps:$4 sm:$0xff]   ;;  %v2694_v27 = vld [vmem:[%s3957_s1 + $0x220] ss:$16 sps:$4 sm:$0xff]  }
  0x1a   : > { %1856 = vmatpush1.bf16.msra.mxu0 %v2675_v14  ;;  %v2695_v28 = vld [vmem:[%s3957_s1 + $0x4] ss:$16 sps:$4 sm:$0xff]   ;;  %v2699_v30 = vld [vmem:[%s3957_s1] ss:$16 sps:$4 sm:$0xff]  }
  0x1b   : > { %1899 = vmatpush1.bf16.msra.mxu1 %v2676_v15  ;;  %1857 = vmatprep.subr.bf16.mxu0 %v2677_v16  ;;  %v2697_v29 = vld [vmem:[%s3957_s1 + $0x204] ss:$16 sps:$4 sm:$0xff]   ;;  %v2700_v31 = vld [vmem:[%s3957_s1 + $0x200] ss:$16 sps:$4 sm:$0xff]  }
  0x1c   : > { %1900 = vmatprep.subr.bf16.mxu1 %v2679_v17  ;;  %v2701_v32 = vld [vmem:[%s3957_s1 + $0x1e4] ss:$16 sps:$4 sm:$0xff]   ;;  %v2705_v34 = vld [vmem:[%s3957_s1 + $0x1e0] ss:$16 sps:$4 sm:$0xff]  }
  0x1d   : > { %v2703_v33 = vld [vmem:[%s3957_s1 + $0x3e4] ss:$16 sps:$4 sm:$0xff]   ;;  %v2706_v35 = vld [vmem:[%s3957_s1 + $0x3e0] ss:$16 sps:$4 sm:$0xff]  }
  0x1e   : > { %1858 = vmatpush1.bf16.msra.mxu0 %v2681_v18  ;;  %v2707_v36 = vld [vmem:[%s3957_s1 + $0x1c4] ss:$16 sps:$4 sm:$0xff]   ;;  %v2711_v38 = vld [vmem:[%s3957_s1 + $0x1c0] ss:$16 sps:$4 sm:$0xff]  }
  0x1f   : > { %1901 = vmatpush1.bf16.msra.mxu1 %v2682_v19  ;;  %1859 = vmatprep.subr.bf16.mxu0 %v2683_v20  ;;  %v2709_v37 = vld [vmem:[%s3957_s1 + $0x3c4] ss:$16 sps:$4 sm:$0xff]   ;;  %v2712_v39 = vld [vmem:[%s3957_s1 + $0x3c0] ss:$16 sps:$4 sm:$0xff]  }
  0x20   : > { %1902 = vmatprep.subr.bf16.mxu1 %v2685_v21  ;;  %v2713_v40 = vld [vmem:[%s3957_s1 + $0x1a4] ss:$16 sps:$4 sm:$0xff]   ;;  %v2717_v42 = vld [vmem:[%s3957_s1 + $0x1a0] ss:$16 sps:$4 sm:$0xff]  }
  0x21   : > { %v2715_v41 = vld [vmem:[%s3957_s1 + $0x3a4] ss:$16 sps:$4 sm:$0xff]   ;;  %v2718_v43 = vld [vmem:[%s3957_s1 + $0x3a0] ss:$16 sps:$4 sm:$0xff]  }
  0x22   : > { %1860 = vmatpush1.bf16.msra.mxu0 %v2687_v22  ;;  %v2719_v44 = vld [vmem:[%s3957_s1 + $0x184] ss:$16 sps:$4 sm:$0xff]   ;;  %v2723_v46 = vld [vmem:[%s3957_s1 + $0x180] ss:$16 sps:$4 sm:$0xff]  }
  0x23   : > { %1903 = vmatpush1.bf16.msra.mxu1 %v2688_v23  ;;  %1861 = vmatprep.subr.bf16.mxu0 %v2689_v24  ;;  %v2721_v45 = vld [vmem:[%s3957_s1 + $0x384] ss:$16 sps:$4 sm:$0xff]   ;;  %v2724_v47 = vld [vmem:[%s3957_s1 + $0x380] ss:$16 sps:$4 sm:$0xff]  }
  0x24   : > { %1904 = vmatprep.subr.bf16.mxu1 %v2691_v25  ;;  %v243_v48 = vld [vmem:[%s3240_s12] sm:$0xff] }
  0x25   : > { %v247_v49 = vld [vmem:[%s3240_s12 + $0x20] sm:$0xff] }
  0x26   : > { %1862 = vmatpush1.bf16.msra.mxu0 %v2693_v26  ;;  %v2725_v52 = vld [vmem:[%s3957_s1 + $0x164] ss:$16 sps:$4 sm:$0xff]   ;;  %v3261_v53 = vcombine.high %v243_v48, %v247_v49  ;;  %v2729_v56 = vld [vmem:[%s3957_s1 + $0x160] ss:$16 sps:$4 sm:$0xff]   ;;  %v3318_v8 = vcombine.low %v243_v48, %v247_v49 }
  0x27   : > { %1905 = vmatpush1.bf16.msra.mxu1 %v2694_v27  ;;  %1863 = vmatprep.subr.bf16.mxu0 %v2695_v28  ;;  %v2727_v54 = vld [vmem:[%s3957_s1 + $0x364] ss:$16 sps:$4 sm:$0xff]   ;;  %v2730_v57 = vld [vmem:[%s3957_s1 + $0x360] ss:$16 sps:$4 sm:$0xff]  }
  0x28   : > { %1906 = vmatprep.subr.bf16.mxu1 %v2697_v29  ;;  %1881 = vmatprep.mubr.bf16.mxu0 %v3261_v53  ;;  %v2731_v58 = vld [vmem:[%s3957_s1 + $0x144] ss:$16 sps:$4 sm:$0xff]   ;;  %v2735_v60 = vld [vmem:[%s3957_s1 + $0x140] ss:$16 sps:$4 sm:$0xff]  }
  0x29   : > { %v2733_v59 = vld [vmem:[%s3957_s1 + $0x344] ss:$16 sps:$4 sm:$0xff]   ;;  %v2736_v61 = vld [vmem:[%s3957_s1 + $0x340] ss:$16 sps:$4 sm:$0xff]  }
  0x2a   : > { %1864 = vmatpush1.bf16.msra.mxu0 %v2699_v30  ;;  %v2737_v62 = vld [vmem:[%s3957_s1 + $0x124] ss:$16 sps:$4 sm:$0xff]   ;;  %v2741_v0 = vld [vmem:[%s3957_s1 + $0x120] ss:$16 sps:$4 sm:$0xff]  }
  0x2b   : > { %1907 = vmatpush1.bf16.msra.mxu1 %v2700_v31  ;;  %1865 = vmatprep.subr.bf16.mxu0 %v2701_v32  ;;  %v2739_v63 = vld [vmem:[%s3957_s1 + $0x324] ss:$16 sps:$4 sm:$0xff]   ;;  %v2742_v1 = vld [vmem:[%s3957_s1 + $0x320] ss:$16 sps:$4 sm:$0xff]  }
  0x2c   : > { %1908 = vmatprep.subr.bf16.mxu1 %v2703_v33  ;;  %v2743_v2 = vld [vmem:[%s3957_s1 + $0x104] ss:$16 sps:$4 sm:$0xff]   ;;  %v2747_v4 = vld [vmem:[%s3957_s1 + $0x100] ss:$16 sps:$4 sm:$0xff]  }
  0x2d   : > { %v2745_v3 = vld [vmem:[%s3957_s1 + $0x304] ss:$16 sps:$4 sm:$0xff]   ;;  %v2748_v5 = vld [vmem:[%s3957_s1 + $0x300] ss:$16 sps:$4 sm:$0xff]  }
  0x2e   : > { %1866 = vmatpush2.bf16.msra.mxu0 %v2705_v34  ;;  %v2751_v6 = vld [vmem:[%s3957_s1 + $0x4e4] ss:$16 sps:$4 sm:$0xff]   ;;  %v2749_v10 = vld [vmem:[%s3957_s1 + $0x4e0] ss:$16 sps:$4 sm:$0xff]  }
  0x2f   : > { %1909 = vmatpush2.bf16.msra.mxu1 %v2706_v35  ;;  %1867 = vmatprep.subr.bf16.mxu0 %v2707_v36  ;;  %v2754_v7 = vld [vmem:[%s3957_s1 + $0x6e4] ss:$16 sps:$4 sm:$0xff]   ;;  %v2752_v11 = vld [vmem:[%s3957_s1 + $0x6e0] ss:$16 sps:$4 sm:$0xff]  }
  0x30   : > { %1910 = vmatprep.subr.bf16.mxu1 %v2709_v37  ;;  %v2757_v12 = vld [vmem:[%s3957_s1 + $0x4c4] ss:$16 sps:$4 sm:$0xff]   ;;  %v2755_v14 = vld [vmem:[%s3957_s1 + $0x4c0] ss:$16 sps:$4 sm:$0xff]  }
  0x31   : > { %v2760_v13 = vld [vmem:[%s3957_s1 + $0x6c4] ss:$16 sps:$4 sm:$0xff]   ;;  %v2758_v15 = vld [vmem:[%s3957_s1 + $0x6c0] ss:$16 sps:$4 sm:$0xff]  }
  0x32   : > { %1868 = vmatpush2.bf16.msra.mxu0 %v2711_v38  ;;  %v2763_v16 = vld [vmem:[%s3957_s1 + $0x4a4] ss:$16 sps:$4 sm:$0xff]   ;;  %v2761_v18 = vld [vmem:[%s3957_s1 + $0x4a0] ss:$16 sps:$4 sm:$0xff]   ;;  %v3409_v38 = vld [vmem:[%s3240_s12 + $0x18] sm:$0xff] }
  0x33   : > { %1911 = vmatpush2.bf16.msra.mxu1 %v2712_v39  ;;  %1869 = vmatprep.subr.bf16.mxu0 %v2713_v40  ;;  %v2766_v17 = vld [vmem:[%s3957_s1 + $0x6a4] ss:$16 sps:$4 sm:$0xff]   ;;  %v2764_v19 = vld [vmem:[%s3957_s1 + $0x6a0] ss:$16 sps:$4 sm:$0xff]   ;;  %v3412_v39 = vld [vmem:[%s3240_s12 + $0x38] sm:$0xff] }
  0x34   : > { %1912 = vmatprep.subr.bf16.mxu1 %v2715_v41  ;;  %v2769_v20 = vld [vmem:[%s3957_s1 + $0x484] ss:$16 sps:$4 sm:$0xff]   ;;  %v2767_v22 = vld [vmem:[%s3957_s1 + $0x480] ss:$16 sps:$4 sm:$0xff]  }
  0x35   : > { %v2772_v21 = vld [vmem:[%s3957_s1 + $0x684] ss:$16 sps:$4 sm:$0xff]   ;;  %v2770_v23 = vld [vmem:[%s3957_s1 + $0x680] ss:$16 sps:$4 sm:$0xff]  }
  0x36   : > { %1870 = vmatpush2.bf16.msra.mxu0 %v2717_v42  ;;  %v2775_v24 = vld [vmem:[%s3957_s1 + $0x464] ss:$16 sps:$4 sm:$0xff]   ;;  %v2773_v26 = vld [vmem:[%s3957_s1 + $0x460] ss:$16 sps:$4 sm:$0xff]  }
  0x37   : > { %1913 = vmatpush2.bf16.msra.mxu1 %v2718_v43  ;;  %1871 = vmatprep.subr.bf16.mxu0 %v2719_v44  ;;  %v2778_v25 = vld [vmem:[%s3957_s1 + $0x664] ss:$16 sps:$4 sm:$0xff]   ;;  %v2776_v27 = vld [vmem:[%s3957_s1 + $0x660] ss:$16 sps:$4 sm:$0xff]   ;;  %v3426_v43 = vcombine.high %v3409_v38, %v3412_v39 }
  0x38   : > { %1914 = vmatprep.subr.bf16.mxu1 %v2721_v45  ;;  %v2781_v28 = vld [vmem:[%s3957_s1 + $0x444] ss:$16 sps:$4 sm:$0xff]   ;;  %v2779_v30 = vld [vmem:[%s3957_s1 + $0x440] ss:$16 sps:$4 sm:$0xff]  }
  0x39   : > { %v2784_v29 = vld [vmem:[%s3957_s1 + $0x644] ss:$16 sps:$4 sm:$0xff]   ;;  %v2782_v31 = vld [vmem:[%s3957_s1 + $0x640] ss:$16 sps:$4 sm:$0xff]  }
  0x3a   : > { %1872 = vmatpush2.bf16.msra.mxu0 %v2723_v46  ;;  %v2787_v32 = vld [vmem:[%s3957_s1 + $0x424] ss:$16 sps:$4 sm:$0xff]   ;;  %v2785_v34 = vld [vmem:[%s3957_s1 + $0x420] ss:$16 sps:$4 sm:$0xff]  }
  0x3b   : > { %1915 = vmatpush2.bf16.msra.mxu1 %v2724_v47  ;;  %1873 = vmatprep.subr.bf16.mxu0 %v2725_v52  ;;  %v2790_v33 = vld [vmem:[%s3957_s1 + $0x624] ss:$16 sps:$4 sm:$0xff]   ;;  %v2788_v35 = vld [vmem:[%s3957_s1 + $0x620] ss:$16 sps:$4 sm:$0xff]  }
  0x3c   : > { %1916 = vmatprep.subr.bf16.mxu1 %v2727_v54  ;;  %v3403_v36 = vld [vmem:[%s3240_s12 + $0x10] sm:$0xff] }
  0x3d   : > { %v3406_v37 = vld [vmem:[%s3240_s12 + $0x30] sm:$0xff] }
  0x3e   : > { %1874 = vmatpush2.bf16.msra.mxu0 %v2729_v56  ;;  %v2793_v40 = vld [vmem:[%s3957_s1 + $0x404] ss:$16 sps:$4 sm:$0xff]   ;;  %v3419_v41 = vcombine.high %v3403_v36, %v3406_v37  ;;  %v2791_v44 = vld [vmem:[%s3957_s1 + $0x400] ss:$16 sps:$4 sm:$0xff]  }
  0x3f   : > { %1917 = vmatpush2.bf16.msra.mxu1 %v2730_v57  ;;  %1875 = vmatprep.subr.bf16.mxu0 %v2731_v58  ;;  %v2796_v42 = vld [vmem:[%s3957_s1 + $0x604] ss:$16 sps:$4 sm:$0xff]   ;;  %v2794_v45 = vld [vmem:[%s3957_s1 + $0x600] ss:$16 sps:$4 sm:$0xff]  }
  0x40   : > { %1918 = vmatprep.subr.bf16.mxu1 %v2733_v59  ;;  %v2799_v46 = vld [vmem:[%s3957_s1 + $0x5e4] ss:$16 sps:$4 sm:$0xff]   ;;  %v2797_v48 = vld [vmem:[%s3957_s1 + $0x5e0] ss:$16 sps:$4 sm:$0xff]  }
  0x41   : > { %v2802_v47 = vld [vmem:[%s3957_s1 + $0x7e4] ss:$16 sps:$4 sm:$0xff]   ;;  %v2800_v49 = vld [vmem:[%s3957_s1 + $0x7e0] ss:$16 sps:$4 sm:$0xff]  }
  0x42   : > { %1876 = vmatpush2.bf16.msra.mxu0 %v2735_v60  ;;  %v2805_v50 = vld [vmem:[%s3957_s1 + $0x5c4] ss:$16 sps:$4 sm:$0xff]   ;;  %v2803_v52 = vld [vmem:[%s3957_s1 + $0x5c0] ss:$16 sps:$4 sm:$0xff]  }
  0x43   : > { %1919 = vmatpush2.bf16.msra.mxu1 %v2736_v61  ;;  %1877 = vmatprep.subr.bf16.mxu0 %v2737_v62  ;;  %v2808_v51 = vld [vmem:[%s3957_s1 + $0x7c4] ss:$16 sps:$4 sm:$0xff]   ;;  %v2806_v54 = vld [vmem:[%s3957_s1 + $0x7c0] ss:$16 sps:$4 sm:$0xff]  }
  0x44   : > { %1920 = vmatprep.subr.bf16.mxu1 %v2739_v63  ;;  %v2811_v56 = vld [vmem:[%s3957_s1 + $0x5a4] ss:$16 sps:$4 sm:$0xff]   ;;  %v2809_v58 = vld [vmem:[%s3957_s1 + $0x5a0] ss:$16 sps:$4 sm:$0xff]  }
  0x45   : > { %v2814_v57 = vld [vmem:[%s3957_s1 + $0x7a4] ss:$16 sps:$4 sm:$0xff]   ;;  %v2812_v59 = vld [vmem:[%s3957_s1 + $0x7a0] ss:$16 sps:$4 sm:$0xff]  }
  0x46   : > { %1878 = vmatpush2.bf16.msra.mxu0 %v2741_v0  ;;  %v2817_v60 = vld [vmem:[%s3957_s1 + $0x584] ss:$16 sps:$4 sm:$0xff]   ;;  %v2815_v62 = vld [vmem:[%s3957_s1 + $0x580] ss:$16 sps:$4 sm:$0xff]  }
  0x47   : > { %1921 = vmatpush2.bf16.msra.mxu1 %v2742_v1  ;;  %1879 = vmatprep.subr.bf16.mxu0 %v2743_v2  ;;  %v2820_v61 = vld [vmem:[%s3957_s1 + $0x784] ss:$16 sps:$4 sm:$0xff]   ;;  %v2818_v63 = vld [vmem:[%s3957_s1 + $0x780] ss:$16 sps:$4 sm:$0xff]  }
  0x48   : > { %1922 = vmatprep.subr.bf16.mxu1 %v2745_v3  ;;  %v2823_v0 = vld [vmem:[%s3957_s1 + $0x564] ss:$16 sps:$4 sm:$0xff]   ;;  %v2821_v2 = vld [vmem:[%s3957_s1 + $0x560] ss:$16 sps:$4 sm:$0xff]  }
  0x49   : > { %v2826_v1 = vld [vmem:[%s3957_s1 + $0x764] ss:$16 sps:$4 sm:$0xff]   ;;  %v2824_v3 = vld [vmem:[%s3957_s1 + $0x760] ss:$16 sps:$4 sm:$0xff]  }
  0x4a   : > { %1880 = vmatpush2.bf16.msra.mxu0 %v2747_v4  ;;  %v2829_v4 = vld [vmem:[%s3957_s1 + $0x544] ss:$16 sps:$4 sm:$0xff]  }
  0x4b   : > { %1923 = vmatpush2.bf16.msra.mxu1 %v2748_v5  ;;  %1935 = vmatprep.subr.bf16.mxu0 %v2751_v6  ;;  %v2832_v5 = vld [vmem:[%s3957_s1 + $0x744] ss:$16 sps:$4 sm:$0xff]   ;;  %v2827_v6 = vld [vmem:[%s3957_s1 + $0x540] ss:$16 sps:$4 sm:$0xff]  }
  0x4c   : > { %1978 = vmatprep.subr.bf16.mxu1 %v2754_v7  ;;  %v2830_v7 = vld [vmem:[%s3957_s1 + $0x740] ss:$16 sps:$4 sm:$0xff]  }
  0x4d   : > { %1882 = vmatmul.mubr.bf16.vlgmr.msra.gmra.mxu0 %v3318_v8 }
  0x4e   : > { %1925 = vmatmul.mubr.bf16.vlgmr.msra.gmra.mxu1 %v3320_v9  ;;  %1936 = vmatpush1.bf16.msra.mxu0 %v2749_v10  ;;  %v2835_v10 = vld [vmem:[%s3957_s1 + $0x524] ss:$16 sps:$4 sm:$0xff]  }
  0x4f   : > { %1979 = vmatpush1.bf16.msra.mxu1 %v2752_v11  ;;  %1937 = vmatprep.subr.bf16.mxu0 %v2757_v12  ;;  %v2838_v11 = vld [vmem:[%s3957_s1 + $0x724] ss:$16 sps:$4 sm:$0xff]   ;;  %v2833_v12 = vld [vmem:[%s3957_s1 + $0x520] ss:$16 sps:$4 sm:$0xff]  }
  0x50   : > { %1980 = vmatprep.subr.bf16.mxu1 %v2760_v13  ;;  %1967 = vmatprep.mubr.bf16.mxu0 %v3419_v41  ;;  %v2836_v13 = vld [vmem:[%s3957_s1 + $0x720] ss:$16 sps:$4 sm:$0xff]  }
  0x51   : > { %2010 = vmatprep.mubr.bf16.mxu1 %v3426_v43 }
  0x52   : > { %1938 = vmatpush1.bf16.msra.mxu0 %v2755_v14  ;;  %v2841_v14 = vld [vmem:[%s3957_s1 + $0x504] ss:$16 sps:$4 sm:$0xff]  }
  0x53   : > { %1981 = vmatpush1.bf16.msra.mxu1 %v2758_v15  ;;  %1939 = vmatprep.subr.bf16.mxu0 %v2763_v16  ;;  %v2844_v15 = vld [vmem:[%s3957_s1 + $0x704] ss:$16 sps:$4 sm:$0xff]   ;;  %v2839_v16 = vld [vmem:[%s3957_s1 + $0x500] ss:$16 sps:$4 sm:$0xff]  }
  0x54   : > { %1982 = vmatprep.subr.bf16.mxu1 %v2766_v17  ;;  %v2842_v17 = vld [vmem:[%s3957_s1 + $0x700] ss:$16 sps:$4 sm:$0xff]  }
  0x56   : > { %1940 = vmatpush1.bf16.msra.mxu0 %v2761_v18  ;;  %v2847_v18 = vld [vmem:[%s3957_s1 + $0xec] ss:$16 sps:$4 sm:$0xff]  }
  0x57   : > { %1983 = vmatpush1.bf16.msra.mxu1 %v2764_v19  ;;  %1941 = vmatprep.subr.bf16.mxu0 %v2769_v20  ;;  %v2850_v19 = vld [vmem:[%s3957_s1 + $0x2ec] ss:$16 sps:$4 sm:$0xff]   ;;  %v3540_v20 = vcombine.low %v3403_v36, %v3406_v37  ;;  %v2869_v36 = vld [vmem:[%s3957_s1 + $0x68] ss:$16 sps:$4 sm:$0xff]  }
  0x58   : > { %1984 = vmatprep.subr.bf16.mxu1 %v2772_v21  ;;  %v3544_v21 = vcombine.low %v3409_v38, %v3412_v39  ;;  %v2872_v37 = vld [vmem:[%s3957_s1 + $0x268] ss:$16 sps:$4 sm:$0xff]   ;;  %v2877_v38 = vld [vmem:[%s3957_s1 + $0x4c] ss:$16 sps:$4 sm:$0xff]  }
  0x59   : > { %v2880_v39 = vld [vmem:[%s3957_s1 + $0x24c] ss:$16 sps:$4 sm:$0xff]  }
  0x5a   : > { %1942 = vmatpush1.bf16.msra.mxu0 %v2767_v22  ;;  %v2845_v22 = vld [vmem:[%s3957_s1 + $0xe8] ss:$16 sps:$4 sm:$0xff]  }
  0x5b   : > { %1985 = vmatpush1.bf16.msra.mxu1 %v2770_v23  ;;  %1943 = vmatprep.subr.bf16.mxu0 %v2775_v24  ;;  %v2848_v23 = vld [vmem:[%s3957_s1 + $0x2e8] ss:$16 sps:$4 sm:$0xff]   ;;  %v2853_v24 = vld [vmem:[%s3957_s1 + $0xcc] ss:$16 sps:$4 sm:$0xff]  }
  0x5c   : > { %1986 = vmatprep.subr.bf16.mxu1 %v2778_v25  ;;  %v2856_v25 = vld [vmem:[%s3957_s1 + $0x2cc] ss:$16 sps:$4 sm:$0xff]  }
  0x5e   : > { %1944 = vmatpush1.bf16.msra.mxu0 %v2773_v26  ;;  %v2851_v26 = vld [vmem:[%s3957_s1 + $0xc8] ss:$16 sps:$4 sm:$0xff]  }
  0x5f   : > { %1987 = vmatpush1.bf16.msra.mxu1 %v2776_v27  ;;  %1945 = vmatprep.subr.bf16.mxu0 %v2781_v28  ;;  %v2854_v27 = vld [vmem:[%s3957_s1 + $0x2c8] ss:$16 sps:$4 sm:$0xff]   ;;  %v2859_v28 = vld [vmem:[%s3957_s1 + $0xac] ss:$16 sps:$4 sm:$0xff]  }
  0x60   : > { %1988 = vmatprep.subr.bf16.mxu1 %v2784_v29  ;;  %v2862_v29 = vld [vmem:[%s3957_s1 + $0x2ac] ss:$16 sps:$4 sm:$0xff]  }
  0x62   : > { %1946 = vmatpush1.bf16.msra.mxu0 %v2779_v30  ;;  %v2857_v30 = vld [vmem:[%s3957_s1 + $0xa8] ss:$16 sps:$4 sm:$0xff]  }
  0x63   : > { %1989 = vmatpush1.bf16.msra.mxu1 %v2782_v31  ;;  %1947 = vmatprep.subr.bf16.mxu0 %v2787_v32  ;;  %v2860_v31 = vld [vmem:[%s3957_s1 + $0x2a8] ss:$16 sps:$4 sm:$0xff]   ;;  %v2865_v32 = vld [vmem:[%s3957_s1 + $0x8c] ss:$16 sps:$4 sm:$0xff]  }
  0x64   : > { %1990 = vmatprep.subr.bf16.mxu1 %v2790_v33  ;;  %v2866_v33 = vld [vmem:[%s3957_s1 + $0x288] ss:$16 sps:$4 sm:$0xff]  }
  0x66   : > { %1948 = vmatpush1.bf16.msra.mxu0 %v2785_v34  ;;  %v2871_v34 = vld [vmem:[%s3957_s1 + $0x6c] ss:$16 sps:$4 sm:$0xff]  }
  0x67   : > { %1991 = vmatpush1.bf16.msra.mxu1 %v2788_v35  ;;  %1949 = vmatprep.subr.bf16.mxu0 %v2793_v40  ;;  %v2874_v35 = vld [vmem:[%s3957_s1 + $0x26c] ss:$16 sps:$4 sm:$0xff]   ;;  %v2875_v40 = vld [vmem:[%s3957_s1 + $0x48] ss:$16 sps:$4 sm:$0xff]  }
  0x68   : > { %1992 = vmatprep.subr.bf16.mxu1 %v2796_v42  ;;  %v2878_v42 = vld [vmem:[%s3957_s1 + $0x248] ss:$16 sps:$4 sm:$0xff]  }
  0x6a   : > { %1950 = vmatpush1.bf16.msra.mxu0 %v2791_v44  ;;  %v2883_v44 = vld [vmem:[%s3957_s1 + $0x2c] ss:$16 sps:$4 sm:$0xff]  }
  0x6b   : > { %1993 = vmatpush1.bf16.msra.mxu1 %v2794_v45  ;;  %1951 = vmatprep.subr.bf16.mxu0 %v2799_v46  ;;  %v2886_v45 = vld [vmem:[%s3957_s1 + $0x22c] ss:$16 sps:$4 sm:$0xff]   ;;  %v2881_v46 = vld [vmem:[%s3957_s1 + $0x28] ss:$16 sps:$4 sm:$0xff]  }
  0x6c   : > { %1994 = vmatprep.subr.bf16.mxu1 %v2802_v47  ;;  %v2884_v47 = vld [vmem:[%s3957_s1 + $0x228] ss:$16 sps:$4 sm:$0xff]  }
  0x6e   : > { %1952 = vmatpush2.bf16.msra.mxu0 %v2797_v48  ;;  %v2889_v48 = vld [vmem:[%s3957_s1 + $0xc] ss:$16 sps:$4 sm:$0xff]  }
  0x6f   : > { %1995 = vmatpush2.bf16.msra.mxu1 %v2800_v49  ;;  %1953 = vmatprep.subr.bf16.mxu0 %v2805_v50  ;;  %v2892_v49 = vld [vmem:[%s3957_s1 + $0x20c] ss:$16 sps:$4 sm:$0xff]   ;;  %v2887_v50 = vld [vmem:[%s3957_s1 + $0x8] ss:$16 sps:$4 sm:$0xff]  }
  0x70   : > { %1996 = vmatprep.subr.bf16.mxu1 %v2808_v51  ;;  %v2890_v51 = vld [vmem:[%s3957_s1 + $0x208] ss:$16 sps:$4 sm:$0xff]  }
  0x72   : > { %1954 = vmatpush2.bf16.msra.mxu0 %v2803_v52  ;;  %v2895_v52 = vld [vmem:[%s3957_s1 + $0x1ec] ss:$16 sps:$4 sm:$0xff]  }
  0x73   : > { %1997 = vmatpush2.bf16.msra.mxu1 %v2806_v54  ;;  %1955 = vmatprep.subr.bf16.mxu0 %v2811_v56  ;;  %v2898_v54 = vld [vmem:[%s3957_s1 + $0x3ec] ss:$16 sps:$4 sm:$0xff]   ;;  %v2893_v56 = vld [vmem:[%s3957_s1 + $0x1e8] ss:$16 sps:$4 sm:$0xff]  }
  0x74   : > { %1998 = vmatprep.subr.bf16.mxu1 %v2814_v57  ;;  %v2896_v57 = vld [vmem:[%s3957_s1 + $0x3e8] ss:$16 sps:$4 sm:$0xff]  }
  0x76   : > { %1956 = vmatpush2.bf16.msra.mxu0 %v2809_v58  ;;  %v2901_v58 = vld [vmem:[%s3957_s1 + $0x1cc] ss:$16 sps:$4 sm:$0xff]  }
  0x77   : > { %1999 = vmatpush2.bf16.msra.mxu1 %v2812_v59  ;;  %1957 = vmatprep.subr.bf16.mxu0 %v2817_v60  ;;  %v2904_v59 = vld [vmem:[%s3957_s1 + $0x3cc] ss:$16 sps:$4 sm:$0xff]   ;;  %v2899_v60 = vld [vmem:[%s3957_s1 + $0x1c8] ss:$16 sps:$4 sm:$0xff]  }
  0x78   : > { %2000 = vmatprep.subr.bf16.mxu1 %v2820_v61  ;;  %v2902_v61 = vld [vmem:[%s3957_s1 + $0x3c8] ss:$16 sps:$4 sm:$0xff]  }
  0x7a   : > { %1958 = vmatpush2.bf16.msra.mxu0 %v2815_v62  ;;  %v2907_v62 = vld [vmem:[%s3957_s1 + $0x1ac] ss:$16 sps:$4 sm:$0xff]  }
  0x7b   : > { %2001 = vmatpush2.bf16.msra.mxu1 %v2818_v63  ;;  %1959 = vmatprep.subr.bf16.mxu0 %v2823_v0  ;;  %v2910_v63 = vld [vmem:[%s3957_s1 + $0x3ac] ss:$16 sps:$4 sm:$0xff]   ;;  %v2905_v0 = vld [vmem:[%s3957_s1 + $0x1a8] ss:$16 sps:$4 sm:$0xff]  }
  0x7c   : > { %2002 = vmatprep.subr.bf16.mxu1 %v2826_v1  ;;  %v2908_v1 = vld [vmem:[%s3957_s1 + $0x3a8] ss:$16 sps:$4 sm:$0xff]  }
  0x7e   : > { %1960 = vmatpush2.bf16.msra.mxu0 %v2821_v2  ;;  %v2913_v2 = vld [vmem:[%s3957_s1 + $0x18c] ss:$16 sps:$4 sm:$0xff]  }
  0x7f   : > { %2003 = vmatpush2.bf16.msra.mxu1 %v2824_v3  ;;  %1961 = vmatprep.subr.bf16.mxu0 %v2829_v4  ;;  %v2916_v3 = vld [vmem:[%s3957_s1 + $0x38c] ss:$16 sps:$4 sm:$0xff]   ;;  %v2911_v4 = vld [vmem:[%s3957_s1 + $0x188] ss:$16 sps:$4 sm:$0xff]  }
  0x80   : > { %2004 = vmatprep.subr.bf16.mxu1 %v2832_v5  ;;  %v2914_v5 = vld [vmem:[%s3957_s1 + $0x388] ss:$16 sps:$4 sm:$0xff]  }
  0x82   : > { %1962 = vmatpush2.bf16.msra.mxu0 %v2827_v6  ;;  %v2919_v6 = vld [vmem:[%s3957_s1 + $0x16c] ss:$16 sps:$4 sm:$0xff]  }
  0x83   : > { %2005 = vmatpush2.bf16.msra.mxu1 %v2830_v7  ;;  %1963 = vmatprep.subr.bf16.mxu0 %v2835_v10  ;;  %v2922_v7 = vld [vmem:[%s3957_s1 + $0x36c] ss:$16 sps:$4 sm:$0xff]   ;;  %v2917_v10 = vld [vmem:[%s3957_s1 + $0x168] ss:$16 sps:$4 sm:$0xff]  }
  0x84   : > { %2006 = vmatprep.subr.bf16.mxu1 %v2838_v11  ;;  %v2920_v11 = vld [vmem:[%s3957_s1 + $0x368] ss:$16 sps:$4 sm:$0xff]  }
  0x86   : > { %1964 = vmatpush2.bf16.msra.mxu0 %v2833_v12  ;;  %v2925_v12 = vld [vmem:[%s3957_s1 + $0x14c] ss:$16 sps:$4 sm:$0xff]  }
  0x87   : > { %2007 = vmatpush2.bf16.msra.mxu1 %v2836_v13  ;;  %1965 = vmatprep.subr.bf16.mxu0 %v2841_v14  ;;  %v2928_v13 = vld [vmem:[%s3957_s1 + $0x34c] ss:$16 sps:$4 sm:$0xff]   ;;  %v2923_v14 = vld [vmem:[%s3957_s1 + $0x148] ss:$16 sps:$4 sm:$0xff]  }
  0x88   : > { %2008 = vmatprep.subr.bf16.mxu1 %v2844_v15  ;;  %v2926_v15 = vld [vmem:[%s3957_s1 + $0x348] ss:$16 sps:$4 sm:$0xff]  }
  0x8a   : > { %1966 = vmatpush2.bf16.msra.mxu0 %v2839_v16  ;;  %v2931_v16 = vld [vmem:[%s3957_s1 + $0x12c] ss:$16 sps:$4 sm:$0xff]  }
  0x8b   : > { %2009 = vmatpush2.bf16.msra.mxu1 %v2842_v17  ;;  %2021 = vmatprep.subr.bf16.mxu0 %v2847_v18  ;;  %v2934_v17 = vld [vmem:[%s3957_s1 + $0x32c] ss:$16 sps:$4 sm:$0xff]   ;;  %v2929_v18 = vld [vmem:[%s3957_s1 + $0x128] ss:$16 sps:$4 sm:$0xff]  }
  0x8c   : > { %2064 = vmatprep.subr.bf16.mxu1 %v2850_v19  ;;  %v2932_v19 = vld [vmem:[%s3957_s1 + $0x328] ss:$16 sps:$4 sm:$0xff]  }
  0x8d   : > { %1968 = vmatmul.mubr.bf16.vlgmr.msra.gmra.mxu0 %v3540_v20 }
  0x8e   : > { %2011 = vmatmul.mubr.bf16.vlgmr.msra.gmra.mxu1 %v3544_v21  ;;  %2022 = vmatpush1.bf16.msra.mxu0 %v2845_v22  ;;  %v2937_v22 = vld [vmem:[%s3957_s1 + $0x10c] ss:$16 sps:$4 sm:$0xff]  }
  0x8f   : > { %2065 = vmatpush1.bf16.msra.mxu1 %v2848_v23  ;;  %2023 = vmatprep.subr.bf16.mxu0 %v2853_v24  ;;  %v2940_v23 = vld [vmem:[%s3957_s1 + $0x30c] ss:$16 sps:$4 sm:$0xff]   ;;  %v2935_v24 = vld [vmem:[%s3957_s1 + $0x108] ss:$16 sps:$4 sm:$0xff]  }
  0x90   : > { %2066 = vmatprep.subr.bf16.mxu1 %v2856_v25  ;;  %2053 = vmatprep.mubr.bf16.mxu0 %v3261_v53  ;;  %v2868_v53 = vld [vmem:[%s3957_s1 + $0x28c] ss:$16 sps:$4 sm:$0xff]   ;;  %v2938_v25 = vld [vmem:[%s3957_s1 + $0x308] ss:$16 sps:$4 sm:$0xff]  }
  0x91   : > { %2096 = vmatprep.mubr.bf16.mxu1 %v3266_v55  ;;  %v2863_v55 = vld [vmem:[%s3957_s1 + $0x88] ss:$16 sps:$4 sm:$0xff]  }
  0x92   : > { %2024 = vmatpush1.bf16.msra.mxu0 %v2851_v26  ;;  %v2943_v26 = vld [vmem:[%s3957_s1 + $0x4ec] ss:$16 sps:$4 sm:$0xff]  }
  0x93   : > { %2067 = vmatpush1.bf16.msra.mxu1 %v2854_v27  ;;  %2025 = vmatprep.subr.bf16.mxu0 %v2859_v28  ;;  %v2946_v27 = vld [vmem:[%s3957_s1 + $0x6ec] ss:$16 sps:$4 sm:$0xff]   ;;  %v2941_v28 = vld [vmem:[%s3957_s1 + $0x4e8] ss:$16 sps:$4 sm:$0xff]  }
  0x94   : > { %2068 = vmatprep.subr.bf16.mxu1 %v2862_v29  ;;  %v2944_v29 = vld [vmem:[%s3957_s1 + $0x6e8] ss:$16 sps:$4 sm:$0xff]  }
  0x96   : > { %2026 = vmatpush1.bf16.msra.mxu0 %v2857_v30  ;;  %v2949_v30 = vld [vmem:[%s3957_s1 + $0x4cc] ss:$16 sps:$4 sm:$0xff]  }
  0x97   : > { %2069 = vmatpush1.bf16.msra.mxu1 %v2860_v31  ;;  %2027 = vmatprep.subr.bf16.mxu0 %v2865_v32  ;;  %v2952_v31 = vld [vmem:[%s3957_s1 + $0x6cc] ss:$16 sps:$4 sm:$0xff]   ;;  %v2947_v32 = vld [vmem:[%s3957_s1 + $0x4c8] ss:$16 sps:$4 sm:$0xff]  }
  0x98   : > { %2070 = vmatprep.subr.bf16.mxu1 %v2868_v53  ;;  %v2950_v53 = vld [vmem:[%s3957_s1 + $0x6c8] ss:$16 sps:$4 sm:$0xff]  }
  0x9a   : > { %2028 = vmatpush1.bf16.msra.mxu0 %v2863_v55  ;;  %v2955_v55 = vld [vmem:[%s3957_s1 + $0x4ac] ss:$16 sps:$4 sm:$0xff]  }
  0x9b   : > { %2071 = vmatpush1.bf16.msra.mxu1 %v2866_v33  ;;  %2029 = vmatprep.subr.bf16.mxu0 %v2871_v34  ;;  %v2956_v33 = vld [vmem:[%s3957_s1 + $0x6a8] ss:$16 sps:$4 sm:$0xff]   ;;  %v2961_v34 = vld [vmem:[%s3957_s1 + $0x48c] ss:$16 sps:$4 sm:$0xff]  }
  0x9c   : > { %2072 = vmatprep.subr.bf16.mxu1 %v2874_v35  ;;  %v2962_v35 = vld [vmem:[%s3957_s1 + $0x688] ss:$16 sps:$4 sm:$0xff]  }
  0x9e   : > { %2030 = vmatpush1.bf16.msra.mxu0 %v2869_v36  ;;  %v2967_v36 = vld [vmem:[%s3957_s1 + $0x46c] ss:$16 sps:$4 sm:$0xff]  }
  0x9f   : > { %2073 = vmatpush1.bf16.msra.mxu1 %v2872_v37  ;;  %2031 = vmatprep.subr.bf16.mxu0 %v2877_v38  ;;  %v2970_v37 = vld [vmem:[%s3957_s1 + $0x66c] ss:$16 sps:$4 sm:$0xff]   ;;  %v2965_v38 = vld [vmem:[%s3957_s1 + $0x468] ss:$16 sps:$4 sm:$0xff]  }
  0xa0   : > { %2074 = vmatprep.subr.bf16.mxu1 %v2880_v39  ;;  %v2968_v39 = vld [vmem:[%s3957_s1 + $0x668] ss:$16 sps:$4 sm:$0xff]  }
  0xa2   : > { %2032 = vmatpush1.bf16.msra.mxu0 %v2875_v40  ;;  %v2973_v40 = vld [vmem:[%s3957_s1 + $0x44c] ss:$16 sps:$4 sm:$0xff]  }
  0xa3   : > { %2075 = vmatpush1.bf16.msra.mxu1 %v2878_v42  ;;  %2033 = vmatprep.subr.bf16.mxu0 %v2883_v44  ;;  %v2976_v42 = vld [vmem:[%s3957_s1 + $0x64c] ss:$16 sps:$4 sm:$0xff]   ;;  %v2971_v44 = vld [vmem:[%s3957_s1 + $0x448] ss:$16 sps:$4 sm:$0xff]  }
  0xa4   : > { %2076 = vmatprep.subr.bf16.mxu1 %v2886_v45  ;;  %v2974_v45 = vld [vmem:[%s3957_s1 + $0x648] ss:$16 sps:$4 sm:$0xff]  }
  0xa6   : > { %2034 = vmatpush1.bf16.msra.mxu0 %v2881_v46  ;;  %v2979_v46 = vld [vmem:[%s3957_s1 + $0x42c] ss:$16 sps:$4 sm:$0xff]  }
  0xa7   : > { %2077 = vmatpush1.bf16.msra.mxu1 %v2884_v47  ;;  %2035 = vmatprep.subr.bf16.mxu0 %v2889_v48  ;;  %v2982_v47 = vld [vmem:[%s3957_s1 + $0x62c] ss:$16 sps:$4 sm:$0xff]   ;;  %v2977_v48 = vld [vmem:[%s3957_s1 + $0x428] ss:$16 sps:$4 sm:$0xff]  }
  0xa8   : > { %2078 = vmatprep.subr.bf16.mxu1 %v2892_v49  ;;  %v2980_v49 = vld [vmem:[%s3957_s1 + $0x628] ss:$16 sps:$4 sm:$0xff]  }
  0xaa   : > { %2036 = vmatpush1.bf16.msra.mxu0 %v2887_v50  ;;  %v2985_v50 = vld [vmem:[%s3957_s1 + $0x40c] ss:$16 sps:$4 sm:$0xff]  }
  0xab   : > { %2079 = vmatpush1.bf16.msra.mxu1 %v2890_v51  ;;  %2037 = vmatprep.subr.bf16.mxu0 %v2895_v52  ;;  %v2988_v51 = vld [vmem:[%s3957_s1 + $0x60c] ss:$16 sps:$4 sm:$0xff]   ;;  %v2983_v52 = vld [vmem:[%s3957_s1 + $0x408] ss:$16 sps:$4 sm:$0xff]  }
  0xac   : > { %2080 = vmatprep.subr.bf16.mxu1 %v2898_v54  ;;  %v2986_v54 = vld [vmem:[%s3957_s1 + $0x608] ss:$16 sps:$4 sm:$0xff]  }
  0xae   : > { %2038 = vmatpush2.bf16.msra.mxu0 %v2893_v56  ;;  %v2991_v56 = vld [vmem:[%s3957_s1 + $0x5ec] ss:$16 sps:$4 sm:$0xff]  }
  0xaf   : > { %2081 = vmatpush2.bf16.msra.mxu1 %v2896_v57  ;;  %2039 = vmatprep.subr.bf16.mxu0 %v2901_v58  ;;  %v2994_v57 = vld [vmem:[%s3957_s1 + $0x7ec] ss:$16 sps:$4 sm:$0xff]   ;;  %v2989_v58 = vld [vmem:[%s3957_s1 + $0x5e8] ss:$16 sps:$4 sm:$0xff]  }
  0xb0   : > { %2082 = vmatprep.subr.bf16.mxu1 %v2904_v59  ;;  %v2992_v59 = vld [vmem:[%s3957_s1 + $0x7e8] ss:$16 sps:$4 sm:$0xff]  }
  0xb2   : > { %2040 = vmatpush2.bf16.msra.mxu0 %v2899_v60  ;;  %v2997_v60 = vld [vmem:[%s3957_s1 + $0x5cc] ss:$16 sps:$4 sm:$0xff]  }
  0xb3   : > { %2083 = vmatpush2.bf16.msra.mxu1 %v2902_v61  ;;  %2041 = vmatprep.subr.bf16.mxu0 %v2907_v62  ;;  %v3000_v61 = vld [vmem:[%s3957_s1 + $0x7cc] ss:$16 sps:$4 sm:$0xff]   ;;  %v2995_v62 = vld [vmem:[%s3957_s1 + $0x5c8] ss:$16 sps:$4 sm:$0xff]  }
  0xb4   : > { %2084 = vmatprep.subr.bf16.mxu1 %v2910_v63  ;;  %v2998_v63 = vld [vmem:[%s3957_s1 + $0x7c8] ss:$16 sps:$4 sm:$0xff]  }
  0xb6   : > { %2042 = vmatpush2.bf16.msra.mxu0 %v2905_v0  ;;  %v3003_v0 = vld [vmem:[%s3957_s1 + $0x5ac] ss:$16 sps:$4 sm:$0xff]  }
  0xb7   : > { %2085 = vmatpush2.bf16.msra.mxu1 %v2908_v1  ;;  %2043 = vmatprep.subr.bf16.mxu0 %v2913_v2  ;;  %v3006_v1 = vld [vmem:[%s3957_s1 + $0x7ac] ss:$16 sps:$4 sm:$0xff]   ;;  %v3001_v2 = vld [vmem:[%s3957_s1 + $0x5a8] ss:$16 sps:$4 sm:$0xff]  }
  0xb8   : > { %2086 = vmatprep.subr.bf16.mxu1 %v2916_v3  ;;  %v3004_v3 = vld [vmem:[%s3957_s1 + $0x7a8] ss:$16 sps:$4 sm:$0xff]  }
  0xba   : > { %2044 = vmatpush2.bf16.msra.mxu0 %v2911_v4  ;;  %v3009_v4 = vld [vmem:[%s3957_s1 + $0x58c] ss:$16 sps:$4 sm:$0xff]  }
  0xbb   : > { %2087 = vmatpush2.bf16.msra.mxu1 %v2914_v5  ;;  %2045 = vmatprep.subr.bf16.mxu0 %v2919_v6  ;;  %v3012_v5 = vld [vmem:[%s3957_s1 + $0x78c] ss:$16 sps:$4 sm:$0xff]   ;;  %v3007_v6 = vld [vmem:[%s3957_s1 + $0x588] ss:$16 sps:$4 sm:$0xff]  }
  0xbc   : > { %2088 = vmatprep.subr.bf16.mxu1 %v2922_v7  ;;  %v3010_v7 = vld [vmem:[%s3957_s1 + $0x788] ss:$16 sps:$4 sm:$0xff]  }
  0xbe   : > { %2046 = vmatpush2.bf16.msra.mxu0 %v2917_v10  ;;  %v3015_v10 = vld [vmem:[%s3957_s1 + $0x56c] ss:$16 sps:$4 sm:$0xff]  }
  0xbf   : > { %2089 = vmatpush2.bf16.msra.mxu1 %v2920_v11  ;;  %2047 = vmatprep.subr.bf16.mxu0 %v2925_v12  ;;  %v3018_v11 = vld [vmem:[%s3957_s1 + $0x76c] ss:$16 sps:$4 sm:$0xff]   ;;  %v3013_v12 = vld [vmem:[%s3957_s1 + $0x568] ss:$16 sps:$4 sm:$0xff]  }
  0xc0   : > { %2090 = vmatprep.subr.bf16.mxu1 %v2928_v13  ;;  %v3016_v13 = vld [vmem:[%s3957_s1 + $0x768] ss:$16 sps:$4 sm:$0xff]  }
  0xc2   : > { %2048 = vmatpush2.bf16.msra.mxu0 %v2923_v14  ;;  %v3021_v14 = vld [vmem:[%s3957_s1 + $0x54c] ss:$16 sps:$4 sm:$0xff]  }
  0xc3   : > { %2091 = vmatpush2.bf16.msra.mxu1 %v2926_v15  ;;  %2049 = vmatprep.subr.bf16.mxu0 %v2931_v16  ;;  %v3024_v15 = vld [vmem:[%s3957_s1 + $0x74c] ss:$16 sps:$4 sm:$0xff]   ;;  %v3019_v16 = vld [vmem:[%s3957_s1 + $0x548] ss:$16 sps:$4 sm:$0xff]  }
  0xc4   : > { %2092 = vmatprep.subr.bf16.mxu1 %v2934_v17  ;;  %v3022_v17 = vld [vmem:[%s3957_s1 + $0x748] ss:$16 sps:$4 sm:$0xff]  }
  0xc6   : > { %2050 = vmatpush2.bf16.msra.mxu0 %v2929_v18  ;;  %v3027_v18 = vld [vmem:[%s3957_s1 + $0x52c] ss:$16 sps:$4 sm:$0xff]  }
  0xc7   : > { %2093 = vmatpush2.bf16.msra.mxu1 %v2932_v19  ;;  %2051 = vmatprep.subr.bf16.mxu0 %v2937_v22  ;;  %v3030_v19 = vld [vmem:[%s3957_s1 + $0x72c] ss:$16 sps:$4 sm:$0xff]   ;;  %v3025_v22 = vld [vmem:[%s3957_s1 + $0x528] ss:$16 sps:$4 sm:$0xff]  }
  0xc8   : > { %2094 = vmatprep.subr.bf16.mxu1 %v2940_v23  ;;  %v3028_v23 = vld [vmem:[%s3957_s1 + $0x728] ss:$16 sps:$4 sm:$0xff]  }
  0xca   : > { %2052 = vmatpush2.bf16.msra.mxu0 %v2935_v24  ;;  %v3033_v24 = vld [vmem:[%s3957_s1 + $0x50c] ss:$16 sps:$4 sm:$0xff]  }
  0xcb   : > { %2095 = vmatpush2.bf16.msra.mxu1 %v2938_v25  ;;  %2107 = vmatprep.subr.bf16.mxu0 %v2943_v26  ;;  %v3036_v25 = vld [vmem:[%s3957_s1 + $0x70c] ss:$16 sps:$4 sm:$0xff]   ;;  %v3031_v26 = vld [vmem:[%s3957_s1 + $0x508] ss:$16 sps:$4 sm:$0xff]  }
  0xcc   : > { %2150 = vmatprep.subr.bf16.mxu1 %v2946_v27  ;;  %v3034_v27 = vld [vmem:[%s3957_s1 + $0x708] ss:$16 sps:$4 sm:$0xff]  }
  0xcd   : > { %2054 = vmatmul.mubr.bf16.vlgmr.msra.gmra.mxu0 %v3318_v8  ;;  %v2958_v8 = vld [vmem:[%s3957_s1 + $0x6ac] ss:$16 sps:$4 sm:$0xff]  }
  0xce   : > { %2097 = vmatmul.mubr.bf16.vlgmr.msra.gmra.mxu1 %v3320_v9  ;;  %2108 = vmatpush1.bf16.msra.mxu0 %v2941_v28  ;;  %v2953_v9 = vld [vmem:[%s3957_s1 + $0x4a8] ss:$16 sps:$4 sm:$0xff]   ;;  %v509_v28 = vlaneseq }
  0xcf   : > { %2151 = vmatpush1.bf16.msra.mxu1 %v2944_v29  ;;  %2109 = vmatprep.subr.bf16.mxu0 %v2949_v30 }
  0xd0   : > { %2152 = vmatprep.subr.bf16.mxu1 %v2952_v31  ;;  %2139 = vmatprep.mubr.bf16.mxu0 %v3419_v41  ;;  %v2964_v41 = vld [vmem:[%s3957_s1 + $0x68c] ss:$16 sps:$4 sm:$0xff]   ;;  %v510_v29 = vshrl.u32 %v509_v28, 7 }
  0xd1   : > { %2182 = vmatprep.mubr.bf16.mxu1 %v3426_v43  ;;  %v2959_v43 = vld [vmem:[%s3957_s1 + $0x488] ss:$16 sps:$4 sm:$0xff]  }
  0xd2   : > { %2110 = vmatpush1.bf16.msra.mxu0 %v2947_v32  ;;  %v511_v32 = vsub.s32 0, %v510_v29 }
  0xd3   : > { %2153 = vmatpush1.bf16.msra.mxu1 %v2950_v53  ;;  %2111 = vmatprep.subr.bf16.mxu0 %v2955_v55  ;;  %v507_v53 = vld [vmem:[%s3958_s2] sm:$0xf]  ;;  %v515_v55 = vsub.s32 1, %v510_v29 }
  0xd4   : > { %2154 = vmatprep.subr.bf16.mxu1 %v2958_v8 }
  0xd6   : > { %2112 = vmatpush1.bf16.msra.mxu0 %v2953_v9 }
  0xd7   : > { %2155 = vmatpush1.bf16.msra.mxu1 %v2956_v33  ;;  %2113 = vmatprep.subr.bf16.mxu0 %v2961_v34  ;;  %v512_v33 = vrot.slane %v507_v53, %v511_v32  ;;  %v516_v34 = vrot.slane %v507_v53, %v515_v55 }
  0xd8   : > { %2156 = vmatprep.subr.bf16.mxu1 %v2964_v41 }
  0xda   : > { %2114 = vmatpush1.bf16.msra.mxu0 %v2959_v43 }
  0xdb   : > { %2157 = vmatpush1.bf16.msra.mxu1 %v2962_v35  ;;  %2115 = vmatprep.subr.bf16.mxu0 %v2967_v36 }
  0xdc   : > { %2158 = vmatprep.subr.bf16.mxu1 %v2970_v37 }
  0xde   : > { %2116 = vmatpush1.bf16.msra.mxu0 %v2965_v38 }
  0xdf   : > { %2159 = vmatpush1.bf16.msra.mxu1 %v2968_v39  ;;  %2117 = vmatprep.subr.bf16.mxu0 %v2973_v40 }
  0xe0   : > { %2160 = vmatprep.subr.bf16.mxu1 %v2976_v42 }
  0xe2   : > { %2118 = vmatpush1.bf16.msra.mxu0 %v2971_v44 }
  0xe3   : > { %2161 = vmatpush1.bf16.msra.mxu1 %v2974_v45  ;;  %2119 = vmatprep.subr.bf16.mxu0 %v2979_v46 }
  0xe4   : > { %2162 = vmatprep.subr.bf16.mxu1 %v2982_v47 }
  0xe6   : > { %2120 = vmatpush1.bf16.msra.mxu0 %v2977_v48 }
  0xe7   : > { %2163 = vmatpush1.bf16.msra.mxu1 %v2980_v49  ;;  %2121 = vmatprep.subr.bf16.mxu0 %v2985_v50 }
  0xe8   : > { %2164 = vmatprep.subr.bf16.mxu1 %v2988_v51 }
  0xea   : > { %2122 = vmatpush1.bf16.msra.mxu0 %v2983_v52 }
  0xeb   : > { %2165 = vmatpush1.bf16.msra.mxu1 %v2986_v54  ;;  %2123 = vmatprep.subr.bf16.mxu0 %v2991_v56 }
  0xec   : > { %2166 = vmatprep.subr.bf16.mxu1 %v2994_v57 }
  0xee   : > { %2124 = vmatpush2.bf16.msra.mxu0 %v2989_v58 }
  0xef   : > { %2167 = vmatpush2.bf16.msra.mxu1 %v2992_v59  ;;  %2125 = vmatprep.subr.bf16.mxu0 %v2997_v60 }
  0xf0   : > { %2168 = vmatprep.subr.bf16.mxu1 %v3000_v61 }
  0xf2   : > { %2126 = vmatpush2.bf16.msra.mxu0 %v2995_v62 }
  0xf3   : > { %2169 = vmatpush2.bf16.msra.mxu1 %v2998_v63  ;;  %2127 = vmatprep.subr.bf16.mxu0 %v3003_v0 }
  0xf4   : > { %2170 = vmatprep.subr.bf16.mxu1 %v3006_v1 }
  0xf6   : > { %2128 = vmatpush2.bf16.msra.mxu0 %v3001_v2 }
  0xf7   : > { %2171 = vmatpush2.bf16.msra.mxu1 %v3004_v3  ;;  %2129 = vmatprep.subr.bf16.mxu0 %v3009_v4 }
  0xf8   : > { %2172 = vmatprep.subr.bf16.mxu1 %v3012_v5 }
  0xfa   : > { %2130 = vmatpush2.bf16.msra.mxu0 %v3007_v6 }
  0xfb   : > { %2173 = vmatpush2.bf16.msra.mxu1 %v3010_v7  ;;  %2131 = vmatprep.subr.bf16.mxu0 %v3015_v10  ;;  %v519_v7 = vsub.s32 2, %v510_v29  ;;  %v523_v10 = vsub.s32 3, %v510_v29 }
  0xfc   : > { %2174 = vmatprep.subr.bf16.mxu1 %v3018_v11 }
  0xfe   : > { %2132 = vmatpush2.bf16.msra.mxu0 %v3013_v12 }
  0xff   : > { %2175 = vmatpush2.bf16.msra.mxu1 %v3016_v13  ;;  %2133 = vmatprep.subr.bf16.mxu0 %v3021_v14  ;;  %v520_v13 = vrot.slane %v507_v53, %v519_v7  ;;  %v524_v14 = vrot.slane %v507_v53, %v523_v10 }
 0x100   : > { %2176 = vmatprep.subr.bf16.mxu1 %v3024_v15 }
 0x102   : > { %2134 = vmatpush2.bf16.msra.mxu0 %v3019_v16 }
 0x103   : > { %2177 = vmatpush2.bf16.msra.mxu1 %v3022_v17  ;;  %2135 = vmatprep.subr.bf16.mxu0 %v3027_v18 }
 0x104   : > { %2178 = vmatprep.subr.bf16.mxu1 %v3030_v19 }
 0x106   : > { %2136 = vmatpush2.bf16.msra.mxu0 %v3025_v22 }
 0x107   : > { %2179 = vmatpush2.bf16.msra.mxu1 %v3028_v23  ;;  %2137 = vmatprep.subr.bf16.mxu0 %v3033_v24 }
 0x108   : > { %2180 = vmatprep.subr.bf16.mxu1 %v3036_v25 }
 0x10a   : > { %2138 = vmatpush2.bf16.msra.mxu0 %v3031_v26 }
 0x10b   : > { %2181 = vmatpush2.bf16.msra.mxu1 %v3034_v27 }
 0x10d   : > { %2140 = vmatmul.mubr.bf16.vlgmr.msra.gmra.mxu0 %v3540_v20  ;;  %v1883_v30 = vpop.f32.mrf.mxu0 }
 0x10e   : > { %2183 = vmatmul.mubr.bf16.vlgmr.msra.gmra.mxu1 %v3544_v21  ;;  %v1926_v31 = vpop.f32.mrf.mxu1  ;;  %v1884_v35 = vadd.f32 %v1883_v30, %v512_v33 }
 0x10f   : > { %v1885_v8 = vpop.f32.mrf.mxu0 }
 0x110   : > { %v1928_v9 = vpop.f32.mrf.mxu1  ;;  %v1886_v20 = vadd.f32 %v1885_v8, %v516_v34  ;;  %v1927_v37 = vadd.f32 %v1926_v31, %v1884_v35 }
 0x111   : > { %v1887_v41 = vpop.f32.mrf.mxu0 }
 0x112   : > { %v1930_v43 = vpop.f32.mrf.mxu1  ;;  %v1888_v38 = vadd.f32 %v1887_v41, %v512_v33  ;;  %v1929_v42 = vadd.f32 %v1928_v9, %v1886_v20 }
 0x113   : > { %v1889_v36 = vpop.f32.mrf.mxu0 }
 0x114   : > { %v1932_v21 = vpop.f32.mrf.mxu1  ;;  %v1890_v44 = vadd.f32 %v1889_v36, %v516_v34  ;;  %v1931_v48 = vadd.f32 %v1930_v43, %v1888_v38 }
 0x116   : > { %v1933_v54 = vadd.f32 %v1932_v21, %v1890_v44 }
 0x14d   : > { %v1969_v39 = vpop.f32.mrf.mxu0 }
 0x14e   : > { %v2012_v40 = vpop.f32.mrf.mxu1  ;;  %v1970_v45 = vadd.f32 %v1969_v39, %v1927_v37 }
 0x14f   : > { %v1971_v46 = vpop.f32.mrf.mxu0 }
 0x150   : > { %v2014_v47 = vpop.f32.mrf.mxu1  ;;  %v2013_v49 = vadd.f32 %v2012_v40, %v1970_v45  ;;  %v1972_v50 = vadd.f32 %v1971_v46, %v1929_v42 }
 0x151   : > { %v1973_v51 = vpop.f32.mrf.mxu0 }
 0x152   : > { %v2016_v52 = vpop.f32.mrf.mxu1  ;;  %v2015_v56 = vadd.f32 %v2014_v47, %v1972_v50  ;;  %v1974_v57 = vadd.f32 %v1973_v51, %v1931_v48  ;;  %v2193_v59 = vmax.f32 %v2013_v49, 0.0 }
 0x153   : > { %v1975_v58 = vpop.f32.mrf.mxu0 }
 0x154   : > { %v2194_v60 = vmax.f32 %v2015_v56, 0.0  ;;  %v2017_v61 = vadd.f32 %v2016_v52, %v1974_v57  ;;  %v1976_v62 = vadd.f32 %v1975_v58, %v1933_v54  ;;  %v2018_v63 = vpop.f32.mrf.mxu1 }
 0x156   : > { %v2625_v0 = vpack.c.bf16 %v2194_v60, %v2193_v59  ;;  %v2019_v1 = vadd.f32 %v2018_v63, %v1976_v62  ;;  %v2197_v2 = vmax.f32 %v2017_v61, 0.0 }
 0x158   : > { %2225 = vst [vmem:[%s3941_s8] sm:$0xff] %v2625_v0  ;;  %v2198_v3 = vmax.f32 %v2019_v1, 0.0 }
 0x15a   : > { %v2627_v4 = vpack.c.bf16 %v2198_v3, %v2197_v2 }
 0x15c   : > { %2227 = vst [vmem:[%s3941_s8 + $0x10] sm:$0xff] %v2627_v4 }
 0x18d   : > { %v2055_v5 = vpop.f32.mrf.mxu0 }
 0x18e   : > { %v2098_v6 = vpop.f32.mrf.mxu1  ;;  %v2056_v17 = vadd.f32 %v2055_v5, %v520_v13 }
 0x18f   : > { %v2057_v11 = vpop.f32.mrf.mxu0 }
 0x190   : > { %v2100_v12 = vpop.f32.mrf.mxu1  ;;  %v2058_v18 = vadd.f32 %v2057_v11, %v524_v14  ;;  %v2099_v23 = vadd.f32 %v2098_v6, %v2056_v17 }
 0x191   : > { %v2059_v15 = vpop.f32.mrf.mxu0 }
 0x192   : > { %v2102_v16 = vpop.f32.mrf.mxu1  ;;  %v2060_v24 = vadd.f32 %v2059_v15, %v520_v13  ;;  %v2101_v27 = vadd.f32 %v2100_v12, %v2058_v18 }
 0x193   : > { %v2061_v19 = vpop.f32.mrf.mxu0 }
 0x194   : > { %v2104_v22 = vpop.f32.mrf.mxu1  ;;  %v2062_v28 = vadd.f32 %v2061_v19, %v524_v14  ;;  %v2103_v29 = vadd.f32 %v2102_v16, %v2060_v24 }
 0x196   : > { %v2105_v33 = vadd.f32 %v2104_v22, %v2062_v28 }
 0x1cd   : > { %v2141_v25 = vpop.f32.mrf.mxu0 }
 0x1ce   : > { %v2184_v26 = vpop.f32.mrf.mxu1  ;;  %v2142_v30 = vadd.f32 %v2141_v25, %v2099_v23 }
 0x1cf   : > { %v2143_v31 = vpop.f32.mrf.mxu0 }
 0x1d0   : > { %v2186_v32 = vpop.f32.mrf.mxu1  ;;  %v2185_v55 = vadd.f32 %v2184_v26, %v2142_v30  ;;  %v2144_v8 = vadd.f32 %v2143_v31, %v2101_v27 }
 0x1d1   : > { %v2145_v53 = vpop.f32.mrf.mxu0 }
 0x1d2   : > { %v2188_v9 = vpop.f32.mrf.mxu1  ;;  %v2187_v34 = vadd.f32 %v2186_v32, %v2144_v8  ;;  %v2146_v41 = vadd.f32 %v2145_v53, %v2103_v29  ;;  %v2195_v35 = vmax.f32 %v2185_v55, 0.0 }
 0x1d3   : > { %v2147_v43 = vpop.f32.mrf.mxu0 }
 0x1d4   : > { %v2196_v20 = vmax.f32 %v2187_v34, 0.0  ;;  %v2189_v36 = vadd.f32 %v2188_v9, %v2146_v41  ;;  %v2148_v21 = vadd.f32 %v2147_v43, %v2105_v33  ;;  %v2190_v37 = vpop.f32.mrf.mxu1 }
 0x1d6   : > { %v2626_v38 = vpack.c.bf16 %v2196_v20, %v2195_v35  ;;  %v2191_v39 = vadd.f32 %v2190_v37, %v2148_v21  ;;  %v2199_v40 = vmax.f32 %v2189_v36, 0.0 }
 0x1d8   : > { %2226 = vst [vmem:[%s3941_s8 + $0x8] sm:$0xff] %v2626_v38  ;;  %v2200_v42 = vmax.f32 %v2191_v39, 0.0 }
 0x1da   : > { %v2628_v44 = vpack.c.bf16 %v2200_v42, %v2199_v40 }
 0x1dc   : > { %2228 = vst [vmem:[%s3941_s8 + $0x18] sm:$0xff] %v2628_v44 }
 0x1dd PF: > { %s13_s14 = sadd.s32 1, %s3059_s14   ;;  %s3960_s12 = smov %s3055_s13 }
 0x1de   : > { %p10_p5 = scmp.ge.s32.totalorder %s13_s14, 4   ;;  %s3961_s13 = smov %s3963_s15 }
 0x1e0   :  { %12 = sbr.rel (!%p10_p5) target bundleno = 2 (0x2), region = 68 }

// kernel: decoder_forward.5
= control target key start
LH: loop header
LB: loop body
LE: loop exit
PB: predicated region body
PF: predicated region fallthrough
CT: control target
= control target key end

     0   :  { %8 = vsyncpa [#allocation3], 0  ;;  %s6578_s0 = inlined_call_operand.vmem [shape: bf16[8,2048], index: 0, kind: input, shape index: {}]   ;;  %s6579_s1 = inlined_call_operand.hbm [shape: bf16[2048,1024], index: 1, kind: input, shape index: {}]   ;;  %s6580_s2 = inlined_call_operand.hbm [shape: f32[1,1024], index: 2, kind: input, shape index: {}]   ;;  %s6581_s3 = inlined_call_operand.vmem [shape: bf16[8,1024], index: 3, kind: output, shape index: {}]  }
   0x1   :  { %10 = vsyncpa [#allocation3 + $0x1], 0 }
   0x2   :  { %11 = vsyncpa [#allocation5], 0 }
   0x3   :  { %13 = vsyncpa [#allocation5 + $0x1], 0  ;;  %s5777_s12 = smov 0   ;;  %s5779_s13 = smov 0  }
   0x4   :  { %s5781_s14 = smov 0   ;;  %s5783_s15 = smov 0  }
   0x5   :  { %s5785_s16 = smov 0   ;;  %s5787_s17 = smov 0  }
   0x6 LB: > { %s4240_s18 = sadd.s32 4294967295, %s5750_s17   ;;  %s28_s19 = sadd.s32 1, %s5746_s16  ;;  %s5750_s17 = sphi %s5787_s17, %s19_s17   ;;  %s5746_s16 = sphi %s5785_s16, %s6590_s16   ;;  %s5742_s15 = sphi %s5783_s15, %s6589_s15   ;;  %s5738_s14 = sphi %s5781_s14, %s6588_s14   ;;  %s5734_s13 = sphi %s5779_s13, %s6587_s13   ;;  %s5730_s12 = sphi %s5777_s12, %s6586_s12  }
   0x7   : > { %p29_p0 = scmp.ge.s32.totalorder %s28_s19, 2  ;;  %s64_s20 = sadd.s32 1, %s5738_s14 }
   0x8   : > { %p71_p1 = scmp.ne.s32.totalorder %s5738_s14, %s5734_s13  ;;  %p72_p2 = scmp.eq.s32.totalorder %s5750_s17, 0 }
   0x9   : > { %s6592_s19 = smov (%p29_p0, %s28_s19), 0  ;;  %p77_p4 = scmp.ne.s32.totalorder %s5734_s13, %s5730_s12 }
   0xa   : > { %p5813_p3 = por %p72_p2, %p71_p1  ;;  %s61_s22 = ssub.s32 %s5746_s16, %s6592_s19 }
   0xb   : > { %p78_p5 = scmp.eq.s32.totalorder %s4240_s18, 0  ;;  %p62_p6 = scmp.eq.s32.totalorder %s61_s22, 0 }
   0xc   : > { %p4803_p8 = scmp.lt.s32.totalorder %s5750_s17, 2  ;;  %s5829_s25 = sand.u32 1, %s5738_s14  }
   0xd   : > { %p5820_p7 = por %p78_p5, %p77_p4  ;;  %s4788_s26 = sshll.u32 %s5746_s16, 8 }
   0xe   : > { %s5826_s24 = scalar_select %p62_p6, %s5738_s14, %s64_s20  }
   0xf   : > { %s4245_s27 = sshll.u32 %s5829_s25, 12  ;;  %s173_s30 = scalar_lea.hbm %s6579_s1, %s4788_s26 }
  0x10   : > { %s167_s4 = scalar_lea.vmem [#allocation2], %s4245_s27  ;;  %p5838_p9 = pnand %p4803_p8, %p5813_p3 }
  0x11   : > { %s174_s5 = sshll.u32 %s167_s4, 4  ;;  %p4251_p10 = scmp.ge.s32.totalorder %s5750_s17, 1  ;;  %s175_s5 = int_to_ptr.vmem [resolvable:$true] %s174_s5 }
  0x12   : > { %s164_s7 = scalar_lea.sflag [#allocation3], %s5829_s25  ;;  %p5642_p11 = pneg %p5838_p9 }
  0x13   : > { %s5653_s8 = scalar_lea.vmem %s175_s5, 65536  ;;  %s5752_s9 = smov [#allocation2]  }
  0x14   : > { %p5654_p12 = scmp.ne.s32.totalorder %s175_s5, %s5653_s8  ;;  %s5658_s10 = sshll.u32 %s5752_s9, 4  ;;  %s5659_s10 = int_to_ptr.vmem [resolvable:$false] %s5658_s10 }
  0x15   : > { %s5660_s11 = scalar_lea.vmem %s5659_s10, 131072  ;;  %p5661_p1 = scmp.lt.s32.totalorder %s175_s5, %s5659_s10 }
  0x16   : > { %p5656_p13 = pnand %p5654_p12, %p5642_p11  ;;  %p5662_p2 = scmp.lt.s32.totalorder %s5660_s11, %s5653_s8 }
  0x18   : > { %p5657_p0 = pneg %p5656_p13  ;;  %p5663_p3 = por %p5662_p2, %p5661_p1 }
  0x1a   : > { %p5664_p4 = pnand %p5663_p3, %p5657_p0 }
  0x1c   : > { %5667 = shalt.err (!%p5664_p4)
}
  0x1d   : > { %s5753_s12 = smov 512   ;;  %s5754_s18 = smov 256  }
  0x1e   : > { %s5755_s20 = smov 16   ;;  %p201_p5 = scmp.lt.s32.totalorder %s5750_s17, 3 }
  0x1f   : > { %4799 = dma.hbm_to_vmem [thread:$0]  (!%p5838_p9), %s173_s30, 65536, %s175_s5, %s164_s7, %s5753_s12, %s5754_s18, %s5755_s20  }
  0x20   : > { %s4248_s21 = sshll.u32 %s5829_s25, 2  ;;  %s4789_s22 = sshll.u32 %s5746_s16, 6 }
  0x21   : > { %p5856_p6 = pnand %p4251_p10, %p201_p5  ;;  %s194_s29 = scalar_lea.hbm %s6580_s2, %s4789_s22 }
  0x22   : > { %s188_s4 = scalar_lea.vmem [#allocation4], %s4248_s21  ;;  %s185_s9 = scalar_lea.sflag [#allocation5], %s5829_s25 }
  0x23   : > { %s196_s8 = sshll.u32 %s188_s4, 4  ;;  %s5756_s30 = smov [#allocation4]   ;;  %s197_s8 = int_to_ptr.vmem [resolvable:$true] %s196_s8 }
  0x24   : > { %s5681_s10 = scalar_lea.vmem %s197_s8, 64  ;;  %s5686_s5 = sshll.u32 %s5756_s30, 4  ;;  %s5687_s5 = int_to_ptr.vmem [resolvable:$false] %s5686_s5 }
  0x25   : > { %p5682_p8 = scmp.ne.s32.totalorder %s197_s8, %s5681_s10  ;;  %s5688_s7 = scalar_lea.vmem %s5687_s5, 128 }
  0x26   : > { %p5689_p10 = scmp.lt.s32.totalorder %s197_s8, %s5687_s5  ;;  %p5690_p0 = scmp.lt.s32.totalorder %s5688_s7, %s5681_s10 }
  0x27   : > { %p5684_p12 = pnand %p5682_p8, %p5642_p11 }
  0x28   : > { %p5691_p1 = por %p5690_p0, %p5689_p10 }
  0x29   : > { %p5685_p13 = pneg %p5684_p12 }
  0x2b   : > { %p5692_p2 = pnand %p5691_p1, %p5685_p13 }
  0x2d   : > { %5695 = shalt.err (!%p5692_p2)
}
  0x2e   : > { %4802 = dma.hbm_to_vmem [thread:$0]  (!%p5838_p9), %s194_s29, 64, %s197_s8, %s185_s9  }
  0x2f   : > { %205 = sbr.rel (%p5856_p6) target bundleno = 773 (0x305), region = 32  ;;  %s207_s25 = sand.u32 (!%p5856_p6), 1, %s5734_s13  }
  0x30   : > { %s4252_s11 = sshll.u32 (!%p5856_p6), %s207_s25, 12  ;;  %s208_s12 = scalar_lea.sflag (!%p5856_p6), [#allocation3], %s207_s25 }
  0x31   : > { %s5872_s18 = scalar_lea.vmem (!%p5856_p6), [#allocation2], %s4252_s11 }
  0x34   : > { %5721 = dma.done.wait (%p5820_p7), %s208_s12, 65536  }
  0x35   : > { %5723 = vsyncadd (%p5820_p7), %s208_s12, 4294901760  ;;  %s4253_s20 = sshll.u32 %s207_s25, 2  ;;  %s217_s21 = scalar_lea.sflag [#allocation5], %s207_s25 }
  0x36   : > { %s5878_s6 = scalar_lea.vmem [#allocation4], %s4253_s20 }
  0x37   : > { %5725 = dma.done.wait (%p5820_p7), %s217_s21, 64  }
  0x38   : > { %5727 = vsyncadd (%p5820_p7), %s217_s21, 4294967232  ;;  %v4855_v0 = vld [vmem:[%s5872_s18 + $0xe4] ss:$16 sps:$4 sm:$0xff]   ;;  %v4859_v2 = vld [vmem:[%s5872_s18 + $0xe0] ss:$16 sps:$4 sm:$0xff]   ;;  %s4254_s20 = sshll.u32 %s5742_s15, 2 }
  0x39   : > { %v4857_v1 = vld [vmem:[%s5872_s18 + $0x2e4] ss:$16 sps:$4 sm:$0xff]   ;;  %3432 = vmatprep.subr.bf16.mxu0 %v4855_v0  ;;  %v4860_v3 = vld [vmem:[%s5872_s18 + $0x2e0] ss:$16 sps:$4 sm:$0xff]   ;;  %v275_v48 = vld [vmem:[%s6578_s0 + $0x8] sm:$0xff]  ;;  %p267_p7 = scmp.lt.s32.totalorder %s4254_s20, 7 }
  0x3a   : > { %3473 = vmatprep.subr.bf16.mxu1 %v4857_v1  ;;  %v4861_v4 = vld [vmem:[%s5872_s18 + $0xc4] ss:$16 sps:$4 sm:$0xff]   ;;  %3433 = vmatpush1.bf16.msra.mxu0 %v4859_v2  ;;  %v4865_v6 = vld [vmem:[%s5872_s18 + $0xc0] ss:$16 sps:$4 sm:$0xff]   ;;  %v5940_v51 = vcombine.high %v275_v48, %v275_v48 }
  0x3b   : > { %3474 = vmatpush1.bf16.msra.mxu1 %v4860_v3  ;;  %v4863_v5 = vld [vmem:[%s5872_s18 + $0x2c4] ss:$16 sps:$4 sm:$0xff]   ;;  %3434 = vmatprep.subr.bf16.mxu0 %v4861_v4  ;;  %v4866_v7 = vld [vmem:[%s5872_s18 + $0x2c0] ss:$16 sps:$4 sm:$0xff]   ;;  %s6594_s20 = smov (!%p267_p7, %s4254_s20), 7 }
  0x3c   : > { %3475 = vmatprep.subr.bf16.mxu1 %v4863_v5  ;;  %v4867_v8 = vld [vmem:[%s5872_s18 + $0xa4] ss:$16 sps:$4 sm:$0xff]   ;;  %v4871_v10 = vld [vmem:[%s5872_s18 + $0xa0] ss:$16 sps:$4 sm:$0xff]   ;;  %3505 = vmatprep.mubr.bf16.mxu1 %v5940_v51  ;;  %s4255_s15 = sshll.u32 %s6594_s20, 2 }
  0x3d   : > { %v4869_v9 = vld [vmem:[%s5872_s18 + $0x2a4] ss:$16 sps:$4 sm:$0xff]   ;;  %v4872_v11 = vld [vmem:[%s5872_s18 + $0x2a0] ss:$16 sps:$4 sm:$0xff]   ;;  %s6501_s22 = scalar_lea.vmem %s6581_s3, %s4255_s15 }
  0x3e   : > { %3435 = vmatpush1.bf16.msra.mxu0 %v4865_v6  ;;  %v4873_v12 = vld [vmem:[%s5872_s18 + $0x84] ss:$16 sps:$4 sm:$0xff]   ;;  %v4877_v14 = vld [vmem:[%s5872_s18 + $0x80] ss:$16 sps:$4 sm:$0xff]  }
  0x3f   : > { %3476 = vmatpush1.bf16.msra.mxu1 %v4866_v7  ;;  %3436 = vmatprep.subr.bf16.mxu0 %v4867_v8  ;;  %v4875_v13 = vld [vmem:[%s5872_s18 + $0x284] ss:$16 sps:$4 sm:$0xff]   ;;  %v4878_v15 = vld [vmem:[%s5872_s18 + $0x280] ss:$16 sps:$4 sm:$0xff]   ;;  %v5964_v7 = vcombine.low %v275_v48, %v275_v48 }
  0x40   : > { %3477 = vmatprep.subr.bf16.mxu1 %v4869_v9  ;;  %v4879_v16 = vld [vmem:[%s5872_s18 + $0x64] ss:$16 sps:$4 sm:$0xff]   ;;  %v4883_v18 = vld [vmem:[%s5872_s18 + $0x60] ss:$16 sps:$4 sm:$0xff]  }
  0x41   : > { %v4881_v17 = vld [vmem:[%s5872_s18 + $0x264] ss:$16 sps:$4 sm:$0xff]   ;;  %v4884_v19 = vld [vmem:[%s5872_s18 + $0x260] ss:$16 sps:$4 sm:$0xff]  }
  0x42   : > { %3437 = vmatpush1.bf16.msra.mxu0 %v4871_v10  ;;  %v4885_v20 = vld [vmem:[%s5872_s18 + $0x44] ss:$16 sps:$4 sm:$0xff]   ;;  %v4889_v22 = vld [vmem:[%s5872_s18 + $0x40] ss:$16 sps:$4 sm:$0xff]  }
  0x43   : > { %3478 = vmatpush1.bf16.msra.mxu1 %v4872_v11  ;;  %3438 = vmatprep.subr.bf16.mxu0 %v4873_v12  ;;  %v4887_v21 = vld [vmem:[%s5872_s18 + $0x244] ss:$16 sps:$4 sm:$0xff]   ;;  %v4890_v23 = vld [vmem:[%s5872_s18 + $0x240] ss:$16 sps:$4 sm:$0xff]  }
  0x44   : > { %3479 = vmatprep.subr.bf16.mxu1 %v4875_v13  ;;  %v4891_v24 = vld [vmem:[%s5872_s18 + $0x24] ss:$16 sps:$4 sm:$0xff]   ;;  %v4895_v26 = vld [vmem:[%s5872_s18 + $0x20] ss:$16 sps:$4 sm:$0xff]  }
  0x45   : > { %v4893_v25 = vld [vmem:[%s5872_s18 + $0x224] ss:$16 sps:$4 sm:$0xff]   ;;  %v4896_v27 = vld [vmem:[%s5872_s18 + $0x220] ss:$16 sps:$4 sm:$0xff]  }
  0x46   : > { %3439 = vmatpush1.bf16.msra.mxu0 %v4877_v14  ;;  %v4897_v28 = vld [vmem:[%s5872_s18 + $0x4] ss:$16 sps:$4 sm:$0xff]   ;;  %v4901_v30 = vld [vmem:[%s5872_s18] ss:$16 sps:$4 sm:$0xff]  }
  0x47   : > { %3480 = vmatpush1.bf16.msra.mxu1 %v4878_v15  ;;  %3440 = vmatprep.subr.bf16.mxu0 %v4879_v16  ;;  %v4899_v29 = vld [vmem:[%s5872_s18 + $0x204] ss:$16 sps:$4 sm:$0xff]   ;;  %v4902_v31 = vld [vmem:[%s5872_s18 + $0x200] ss:$16 sps:$4 sm:$0xff]  }
  0x48   : > { %3481 = vmatprep.subr.bf16.mxu1 %v4881_v17  ;;  %v4903_v32 = vld [vmem:[%s5872_s18 + $0x1e4] ss:$16 sps:$4 sm:$0xff]   ;;  %v4907_v34 = vld [vmem:[%s5872_s18 + $0x1e0] ss:$16 sps:$4 sm:$0xff]  }
  0x49   : > { %v4905_v33 = vld [vmem:[%s5872_s18 + $0x3e4] ss:$16 sps:$4 sm:$0xff]   ;;  %v4908_v35 = vld [vmem:[%s5872_s18 + $0x3e0] ss:$16 sps:$4 sm:$0xff]  }
  0x4a   : > { %3441 = vmatpush1.bf16.msra.mxu0 %v4883_v18  ;;  %v4909_v36 = vld [vmem:[%s5872_s18 + $0x1c4] ss:$16 sps:$4 sm:$0xff]   ;;  %v4913_v38 = vld [vmem:[%s5872_s18 + $0x1c0] ss:$16 sps:$4 sm:$0xff]  }
  0x4b   : > { %3482 = vmatpush1.bf16.msra.mxu1 %v4884_v19  ;;  %3442 = vmatprep.subr.bf16.mxu0 %v4885_v20  ;;  %v4911_v37 = vld [vmem:[%s5872_s18 + $0x3c4] ss:$16 sps:$4 sm:$0xff]   ;;  %v4914_v39 = vld [vmem:[%s5872_s18 + $0x3c0] ss:$16 sps:$4 sm:$0xff]  }
  0x4c   : > { %3483 = vmatprep.subr.bf16.mxu1 %v4887_v21  ;;  %v4915_v40 = vld [vmem:[%s5872_s18 + $0x1a4] ss:$16 sps:$4 sm:$0xff]   ;;  %v4919_v42 = vld [vmem:[%s5872_s18 + $0x1a0] ss:$16 sps:$4 sm:$0xff]  }
  0x4d   : > { %v4917_v41 = vld [vmem:[%s5872_s18 + $0x3a4] ss:$16 sps:$4 sm:$0xff]   ;;  %v4920_v43 = vld [vmem:[%s5872_s18 + $0x3a0] ss:$16 sps:$4 sm:$0xff]  }
  0x4e   : > { %3443 = vmatpush1.bf16.msra.mxu0 %v4889_v22  ;;  %v4921_v44 = vld [vmem:[%s5872_s18 + $0x184] ss:$16 sps:$4 sm:$0xff]   ;;  %v4925_v49 = vld [vmem:[%s5872_s18 + $0x180] ss:$16 sps:$4 sm:$0xff]  }
  0x4f   : > { %3484 = vmatpush1.bf16.msra.mxu1 %v4890_v23  ;;  %3444 = vmatprep.subr.bf16.mxu0 %v4891_v24  ;;  %v4923_v45 = vld [vmem:[%s5872_s18 + $0x384] ss:$16 sps:$4 sm:$0xff]   ;;  %v4926_v50 = vld [vmem:[%s5872_s18 + $0x380] ss:$16 sps:$4 sm:$0xff]  }
  0x50   : > { %3485 = vmatprep.subr.bf16.mxu1 %v4893_v25  ;;  %v274_v46 = vld [vmem:[%s6578_s0] sm:$0xff] }
  0x51   : > { %v5933_v47 = vcombine.high %v274_v46, %v274_v46  ;;  %v4927_v52 = vld [vmem:[%s5872_s18 + $0x164] ss:$16 sps:$4 sm:$0xff]   ;;  %v4931_v54 = vld [vmem:[%s5872_s18 + $0x160] ss:$16 sps:$4 sm:$0xff]   ;;  %v5962_v6 = vcombine.low %v274_v46, %v274_v46 }
  0x52   : > { %3445 = vmatpush1.bf16.msra.mxu0 %v4895_v26  ;;  %v4929_v53 = vld [vmem:[%s5872_s18 + $0x364] ss:$16 sps:$4 sm:$0xff]   ;;  %v4932_v55 = vld [vmem:[%s5872_s18 + $0x360] ss:$16 sps:$4 sm:$0xff]  }
  0x53   : > { %3486 = vmatpush1.bf16.msra.mxu1 %v4896_v27  ;;  %3446 = vmatprep.subr.bf16.mxu0 %v4897_v28  ;;  %v4933_v56 = vld [vmem:[%s5872_s18 + $0x144] ss:$16 sps:$4 sm:$0xff]   ;;  %v4937_v58 = vld [vmem:[%s5872_s18 + $0x140] ss:$16 sps:$4 sm:$0xff]  }
  0x54   : > { %3487 = vmatprep.subr.bf16.mxu1 %v4899_v29  ;;  %3464 = vmatprep.mubr.bf16.mxu0 %v5933_v47  ;;  %v4935_v57 = vld [vmem:[%s5872_s18 + $0x344] ss:$16 sps:$4 sm:$0xff]   ;;  %v4938_v59 = vld [vmem:[%s5872_s18 + $0x340] ss:$16 sps:$4 sm:$0xff]  }
  0x55   : > { %v4939_v60 = vld [vmem:[%s5872_s18 + $0x124] ss:$16 sps:$4 sm:$0xff]   ;;  %v4943_v62 = vld [vmem:[%s5872_s18 + $0x120] ss:$16 sps:$4 sm:$0xff]  }
  0x56   : > { %3447 = vmatpush1.bf16.msra.mxu0 %v4901_v30  ;;  %v4941_v61 = vld [vmem:[%s5872_s18 + $0x324] ss:$16 sps:$4 sm:$0xff]   ;;  %v4944_v63 = vld [vmem:[%s5872_s18 + $0x320] ss:$16 sps:$4 sm:$0xff]  }
  0x57   : > { %3488 = vmatpush1.bf16.msra.mxu1 %v4902_v31  ;;  %3448 = vmatprep.subr.bf16.mxu0 %v4903_v32  ;;  %v4945_v0 = vld [vmem:[%s5872_s18 + $0x104] ss:$16 sps:$4 sm:$0xff]   ;;  %v4949_v2 = vld [vmem:[%s5872_s18 + $0x100] ss:$16 sps:$4 sm:$0xff]  }
  0x58   : > { %3489 = vmatprep.subr.bf16.mxu1 %v4905_v33  ;;  %v4947_v1 = vld [vmem:[%s5872_s18 + $0x304] ss:$16 sps:$4 sm:$0xff]   ;;  %v4950_v3 = vld [vmem:[%s5872_s18 + $0x300] ss:$16 sps:$4 sm:$0xff]   ;;  %v6000_v33 = vld [vmem:[%s6578_s0 + $0x18] sm:$0xff] }
  0x59   : > { %v4957_v4 = vld [vmem:[%s5872_s18 + $0x4e4] ss:$16 sps:$4 sm:$0xff]   ;;  %v4955_v8 = vld [vmem:[%s5872_s18 + $0x4e0] ss:$16 sps:$4 sm:$0xff]  }
  0x5a   : > { %3449 = vmatpush2.bf16.msra.mxu0 %v4907_v34  ;;  %v4960_v5 = vld [vmem:[%s5872_s18 + $0x6e4] ss:$16 sps:$4 sm:$0xff]   ;;  %v4958_v9 = vld [vmem:[%s5872_s18 + $0x6e0] ss:$16 sps:$4 sm:$0xff]  }
  0x5b   : > { %3490 = vmatpush2.bf16.msra.mxu1 %v4908_v35  ;;  %3450 = vmatprep.subr.bf16.mxu0 %v4909_v36  ;;  %v4963_v10 = vld [vmem:[%s5872_s18 + $0x4c4] ss:$16 sps:$4 sm:$0xff]   ;;  %v4961_v12 = vld [vmem:[%s5872_s18 + $0x4c0] ss:$16 sps:$4 sm:$0xff]  }
  0x5c   : > { %3491 = vmatprep.subr.bf16.mxu1 %v4911_v37  ;;  %v4966_v11 = vld [vmem:[%s5872_s18 + $0x6c4] ss:$16 sps:$4 sm:$0xff]   ;;  %v4964_v13 = vld [vmem:[%s5872_s18 + $0x6c0] ss:$16 sps:$4 sm:$0xff]   ;;  %v6010_v37 = vcombine.high %v6000_v33, %v6000_v33 }
  0x5d   : > { %v4969_v14 = vld [vmem:[%s5872_s18 + $0x4a4] ss:$16 sps:$4 sm:$0xff]   ;;  %v4967_v16 = vld [vmem:[%s5872_s18 + $0x4a0] ss:$16 sps:$4 sm:$0xff]  }
  0x5e   : > { %3451 = vmatpush2.bf16.msra.mxu0 %v4913_v38  ;;  %v4972_v15 = vld [vmem:[%s5872_s18 + $0x6a4] ss:$16 sps:$4 sm:$0xff]   ;;  %v4970_v17 = vld [vmem:[%s5872_s18 + $0x6a0] ss:$16 sps:$4 sm:$0xff]  }
  0x5f   : > { %3492 = vmatpush2.bf16.msra.mxu1 %v4914_v39  ;;  %3452 = vmatprep.subr.bf16.mxu0 %v4915_v40  ;;  %v4975_v18 = vld [vmem:[%s5872_s18 + $0x484] ss:$16 sps:$4 sm:$0xff]   ;;  %v4973_v20 = vld [vmem:[%s5872_s18 + $0x480] ss:$16 sps:$4 sm:$0xff]  }
  0x60   : > { %3493 = vmatprep.subr.bf16.mxu1 %v4917_v41  ;;  %v4978_v19 = vld [vmem:[%s5872_s18 + $0x684] ss:$16 sps:$4 sm:$0xff]   ;;  %v4976_v21 = vld [vmem:[%s5872_s18 + $0x680] ss:$16 sps:$4 sm:$0xff]  }
  0x61   : > { %v4981_v22 = vld [vmem:[%s5872_s18 + $0x464] ss:$16 sps:$4 sm:$0xff]   ;;  %v4979_v24 = vld [vmem:[%s5872_s18 + $0x460] ss:$16 sps:$4 sm:$0xff]  }
  0x62   : > { %3453 = vmatpush2.bf16.msra.mxu0 %v4919_v42  ;;  %v4984_v23 = vld [vmem:[%s5872_s18 + $0x664] ss:$16 sps:$4 sm:$0xff]   ;;  %v4982_v25 = vld [vmem:[%s5872_s18 + $0x660] ss:$16 sps:$4 sm:$0xff]  }
  0x63   : > { %3494 = vmatpush2.bf16.msra.mxu1 %v4920_v43  ;;  %3454 = vmatprep.subr.bf16.mxu0 %v4921_v44  ;;  %v4987_v26 = vld [vmem:[%s5872_s18 + $0x444] ss:$16 sps:$4 sm:$0xff]   ;;  %v4985_v28 = vld [vmem:[%s5872_s18 + $0x440] ss:$16 sps:$4 sm:$0xff]  }
  0x64   : > { %3495 = vmatprep.subr.bf16.mxu1 %v4923_v45  ;;  %v4990_v27 = vld [vmem:[%s5872_s18 + $0x644] ss:$16 sps:$4 sm:$0xff]   ;;  %v4988_v29 = vld [vmem:[%s5872_s18 + $0x640] ss:$16 sps:$4 sm:$0xff]  }
  0x65   : > { %v4993_v30 = vld [vmem:[%s5872_s18 + $0x424] ss:$16 sps:$4 sm:$0xff]   ;;  %v4991_v34 = vld [vmem:[%s5872_s18 + $0x420] ss:$16 sps:$4 sm:$0xff]  }
  0x66   : > { %3455 = vmatpush2.bf16.msra.mxu0 %v4925_v49  ;;  %v4996_v31 = vld [vmem:[%s5872_s18 + $0x624] ss:$16 sps:$4 sm:$0xff]   ;;  %v4994_v35 = vld [vmem:[%s5872_s18 + $0x620] ss:$16 sps:$4 sm:$0xff]  }
  0x67   : > { %3496 = vmatpush2.bf16.msra.mxu1 %v4926_v50  ;;  %3456 = vmatprep.subr.bf16.mxu0 %v4927_v52  ;;  %v5995_v32 = vld [vmem:[%s6578_s0 + $0x10] sm:$0xff] }
  0x68   : > { %3497 = vmatprep.subr.bf16.mxu1 %v4929_v53  ;;  %v6006_v36 = vcombine.high %v5995_v32, %v5995_v32  ;;  %v4999_v38 = vld [vmem:[%s5872_s18 + $0x404] ss:$16 sps:$4 sm:$0xff]   ;;  %v4997_v40 = vld [vmem:[%s5872_s18 + $0x400] ss:$16 sps:$4 sm:$0xff]  }
  0x69   : > { %v5002_v39 = vld [vmem:[%s5872_s18 + $0x604] ss:$16 sps:$4 sm:$0xff]   ;;  %v5000_v41 = vld [vmem:[%s5872_s18 + $0x600] ss:$16 sps:$4 sm:$0xff]  }
  0x6a   : > { %3457 = vmatpush2.bf16.msra.mxu0 %v4931_v54  ;;  %v5005_v42 = vld [vmem:[%s5872_s18 + $0x5e4] ss:$16 sps:$4 sm:$0xff]   ;;  %v5003_v44 = vld [vmem:[%s5872_s18 + $0x5e0] ss:$16 sps:$4 sm:$0xff]  }
  0x6b   : > { %3498 = vmatpush2.bf16.msra.mxu1 %v4932_v55  ;;  %3458 = vmatprep.subr.bf16.mxu0 %v4933_v56  ;;  %v5008_v43 = vld [vmem:[%s5872_s18 + $0x7e4] ss:$16 sps:$4 sm:$0xff]   ;;  %v5006_v45 = vld [vmem:[%s5872_s18 + $0x7e0] ss:$16 sps:$4 sm:$0xff]  }
  0x6c   : > { %3499 = vmatprep.subr.bf16.mxu1 %v4935_v57  ;;  %v5011_v46 = vld [vmem:[%s5872_s18 + $0x5c4] ss:$16 sps:$4 sm:$0xff]   ;;  %v5009_v49 = vld [vmem:[%s5872_s18 + $0x5c0] ss:$16 sps:$4 sm:$0xff]  }
  0x6d   : > { %v5014_v48 = vld [vmem:[%s5872_s18 + $0x7c4] ss:$16 sps:$4 sm:$0xff]   ;;  %v5012_v50 = vld [vmem:[%s5872_s18 + $0x7c0] ss:$16 sps:$4 sm:$0xff]  }
  0x6e   : > { %3459 = vmatpush2.bf16.msra.mxu0 %v4937_v58  ;;  %v5017_v52 = vld [vmem:[%s5872_s18 + $0x5a4] ss:$16 sps:$4 sm:$0xff]   ;;  %v5015_v54 = vld [vmem:[%s5872_s18 + $0x5a0] ss:$16 sps:$4 sm:$0xff]  }
  0x6f   : > { %3500 = vmatpush2.bf16.msra.mxu1 %v4938_v59  ;;  %3460 = vmatprep.subr.bf16.mxu0 %v4939_v60  ;;  %v5020_v53 = vld [vmem:[%s5872_s18 + $0x7a4] ss:$16 sps:$4 sm:$0xff]   ;;  %v5018_v55 = vld [vmem:[%s5872_s18 + $0x7a0] ss:$16 sps:$4 sm:$0xff]  }
  0x70   : > { %3501 = vmatprep.subr.bf16.mxu1 %v4941_v61  ;;  %v5023_v56 = vld [vmem:[%s5872_s18 + $0x584] ss:$16 sps:$4 sm:$0xff]   ;;  %v5021_v58 = vld [vmem:[%s5872_s18 + $0x580] ss:$16 sps:$4 sm:$0xff]  }
  0x71   : > { %v5026_v57 = vld [vmem:[%s5872_s18 + $0x784] ss:$16 sps:$4 sm:$0xff]   ;;  %v5024_v59 = vld [vmem:[%s5872_s18 + $0x780] ss:$16 sps:$4 sm:$0xff]  }
  0x72   : > { %3461 = vmatpush2.bf16.msra.mxu0 %v4943_v62  ;;  %v5029_v60 = vld [vmem:[%s5872_s18 + $0x564] ss:$16 sps:$4 sm:$0xff]   ;;  %v5027_v62 = vld [vmem:[%s5872_s18 + $0x560] ss:$16 sps:$4 sm:$0xff]  }
  0x73   : > { %3502 = vmatpush2.bf16.msra.mxu1 %v4944_v63  ;;  %3462 = vmatprep.subr.bf16.mxu0 %v4945_v0  ;;  %v5032_v61 = vld [vmem:[%s5872_s18 + $0x764] ss:$16 sps:$4 sm:$0xff]   ;;  %v5030_v63 = vld [vmem:[%s5872_s18 + $0x760] ss:$16 sps:$4 sm:$0xff]  }
  0x74   : > { %3503 = vmatprep.subr.bf16.mxu1 %v4947_v1  ;;  %v5035_v0 = vld [vmem:[%s5872_s18 + $0x544] ss:$16 sps:$4 sm:$0xff]  }
  0x75   : > { %v5038_v1 = vld [vmem:[%s5872_s18 + $0x744] ss:$16 sps:$4 sm:$0xff]  }
  0x76   : > { %3463 = vmatpush2.bf16.msra.mxu0 %v4949_v2  ;;  %v5033_v2 = vld [vmem:[%s5872_s18 + $0x540] ss:$16 sps:$4 sm:$0xff]  }
  0x77   : > { %3504 = vmatpush2.bf16.msra.mxu1 %v4950_v3  ;;  %3514 = vmatprep.subr.bf16.mxu0 %v4957_v4  ;;  %v5036_v3 = vld [vmem:[%s5872_s18 + $0x740] ss:$16 sps:$4 sm:$0xff]   ;;  %v5041_v4 = vld [vmem:[%s5872_s18 + $0x524] ss:$16 sps:$4 sm:$0xff]  }
  0x78   : > { %3555 = vmatprep.subr.bf16.mxu1 %v4960_v5  ;;  %v5044_v5 = vld [vmem:[%s5872_s18 + $0x724] ss:$16 sps:$4 sm:$0xff]  }
  0x79   : > { %3465 = vmatmul.mubr.bf16.vlgmr.msra.gmra.mxu0 %v5962_v6 }
  0x7a   : > { %3506 = vmatmul.mubr.bf16.vlgmr.msra.gmra.mxu1 %v5964_v7  ;;  %3515 = vmatpush1.bf16.msra.mxu0 %v4955_v8  ;;  %v5039_v8 = vld [vmem:[%s5872_s18 + $0x520] ss:$16 sps:$4 sm:$0xff]  }
  0x7b   : > { %3556 = vmatpush1.bf16.msra.mxu1 %v4958_v9  ;;  %3516 = vmatprep.subr.bf16.mxu0 %v4963_v10  ;;  %v5042_v9 = vld [vmem:[%s5872_s18 + $0x720] ss:$16 sps:$4 sm:$0xff]   ;;  %v5047_v10 = vld [vmem:[%s5872_s18 + $0x504] ss:$16 sps:$4 sm:$0xff]  }
  0x7c   : > { %3557 = vmatprep.subr.bf16.mxu1 %v4966_v11  ;;  %3546 = vmatprep.mubr.bf16.mxu0 %v6006_v36  ;;  %v5050_v11 = vld [vmem:[%s5872_s18 + $0x704] ss:$16 sps:$4 sm:$0xff]  }
  0x7d   : > { %3587 = vmatprep.mubr.bf16.mxu1 %v6010_v37 }
  0x7e   : > { %3517 = vmatpush1.bf16.msra.mxu0 %v4961_v12  ;;  %v5045_v12 = vld [vmem:[%s5872_s18 + $0x500] ss:$16 sps:$4 sm:$0xff]  }
  0x7f   : > { %3558 = vmatpush1.bf16.msra.mxu1 %v4964_v13  ;;  %3518 = vmatprep.subr.bf16.mxu0 %v4969_v14  ;;  %v5048_v13 = vld [vmem:[%s5872_s18 + $0x700] ss:$16 sps:$4 sm:$0xff]   ;;  %v5057_v14 = vld [vmem:[%s5872_s18 + $0x8e4] ss:$16 sps:$4 sm:$0xff]  }
  0x80   : > { %3559 = vmatprep.subr.bf16.mxu1 %v4972_v15  ;;  %v5060_v15 = vld [vmem:[%s5872_s18 + $0xae4] ss:$16 sps:$4 sm:$0xff]  }
  0x82   : > { %3519 = vmatpush1.bf16.msra.mxu0 %v4967_v16  ;;  %v6054_v16 = vcombine.low %v5995_v32, %v5995_v32  ;;  %v5075_v32 = vld [vmem:[%s5872_s18 + $0x884] ss:$16 sps:$4 sm:$0xff]  }
  0x83   : > { %3560 = vmatpush1.bf16.msra.mxu1 %v4970_v17  ;;  %3520 = vmatprep.subr.bf16.mxu0 %v4975_v18  ;;  %v6058_v17 = vcombine.low %v6000_v33, %v6000_v33  ;;  %v5055_v18 = vld [vmem:[%s5872_s18 + $0x8e0] ss:$16 sps:$4 sm:$0xff]   ;;  %v5078_v33 = vld [vmem:[%s5872_s18 + $0xa84] ss:$16 sps:$4 sm:$0xff]  }
  0x84   : > { %3561 = vmatprep.subr.bf16.mxu1 %v4978_v19  ;;  %v5058_v19 = vld [vmem:[%s5872_s18 + $0xae0] ss:$16 sps:$4 sm:$0xff]  }
  0x86   : > { %3521 = vmatpush1.bf16.msra.mxu0 %v4973_v20  ;;  %v5063_v20 = vld [vmem:[%s5872_s18 + $0x8c4] ss:$16 sps:$4 sm:$0xff]  }
  0x87   : > { %3562 = vmatpush1.bf16.msra.mxu1 %v4976_v21  ;;  %3522 = vmatprep.subr.bf16.mxu0 %v4981_v22  ;;  %v5066_v21 = vld [vmem:[%s5872_s18 + $0xac4] ss:$16 sps:$4 sm:$0xff]  }
  0x88   : > { %3563 = vmatprep.subr.bf16.mxu1 %v4984_v23  ;;  %v6067_v22 = vld [vmem:[%s6578_s0 + $0x20] sm:$0xff]  ;;  %v6072_v23 = vld [vmem:[%s6578_s0 + $0x28] sm:$0xff] }
  0x8a   : > { %3523 = vmatpush1.bf16.msra.mxu0 %v4979_v24  ;;  %v6076_v24 = vcombine.high %v6067_v22, %v6067_v22 }
  0x8b   : > { %3564 = vmatpush1.bf16.msra.mxu1 %v4982_v25  ;;  %3524 = vmatprep.subr.bf16.mxu0 %v4987_v26  ;;  %v6080_v25 = vcombine.high %v6072_v23, %v6072_v23  ;;  %v5061_v26 = vld [vmem:[%s5872_s18 + $0x8c0] ss:$16 sps:$4 sm:$0xff]  }
  0x8c   : > { %3565 = vmatprep.subr.bf16.mxu1 %v4990_v27  ;;  %v5064_v27 = vld [vmem:[%s5872_s18 + $0xac0] ss:$16 sps:$4 sm:$0xff]  }
  0x8e   : > { %3525 = vmatpush1.bf16.msra.mxu0 %v4985_v28  ;;  %v5069_v28 = vld [vmem:[%s5872_s18 + $0x8a4] ss:$16 sps:$4 sm:$0xff]  }
  0x8f   : > { %3566 = vmatpush1.bf16.msra.mxu1 %v4988_v29  ;;  %3526 = vmatprep.subr.bf16.mxu0 %v4993_v30  ;;  %v5072_v29 = vld [vmem:[%s5872_s18 + $0xaa4] ss:$16 sps:$4 sm:$0xff]   ;;  %v5067_v30 = vld [vmem:[%s5872_s18 + $0x8a0] ss:$16 sps:$4 sm:$0xff]  }
  0x90   : > { %3567 = vmatprep.subr.bf16.mxu1 %v4996_v31  ;;  %v5070_v31 = vld [vmem:[%s5872_s18 + $0xaa0] ss:$16 sps:$4 sm:$0xff]  }
  0x92   : > { %3527 = vmatpush1.bf16.msra.mxu0 %v4991_v34  ;;  %v5073_v34 = vld [vmem:[%s5872_s18 + $0x880] ss:$16 sps:$4 sm:$0xff]  }
  0x93   : > { %3568 = vmatpush1.bf16.msra.mxu1 %v4994_v35  ;;  %3528 = vmatprep.subr.bf16.mxu0 %v4999_v38  ;;  %v5076_v35 = vld [vmem:[%s5872_s18 + $0xa80] ss:$16 sps:$4 sm:$0xff]   ;;  %v5081_v38 = vld [vmem:[%s5872_s18 + $0x864] ss:$16 sps:$4 sm:$0xff]  }
  0x94   : > { %3569 = vmatprep.subr.bf16.mxu1 %v5002_v39  ;;  %v5084_v39 = vld [vmem:[%s5872_s18 + $0xa64] ss:$16 sps:$4 sm:$0xff]  }
  0x96   : > { %3529 = vmatpush1.bf16.msra.mxu0 %v4997_v40  ;;  %v5079_v40 = vld [vmem:[%s5872_s18 + $0x860] ss:$16 sps:$4 sm:$0xff]  }
  0x97   : > { %3570 = vmatpush1.bf16.msra.mxu1 %v5000_v41  ;;  %3530 = vmatprep.subr.bf16.mxu0 %v5005_v42  ;;  %v5082_v41 = vld [vmem:[%s5872_s18 + $0xa60] ss:$16 sps:$4 sm:$0xff]   ;;  %v5087_v42 = vld [vmem:[%s5872_s18 + $0x844] ss:$16 sps:$4 sm:$0xff]  }
  0x98   : > { %3571 = vmatprep.subr.bf16.mxu1 %v5008_v43  ;;  %v5090_v43 = vld [vmem:[%s5872_s18 + $0xa44] ss:$16 sps:$4 sm:$0xff]  }
  0x9a   : > { %3531 = vmatpush2.bf16.msra.mxu0 %v5003_v44  ;;  %v5085_v44 = vld [vmem:[%s5872_s18 + $0x840] ss:$16 sps:$4 sm:$0xff]  }
  0x9b   : > { %3572 = vmatpush2.bf16.msra.mxu1 %v5006_v45  ;;  %3532 = vmatprep.subr.bf16.mxu0 %v5011_v46  ;;  %v5088_v45 = vld [vmem:[%s5872_s18 + $0xa40] ss:$16 sps:$4 sm:$0xff]   ;;  %v5093_v46 = vld [vmem:[%s5872_s18 + $0x824] ss:$16 sps:$4 sm:$0xff]  }
  0x9c   : > { %3573 = vmatprep.subr.bf16.mxu1 %v5014_v48  ;;  %v5096_v48 = vld [vmem:[%s5872_s18 + $0xa24] ss:$16 sps:$4 sm:$0xff]  }
  0x9e   : > { %3533 = vmatpush2.bf16.msra.mxu0 %v5009_v49  ;;  %v5091_v49 = vld [vmem:[%s5872_s18 + $0x820] ss:$16 sps:$4 sm:$0xff]  }
  0x9f   : > { %3574 = vmatpush2.bf16.msra.mxu1 %v5012_v50  ;;  %3534 = vmatprep.subr.bf16.mxu0 %v5017_v52  ;;  %v5094_v50 = vld [vmem:[%s5872_s18 + $0xa20] ss:$16 sps:$4 sm:$0xff]   ;;  %v5099_v52 = vld [vmem:[%s5872_s18 + $0x804] ss:$16 sps:$4 sm:$0xff]  }
  0xa0   : > { %3575 = vmatprep.subr.bf16.mxu1 %v5020_v53  ;;  %v5102_v53 = vld [vmem:[%s5872_s18 + $0xa04] ss:$16 sps:$4 sm:$0xff]  }
  0xa2   : > { %3535 = vmatpush2.bf16.msra.mxu0 %v5015_v54  ;;  %v5097_v54 = vld [vmem:[%s5872_s18 + $0x800] ss:$16 sps:$4 sm:$0xff]  }
  0xa3   : > { %3576 = vmatpush2.bf16.msra.mxu1 %v5018_v55  ;;  %3536 = vmatprep.subr.bf16.mxu0 %v5023_v56  ;;  %v5100_v55 = vld [vmem:[%s5872_s18 + $0xa00] ss:$16 sps:$4 sm:$0xff]   ;;  %v5105_v56 = vld [vmem:[%s5872_s18 + $0x9e4] ss:$16 sps:$4 sm:$0xff]  }
  0xa4   : > { %3577 = vmatprep.subr.bf16.mxu1 %v5026_v57  ;;  %v5108_v57 = vld [vmem:[%s5872_s18 + $0xbe4] ss:$16 sps:$4 sm:$0xff]  }
  0xa6   : > { %3537 = vmatpush2.bf16.msra.mxu0 %v5021_v58  ;;  %v5103_v58 = vld [vmem:[%s5872_s18 + $0x9e0] ss:$16 sps:$4 sm:$0xff]  }
  0xa7   : > { %3578 = vmatpush2.bf16.msra.mxu1 %v5024_v59  ;;  %3538 = vmatprep.subr.bf16.mxu0 %v5029_v60  ;;  %v5106_v59 = vld [vmem:[%s5872_s18 + $0xbe0] ss:$16 sps:$4 sm:$0xff]   ;;  %v5111_v60 = vld [vmem:[%s5872_s18 + $0x9c4] ss:$16 sps:$4 sm:$0xff]  }
  0xa8   : > { %3579 = vmatprep.subr.bf16.mxu1 %v5032_v61  ;;  %v5114_v61 = vld [vmem:[%s5872_s18 + $0xbc4] ss:$16 sps:$4 sm:$0xff]  }
  0xaa   : > { %3539 = vmatpush2.bf16.msra.mxu0 %v5027_v62  ;;  %v5109_v62 = vld [vmem:[%s5872_s18 + $0x9c0] ss:$16 sps:$4 sm:$0xff]  }
  0xab   : > { %3580 = vmatpush2.bf16.msra.mxu1 %v5030_v63  ;;  %3540 = vmatprep.subr.bf16.mxu0 %v5035_v0  ;;  %v5112_v63 = vld [vmem:[%s5872_s18 + $0xbc0] ss:$16 sps:$4 sm:$0xff]   ;;  %v5117_v0 = vld [vmem:[%s5872_s18 + $0x9a4] ss:$16 sps:$4 sm:$0xff]  }
  0xac   : > { %3581 = vmatprep.subr.bf16.mxu1 %v5038_v1  ;;  %v5120_v1 = vld [vmem:[%s5872_s18 + $0xba4] ss:$16 sps:$4 sm:$0xff]  }
  0xae   : > { %3541 = vmatpush2.bf16.msra.mxu0 %v5033_v2  ;;  %v5115_v2 = vld [vmem:[%s5872_s18 + $0x9a0] ss:$16 sps:$4 sm:$0xff]  }
  0xaf   : > { %3582 = vmatpush2.bf16.msra.mxu1 %v5036_v3  ;;  %3542 = vmatprep.subr.bf16.mxu0 %v5041_v4  ;;  %v5118_v3 = vld [vmem:[%s5872_s18 + $0xba0] ss:$16 sps:$4 sm:$0xff]   ;;  %v5123_v4 = vld [vmem:[%s5872_s18 + $0x984] ss:$16 sps:$4 sm:$0xff]  }
  0xb0   : > { %3583 = vmatprep.subr.bf16.mxu1 %v5044_v5  ;;  %v5126_v5 = vld [vmem:[%s5872_s18 + $0xb84] ss:$16 sps:$4 sm:$0xff]  }
  0xb2   : > { %3543 = vmatpush2.bf16.msra.mxu0 %v5039_v8  ;;  %v5121_v8 = vld [vmem:[%s5872_s18 + $0x980] ss:$16 sps:$4 sm:$0xff]  }
  0xb3   : > { %3584 = vmatpush2.bf16.msra.mxu1 %v5042_v9  ;;  %3544 = vmatprep.subr.bf16.mxu0 %v5047_v10  ;;  %v5124_v9 = vld [vmem:[%s5872_s18 + $0xb80] ss:$16 sps:$4 sm:$0xff]   ;;  %v5129_v10 = vld [vmem:[%s5872_s18 + $0x964] ss:$16 sps:$4 sm:$0xff]  }
  0xb4   : > { %3585 = vmatprep.subr.bf16.mxu1 %v5050_v11  ;;  %v5132_v11 = vld [vmem:[%s5872_s18 + $0xb64] ss:$16 sps:$4 sm:$0xff]  }
  0xb6   : > { %3545 = vmatpush2.bf16.msra.mxu0 %v5045_v12  ;;  %v5127_v12 = vld [vmem:[%s5872_s18 + $0x960] ss:$16 sps:$4 sm:$0xff]  }
  0xb7   : > { %3586 = vmatpush2.bf16.msra.mxu1 %v5048_v13  ;;  %3596 = vmatprep.subr.bf16.mxu0 %v5057_v14  ;;  %v5130_v13 = vld [vmem:[%s5872_s18 + $0xb60] ss:$16 sps:$4 sm:$0xff]   ;;  %v5135_v14 = vld [vmem:[%s5872_s18 + $0x944] ss:$16 sps:$4 sm:$0xff]  }
  0xb8   : > { %3637 = vmatprep.subr.bf16.mxu1 %v5060_v15  ;;  %v5138_v15 = vld [vmem:[%s5872_s18 + $0xb44] ss:$16 sps:$4 sm:$0xff]  }
  0xb9   : > { %3547 = vmatmul.mubr.bf16.vlgmr.msra.gmra.mxu0 %v6054_v16 }
  0xba   : > { %3588 = vmatmul.mubr.bf16.vlgmr.msra.gmra.mxu1 %v6058_v17  ;;  %3597 = vmatpush1.bf16.msra.mxu0 %v5055_v18  ;;  %v5133_v18 = vld [vmem:[%s5872_s18 + $0x940] ss:$16 sps:$4 sm:$0xff]  }
  0xbb   : > { %3638 = vmatpush1.bf16.msra.mxu1 %v5058_v19  ;;  %3598 = vmatprep.subr.bf16.mxu0 %v5063_v20  ;;  %v5136_v19 = vld [vmem:[%s5872_s18 + $0xb40] ss:$16 sps:$4 sm:$0xff]   ;;  %v5141_v20 = vld [vmem:[%s5872_s18 + $0x924] ss:$16 sps:$4 sm:$0xff]  }
  0xbc   : > { %3639 = vmatprep.subr.bf16.mxu1 %v5066_v21  ;;  %3628 = vmatprep.mubr.bf16.mxu0 %v6076_v24  ;;  %v5144_v21 = vld [vmem:[%s5872_s18 + $0xb24] ss:$16 sps:$4 sm:$0xff]  }
  0xbd   : > { %3669 = vmatprep.mubr.bf16.mxu1 %v6080_v25 }
  0xbe   : > { %3599 = vmatpush1.bf16.msra.mxu0 %v5061_v26  ;;  %v5139_v26 = vld [vmem:[%s5872_s18 + $0x920] ss:$16 sps:$4 sm:$0xff]  }
  0xbf   : > { %3640 = vmatpush1.bf16.msra.mxu1 %v5064_v27  ;;  %3600 = vmatprep.subr.bf16.mxu0 %v5069_v28  ;;  %v5142_v27 = vld [vmem:[%s5872_s18 + $0xb20] ss:$16 sps:$4 sm:$0xff]   ;;  %v5147_v28 = vld [vmem:[%s5872_s18 + $0x904] ss:$16 sps:$4 sm:$0xff]  }
  0xc0   : > { %3641 = vmatprep.subr.bf16.mxu1 %v5072_v29  ;;  %v5150_v29 = vld [vmem:[%s5872_s18 + $0xb04] ss:$16 sps:$4 sm:$0xff]  }
  0xc2   : > { %3601 = vmatpush1.bf16.msra.mxu0 %v5067_v30  ;;  %v5145_v30 = vld [vmem:[%s5872_s18 + $0x900] ss:$16 sps:$4 sm:$0xff]  }
  0xc3   : > { %3642 = vmatpush1.bf16.msra.mxu1 %v5070_v31  ;;  %3602 = vmatprep.subr.bf16.mxu0 %v5075_v32  ;;  %v5148_v31 = vld [vmem:[%s5872_s18 + $0xb00] ss:$16 sps:$4 sm:$0xff]   ;;  %v5157_v32 = vld [vmem:[%s5872_s18 + $0xce4] ss:$16 sps:$4 sm:$0xff]  }
  0xc4   : > { %3643 = vmatprep.subr.bf16.mxu1 %v5078_v33  ;;  %v5160_v33 = vld [vmem:[%s5872_s18 + $0xee4] ss:$16 sps:$4 sm:$0xff]  }
  0xc6   : > { %3603 = vmatpush1.bf16.msra.mxu0 %v5073_v34  ;;  %v5155_v34 = vld [vmem:[%s5872_s18 + $0xce0] ss:$16 sps:$4 sm:$0xff]  }
  0xc7   : > { %3644 = vmatpush1.bf16.msra.mxu1 %v5076_v35  ;;  %3604 = vmatprep.subr.bf16.mxu0 %v5081_v38  ;;  %v6150_v35 = vld [vmem:[%s6578_s0 + $0x30] sm:$0xff]  ;;  %v6154_v38 = vcombine.low %v6067_v22, %v6067_v22 }
  0xc8   : > { %3645 = vmatprep.subr.bf16.mxu1 %v5084_v39  ;;  %v6158_v39 = vcombine.low %v6072_v23, %v6072_v23  ;;  %v5166_v22 = vld [vmem:[%s5872_s18 + $0xec4] ss:$16 sps:$4 sm:$0xff]   ;;  %v6170_v23 = vcombine.high %v6150_v35, %v6150_v35 }
  0xca   : > { %3605 = vmatpush1.bf16.msra.mxu0 %v5079_v40  ;;  %v6163_v40 = vld [vmem:[%s6578_s0 + $0x38] sm:$0xff] }
  0xcb   : > { %3646 = vmatpush1.bf16.msra.mxu1 %v5082_v41  ;;  %3606 = vmatprep.subr.bf16.mxu0 %v5087_v42  ;;  %v5158_v41 = vld [vmem:[%s5872_s18 + $0xee0] ss:$16 sps:$4 sm:$0xff]   ;;  %v5163_v42 = vld [vmem:[%s5872_s18 + $0xcc4] ss:$16 sps:$4 sm:$0xff]  }
  0xcc   : > { %3647 = vmatprep.subr.bf16.mxu1 %v5090_v43  ;;  %v6174_v43 = vcombine.high %v6163_v40, %v6163_v40 }
  0xce   : > { %3607 = vmatpush1.bf16.msra.mxu0 %v5085_v44  ;;  %v5161_v44 = vld [vmem:[%s5872_s18 + $0xcc0] ss:$16 sps:$4 sm:$0xff]  }
  0xcf   : > { %3648 = vmatpush1.bf16.msra.mxu1 %v5088_v45  ;;  %3608 = vmatprep.subr.bf16.mxu0 %v5093_v46  ;;  %v5164_v45 = vld [vmem:[%s5872_s18 + $0xec0] ss:$16 sps:$4 sm:$0xff]   ;;  %v5169_v46 = vld [vmem:[%s5872_s18 + $0xca4] ss:$16 sps:$4 sm:$0xff]  }
  0xd0   : > { %3649 = vmatprep.subr.bf16.mxu1 %v5096_v48  ;;  %v5172_v48 = vld [vmem:[%s5872_s18 + $0xea4] ss:$16 sps:$4 sm:$0xff]  }
  0xd2   : > { %3609 = vmatpush1.bf16.msra.mxu0 %v5091_v49  ;;  %v5167_v49 = vld [vmem:[%s5872_s18 + $0xca0] ss:$16 sps:$4 sm:$0xff]  }
  0xd3   : > { %3650 = vmatpush1.bf16.msra.mxu1 %v5094_v50  ;;  %3610 = vmatprep.subr.bf16.mxu0 %v5099_v52  ;;  %v5170_v50 = vld [vmem:[%s5872_s18 + $0xea0] ss:$16 sps:$4 sm:$0xff]   ;;  %v5175_v52 = vld [vmem:[%s5872_s18 + $0xc84] ss:$16 sps:$4 sm:$0xff]  }
  0xd4   : > { %3651 = vmatprep.subr.bf16.mxu1 %v5102_v53  ;;  %v5178_v53 = vld [vmem:[%s5872_s18 + $0xe84] ss:$16 sps:$4 sm:$0xff]  }
  0xd6   : > { %3611 = vmatpush1.bf16.msra.mxu0 %v5097_v54  ;;  %v5173_v54 = vld [vmem:[%s5872_s18 + $0xc80] ss:$16 sps:$4 sm:$0xff]  }
  0xd7   : > { %3652 = vmatpush1.bf16.msra.mxu1 %v5100_v55  ;;  %3612 = vmatprep.subr.bf16.mxu0 %v5105_v56  ;;  %v5176_v55 = vld [vmem:[%s5872_s18 + $0xe80] ss:$16 sps:$4 sm:$0xff]   ;;  %v5181_v56 = vld [vmem:[%s5872_s18 + $0xc64] ss:$16 sps:$4 sm:$0xff]  }
  0xd8   : > { %3653 = vmatprep.subr.bf16.mxu1 %v5108_v57  ;;  %v5184_v57 = vld [vmem:[%s5872_s18 + $0xe64] ss:$16 sps:$4 sm:$0xff]  }
  0xda   : > { %3613 = vmatpush2.bf16.msra.mxu0 %v5103_v58  ;;  %v5179_v58 = vld [vmem:[%s5872_s18 + $0xc60] ss:$16 sps:$4 sm:$0xff]  }
  0xdb   : > { %3654 = vmatpush2.bf16.msra.mxu1 %v5106_v59  ;;  %3614 = vmatprep.subr.bf16.mxu0 %v5111_v60  ;;  %v5182_v59 = vld [vmem:[%s5872_s18 + $0xe60] ss:$16 sps:$4 sm:$0xff]   ;;  %v5187_v60 = vld [vmem:[%s5872_s18 + $0xc44] ss:$16 sps:$4 sm:$0xff]  }
  0xdc   : > { %3655 = vmatprep.subr.bf16.mxu1 %v5114_v61  ;;  %v5190_v61 = vld [vmem:[%s5872_s18 + $0xe44] ss:$16 sps:$4 sm:$0xff]  }
  0xde   : > { %3615 = vmatpush2.bf16.msra.mxu0 %v5109_v62  ;;  %v5185_v62 = vld [vmem:[%s5872_s18 + $0xc40] ss:$16 sps:$4 sm:$0xff]  }
  0xdf   : > { %3656 = vmatpush2.bf16.msra.mxu1 %v5112_v63  ;;  %3616 = vmatprep.subr.bf16.mxu0 %v5117_v0  ;;  %v5188_v63 = vld [vmem:[%s5872_s18 + $0xe40] ss:$16 sps:$4 sm:$0xff]   ;;  %v5193_v0 = vld [vmem:[%s5872_s18 + $0xc24] ss:$16 sps:$4 sm:$0xff]  }
  0xe0   : > { %3657 = vmatprep.subr.bf16.mxu1 %v5120_v1  ;;  %v5196_v1 = vld [vmem:[%s5872_s18 + $0xe24] ss:$16 sps:$4 sm:$0xff]  }
  0xe2   : > { %3617 = vmatpush2.bf16.msra.mxu0 %v5115_v2  ;;  %v5191_v2 = vld [vmem:[%s5872_s18 + $0xc20] ss:$16 sps:$4 sm:$0xff]  }
  0xe3   : > { %3658 = vmatpush2.bf16.msra.mxu1 %v5118_v3  ;;  %3618 = vmatprep.subr.bf16.mxu0 %v5123_v4  ;;  %v5194_v3 = vld [vmem:[%s5872_s18 + $0xe20] ss:$16 sps:$4 sm:$0xff]   ;;  %v5199_v4 = vld [vmem:[%s5872_s18 + $0xc04] ss:$16 sps:$4 sm:$0xff]  }
  0xe4   : > { %3659 = vmatprep.subr.bf16.mxu1 %v5126_v5  ;;  %v5202_v5 = vld [vmem:[%s5872_s18 + $0xe04] ss:$16 sps:$4 sm:$0xff]  }
  0xe6   : > { %3619 = vmatpush2.bf16.msra.mxu0 %v5121_v8  ;;  %v5197_v8 = vld [vmem:[%s5872_s18 + $0xc00] ss:$16 sps:$4 sm:$0xff]  }
  0xe7   : > { %3660 = vmatpush2.bf16.msra.mxu1 %v5124_v9  ;;  %3620 = vmatprep.subr.bf16.mxu0 %v5129_v10  ;;  %v5200_v9 = vld [vmem:[%s5872_s18 + $0xe00] ss:$16 sps:$4 sm:$0xff]   ;;  %v5205_v10 = vld [vmem:[%s5872_s18 + $0xde4] ss:$16 sps:$4 sm:$0xff]  }
  0xe8   : > { %3661 = vmatprep.subr.bf16.mxu1 %v5132_v11  ;;  %v5208_v11 = vld [vmem:[%s5872_s18 + $0xfe4] ss:$16 sps:$4 sm:$0xff]  }
  0xea   : > { %3621 = vmatpush2.bf16.msra.mxu0 %v5127_v12  ;;  %v5203_v12 = vld [vmem:[%s5872_s18 + $0xde0] ss:$16 sps:$4 sm:$0xff]  }
  0xeb   : > { %3662 = vmatpush2.bf16.msra.mxu1 %v5130_v13  ;;  %3622 = vmatprep.subr.bf16.mxu0 %v5135_v14  ;;  %v5206_v13 = vld [vmem:[%s5872_s18 + $0xfe0] ss:$16 sps:$4 sm:$0xff]   ;;  %v5211_v14 = vld [vmem:[%s5872_s18 + $0xdc4] ss:$16 sps:$4 sm:$0xff]  }
  0xec   : > { %3663 = vmatprep.subr.bf16.mxu1 %v5138_v15  ;;  %v5214_v15 = vld [vmem:[%s5872_s18 + $0xfc4] ss:$16 sps:$4 sm:$0xff]  }
  0xee   : > { %3623 = vmatpush2.bf16.msra.mxu0 %v5133_v18  ;;  %v5209_v18 = vld [vmem:[%s5872_s18 + $0xdc0] ss:$16 sps:$4 sm:$0xff]  }
  0xef   : > { %3664 = vmatpush2.bf16.msra.mxu1 %v5136_v19  ;;  %3624 = vmatprep.subr.bf16.mxu0 %v5141_v20  ;;  %v5212_v19 = vld [vmem:[%s5872_s18 + $0xfc0] ss:$16 sps:$4 sm:$0xff]   ;;  %v5217_v20 = vld [vmem:[%s5872_s18 + $0xda4] ss:$16 sps:$4 sm:$0xff]  }
  0xf0   : > { %3665 = vmatprep.subr.bf16.mxu1 %v5144_v21  ;;  %v5220_v21 = vld [vmem:[%s5872_s18 + $0xfa4] ss:$16 sps:$4 sm:$0xff]  }
  0xf2   : > { %3625 = vmatpush2.bf16.msra.mxu0 %v5139_v26  ;;  %v5215_v26 = vld [vmem:[%s5872_s18 + $0xda0] ss:$16 sps:$4 sm:$0xff]  }
  0xf3   : > { %3666 = vmatpush2.bf16.msra.mxu1 %v5142_v27  ;;  %3626 = vmatprep.subr.bf16.mxu0 %v5147_v28  ;;  %v5218_v27 = vld [vmem:[%s5872_s18 + $0xfa0] ss:$16 sps:$4 sm:$0xff]   ;;  %v5223_v28 = vld [vmem:[%s5872_s18 + $0xd84] ss:$16 sps:$4 sm:$0xff]  }
  0xf4   : > { %3667 = vmatprep.subr.bf16.mxu1 %v5150_v29  ;;  %v5226_v29 = vld [vmem:[%s5872_s18 + $0xf84] ss:$16 sps:$4 sm:$0xff]  }
  0xf6   : > { %3627 = vmatpush2.bf16.msra.mxu0 %v5145_v30  ;;  %v5221_v30 = vld [vmem:[%s5872_s18 + $0xd80] ss:$16 sps:$4 sm:$0xff]  }
  0xf7   : > { %3668 = vmatpush2.bf16.msra.mxu1 %v5148_v31  ;;  %3678 = vmatprep.subr.bf16.mxu0 %v5157_v32  ;;  %v5224_v31 = vld [vmem:[%s5872_s18 + $0xf80] ss:$16 sps:$4 sm:$0xff]   ;;  %v5229_v32 = vld [vmem:[%s5872_s18 + $0xd64] ss:$16 sps:$4 sm:$0xff]  }
  0xf8   : > { %3719 = vmatprep.subr.bf16.mxu1 %v5160_v33  ;;  %v5232_v33 = vld [vmem:[%s5872_s18 + $0xf64] ss:$16 sps:$4 sm:$0xff]  }
  0xf9   : > { %3629 = vmatmul.mubr.bf16.vlgmr.msra.gmra.mxu0 %v6154_v38 }
  0xfa   : > { %3670 = vmatmul.mubr.bf16.vlgmr.msra.gmra.mxu1 %v6158_v39  ;;  %3679 = vmatpush1.bf16.msra.mxu0 %v5155_v34  ;;  %v5227_v34 = vld [vmem:[%s5872_s18 + $0xd60] ss:$16 sps:$4 sm:$0xff]  }
  0xfb   : > { %3720 = vmatpush1.bf16.msra.mxu1 %v5158_v41  ;;  %3680 = vmatprep.subr.bf16.mxu0 %v5163_v42  ;;  %v5230_v41 = vld [vmem:[%s5872_s18 + $0xf60] ss:$16 sps:$4 sm:$0xff]   ;;  %v5235_v42 = vld [vmem:[%s5872_s18 + $0xd44] ss:$16 sps:$4 sm:$0xff]  }
  0xfc   : > { %3721 = vmatprep.subr.bf16.mxu1 %v5166_v22  ;;  %3710 = vmatprep.mubr.bf16.mxu0 %v6170_v23  ;;  %v5238_v22 = vld [vmem:[%s5872_s18 + $0xf44] ss:$16 sps:$4 sm:$0xff]  }
  0xfd   : > { %3751 = vmatprep.mubr.bf16.mxu1 %v6174_v43 }
  0xfe   : > { %3681 = vmatpush1.bf16.msra.mxu0 %v5161_v44  ;;  %v5233_v44 = vld [vmem:[%s5872_s18 + $0xd40] ss:$16 sps:$4 sm:$0xff]  }
  0xff   : > { %3722 = vmatpush1.bf16.msra.mxu1 %v5164_v45  ;;  %3682 = vmatprep.subr.bf16.mxu0 %v5169_v46  ;;  %v5236_v45 = vld [vmem:[%s5872_s18 + $0xf40] ss:$16 sps:$4 sm:$0xff]   ;;  %v796_v46 = vlaneseq }
 0x100   : > { %3723 = vmatprep.subr.bf16.mxu1 %v5172_v48  ;;  %v5241_v48 = vld [vmem:[%s5872_s18 + $0xd24] ss:$16 sps:$4 sm:$0xff]  }
 0x102   : > { %3683 = vmatpush1.bf16.msra.mxu0 %v5167_v49  ;;  %v5244_v49 = vld [vmem:[%s5872_s18 + $0xf24] ss:$16 sps:$4 sm:$0xff]  }
 0x103   : > { %3724 = vmatpush1.bf16.msra.mxu1 %v5170_v50  ;;  %3684 = vmatprep.subr.bf16.mxu0 %v5175_v52  ;;  %v5239_v50 = vld [vmem:[%s5872_s18 + $0xd20] ss:$16 sps:$4 sm:$0xff]  }
 0x104   : > { %3725 = vmatprep.subr.bf16.mxu1 %v5178_v53  ;;  %v5242_v52 = vld [vmem:[%s5872_s18 + $0xf20] ss:$16 sps:$4 sm:$0xff]   ;;  %v6234_v53 = vshrl.u32 %v796_v46, 7  ;;  %v5288_v46 = vld [vmem:[%s5872_s18 + $0x248] ss:$16 sps:$4 sm:$0xff]  }
 0x106   : > { %3685 = vmatpush1.bf16.msra.mxu0 %v5173_v54  ;;  %v5247_v54 = vld [vmem:[%s5872_s18 + $0xd04] ss:$16 sps:$4 sm:$0xff]  }
 0x107   : > { %3726 = vmatpush1.bf16.msra.mxu1 %v5176_v55  ;;  %3686 = vmatprep.subr.bf16.mxu0 %v5181_v56  ;;  %v5250_v55 = vld [vmem:[%s5872_s18 + $0xf04] ss:$16 sps:$4 sm:$0xff]   ;;  %v5245_v56 = vld [vmem:[%s5872_s18 + $0xd00] ss:$16 sps:$4 sm:$0xff]  }
 0x108   : > { %3727 = vmatprep.subr.bf16.mxu1 %v5184_v57  ;;  %v5248_v57 = vld [vmem:[%s5872_s18 + $0xf00] ss:$16 sps:$4 sm:$0xff]  }
 0x10a   : > { %3687 = vmatpush1.bf16.msra.mxu0 %v5179_v58  ;;  %v794_v58 = vld [vmem:[%s5878_s6] sm:$0xf] }
 0x10b   : > { %3728 = vmatpush1.bf16.msra.mxu1 %v5182_v59  ;;  %3688 = vmatprep.subr.bf16.mxu0 %v5187_v60  ;;  %v798_v59 = vsub.s32 0, %v6234_v53  ;;  %v5257_v60 = vld [vmem:[%s5872_s18 + $0xec] ss:$16 sps:$4 sm:$0xff]  }
 0x10c   : > { %3729 = vmatprep.subr.bf16.mxu1 %v5190_v61  ;;  %v5260_v61 = vld [vmem:[%s5872_s18 + $0x2ec] ss:$16 sps:$4 sm:$0xff]  }
 0x10e   : > { %3689 = vmatpush1.bf16.msra.mxu0 %v5185_v62  ;;  %v802_v62 = vsub.s32 1, %v6234_v53 }
 0x10f   : > { %3730 = vmatpush1.bf16.msra.mxu1 %v5188_v63  ;;  %3690 = vmatprep.subr.bf16.mxu0 %v5193_v0  ;;  %v6247_v63 = vcombine.low %v6150_v35, %v6150_v35  ;;  %v6251_v0 = vcombine.low %v6163_v40, %v6163_v40  ;;  %v5261_v40 = vld [vmem:[%s5872_s18 + $0xc8] ss:$16 sps:$4 sm:$0xff]  }
 0x110   : > { %3731 = vmatprep.subr.bf16.mxu1 %v5196_v1  ;;  %v5255_v1 = vld [vmem:[%s5872_s18 + $0xe8] ss:$16 sps:$4 sm:$0xff]  }
 0x112   : > { %3691 = vmatpush1.bf16.msra.mxu0 %v5191_v2  ;;  %v799_v2 = vrot.slane %v794_v58, %v798_v59  ;;  %v5308_v59 = vld [vmem:[%s5872_s18 + $0x3ec] ss:$16 sps:$4 sm:$0xff]  }
 0x113   : > { %3732 = vmatpush1.bf16.msra.mxu1 %v5194_v3  ;;  %3692 = vmatprep.subr.bf16.mxu0 %v5199_v4  ;;  %v5258_v3 = vld [vmem:[%s5872_s18 + $0x2e8] ss:$16 sps:$4 sm:$0xff]   ;;  %v5263_v4 = vld [vmem:[%s5872_s18 + $0xcc] ss:$16 sps:$4 sm:$0xff]  }
 0x114   : > { %3733 = vmatprep.subr.bf16.mxu1 %v5202_v5  ;;  %v5266_v5 = vld [vmem:[%s5872_s18 + $0x2cc] ss:$16 sps:$4 sm:$0xff]  }
 0x116   : > { %3693 = vmatpush1.bf16.msra.mxu0 %v5197_v8  ;;  %v803_v8 = vrot.slane %v794_v58, %v802_v62  ;;  %v5305_v58 = vld [vmem:[%s5872_s18 + $0x1ec] ss:$16 sps:$4 sm:$0xff]  }
 0x117   : > { %3734 = vmatpush1.bf16.msra.mxu1 %v5200_v9  ;;  %3694 = vmatprep.subr.bf16.mxu0 %v5205_v10  ;;  %v5311_v62 = vld [vmem:[%s5872_s18 + $0x1cc] ss:$16 sps:$4 sm:$0xff]  }
 0x118   : > { %3735 = vmatprep.subr.bf16.mxu1 %v5208_v11  ;;  %v5264_v11 = vld [vmem:[%s5872_s18 + $0x2c8] ss:$16 sps:$4 sm:$0xff]  }
 0x11a   : > { %3695 = vmatpush2.bf16.msra.mxu0 %v5203_v12 }
 0x11b   : > { %3736 = vmatpush2.bf16.msra.mxu1 %v5206_v13  ;;  %3696 = vmatprep.subr.bf16.mxu0 %v5211_v14  ;;  %v5269_v14 = vld [vmem:[%s5872_s18 + $0xac] ss:$16 sps:$4 sm:$0xff]  }
 0x11c   : > { %3737 = vmatprep.subr.bf16.mxu1 %v5214_v15  ;;  %v5272_v15 = vld [vmem:[%s5872_s18 + $0x2ac] ss:$16 sps:$4 sm:$0xff]  }
 0x11e   : > { %3697 = vmatpush2.bf16.msra.mxu0 %v5209_v18 }
 0x11f   : > { %3738 = vmatpush2.bf16.msra.mxu1 %v5212_v19  ;;  %3698 = vmatprep.subr.bf16.mxu0 %v5217_v20 }
 0x120   : > { %3739 = vmatprep.subr.bf16.mxu1 %v5220_v21 }
 0x122   : > { %3699 = vmatpush2.bf16.msra.mxu0 %v5215_v26  ;;  %v5267_v26 = vld [vmem:[%s5872_s18 + $0xa8] ss:$16 sps:$4 sm:$0xff]  }
 0x123   : > { %3740 = vmatpush2.bf16.msra.mxu1 %v5218_v27  ;;  %3700 = vmatprep.subr.bf16.mxu0 %v5223_v28  ;;  %v5270_v28 = vld [vmem:[%s5872_s18 + $0x2a8] ss:$16 sps:$4 sm:$0xff]  }
 0x124   : > { %3741 = vmatprep.subr.bf16.mxu1 %v5226_v29 }
 0x126   : > { %3701 = vmatpush2.bf16.msra.mxu0 %v5221_v30 }
 0x127   : > { %3742 = vmatpush2.bf16.msra.mxu1 %v5224_v31  ;;  %3702 = vmatprep.subr.bf16.mxu0 %v5229_v32  ;;  %v5273_v31 = vld [vmem:[%s5872_s18 + $0x88] ss:$16 sps:$4 sm:$0xff]  }
 0x128   : > { %3743 = vmatprep.subr.bf16.mxu1 %v5232_v33  ;;  %v5276_v32 = vld [vmem:[%s5872_s18 + $0x288] ss:$16 sps:$4 sm:$0xff]   ;;  %v5281_v33 = vld [vmem:[%s5872_s18 + $0x6c] ss:$16 sps:$4 sm:$0xff]  }
 0x12a   : > { %3703 = vmatpush2.bf16.msra.mxu0 %v5227_v34  ;;  %v5284_v34 = vld [vmem:[%s5872_s18 + $0x26c] ss:$16 sps:$4 sm:$0xff]  }
 0x12b   : > { %3744 = vmatpush2.bf16.msra.mxu1 %v5230_v41  ;;  %3704 = vmatprep.subr.bf16.mxu0 %v5235_v42  ;;  %v5279_v41 = vld [vmem:[%s5872_s18 + $0x68] ss:$16 sps:$4 sm:$0xff]  }
 0x12c   : > { %3745 = vmatprep.subr.bf16.mxu1 %v5238_v22  ;;  %v5282_v42 = vld [vmem:[%s5872_s18 + $0x268] ss:$16 sps:$4 sm:$0xff]   ;;  %v5287_v22 = vld [vmem:[%s5872_s18 + $0x4c] ss:$16 sps:$4 sm:$0xff]  }
 0x12e   : > { %3705 = vmatpush2.bf16.msra.mxu0 %v5233_v44  ;;  %v5290_v44 = vld [vmem:[%s5872_s18 + $0x24c] ss:$16 sps:$4 sm:$0xff]  }
 0x12f   : > { %3746 = vmatpush2.bf16.msra.mxu1 %v5236_v45  ;;  %3706 = vmatprep.subr.bf16.mxu0 %v5241_v48  ;;  %v5285_v45 = vld [vmem:[%s5872_s18 + $0x48] ss:$16 sps:$4 sm:$0xff]   ;;  %v5293_v48 = vld [vmem:[%s5872_s18 + $0x2c] ss:$16 sps:$4 sm:$0xff]  }
 0x130   : > { %3747 = vmatprep.subr.bf16.mxu1 %v5244_v49  ;;  %v5296_v49 = vld [vmem:[%s5872_s18 + $0x22c] ss:$16 sps:$4 sm:$0xff]  }
 0x132   : > { %3707 = vmatpush2.bf16.msra.mxu0 %v5239_v50  ;;  %v5291_v50 = vld [vmem:[%s5872_s18 + $0x28] ss:$16 sps:$4 sm:$0xff]  }
 0x133   : > { %3748 = vmatpush2.bf16.msra.mxu1 %v5242_v52  ;;  %3708 = vmatprep.subr.bf16.mxu0 %v5247_v54  ;;  %v5294_v52 = vld [vmem:[%s5872_s18 + $0x228] ss:$16 sps:$4 sm:$0xff]   ;;  %v5299_v54 = vld [vmem:[%s5872_s18 + $0xc] ss:$16 sps:$4 sm:$0xff]  }
 0x134   : > { %3749 = vmatprep.subr.bf16.mxu1 %v5250_v55  ;;  %v5302_v55 = vld [vmem:[%s5872_s18 + $0x20c] ss:$16 sps:$4 sm:$0xff]  }
 0x136   : > { %3709 = vmatpush2.bf16.msra.mxu0 %v5245_v56  ;;  %v5297_v56 = vld [vmem:[%s5872_s18 + $0x8] ss:$16 sps:$4 sm:$0xff]  }
 0x137   : > { %3750 = vmatpush2.bf16.msra.mxu1 %v5248_v57  ;;  %3760 = vmatprep.subr.bf16.mxu0 %v5257_v60  ;;  %v5300_v57 = vld [vmem:[%s5872_s18 + $0x208] ss:$16 sps:$4 sm:$0xff]  }
 0x138   : > { %3801 = vmatprep.subr.bf16.mxu1 %v5260_v61  ;;  %v5303_v60 = vld [vmem:[%s5872_s18 + $0x1e8] ss:$16 sps:$4 sm:$0xff]  }
 0x139   : > { %v3466_v35 = vpop.f32.mrf.mxu0  ;;  %3711 = vmatmul.mubr.bf16.vlgmr.msra.gmra.mxu0 %v6247_v63  ;;  %v5306_v61 = vld [vmem:[%s5872_s18 + $0x3e8] ss:$16 sps:$4 sm:$0xff]  }
 0x13a   : > { %v3507_v9 = vpop.f32.mrf.mxu1  ;;  %3752 = vmatmul.mubr.bf16.vlgmr.msra.gmra.mxu1 %v6251_v0  ;;  %v3467_v10 = vadd.f32 %v3466_v35, %v799_v2  ;;  %3761 = vmatpush1.bf16.msra.mxu0 %v5255_v1  ;;  %v5314_v1 = vld [vmem:[%s5872_s18 + $0x3cc] ss:$16 sps:$4 sm:$0xff]   ;;  %v5309_v2 = vld [vmem:[%s5872_s18 + $0x1c8] ss:$16 sps:$4 sm:$0xff]  }
 0x13b   : > { %3802 = vmatpush1.bf16.msra.mxu1 %v5258_v3  ;;  %v3468_v12 = vpop.f32.mrf.mxu0  ;;  %3762 = vmatprep.subr.bf16.mxu0 %v5263_v4  ;;  %v5312_v3 = vld [vmem:[%s5872_s18 + $0x3c8] ss:$16 sps:$4 sm:$0xff]   ;;  %v5317_v4 = vld [vmem:[%s5872_s18 + $0x1ac] ss:$16 sps:$4 sm:$0xff]  }
 0x13c   : > { %v3509_v13 = vpop.f32.mrf.mxu1  ;;  %3803 = vmatprep.subr.bf16.mxu1 %v5266_v5  ;;  %v6263_v18 = vadd.f32 %v3507_v9, %v3467_v10  ;;  %v3469_v19 = vadd.f32 %v3468_v12, %v803_v8  ;;  %3792 = vmatprep.mubr.bf16.mxu0 %v5933_v47  ;;  %v5275_v47 = vld [vmem:[%s5872_s18 + $0x8c] ss:$16 sps:$4 sm:$0xff]   ;;  %v5315_v8 = vld [vmem:[%s5872_s18 + $0x1a8] ss:$16 sps:$4 sm:$0xff]  }
 0x13d   : > { %3833 = vmatprep.mubr.bf16.mxu1 %v5940_v51  ;;  %v3470_v20 = vpop.f32.mrf.mxu0  ;;  %v5278_v51 = vld [vmem:[%s5872_s18 + $0x28c] ss:$16 sps:$4 sm:$0xff]   ;;  %v5318_v35 = vld [vmem:[%s5872_s18 + $0x3a8] ss:$16 sps:$4 sm:$0xff]  }
 0x13e   : > { %v3511_v21 = vpop.f32.mrf.mxu1  ;;  %v6268_v27 = vadd.f32 %v3509_v13, %v3469_v19  ;;  %3763 = vmatpush1.bf16.msra.mxu0 %v5261_v40  ;;  %v5320_v5 = vld [vmem:[%s5872_s18 + $0x3ac] ss:$16 sps:$4 sm:$0xff]   ;;  %v5321_v10 = vld [vmem:[%s5872_s18 + $0x188] ss:$16 sps:$4 sm:$0xff]  }
 0x13f   : > { %3804 = vmatpush1.bf16.msra.mxu1 %v5264_v11  ;;  %v3471_v29 = vpop.f32.mrf.mxu0  ;;  %3764 = vmatprep.subr.bf16.mxu0 %v5269_v14  ;;  %v5323_v9 = vld [vmem:[%s5872_s18 + $0x18c] ss:$16 sps:$4 sm:$0xff]   ;;  %v5324_v11 = vld [vmem:[%s5872_s18 + $0x388] ss:$16 sps:$4 sm:$0xff]  }
 0x140   : > { %v3512_v30 = vpop.f32.mrf.mxu1  ;;  %3805 = vmatprep.subr.bf16.mxu1 %v5272_v15  ;;  %v5326_v40 = vld [vmem:[%s5872_s18 + $0x38c] ss:$16 sps:$4 sm:$0xff]   ;;  %v5327_v14 = vld [vmem:[%s5872_s18 + $0x168] ss:$16 sps:$4 sm:$0xff]  }
 0x141   : > { %v5329_v12 = vld [vmem:[%s5872_s18 + $0x16c] ss:$16 sps:$4 sm:$0xff]   ;;  %v5330_v15 = vld [vmem:[%s5872_s18 + $0x368] ss:$16 sps:$4 sm:$0xff]  }
 0x142   : > { %3765 = vmatpush1.bf16.msra.mxu0 %v5267_v26  ;;  %v5332_v13 = vld [vmem:[%s5872_s18 + $0x36c] ss:$16 sps:$4 sm:$0xff]   ;;  %v5333_v21 = vld [vmem:[%s5872_s18 + $0x148] ss:$16 sps:$4 sm:$0xff]  }
 0x143   : > { %3806 = vmatpush1.bf16.msra.mxu1 %v5270_v28  ;;  %3766 = vmatprep.subr.bf16.mxu0 %v5275_v47  ;;  %v5335_v19 = vld [vmem:[%s5872_s18 + $0x14c] ss:$16 sps:$4 sm:$0xff]   ;;  %v5336_v26 = vld [vmem:[%s5872_s18 + $0x348] ss:$16 sps:$4 sm:$0xff]  }
 0x144   : > { %3807 = vmatprep.subr.bf16.mxu1 %v5278_v51  ;;  %v5338_v20 = vld [vmem:[%s5872_s18 + $0x34c] ss:$16 sps:$4 sm:$0xff]   ;;  %v5339_v30 = vld [vmem:[%s5872_s18 + $0x128] ss:$16 sps:$4 sm:$0xff]  }
 0x145   : > { %v5341_v28 = vld [vmem:[%s5872_s18 + $0x12c] ss:$16 sps:$4 sm:$0xff]   ;;  %v5342_v47 = vld [vmem:[%s5872_s18 + $0x328] ss:$16 sps:$4 sm:$0xff]  }
 0x146   : > { %3767 = vmatpush1.bf16.msra.mxu0 %v5273_v31  ;;  %v5344_v29 = vld [vmem:[%s5872_s18 + $0x32c] ss:$16 sps:$4 sm:$0xff]  }
 0x147   : > { %3808 = vmatpush1.bf16.msra.mxu1 %v5276_v32  ;;  %3768 = vmatprep.subr.bf16.mxu0 %v5281_v33  ;;  %v5347_v51 = vld [vmem:[%s5872_s18 + $0x10c] ss:$16 sps:$4 sm:$0xff]   ;;  %v5345_v32 = vld [vmem:[%s5872_s18 + $0x108] ss:$16 sps:$4 sm:$0xff]  }
 0x148   : > { %3809 = vmatprep.subr.bf16.mxu1 %v5284_v34  ;;  %v5350_v31 = vld [vmem:[%s5872_s18 + $0x30c] ss:$16 sps:$4 sm:$0xff]   ;;  %v5348_v33 = vld [vmem:[%s5872_s18 + $0x308] ss:$16 sps:$4 sm:$0xff]  }
 0x149   : > { %v5353_v34 = vld [vmem:[%s5872_s18 + $0x4ec] ss:$16 sps:$4 sm:$0xff]  }
 0x14a   : > { %3769 = vmatpush1.bf16.msra.mxu0 %v5279_v41  ;;  %v5356_v41 = vld [vmem:[%s5872_s18 + $0x6ec] ss:$16 sps:$4 sm:$0xff]  }
 0x14b   : > { %3810 = vmatpush1.bf16.msra.mxu1 %v5282_v42  ;;  %3770 = vmatprep.subr.bf16.mxu0 %v5287_v22  ;;  %v5351_v42 = vld [vmem:[%s5872_s18 + $0x4e8] ss:$16 sps:$4 sm:$0xff]  }
 0x14c   : > { %3811 = vmatprep.subr.bf16.mxu1 %v5290_v44  ;;  %v5354_v22 = vld [vmem:[%s5872_s18 + $0x6e8] ss:$16 sps:$4 sm:$0xff]   ;;  %v5359_v44 = vld [vmem:[%s5872_s18 + $0x4cc] ss:$16 sps:$4 sm:$0xff]  }
 0x14e   : > { %3771 = vmatpush1.bf16.msra.mxu0 %v5285_v45  ;;  %v5362_v45 = vld [vmem:[%s5872_s18 + $0x6cc] ss:$16 sps:$4 sm:$0xff]  }
 0x14f   : > { %3812 = vmatpush1.bf16.msra.mxu1 %v5288_v46  ;;  %3772 = vmatprep.subr.bf16.mxu0 %v5293_v48 }
 0x150   : > { %3813 = vmatprep.subr.bf16.mxu1 %v5296_v49 }
 0x152   : > { %3773 = vmatpush1.bf16.msra.mxu0 %v5291_v50  ;;  %v5357_v50 = vld [vmem:[%s5872_s18 + $0x4c8] ss:$16 sps:$4 sm:$0xff]  }
 0x153   : > { %3814 = vmatpush1.bf16.msra.mxu1 %v5294_v52  ;;  %3774 = vmatprep.subr.bf16.mxu0 %v5299_v54  ;;  %v5360_v52 = vld [vmem:[%s5872_s18 + $0x6c8] ss:$16 sps:$4 sm:$0xff]  }
 0x154   : > { %3815 = vmatprep.subr.bf16.mxu1 %v5302_v55 }
 0x156   : > { %3775 = vmatpush1.bf16.msra.mxu0 %v5297_v56  ;;  %v5365_v56 = vld [vmem:[%s5872_s18 + $0x4ac] ss:$16 sps:$4 sm:$0xff]  }
 0x157   : > { %3816 = vmatpush1.bf16.msra.mxu1 %v5300_v57  ;;  %3776 = vmatprep.subr.bf16.mxu0 %v5305_v58  ;;  %v5368_v57 = vld [vmem:[%s5872_s18 + $0x6ac] ss:$16 sps:$4 sm:$0xff]  }
 0x158   : > { %3817 = vmatprep.subr.bf16.mxu1 %v5308_v59 }
 0x15a   : > { %3777 = vmatpush2.bf16.msra.mxu0 %v5303_v60  ;;  %v5363_v60 = vld [vmem:[%s5872_s18 + $0x4a8] ss:$16 sps:$4 sm:$0xff]  }
 0x15b   : > { %3818 = vmatpush2.bf16.msra.mxu1 %v5306_v61  ;;  %3778 = vmatprep.subr.bf16.mxu0 %v5311_v62  ;;  %v5366_v61 = vld [vmem:[%s5872_s18 + $0x6a8] ss:$16 sps:$4 sm:$0xff]  }
 0x15c   : > { %3819 = vmatprep.subr.bf16.mxu1 %v5314_v1 }
 0x15e   : > { %3779 = vmatpush2.bf16.msra.mxu0 %v5309_v2  ;;  %v5372_v2 = vld [vmem:[%s5872_s18 + $0x688] ss:$16 sps:$4 sm:$0xff]  }
 0x15f   : > { %3820 = vmatpush2.bf16.msra.mxu1 %v5312_v3  ;;  %3780 = vmatprep.subr.bf16.mxu0 %v5317_v4  ;;  %v5377_v3 = vld [vmem:[%s5872_s18 + $0x46c] ss:$16 sps:$4 sm:$0xff]  }
 0x160   : > { %3821 = vmatprep.subr.bf16.mxu1 %v5320_v5  ;;  %v5380_v4 = vld [vmem:[%s5872_s18 + $0x66c] ss:$16 sps:$4 sm:$0xff]   ;;  %v5375_v5 = vld [vmem:[%s5872_s18 + $0x468] ss:$16 sps:$4 sm:$0xff]  }
 0x162   : > { %3781 = vmatpush2.bf16.msra.mxu0 %v5315_v8  ;;  %v5378_v8 = vld [vmem:[%s5872_s18 + $0x668] ss:$16 sps:$4 sm:$0xff]  }
 0x163   : > { %3822 = vmatpush2.bf16.msra.mxu1 %v5318_v35  ;;  %3782 = vmatprep.subr.bf16.mxu0 %v5323_v9  ;;  %v5383_v35 = vld [vmem:[%s5872_s18 + $0x44c] ss:$16 sps:$4 sm:$0xff]  }
 0x164   : > { %3823 = vmatprep.subr.bf16.mxu1 %v5326_v40  ;;  %v5386_v9 = vld [vmem:[%s5872_s18 + $0x64c] ss:$16 sps:$4 sm:$0xff]   ;;  %v5381_v40 = vld [vmem:[%s5872_s18 + $0x448] ss:$16 sps:$4 sm:$0xff]  }
 0x166   : > { %3783 = vmatpush2.bf16.msra.mxu0 %v5321_v10  ;;  %v5384_v10 = vld [vmem:[%s5872_s18 + $0x648] ss:$16 sps:$4 sm:$0xff]  }
 0x167   : > { %3824 = vmatpush2.bf16.msra.mxu1 %v5324_v11  ;;  %3784 = vmatprep.subr.bf16.mxu0 %v5329_v12  ;;  %v5389_v11 = vld [vmem:[%s5872_s18 + $0x42c] ss:$16 sps:$4 sm:$0xff]  }
 0x168   : > { %3825 = vmatprep.subr.bf16.mxu1 %v5332_v13  ;;  %v5392_v12 = vld [vmem:[%s5872_s18 + $0x62c] ss:$16 sps:$4 sm:$0xff]   ;;  %v5387_v13 = vld [vmem:[%s5872_s18 + $0x428] ss:$16 sps:$4 sm:$0xff]  }
 0x16a   : > { %3785 = vmatpush2.bf16.msra.mxu0 %v5327_v14  ;;  %v5390_v14 = vld [vmem:[%s5872_s18 + $0x628] ss:$16 sps:$4 sm:$0xff]  }
 0x16b   : > { %3826 = vmatpush2.bf16.msra.mxu1 %v5330_v15  ;;  %3786 = vmatprep.subr.bf16.mxu0 %v5335_v19  ;;  %v5395_v15 = vld [vmem:[%s5872_s18 + $0x40c] ss:$16 sps:$4 sm:$0xff]  }
 0x16c   : > { %3827 = vmatprep.subr.bf16.mxu1 %v5338_v20  ;;  %v5398_v19 = vld [vmem:[%s5872_s18 + $0x60c] ss:$16 sps:$4 sm:$0xff]   ;;  %v5393_v20 = vld [vmem:[%s5872_s18 + $0x408] ss:$16 sps:$4 sm:$0xff]  }
 0x16e   : > { %3787 = vmatpush2.bf16.msra.mxu0 %v5333_v21  ;;  %v5396_v21 = vld [vmem:[%s5872_s18 + $0x608] ss:$16 sps:$4 sm:$0xff]  }
 0x16f   : > { %3828 = vmatpush2.bf16.msra.mxu1 %v5336_v26  ;;  %3788 = vmatprep.subr.bf16.mxu0 %v5341_v28  ;;  %v5401_v26 = vld [vmem:[%s5872_s18 + $0x5ec] ss:$16 sps:$4 sm:$0xff]  }
 0x170   : > { %3829 = vmatprep.subr.bf16.mxu1 %v5344_v29  ;;  %v5404_v28 = vld [vmem:[%s5872_s18 + $0x7ec] ss:$16 sps:$4 sm:$0xff]   ;;  %v5399_v29 = vld [vmem:[%s5872_s18 + $0x5e8] ss:$16 sps:$4 sm:$0xff]  }
 0x172   : > { %3789 = vmatpush2.bf16.msra.mxu0 %v5339_v30  ;;  %v5402_v30 = vld [vmem:[%s5872_s18 + $0x7e8] ss:$16 sps:$4 sm:$0xff]  }
 0x173   : > { %3830 = vmatpush2.bf16.msra.mxu1 %v5342_v47  ;;  %3790 = vmatprep.subr.bf16.mxu0 %v5347_v51  ;;  %v5407_v47 = vld [vmem:[%s5872_s18 + $0x5cc] ss:$16 sps:$4 sm:$0xff]  }
 0x174   : > { %3831 = vmatprep.subr.bf16.mxu1 %v5350_v31  ;;  %v5410_v51 = vld [vmem:[%s5872_s18 + $0x7cc] ss:$16 sps:$4 sm:$0xff]   ;;  %v5405_v31 = vld [vmem:[%s5872_s18 + $0x5c8] ss:$16 sps:$4 sm:$0xff]  }
 0x176   : > { %3791 = vmatpush2.bf16.msra.mxu0 %v5345_v32  ;;  %v5408_v32 = vld [vmem:[%s5872_s18 + $0x7c8] ss:$16 sps:$4 sm:$0xff]  }
 0x177   : > { %3832 = vmatpush2.bf16.msra.mxu1 %v5348_v33  ;;  %3842 = vmatprep.subr.bf16.mxu0 %v5353_v34  ;;  %v5413_v33 = vld [vmem:[%s5872_s18 + $0x5ac] ss:$16 sps:$4 sm:$0xff]  }
 0x178   : > { %3883 = vmatprep.subr.bf16.mxu1 %v5356_v41  ;;  %v5416_v34 = vld [vmem:[%s5872_s18 + $0x7ac] ss:$16 sps:$4 sm:$0xff]   ;;  %v5411_v41 = vld [vmem:[%s5872_s18 + $0x5a8] ss:$16 sps:$4 sm:$0xff]  }
 0x179   : > { %v3548_v46 = vpop.f32.mrf.mxu0  ;;  %3793 = vmatmul.mubr.bf16.vlgmr.msra.gmra.mxu0 %v5962_v6 }
 0x17a   : > { %v3589_v48 = vpop.f32.mrf.mxu1  ;;  %3834 = vmatmul.mubr.bf16.vlgmr.msra.gmra.mxu1 %v5964_v7  ;;  %v3549_v49 = vadd.f32 %v3548_v46, %v6263_v18  ;;  %3843 = vmatpush1.bf16.msra.mxu0 %v5351_v42  ;;  %v5414_v42 = vld [vmem:[%s5872_s18 + $0x7a8] ss:$16 sps:$4 sm:$0xff]  }
 0x17b   : > { %3884 = vmatpush1.bf16.msra.mxu1 %v5354_v22  ;;  %v3550_v54 = vpop.f32.mrf.mxu0  ;;  %3844 = vmatprep.subr.bf16.mxu0 %v5359_v44  ;;  %v5419_v22 = vld [vmem:[%s5872_s18 + $0x58c] ss:$16 sps:$4 sm:$0xff]   ;;  %v5420_v46 = vld [vmem:[%s5872_s18 + $0x788] ss:$16 sps:$4 sm:$0xff]  }
 0x17c   : > { %v3591_v55 = vpop.f32.mrf.mxu1  ;;  %3885 = vmatprep.subr.bf16.mxu1 %v5362_v45  ;;  %v6336_v58 = vadd.f32 %v3589_v48, %v3549_v49  ;;  %v3551_v6 = vadd.f32 %v3550_v54, %v6268_v27  ;;  %3874 = vmatprep.mubr.bf16.mxu0 %v6006_v36  ;;  %v5371_v36 = vld [vmem:[%s5872_s18 + $0x48c] ss:$16 sps:$4 sm:$0xff]   ;;  %v5369_v27 = vld [vmem:[%s5872_s18 + $0x488] ss:$16 sps:$4 sm:$0xff]  }
 0x17d   : > { %3915 = vmatprep.mubr.bf16.mxu1 %v6010_v37  ;;  %v3552_v7 = vpop.f32.mrf.mxu0  ;;  %v5374_v37 = vld [vmem:[%s5872_s18 + $0x68c] ss:$16 sps:$4 sm:$0xff]   ;;  %v5417_v45 = vld [vmem:[%s5872_s18 + $0x588] ss:$16 sps:$4 sm:$0xff]  }
 0x17e   : > { %v3593_v18 = vpop.f32.mrf.mxu1  ;;  %v6341_v59 = vadd.f32 %v3591_v55, %v3551_v6  ;;  %3845 = vmatpush1.bf16.msra.mxu0 %v5357_v50  ;;  %v5422_v44 = vld [vmem:[%s5872_s18 + $0x78c] ss:$16 sps:$4 sm:$0xff]   ;;  %v5423_v50 = vld [vmem:[%s5872_s18 + $0x568] ss:$16 sps:$4 sm:$0xff]  }
 0x17f   : > { %3886 = vmatpush1.bf16.msra.mxu1 %v5360_v52  ;;  %v3553_v62 = vpop.f32.mrf.mxu0  ;;  %3846 = vmatprep.subr.bf16.mxu0 %v5365_v56  ;;  %v5425_v48 = vld [vmem:[%s5872_s18 + $0x56c] ss:$16 sps:$4 sm:$0xff]   ;;  %v5426_v52 = vld [vmem:[%s5872_s18 + $0x768] ss:$16 sps:$4 sm:$0xff]  }
 0x180   : > { %v3594_v1 = vpop.f32.mrf.mxu1  ;;  %3887 = vmatprep.subr.bf16.mxu1 %v5368_v57  ;;  %v5428_v49 = vld [vmem:[%s5872_s18 + $0x76c] ss:$16 sps:$4 sm:$0xff]   ;;  %v5429_v56 = vld [vmem:[%s5872_s18 + $0x548] ss:$16 sps:$4 sm:$0xff]  }
 0x181   : > { %v5431_v54 = vld [vmem:[%s5872_s18 + $0x54c] ss:$16 sps:$4 sm:$0xff]   ;;  %v5432_v57 = vld [vmem:[%s5872_s18 + $0x748] ss:$16 sps:$4 sm:$0xff]  }
 0x182   : > { %3847 = vmatpush1.bf16.msra.mxu0 %v5363_v60  ;;  %v5434_v55 = vld [vmem:[%s5872_s18 + $0x74c] ss:$16 sps:$4 sm:$0xff]   ;;  %v5435_v18 = vld [vmem:[%s5872_s18 + $0x528] ss:$16 sps:$4 sm:$0xff]  }
 0x183   : > { %3888 = vmatpush1.bf16.msra.mxu1 %v5366_v61  ;;  %3848 = vmatprep.subr.bf16.mxu0 %v5371_v36  ;;  %v5437_v6 = vld [vmem:[%s5872_s18 + $0x52c] ss:$16 sps:$4 sm:$0xff]   ;;  %v5438_v60 = vld [vmem:[%s5872_s18 + $0x728] ss:$16 sps:$4 sm:$0xff]  }
 0x184   : > { %3889 = vmatprep.subr.bf16.mxu1 %v5374_v37  ;;  %v5440_v7 = vld [vmem:[%s5872_s18 + $0x72c] ss:$16 sps:$4 sm:$0xff]   ;;  %v5441_v1 = vld [vmem:[%s5872_s18 + $0x508] ss:$16 sps:$4 sm:$0xff]  }
 0x185   : > { %v5443_v61 = vld [vmem:[%s5872_s18 + $0x50c] ss:$16 sps:$4 sm:$0xff]   ;;  %v5444_v36 = vld [vmem:[%s5872_s18 + $0x708] ss:$16 sps:$4 sm:$0xff]  }
 0x186   : > { %3849 = vmatpush1.bf16.msra.mxu0 %v5369_v27  ;;  %v5446_v62 = vld [vmem:[%s5872_s18 + $0x70c] ss:$16 sps:$4 sm:$0xff]  }
 0x187   : > { %3890 = vmatpush1.bf16.msra.mxu1 %v5372_v2  ;;  %3850 = vmatprep.subr.bf16.mxu0 %v5377_v3  ;;  %v5449_v37 = vld [vmem:[%s5872_s18 + $0x8ec] ss:$16 sps:$4 sm:$0xff]   ;;  %v5447_v2 = vld [vmem:[%s5872_s18 + $0x8e8] ss:$16 sps:$4 sm:$0xff]  }
 0x188   : > { %3891 = vmatprep.subr.bf16.mxu1 %v5380_v4  ;;  %v5452_v27 = vld [vmem:[%s5872_s18 + $0xaec] ss:$16 sps:$4 sm:$0xff]   ;;  %v5450_v3 = vld [vmem:[%s5872_s18 + $0xae8] ss:$16 sps:$4 sm:$0xff]  }
 0x189   : > { %v5455_v4 = vld [vmem:[%s5872_s18 + $0x8cc] ss:$16 sps:$4 sm:$0xff]  }
 0x18a   : > { %3851 = vmatpush1.bf16.msra.mxu0 %v5375_v5  ;;  %v5458_v5 = vld [vmem:[%s5872_s18 + $0xacc] ss:$16 sps:$4 sm:$0xff]  }
 0x18b   : > { %3892 = vmatpush1.bf16.msra.mxu1 %v5378_v8  ;;  %3852 = vmatprep.subr.bf16.mxu0 %v5383_v35 }
 0x18c   : > { %3893 = vmatprep.subr.bf16.mxu1 %v5386_v9 }
 0x18e   : > { %3853 = vmatpush1.bf16.msra.mxu0 %v5381_v40  ;;  %v5453_v40 = vld [vmem:[%s5872_s18 + $0x8c8] ss:$16 sps:$4 sm:$0xff]  }
 0x18f   : > { %3894 = vmatpush1.bf16.msra.mxu1 %v5384_v10  ;;  %3854 = vmatprep.subr.bf16.mxu0 %v5389_v11  ;;  %v5456_v10 = vld [vmem:[%s5872_s18 + $0xac8] ss:$16 sps:$4 sm:$0xff]  }
 0x190   : > { %3895 = vmatprep.subr.bf16.mxu1 %v5392_v12 }
 0x192   : > { %3855 = vmatpush1.bf16.msra.mxu0 %v5387_v13  ;;  %v5461_v13 = vld [vmem:[%s5872_s18 + $0x8ac] ss:$16 sps:$4 sm:$0xff]  }
 0x193   : > { %3896 = vmatpush1.bf16.msra.mxu1 %v5390_v14  ;;  %3856 = vmatprep.subr.bf16.mxu0 %v5395_v15  ;;  %v5459_v15 = vld [vmem:[%s5872_s18 + $0x8a8] ss:$16 sps:$4 sm:$0xff]  }
 0x194   : > { %3897 = vmatprep.subr.bf16.mxu1 %v5398_v19  ;;  %v5462_v19 = vld [vmem:[%s5872_s18 + $0xaa8] ss:$16 sps:$4 sm:$0xff]  }
 0x196   : > { %3857 = vmatpush1.bf16.msra.mxu0 %v5393_v20 }
 0x197   : > { %3898 = vmatpush1.bf16.msra.mxu1 %v5396_v21  ;;  %3858 = vmatprep.subr.bf16.mxu0 %v5401_v26  ;;  %v5467_v26 = vld [vmem:[%s5872_s18 + $0x88c] ss:$16 sps:$4 sm:$0xff]  }
 0x198   : > { %3899 = vmatprep.subr.bf16.mxu1 %v5404_v28  ;;  %v5468_v28 = vld [vmem:[%s5872_s18 + $0xa88] ss:$16 sps:$4 sm:$0xff]  }
 0x19a   : > { %3859 = vmatpush2.bf16.msra.mxu0 %v5399_v29  ;;  %v5473_v29 = vld [vmem:[%s5872_s18 + $0x86c] ss:$16 sps:$4 sm:$0xff]  }
 0x19b   : > { %3900 = vmatpush2.bf16.msra.mxu1 %v5402_v30  ;;  %3860 = vmatprep.subr.bf16.mxu0 %v5407_v47  ;;  %v5476_v30 = vld [vmem:[%s5872_s18 + $0xa6c] ss:$16 sps:$4 sm:$0xff]   ;;  %v5471_v47 = vld [vmem:[%s5872_s18 + $0x868] ss:$16 sps:$4 sm:$0xff]  }
 0x19c   : > { %3901 = vmatprep.subr.bf16.mxu1 %v5410_v51  ;;  %v5474_v51 = vld [vmem:[%s5872_s18 + $0xa68] ss:$16 sps:$4 sm:$0xff]  }
 0x19e   : > { %3861 = vmatpush2.bf16.msra.mxu0 %v5405_v31  ;;  %v5479_v31 = vld [vmem:[%s5872_s18 + $0x84c] ss:$16 sps:$4 sm:$0xff]  }
 0x19f   : > { %3902 = vmatpush2.bf16.msra.mxu1 %v5408_v32  ;;  %3862 = vmatprep.subr.bf16.mxu0 %v5413_v33  ;;  %v5482_v32 = vld [vmem:[%s5872_s18 + $0xa4c] ss:$16 sps:$4 sm:$0xff]   ;;  %v5477_v33 = vld [vmem:[%s5872_s18 + $0x848] ss:$16 sps:$4 sm:$0xff]  }
 0x1a0   : > { %3903 = vmatprep.subr.bf16.mxu1 %v5416_v34  ;;  %v5480_v34 = vld [vmem:[%s5872_s18 + $0xa48] ss:$16 sps:$4 sm:$0xff]  }
 0x1a2   : > { %3863 = vmatpush2.bf16.msra.mxu0 %v5411_v41  ;;  %v5485_v41 = vld [vmem:[%s5872_s18 + $0x82c] ss:$16 sps:$4 sm:$0xff]  }
 0x1a3   : > { %3904 = vmatpush2.bf16.msra.mxu1 %v5414_v42  ;;  %3864 = vmatprep.subr.bf16.mxu0 %v5419_v22  ;;  %v5488_v42 = vld [vmem:[%s5872_s18 + $0xa2c] ss:$16 sps:$4 sm:$0xff]   ;;  %v5483_v22 = vld [vmem:[%s5872_s18 + $0x828] ss:$16 sps:$4 sm:$0xff]  }
 0x1a4   : > { %3905 = vmatprep.subr.bf16.mxu1 %v5422_v44  ;;  %v5486_v44 = vld [vmem:[%s5872_s18 + $0xa28] ss:$16 sps:$4 sm:$0xff]  }
 0x1a6   : > { %3865 = vmatpush2.bf16.msra.mxu0 %v5417_v45  ;;  %v5491_v45 = vld [vmem:[%s5872_s18 + $0x80c] ss:$16 sps:$4 sm:$0xff]  }
 0x1a7   : > { %3906 = vmatpush2.bf16.msra.mxu1 %v5420_v46  ;;  %3866 = vmatprep.subr.bf16.mxu0 %v5425_v48  ;;  %v5494_v46 = vld [vmem:[%s5872_s18 + $0xa0c] ss:$16 sps:$4 sm:$0xff]   ;;  %v5489_v48 = vld [vmem:[%s5872_s18 + $0x808] ss:$16 sps:$4 sm:$0xff]  }
 0x1a8   : > { %3907 = vmatprep.subr.bf16.mxu1 %v5428_v49  ;;  %v5492_v49 = vld [vmem:[%s5872_s18 + $0xa08] ss:$16 sps:$4 sm:$0xff]  }
 0x1aa   : > { %3867 = vmatpush2.bf16.msra.mxu0 %v5423_v50  ;;  %v5497_v50 = vld [vmem:[%s5872_s18 + $0x9ec] ss:$16 sps:$4 sm:$0xff]  }
 0x1ab   : > { %3908 = vmatpush2.bf16.msra.mxu1 %v5426_v52  ;;  %3868 = vmatprep.subr.bf16.mxu0 %v5431_v54  ;;  %v5500_v52 = vld [vmem:[%s5872_s18 + $0xbec] ss:$16 sps:$4 sm:$0xff]   ;;  %v5495_v54 = vld [vmem:[%s5872_s18 + $0x9e8] ss:$16 sps:$4 sm:$0xff]  }
 0x1ac   : > { %3909 = vmatprep.subr.bf16.mxu1 %v5434_v55  ;;  %v5498_v55 = vld [vmem:[%s5872_s18 + $0xbe8] ss:$16 sps:$4 sm:$0xff]  }
 0x1ae   : > { %3869 = vmatpush2.bf16.msra.mxu0 %v5429_v56  ;;  %v5503_v56 = vld [vmem:[%s5872_s18 + $0x9cc] ss:$16 sps:$4 sm:$0xff]  }
 0x1af   : > { %3910 = vmatpush2.bf16.msra.mxu1 %v5432_v57  ;;  %3870 = vmatprep.subr.bf16.mxu0 %v5437_v6  ;;  %v5506_v57 = vld [vmem:[%s5872_s18 + $0xbcc] ss:$16 sps:$4 sm:$0xff]   ;;  %v5501_v6 = vld [vmem:[%s5872_s18 + $0x9c8] ss:$16 sps:$4 sm:$0xff]  }
 0x1b0   : > { %3911 = vmatprep.subr.bf16.mxu1 %v5440_v7  ;;  %v5504_v7 = vld [vmem:[%s5872_s18 + $0xbc8] ss:$16 sps:$4 sm:$0xff]  }
 0x1b2   : > { %3871 = vmatpush2.bf16.msra.mxu0 %v5435_v18  ;;  %v5509_v18 = vld [vmem:[%s5872_s18 + $0x9ac] ss:$16 sps:$4 sm:$0xff]  }
 0x1b3   : > { %3912 = vmatpush2.bf16.msra.mxu1 %v5438_v60  ;;  %3872 = vmatprep.subr.bf16.mxu0 %v5443_v61  ;;  %v5512_v60 = vld [vmem:[%s5872_s18 + $0xbac] ss:$16 sps:$4 sm:$0xff]   ;;  %v5507_v61 = vld [vmem:[%s5872_s18 + $0x9a8] ss:$16 sps:$4 sm:$0xff]  }
 0x1b4   : > { %3913 = vmatprep.subr.bf16.mxu1 %v5446_v62  ;;  %v5510_v62 = vld [vmem:[%s5872_s18 + $0xba8] ss:$16 sps:$4 sm:$0xff]  }
 0x1b6   : > { %3873 = vmatpush2.bf16.msra.mxu0 %v5441_v1  ;;  %v5515_v1 = vld [vmem:[%s5872_s18 + $0x98c] ss:$16 sps:$4 sm:$0xff]  }
 0x1b7   : > { %3914 = vmatpush2.bf16.msra.mxu1 %v5444_v36  ;;  %3924 = vmatprep.subr.bf16.mxu0 %v5449_v37  ;;  %v5518_v36 = vld [vmem:[%s5872_s18 + $0xb8c] ss:$16 sps:$4 sm:$0xff]   ;;  %v5513_v37 = vld [vmem:[%s5872_s18 + $0x988] ss:$16 sps:$4 sm:$0xff]  }
 0x1b8   : > { %3965 = vmatprep.subr.bf16.mxu1 %v5452_v27  ;;  %v5516_v27 = vld [vmem:[%s5872_s18 + $0xb88] ss:$16 sps:$4 sm:$0xff]  }
 0x1b9   : > { %v3630_v8 = vpop.f32.mrf.mxu0  ;;  %3875 = vmatmul.mubr.bf16.vlgmr.msra.gmra.mxu0 %v6054_v16  ;;  %v5464_v16 = vld [vmem:[%s5872_s18 + $0xaac] ss:$16 sps:$4 sm:$0xff]  }
 0x1ba   : > { %v3671_v35 = vpop.f32.mrf.mxu1  ;;  %3916 = vmatmul.mubr.bf16.vlgmr.msra.gmra.mxu1 %v6058_v17  ;;  %v3631_v9 = vadd.f32 %v3630_v8, %v6336_v58  ;;  %3925 = vmatpush1.bf16.msra.mxu0 %v5447_v2  ;;  %v5521_v2 = vld [vmem:[%s5872_s18 + $0x96c] ss:$16 sps:$4 sm:$0xff]  }
 0x1bb   : > { %3966 = vmatpush1.bf16.msra.mxu1 %v5450_v3  ;;  %v6408_v11 = vpop.f32.mrf.mxu0  ;;  %3926 = vmatprep.subr.bf16.mxu0 %v5455_v4  ;;  %v5524_v3 = vld [vmem:[%s5872_s18 + $0xb6c] ss:$16 sps:$4 sm:$0xff]   ;;  %v5519_v4 = vld [vmem:[%s5872_s18 + $0x968] ss:$16 sps:$4 sm:$0xff]  }
 0x1bc   : > { %v6410_v12 = vpop.f32.mrf.mxu1  ;;  %3967 = vmatprep.subr.bf16.mxu1 %v5458_v5  ;;  %v6414_v14 = vadd.f32 %v3671_v35, %v3631_v9  ;;  %3956 = vmatprep.mubr.bf16.mxu0 %v6076_v24  ;;  %v5470_v24 = vld [vmem:[%s5872_s18 + $0xa8c] ss:$16 sps:$4 sm:$0xff]   ;;  %v5522_v5 = vld [vmem:[%s5872_s18 + $0xb68] ss:$16 sps:$4 sm:$0xff]  }
 0x1bd   : > { %3997 = vmatprep.mubr.bf16.mxu1 %v6080_v25  ;;  %v3634_v17 = vpop.f32.mrf.mxu0  ;;  %v5465_v25 = vld [vmem:[%s5872_s18 + $0x888] ss:$16 sps:$4 sm:$0xff]   ;;  %v5527_v8 = vld [vmem:[%s5872_s18 + $0x94c] ss:$16 sps:$4 sm:$0xff]  }
 0x1be   : > { %v3675_v58 = vpop.f32.mrf.mxu1  ;;  %3927 = vmatpush1.bf16.msra.mxu0 %v5453_v40  ;;  %v5530_v35 = vld [vmem:[%s5872_s18 + $0xb4c] ss:$16 sps:$4 sm:$0xff]   ;;  %v5525_v9 = vld [vmem:[%s5872_s18 + $0x948] ss:$16 sps:$4 sm:$0xff]  }
 0x1bf   : > { %3968 = vmatpush1.bf16.msra.mxu1 %v5456_v10  ;;  %v3635_v20 = vpop.f32.mrf.mxu0  ;;  %3928 = vmatprep.subr.bf16.mxu0 %v5461_v13  ;;  %v5528_v40 = vld [vmem:[%s5872_s18 + $0xb48] ss:$16 sps:$4 sm:$0xff]   ;;  %v5533_v10 = vld [vmem:[%s5872_s18 + $0x92c] ss:$16 sps:$4 sm:$0xff]  }
 0x1c0   : > { %v3676_v21 = vpop.f32.mrf.mxu1  ;;  %3969 = vmatprep.subr.bf16.mxu1 %v5464_v16  ;;  %v5536_v13 = vld [vmem:[%s5872_s18 + $0xb2c] ss:$16 sps:$4 sm:$0xff]   ;;  %v5531_v16 = vld [vmem:[%s5872_s18 + $0x928] ss:$16 sps:$4 sm:$0xff]  }
 0x1c1   : > { %v5534_v17 = vld [vmem:[%s5872_s18 + $0xb28] ss:$16 sps:$4 sm:$0xff]   ;;  %v5539_v58 = vld [vmem:[%s5872_s18 + $0x90c] ss:$16 sps:$4 sm:$0xff]  }
 0x1c2   : > { %3929 = vmatpush1.bf16.msra.mxu0 %v5459_v15  ;;  %v5542_v15 = vld [vmem:[%s5872_s18 + $0xb0c] ss:$16 sps:$4 sm:$0xff]   ;;  %v5540_v20 = vld [vmem:[%s5872_s18 + $0xb08] ss:$16 sps:$4 sm:$0xff]  }
 0x1c3   : > { %3970 = vmatpush1.bf16.msra.mxu1 %v5462_v19  ;;  %3930 = vmatprep.subr.bf16.mxu0 %v5467_v26  ;;  %v5537_v19 = vld [vmem:[%s5872_s18 + $0x908] ss:$16 sps:$4 sm:$0xff]   ;;  %v5545_v21 = vld [vmem:[%s5872_s18 + $0xcec] ss:$16 sps:$4 sm:$0xff]  }
 0x1c4   : > { %3971 = vmatprep.subr.bf16.mxu1 %v5470_v24  ;;  %v5548_v26 = vld [vmem:[%s5872_s18 + $0xeec] ss:$16 sps:$4 sm:$0xff]   ;;  %v3633_v24 = vadd.f32 %v6408_v11, %v6341_v59 }
 0x1c6   : > { %3931 = vmatpush1.bf16.msra.mxu0 %v5465_v25  ;;  %v5543_v25 = vld [vmem:[%s5872_s18 + $0xce8] ss:$16 sps:$4 sm:$0xff]   ;;  %v3674_v59 = vadd.f32 %v6410_v12, %v3633_v24 }
 0x1c7   : > { %3972 = vmatpush1.bf16.msra.mxu1 %v5468_v28  ;;  %3932 = vmatprep.subr.bf16.mxu0 %v5473_v29  ;;  %v5546_v28 = vld [vmem:[%s5872_s18 + $0xee8] ss:$16 sps:$4 sm:$0xff]   ;;  %v5551_v29 = vld [vmem:[%s5872_s18 + $0xccc] ss:$16 sps:$4 sm:$0xff]  }
 0x1c8   : > { %3973 = vmatprep.subr.bf16.mxu1 %v5476_v30  ;;  %v5554_v30 = vld [vmem:[%s5872_s18 + $0xecc] ss:$16 sps:$4 sm:$0xff]   ;;  %v5609_v24 = vld [vmem:[%s5872_s18 + $0xd88] ss:$16 sps:$4 sm:$0xff]  }
 0x1ca   : > { %3933 = vmatpush1.bf16.msra.mxu0 %v5471_v47 }
 0x1cb   : > { %3974 = vmatpush1.bf16.msra.mxu1 %v5474_v51  ;;  %3934 = vmatprep.subr.bf16.mxu0 %v5479_v31  ;;  %v5549_v31 = vld [vmem:[%s5872_s18 + $0xcc8] ss:$16 sps:$4 sm:$0xff]  }
 0x1cc   : > { %3975 = vmatprep.subr.bf16.mxu1 %v5482_v32  ;;  %v5552_v32 = vld [vmem:[%s5872_s18 + $0xec8] ss:$16 sps:$4 sm:$0xff]  }
 0x1ce   : > { %3935 = vmatpush1.bf16.msra.mxu0 %v5477_v33 }
 0x1cf   : > { %3976 = vmatpush1.bf16.msra.mxu1 %v5480_v34  ;;  %3936 = vmatprep.subr.bf16.mxu0 %v5485_v41  ;;  %v5560_v41 = vld [vmem:[%s5872_s18 + $0xeac] ss:$16 sps:$4 sm:$0xff]  }
 0x1d0   : > { %3977 = vmatprep.subr.bf16.mxu1 %v5488_v42 }
 0x1d2   : > { %3937 = vmatpush1.bf16.msra.mxu0 %v5483_v22 }
 0x1d3   : > { %3978 = vmatpush1.bf16.msra.mxu1 %v5486_v44  ;;  %3938 = vmatprep.subr.bf16.mxu0 %v5491_v45  ;;  %v5555_v44 = vld [vmem:[%s5872_s18 + $0xca8] ss:$16 sps:$4 sm:$0xff]  }
 0x1d4   : > { %3979 = vmatprep.subr.bf16.mxu1 %v5494_v46  ;;  %v5558_v45 = vld [vmem:[%s5872_s18 + $0xea8] ss:$16 sps:$4 sm:$0xff]  }
 0x1d6   : > { %3939 = vmatpush1.bf16.msra.mxu0 %v5489_v48 }
 0x1d7   : > { %3980 = vmatpush1.bf16.msra.mxu1 %v5492_v49  ;;  %3940 = vmatprep.subr.bf16.mxu0 %v5497_v50  ;;  %v5563_v49 = vld [vmem:[%s5872_s18 + $0xc8c] ss:$16 sps:$4 sm:$0xff]  }
 0x1d8   : > { %3981 = vmatprep.subr.bf16.mxu1 %v5500_v52 }
 0x1da   : > { %3941 = vmatpush2.bf16.msra.mxu0 %v5495_v54  ;;  %v5561_v54 = vld [vmem:[%s5872_s18 + $0xc88] ss:$16 sps:$4 sm:$0xff]  }
 0x1db   : > { %3982 = vmatpush2.bf16.msra.mxu1 %v5498_v55  ;;  %3942 = vmatprep.subr.bf16.mxu0 %v5503_v56  ;;  %v5564_v55 = vld [vmem:[%s5872_s18 + $0xe88] ss:$16 sps:$4 sm:$0xff]   ;;  %v5569_v56 = vld [vmem:[%s5872_s18 + $0xc6c] ss:$16 sps:$4 sm:$0xff]  }
 0x1dc   : > { %3983 = vmatprep.subr.bf16.mxu1 %v5506_v57  ;;  %v5572_v57 = vld [vmem:[%s5872_s18 + $0xe6c] ss:$16 sps:$4 sm:$0xff]  }
 0x1de   : > { %3943 = vmatpush2.bf16.msra.mxu0 %v5501_v6  ;;  %v5567_v6 = vld [vmem:[%s5872_s18 + $0xc68] ss:$16 sps:$4 sm:$0xff]  }
 0x1df   : > { %3984 = vmatpush2.bf16.msra.mxu1 %v5504_v7  ;;  %3944 = vmatprep.subr.bf16.mxu0 %v5509_v18  ;;  %v5570_v7 = vld [vmem:[%s5872_s18 + $0xe68] ss:$16 sps:$4 sm:$0xff]   ;;  %v5575_v18 = vld [vmem:[%s5872_s18 + $0xc4c] ss:$16 sps:$4 sm:$0xff]  }
 0x1e0   : > { %3985 = vmatprep.subr.bf16.mxu1 %v5512_v60  ;;  %v5578_v60 = vld [vmem:[%s5872_s18 + $0xe4c] ss:$16 sps:$4 sm:$0xff]  }
 0x1e2   : > { %3945 = vmatpush2.bf16.msra.mxu0 %v5507_v61  ;;  %v5573_v61 = vld [vmem:[%s5872_s18 + $0xc48] ss:$16 sps:$4 sm:$0xff]  }
 0x1e3   : > { %3986 = vmatpush2.bf16.msra.mxu1 %v5510_v62  ;;  %3946 = vmatprep.subr.bf16.mxu0 %v5515_v1  ;;  %v5576_v62 = vld [vmem:[%s5872_s18 + $0xe48] ss:$16 sps:$4 sm:$0xff]   ;;  %v5581_v1 = vld [vmem:[%s5872_s18 + $0xc2c] ss:$16 sps:$4 sm:$0xff]  }
 0x1e4   : > { %3987 = vmatprep.subr.bf16.mxu1 %v5518_v36  ;;  %v5584_v36 = vld [vmem:[%s5872_s18 + $0xe2c] ss:$16 sps:$4 sm:$0xff]  }
 0x1e6   : > { %3947 = vmatpush2.bf16.msra.mxu0 %v5513_v37  ;;  %v5579_v37 = vld [vmem:[%s5872_s18 + $0xc28] ss:$16 sps:$4 sm:$0xff]  }
 0x1e7   : > { %3988 = vmatpush2.bf16.msra.mxu1 %v5516_v27  ;;  %3948 = vmatprep.subr.bf16.mxu0 %v5521_v2  ;;  %v5582_v27 = vld [vmem:[%s5872_s18 + $0xe28] ss:$16 sps:$4 sm:$0xff]   ;;  %v5587_v2 = vld [vmem:[%s5872_s18 + $0xc0c] ss:$16 sps:$4 sm:$0xff]  }
 0x1e8   : > { %3989 = vmatprep.subr.bf16.mxu1 %v5524_v3  ;;  %v5590_v3 = vld [vmem:[%s5872_s18 + $0xe0c] ss:$16 sps:$4 sm:$0xff]  }
 0x1ea   : > { %3949 = vmatpush2.bf16.msra.mxu0 %v5519_v4  ;;  %v5585_v4 = vld [vmem:[%s5872_s18 + $0xc08] ss:$16 sps:$4 sm:$0xff]  }
 0x1eb   : > { %3990 = vmatpush2.bf16.msra.mxu1 %v5522_v5  ;;  %3950 = vmatprep.subr.bf16.mxu0 %v5527_v8  ;;  %v5588_v5 = vld [vmem:[%s5872_s18 + $0xe08] ss:$16 sps:$4 sm:$0xff]   ;;  %v5593_v8 = vld [vmem:[%s5872_s18 + $0xdec] ss:$16 sps:$4 sm:$0xff]  }
 0x1ec   : > { %3991 = vmatprep.subr.bf16.mxu1 %v5530_v35  ;;  %v5596_v35 = vld [vmem:[%s5872_s18 + $0xfec] ss:$16 sps:$4 sm:$0xff]  }
 0x1ee   : > { %3951 = vmatpush2.bf16.msra.mxu0 %v5525_v9  ;;  %v5591_v9 = vld [vmem:[%s5872_s18 + $0xde8] ss:$16 sps:$4 sm:$0xff]  }
 0x1ef   : > { %3992 = vmatpush2.bf16.msra.mxu1 %v5528_v40  ;;  %3952 = vmatprep.subr.bf16.mxu0 %v5533_v10  ;;  %v5594_v40 = vld [vmem:[%s5872_s18 + $0xfe8] ss:$16 sps:$4 sm:$0xff]   ;;  %v5599_v10 = vld [vmem:[%s5872_s18 + $0xdcc] ss:$16 sps:$4 sm:$0xff]  }
 0x1f0   : > { %3993 = vmatprep.subr.bf16.mxu1 %v5536_v13  ;;  %v5602_v13 = vld [vmem:[%s5872_s18 + $0xfcc] ss:$16 sps:$4 sm:$0xff]  }
 0x1f2   : > { %3953 = vmatpush2.bf16.msra.mxu0 %v5531_v16  ;;  %v5597_v16 = vld [vmem:[%s5872_s18 + $0xdc8] ss:$16 sps:$4 sm:$0xff]  }
 0x1f3   : > { %3994 = vmatpush2.bf16.msra.mxu1 %v5534_v17  ;;  %3954 = vmatprep.subr.bf16.mxu0 %v5539_v58  ;;  %v5600_v17 = vld [vmem:[%s5872_s18 + $0xfc8] ss:$16 sps:$4 sm:$0xff]   ;;  %v5605_v58 = vld [vmem:[%s5872_s18 + $0xdac] ss:$16 sps:$4 sm:$0xff]  }
 0x1f4   : > { %3995 = vmatprep.subr.bf16.mxu1 %v5542_v15  ;;  %v5608_v15 = vld [vmem:[%s5872_s18 + $0xfac] ss:$16 sps:$4 sm:$0xff]  }
 0x1f6   : > { %3955 = vmatpush2.bf16.msra.mxu0 %v5537_v19  ;;  %v5603_v19 = vld [vmem:[%s5872_s18 + $0xda8] ss:$16 sps:$4 sm:$0xff]  }
 0x1f7   : > { %3996 = vmatpush2.bf16.msra.mxu1 %v5540_v20  ;;  %4006 = vmatprep.subr.bf16.mxu0 %v5545_v21  ;;  %v5606_v20 = vld [vmem:[%s5872_s18 + $0xfa8] ss:$16 sps:$4 sm:$0xff]   ;;  %v5611_v21 = vld [vmem:[%s5872_s18 + $0xd8c] ss:$16 sps:$4 sm:$0xff]  }
 0x1f8   : > { %4047 = vmatprep.subr.bf16.mxu1 %v5548_v26  ;;  %v5614_v26 = vld [vmem:[%s5872_s18 + $0xf8c] ss:$16 sps:$4 sm:$0xff]  }
 0x1f9   : > { %v3712_v47 = vpop.f32.mrf.mxu0  ;;  %3957 = vmatmul.mubr.bf16.vlgmr.msra.gmra.mxu0 %v6154_v38  ;;  %v5557_v38 = vld [vmem:[%s5872_s18 + $0xcac] ss:$16 sps:$4 sm:$0xff]  }
 0x1fa   : > { %v3753_v51 = vpop.f32.mrf.mxu1  ;;  %3998 = vmatmul.mubr.bf16.vlgmr.msra.gmra.mxu1 %v6158_v39  ;;  %v3713_v11 = vadd.f32 %v3712_v47, %v6414_v14  ;;  %4007 = vmatpush1.bf16.msra.mxu0 %v5543_v25  ;;  %v5612_v25 = vld [vmem:[%s5872_s18 + $0xf88] ss:$16 sps:$4 sm:$0xff]  }
 0x1fb   : > { %4048 = vmatpush1.bf16.msra.mxu1 %v5546_v28  ;;  %v3714_v33 = vpop.f32.mrf.mxu0  ;;  %4008 = vmatprep.subr.bf16.mxu0 %v5551_v29  ;;  %v5617_v28 = vld [vmem:[%s5872_s18 + $0xd6c] ss:$16 sps:$4 sm:$0xff]   ;;  %v5618_v47 = vld [vmem:[%s5872_s18 + $0xf68] ss:$16 sps:$4 sm:$0xff]  }
 0x1fc   : > { %v3755_v34 = vpop.f32.mrf.mxu1  ;;  %4049 = vmatprep.subr.bf16.mxu1 %v5554_v30  ;;  %v3754_v39 = vadd.f32 %v3753_v51, %v3713_v11  ;;  %v3715_v12 = vadd.f32 %v3714_v33, %v3674_v59  ;;  %4038 = vmatprep.mubr.bf16.mxu0 %v6170_v23  ;;  %v5566_v23 = vld [vmem:[%s5872_s18 + $0xe8c] ss:$16 sps:$4 sm:$0xff]   ;;  %v5615_v30 = vld [vmem:[%s5872_s18 + $0xd68] ss:$16 sps:$4 sm:$0xff]  }
 0x1fd   : > { %4079 = vmatprep.mubr.bf16.mxu1 %v6174_v43  ;;  %v3716_v14 = vpop.f32.mrf.mxu0  ;;  %v5620_v29 = vld [vmem:[%s5872_s18 + $0xf6c] ss:$16 sps:$4 sm:$0xff]   ;;  %v5621_v11 = vld [vmem:[%s5872_s18 + $0xd48] ss:$16 sps:$4 sm:$0xff]  }
 0x1fe   : > { %v3757_v42 = vpop.f32.mrf.mxu1  ;;  %v3756_v22 = vadd.f32 %v3755_v34, %v3715_v12  ;;  %4009 = vmatpush1.bf16.msra.mxu0 %v5549_v31  ;;  %v4088_v43 = vmax.f32 %v3754_v39, 0.0  ;;  %v5623_v51 = vld [vmem:[%s5872_s18 + $0xd4c] ss:$16 sps:$4 sm:$0xff]   ;;  %v5624_v31 = vld [vmem:[%s5872_s18 + $0xf48] ss:$16 sps:$4 sm:$0xff]  }
 0x1ff   : > { %4050 = vmatpush1.bf16.msra.mxu1 %v5552_v32  ;;  %v3717_v46 = vpop.f32.mrf.mxu0  ;;  %4010 = vmatprep.subr.bf16.mxu0 %v5557_v38  ;;  %v5626_v59 = vld [vmem:[%s5872_s18 + $0xf4c] ss:$16 sps:$4 sm:$0xff]   ;;  %v5627_v34 = vld [vmem:[%s5872_s18 + $0xd28] ss:$16 sps:$4 sm:$0xff]   ;;  %v806_v42 = vsub.s32 2, %v6234_v53 }
 0x200   : > { %v3758_v48 = vpop.f32.mrf.mxu1  ;;  %4051 = vmatprep.subr.bf16.mxu1 %v5560_v41  ;;  %v4089_v50 = vmax.f32 %v3756_v22, 0.0  ;;  %v5629_v32 = vld [vmem:[%s5872_s18 + $0xd2c] ss:$16 sps:$4 sm:$0xff]   ;;  %v5630_v38 = vld [vmem:[%s5872_s18 + $0xf28] ss:$16 sps:$4 sm:$0xff]   ;;  %v810_v22 = vsub.s32 3, %v6234_v53 }
 0x201   : > { %v5632_v33 = vld [vmem:[%s5872_s18 + $0xf2c] ss:$16 sps:$4 sm:$0xff]   ;;  %v5633_v12 = vld [vmem:[%s5872_s18 + $0xd08] ss:$16 sps:$4 sm:$0xff]  }
 0x202   : > { %v4790_v52 = vpack.c.bf16 %v4089_v50, %v4088_v43  ;;  %4011 = vmatpush1.bf16.msra.mxu0 %v5555_v44  ;;  %v5635_v41 = vld [vmem:[%s5872_s18 + $0xd0c] ss:$16 sps:$4 sm:$0xff]   ;;  %v5636_v14 = vld [vmem:[%s5872_s18 + $0xf08] ss:$16 sps:$4 sm:$0xff]   ;;  %v5639_v44 = vld [vmem:[%s5878_s6] sm:$0xf] }
 0x203   : > { %4052 = vmatpush1.bf16.msra.mxu1 %v5558_v45  ;;  %4012 = vmatprep.subr.bf16.mxu0 %v5563_v49  ;;  %v5638_v39 = vld [vmem:[%s5872_s18 + $0xf0c] ss:$16 sps:$4 sm:$0xff]   ;;  %v807_v45 = vrot.slane %v5639_v44, %v806_v42  ;;  %v811_v46 = vrot.slane %v5639_v44, %v810_v22 }
 0x204   : > { %4053 = vmatprep.subr.bf16.mxu1 %v5566_v23  ;;  %4108 = vst [vmem:[%s6501_s22] sm:$0xff] %v4790_v52 }
 0x206   : > { %4013 = vmatpush1.bf16.msra.mxu0 %v5561_v54 }
 0x207   : > { %4054 = vmatpush1.bf16.msra.mxu1 %v5564_v55  ;;  %4014 = vmatprep.subr.bf16.mxu0 %v5569_v56 }
 0x208   : > { %4055 = vmatprep.subr.bf16.mxu1 %v5572_v57 }
 0x20a   : > { %4015 = vmatpush1.bf16.msra.mxu0 %v5567_v6 }
 0x20b   : > { %4056 = vmatpush1.bf16.msra.mxu1 %v5570_v7  ;;  %4016 = vmatprep.subr.bf16.mxu0 %v5575_v18 }
 0x20c   : > { %4057 = vmatprep.subr.bf16.mxu1 %v5578_v60 }
 0x20e   : > { %4017 = vmatpush1.bf16.msra.mxu0 %v5573_v61 }
 0x20f   : > { %4058 = vmatpush1.bf16.msra.mxu1 %v5576_v62  ;;  %4018 = vmatprep.subr.bf16.mxu0 %v5581_v1 }
 0x210   : > { %4059 = vmatprep.subr.bf16.mxu1 %v5584_v36 }
 0x212   : > { %4019 = vmatpush1.bf16.msra.mxu0 %v5579_v37 }
 0x213   : > { %4060 = vmatpush1.bf16.msra.mxu1 %v5582_v27  ;;  %4020 = vmatprep.subr.bf16.mxu0 %v5587_v2 }
 0x214   : > { %4061 = vmatprep.subr.bf16.mxu1 %v5590_v3 }
 0x216   : > { %4021 = vmatpush1.bf16.msra.mxu0 %v5585_v4 }
 0x217   : > { %4062 = vmatpush1.bf16.msra.mxu1 %v5588_v5  ;;  %4022 = vmatprep.subr.bf16.mxu0 %v5593_v8 }
 0x218   : > { %4063 = vmatprep.subr.bf16.mxu1 %v5596_v35 }
 0x21a   : > { %4023 = vmatpush2.bf16.msra.mxu0 %v5591_v9 }
 0x21b   : > { %4064 = vmatpush2.bf16.msra.mxu1 %v5594_v40  ;;  %4024 = vmatprep.subr.bf16.mxu0 %v5599_v10 }
 0x21c   : > { %4065 = vmatprep.subr.bf16.mxu1 %v5602_v13 }
 0x21e   : > { %4025 = vmatpush2.bf16.msra.mxu0 %v5597_v16 }
 0x21f   : > { %4066 = vmatpush2.bf16.msra.mxu1 %v5600_v17  ;;  %4026 = vmatprep.subr.bf16.mxu0 %v5605_v58 }
 0x220   : > { %4067 = vmatprep.subr.bf16.mxu1 %v5608_v15 }
 0x222   : > { %4027 = vmatpush2.bf16.msra.mxu0 %v5603_v19 }
 0x223   : > { %4068 = vmatpush2.bf16.msra.mxu1 %v5606_v20  ;;  %4028 = vmatprep.subr.bf16.mxu0 %v5611_v21 }
 0x224   : > { %4069 = vmatprep.subr.bf16.mxu1 %v5614_v26 }
 0x226   : > { %4029 = vmatpush2.bf16.msra.mxu0 %v5609_v24 }
 0x227   : > { %4070 = vmatpush2.bf16.msra.mxu1 %v5612_v25  ;;  %4030 = vmatprep.subr.bf16.mxu0 %v5617_v28 }
 0x228   : > { %4071 = vmatprep.subr.bf16.mxu1 %v5620_v29 }
 0x22a   : > { %4031 = vmatpush2.bf16.msra.mxu0 %v5615_v30 }
 0x22b   : > { %4072 = vmatpush2.bf16.msra.mxu1 %v5618_v47  ;;  %4032 = vmatprep.subr.bf16.mxu0 %v5623_v51 }
 0x22c   : > { %4073 = vmatprep.subr.bf16.mxu1 %v5626_v59 }
 0x22e   : > { %4033 = vmatpush2.bf16.msra.mxu0 %v5621_v11 }
 0x22f   : > { %4074 = vmatpush2.bf16.msra.mxu1 %v5624_v31  ;;  %4034 = vmatprep.subr.bf16.mxu0 %v5629_v32 }
 0x230   : > { %4075 = vmatprep.subr.bf16.mxu1 %v5632_v33 }
 0x232   : > { %4035 = vmatpush2.bf16.msra.mxu0 %v5627_v34 }
 0x233   : > { %4076 = vmatpush2.bf16.msra.mxu1 %v5630_v38  ;;  %4036 = vmatprep.subr.bf16.mxu0 %v5635_v41 }
 0x234   : > { %4077 = vmatprep.subr.bf16.mxu1 %v5638_v39 }
 0x236   : > { %4037 = vmatpush2.bf16.msra.mxu0 %v5633_v12 }
 0x237   : > { %4078 = vmatpush2.bf16.msra.mxu1 %v5636_v14 }
 0x239   : > { %v3794_v48 = vpop.f32.mrf.mxu0  ;;  %4039 = vmatmul.mubr.bf16.vlgmr.msra.gmra.mxu0 %v6247_v63 }
 0x23a   : > { %v3835_v49 = vpop.f32.mrf.mxu1  ;;  %4080 = vmatmul.mubr.bf16.vlgmr.msra.gmra.mxu1 %v6251_v0  ;;  %v3795_v23 = vadd.f32 %v3794_v48, %v807_v45 }
 0x23b   : > { %v3796_v43 = vpop.f32.mrf.mxu0 }
 0x23c   : > { %v3837_v50 = vpop.f32.mrf.mxu1  ;;  %v3836_v52 = vadd.f32 %v3835_v49, %v3795_v23  ;;  %v3797_v54 = vadd.f32 %v3796_v43, %v811_v46 }
 0x23d   : > { %v3798_v55 = vpop.f32.mrf.mxu0 }
 0x23e   : > { %v3839_v56 = vpop.f32.mrf.mxu1  ;;  %v3838_v57 = vadd.f32 %v3837_v50, %v3797_v54 }
 0x23f   : > { %v3799_v53 = vpop.f32.mrf.mxu0 }
 0x240   : > { %v3840_v6 = vpop.f32.mrf.mxu1 }
 0x279   : > { %v3876_v7 = vpop.f32.mrf.mxu0 }
 0x27a   : > { %v3917_v18 = vpop.f32.mrf.mxu1  ;;  %v3877_v60 = vadd.f32 %v3876_v7, %v3836_v52 }
 0x27b   : > { %v3878_v61 = vpop.f32.mrf.mxu0 }
 0x27c   : > { %v3919_v62 = vpop.f32.mrf.mxu1  ;;  %v3918_v1 = vadd.f32 %v3917_v18, %v3877_v60  ;;  %v3879_v36 = vadd.f32 %v3878_v61, %v3838_v57 }
 0x27d   : > { %v3880_v63 = vpop.f32.mrf.mxu0 }
 0x27e   : > { %v3921_v37 = vpop.f32.mrf.mxu1  ;;  %v3920_v0 = vadd.f32 %v3919_v62, %v3879_v36 }
 0x27f   : > { %v3881_v27 = vpop.f32.mrf.mxu0 }
 0x280   : > { %v3922_v2 = vpop.f32.mrf.mxu1 }
 0x2b9   : > { %v3958_v3 = vpop.f32.mrf.mxu0 }
 0x2ba   : > { %v3999_v4 = vpop.f32.mrf.mxu1  ;;  %v3959_v5 = vadd.f32 %v3958_v3, %v3918_v1 }
 0x2bb   : > { %v3960_v8 = vpop.f32.mrf.mxu0 }
 0x2bc   : > { %v4001_v35 = vpop.f32.mrf.mxu1  ;;  %v4000_v9 = vadd.f32 %v3999_v4, %v3959_v5  ;;  %v3961_v17 = vadd.f32 %v3960_v8, %v3920_v0 }
 0x2bd   : > { %v3962_v40 = vpop.f32.mrf.mxu0 }
 0x2be   : > { %v4003_v10 = vpop.f32.mrf.mxu1  ;;  %v4002_v19 = vadd.f32 %v4001_v35, %v3961_v17 }
 0x2bf   : > { %v3963_v13 = vpop.f32.mrf.mxu0 }
 0x2c0   : > { %v4004_v16 = vpop.f32.mrf.mxu1 }
 0x2f9   : > { %v4040_v58 = vpop.f32.mrf.mxu0 }
 0x2fa   : > { %v4081_v15 = vpop.f32.mrf.mxu1  ;;  %v4041_v20 = vadd.f32 %v4040_v58, %v4000_v9 }
 0x2fb   : > { %v4042_v21 = vpop.f32.mrf.mxu0 }
 0x2fc   : > { %v4083_v26 = vpop.f32.mrf.mxu1  ;;  %v4082_v24 = vadd.f32 %v4081_v15, %v4041_v20  ;;  %v4043_v25 = vadd.f32 %v4042_v21, %v4002_v19 }
 0x2fd   : > { %v4044_v28 = vpop.f32.mrf.mxu0 }
 0x2fe   : > { %v4085_v29 = vpop.f32.mrf.mxu1  ;;  %v4084_v30 = vadd.f32 %v4083_v26, %v4043_v25  ;;  %v4090_v59 = vmax.f32 %v4082_v24, 0.0 }
 0x2ff   : > { %v4045_v47 = vpop.f32.mrf.mxu0 }
 0x300   : > { %v4086_v51 = vpop.f32.mrf.mxu1  ;;  %v4091_v11 = vmax.f32 %v4084_v30, 0.0 }
 0x302   : > { %v4791_v31 = vpack.c.bf16 %v4091_v11, %v4090_v59 }
 0x304   : > { %4109 = vst [vmem:[%s6501_s22 + $0x8] sm:$0xff] %v4791_v31 }
 0x305 PF: > { %s19_s17 = sadd.s32 1, %s5750_s17   ;;  %s6586_s12 = smov %s5734_s13 }
 0x306   : > { %p16_p9 = scmp.ge.s32.totalorder %s19_s17, 4   ;;  %s6587_s13 = smov %s5738_s14 }
 0x307   : > { %s6588_s14 = smov %s5826_s24  ;;  %s6589_s15 = smov %s5746_s16 }
 0x308   : > { %s6590_s16 = smov %s6592_s19  ;;  %18 = sbr.rel (!%p16_p9) target bundleno = 6 (0x6), region = 88 }
 0x30d   :  { %4140 = vsyncpa [#allocation3], 1 }
 0x30e   :  { %4142 = vsyncpa [#allocation3 + $0x1], 1 }
 0x30f   :  { %4143 = vsyncpa [#allocation5], 1 }
 0x310   :  { %4145 = vsyncpa [#allocation5 + $0x1], 1 }

// kernel: decoder_forward.8
= control target key start
LH: loop header
LB: loop body
LE: loop exit
PB: predicated region body
PF: predicated region fallthrough
CT: control target
= control target key end

     0   :  { %s1494_s12 = smov 0   ;;  %s1496_s13 = smov 0   ;;  %s1668_s0 = inlined_call_operand.vmem [shape: bf16[512,256], index: 0, kind: input, shape index: {}]   ;;  %s1669_s1 = inlined_call_operand.vmem [shape: bf16[256,128], index: 1, kind: input, shape index: {}]   ;;  %s1670_s2 = inlined_call_operand.vmem [shape: f32[1,128], index: 2, kind: input, shape index: {}]   ;;  %s1671_s3 = inlined_call_operand.vmem [shape: bf16[512,128], index: 3, kind: output, shape index: {}]  }
   0x1   :  { %s1498_s14 = smov 0  }
   0x2 LB: > { %s25_s15 = sadd.s32 1, %s1468_s13  ;;  %p1017_p0 = scmp.ge.s32.totalorder %s1472_s14, 1  ;;  %s1472_s14 = sphi %s1498_s14, %s13_s14   ;;  %s1468_s13 = sphi %s1496_s13, %s1673_s13   ;;  %s1464_s12 = sphi %s1494_s12, %s1672_s12  }
   0x3   : > { %p27_p1 = scmp.ge.s32.totalorder %s25_s15, 2  ;;  %p170_p2 = scmp.lt.s32.totalorder %s1472_s14, 3 }
   0x5   : > { %s1675_s15 = smov (%p27_p1, %s25_s15), 0  ;;  %p171_p3 = pnand %p1017_p0, %p170_p2 }
   0x6   : > { %s1018_s18 = sshll.u32 (!%p171_p3), %s1464_s12, 5 }
   0x7   : > { %174 = sbr.rel (%p171_p3) target bundleno = 309 (0x135), region = 32  ;;  %p206_p4 = scmp.lt.s32.totalorder (!%p171_p3), %s1018_s18, 63 }
   0xc   : > { %v1386_v0 = vld [vmem:[%s1669_s1 + $0x78] sm:$0xff]   ;;  %v1388_v2 = vld [vmem:[%s1669_s1 + $0x70] sm:$0xff]   ;;  %v1390_v4 = vld [vmem:[%s1669_s1 + $0x68] sm:$0xff]   ;;  %s1677_s18 = smov (!%p206_p4, %s1018_s18), 63 }
   0xd   : > { %v1387_v1 = vld [vmem:[%s1669_s1 + $0x38] sm:$0xff]   ;;  %1234 = vmatprep.subr.bf16.mxu0 %v1386_v0  ;;  %1346 = vmatprep.subr.bf16.mxu1 %v1386_v0  ;;  %v1389_v3 = vld [vmem:[%s1669_s1 + $0x30] sm:$0xff]   ;;  %v1391_v5 = vld [vmem:[%s1669_s1 + $0x28] sm:$0xff]   ;;  %s1106_s6 = sshll.u32 %s1677_s18, 3  ;;  %s1022_s5 = sshll.u32 %s1677_s18, 2 }
   0xe   : > { %1235 = vmatpush3.bf16.msra.mxu0 %v1387_v1  ;;  %1354 = vmatpush3.bf16.msra.mxu1 %v1387_v1  ;;  %v1392_v6 = vld [vmem:[%s1669_s1 + $0x60] sm:$0xff]   ;;  %v1394_v8 = vld [vmem:[%s1669_s1 + $0x58] sm:$0xff]   ;;  %s1545_s11 = scalar_lea.vmem %s1668_s0, %s1106_s6  ;;  %v1396_v10 = vld [vmem:[%s1669_s1 + $0x50] sm:$0xff]   ;;  %s1613_s8 = scalar_lea.vmem %s1671_s3, %s1022_s5 }
   0xf   : > { %1236 = vmatprep.subr.bf16.mxu0 %v1388_v2  ;;  %1347 = vmatprep.subr.bf16.mxu1 %v1388_v2  ;;  %v1393_v7 = vld [vmem:[%s1669_s1 + $0x20] sm:$0xff]   ;;  %v1395_v9 = vld [vmem:[%s1669_s1 + $0x18] sm:$0xff]   ;;  %v1397_v13 = vld [vmem:[%s1669_s1 + $0x10] sm:$0xff]  }
  0x10   : > { %v1404_v11 = vld [vmem:[%s1545_s11 + $0x4] ss:$8 sps:$4 sm:$0xff]   ;;  %v1402_v18 = vld [vmem:[%s1545_s11] ss:$8 sps:$4 sm:$0xff]   ;;  %v1408_v20 = vld [vmem:[%s1545_s11 + $0x14] ss:$8 sps:$4 sm:$0xff]  }
  0x11   : > { %v1407_v12 = vld [vmem:[%s1545_s11 + $0x84] ss:$8 sps:$4 sm:$0xff]   ;;  %588 = vmatprep.mubr.bf16.mxu0 %v1404_v11  ;;  %v1405_v19 = vld [vmem:[%s1545_s11 + $0x80] ss:$8 sps:$4 sm:$0xff]   ;;  %v1410_v21 = vld [vmem:[%s1545_s11 + $0x94] ss:$8 sps:$4 sm:$0xff]  }
  0x12   : > { %1237 = vmatpush3.bf16.msra.mxu0 %v1389_v3  ;;  %1355 = vmatpush3.bf16.msra.mxu1 %v1389_v3  ;;  %v1398_v14 = vld [vmem:[%s1669_s1 + $0x48] sm:$0xff]   ;;  %v1400_v16 = vld [vmem:[%s1669_s1 + $0x40] sm:$0xff]   ;;  %v1412_v22 = vld [vmem:[%s1545_s11 + $0x10] ss:$8 sps:$4 sm:$0xff]  }
  0x13   : > { %1238 = vmatprep.subr.bf16.mxu0 %v1390_v4  ;;  %1348 = vmatprep.subr.bf16.mxu1 %v1390_v4  ;;  %v1399_v15 = vld [vmem:[%s1669_s1 + $0x8] sm:$0xff]   ;;  %v1401_v17 = vld [vmem:[%s1669_s1] sm:$0xff]   ;;  %v1413_v23 = vld [vmem:[%s1545_s11 + $0x90] ss:$8 sps:$4 sm:$0xff]  }
  0x14   : > { %652 = vmatprep.mubr.bf16.mxu1 %v1407_v12  ;;  %v1414_v24 = vld [vmem:[%s1545_s11 + $0x24] ss:$8 sps:$4 sm:$0xff]   ;;  %v1418_v26 = vld [vmem:[%s1545_s11 + $0x20] ss:$8 sps:$4 sm:$0xff]   ;;  %v1420_v28 = vld [vmem:[%s1545_s11 + $0x34] ss:$8 sps:$4 sm:$0xff]  }
  0x15   : > { %v1416_v25 = vld [vmem:[%s1545_s11 + $0xa4] ss:$8 sps:$4 sm:$0xff]   ;;  %v1419_v27 = vld [vmem:[%s1545_s11 + $0xa0] ss:$8 sps:$4 sm:$0xff]   ;;  %v1422_v29 = vld [vmem:[%s1545_s11 + $0xb4] ss:$8 sps:$4 sm:$0xff]  }
  0x16   : > { %1239 = vmatpush3.bf16.msra.mxu0 %v1391_v5  ;;  %1356 = vmatpush3.bf16.msra.mxu1 %v1391_v5  ;;  %v1424_v30 = vld [vmem:[%s1545_s11 + $0x30] ss:$8 sps:$4 sm:$0xff]   ;;  %v1426_v32 = vld [vmem:[%s1545_s11 + $0x44] ss:$8 sps:$4 sm:$0xff]   ;;  %v1430_v34 = vld [vmem:[%s1545_s11 + $0x40] ss:$8 sps:$4 sm:$0xff]  }
  0x17   : > { %1240 = vmatprep.subr.bf16.mxu0 %v1392_v6  ;;  %1349 = vmatprep.subr.bf16.mxu1 %v1392_v6  ;;  %v1425_v31 = vld [vmem:[%s1545_s11 + $0xb0] ss:$8 sps:$4 sm:$0xff]   ;;  %v1428_v33 = vld [vmem:[%s1545_s11 + $0xc4] ss:$8 sps:$4 sm:$0xff]   ;;  %v1431_v35 = vld [vmem:[%s1545_s11 + $0xc0] ss:$8 sps:$4 sm:$0xff]  }
  0x18   : > { %v1432_v36 = vld [vmem:[%s1545_s11 + $0x54] ss:$8 sps:$4 sm:$0xff]   ;;  %v1436_v38 = vld [vmem:[%s1545_s11 + $0x50] ss:$8 sps:$4 sm:$0xff]   ;;  %v1438_v40 = vld [vmem:[%s1545_s11 + $0x64] ss:$8 sps:$4 sm:$0xff]  }
  0x19   : > { %v1434_v37 = vld [vmem:[%s1545_s11 + $0xd4] ss:$8 sps:$4 sm:$0xff]   ;;  %v1437_v39 = vld [vmem:[%s1545_s11 + $0xd0] ss:$8 sps:$4 sm:$0xff]   ;;  %v1440_v41 = vld [vmem:[%s1545_s11 + $0xe4] ss:$8 sps:$4 sm:$0xff]  }
  0x1a   : > { %1241 = vmatpush3.bf16.msra.mxu0 %v1393_v7  ;;  %1357 = vmatpush3.bf16.msra.mxu1 %v1393_v7  ;;  %v1442_v42 = vld [vmem:[%s1545_s11 + $0x60] ss:$8 sps:$4 sm:$0xff]   ;;  %v1444_v44 = vld [vmem:[%s1545_s11 + $0x74] ss:$8 sps:$4 sm:$0xff]   ;;  %v1448_v46 = vld [vmem:[%s1545_s11 + $0x70] ss:$8 sps:$4 sm:$0xff]  }
  0x1b   : > { %1242 = vmatprep.subr.bf16.mxu0 %v1394_v8  ;;  %1350 = vmatprep.subr.bf16.mxu1 %v1394_v8  ;;  %v1443_v43 = vld [vmem:[%s1545_s11 + $0xe0] ss:$8 sps:$4 sm:$0xff]   ;;  %v1446_v45 = vld [vmem:[%s1545_s11 + $0xf4] ss:$8 sps:$4 sm:$0xff]   ;;  %v1449_v47 = vld [vmem:[%s1545_s11 + $0xf0] ss:$8 sps:$4 sm:$0xff]  }
  0x1c   : > { %v1603_v52 = vld [vmem:[%s1670_s2] ss:$0 sm:$0xff] }
  0x1e   : > { %1243 = vmatpush3.bf16.msra.mxu0 %v1395_v9  ;;  %1358 = vmatpush3.bf16.msra.mxu1 %v1395_v9 }
  0x1f   : > { %1244 = vmatprep.subr.bf16.mxu0 %v1396_v10  ;;  %1351 = vmatprep.subr.bf16.mxu1 %v1396_v10 }
  0x22   : > { %1245 = vmatpush3.bf16.msra.mxu0 %v1397_v13  ;;  %1359 = vmatpush3.bf16.msra.mxu1 %v1397_v13 }
  0x23   : > { %1246 = vmatprep.subr.bf16.mxu0 %v1398_v14  ;;  %1352 = vmatprep.subr.bf16.mxu1 %v1398_v14 }
  0x26   : > { %1247 = vmatpush3.bf16.msra.mxu0 %v1399_v15  ;;  %1360 = vmatpush3.bf16.msra.mxu1 %v1399_v15 }
  0x27   : > { %1248 = vmatprep.subr.bf16.mxu0 %v1400_v16  ;;  %1353 = vmatprep.subr.bf16.mxu1 %v1400_v16 }
  0x2a   : > { %1249 = vmatpush3.bf16.msra.mxu0 %v1401_v17  ;;  %1361 = vmatpush3.bf16.msra.mxu1 %v1401_v17 }
  0x2d   : > { %589 = vmatmul.mubr.bf16.vlgmr.msra.gmra.mxu0 %v1402_v18  ;;  %653 = vmatmul.mubr.bf16.vlgmr.msra.gmra.mxu1 %v1405_v19 }
  0x2e   : > { %596 = vmatprep.mubr.bf16.mxu0 %v1408_v20  ;;  %660 = vmatprep.mubr.bf16.mxu1 %v1410_v21 }
  0x35   : > { %597 = vmatmul.mubr.bf16.gmra.mxu0 %v1412_v22  ;;  %661 = vmatmul.mubr.bf16.gmra.mxu1 %v1413_v23 }
  0x36   : > { %604 = vmatprep.mubr.bf16.mxu0 %v1414_v24  ;;  %668 = vmatprep.mubr.bf16.mxu1 %v1416_v25 }
  0x3d   : > { %605 = vmatmul.mubr.bf16.gmra.mxu0 %v1418_v26  ;;  %669 = vmatmul.mubr.bf16.gmra.mxu1 %v1419_v27 }
  0x3e   : > { %612 = vmatprep.mubr.bf16.mxu0 %v1420_v28  ;;  %676 = vmatprep.mubr.bf16.mxu1 %v1422_v29 }
  0x45   : > { %613 = vmatmul.mubr.bf16.gmra.mxu0 %v1424_v30  ;;  %677 = vmatmul.mubr.bf16.gmra.mxu1 %v1425_v31 }
  0x46   : > { %620 = vmatprep.mubr.bf16.mxu0 %v1426_v32  ;;  %684 = vmatprep.mubr.bf16.mxu1 %v1428_v33 }
  0x4d   : > { %621 = vmatmul.mubr.bf16.gmra.mxu0 %v1430_v34  ;;  %685 = vmatmul.mubr.bf16.gmra.mxu1 %v1431_v35 }
  0x4e   : > { %628 = vmatprep.mubr.bf16.mxu0 %v1432_v36  ;;  %692 = vmatprep.mubr.bf16.mxu1 %v1434_v37 }
  0x55   : > { %629 = vmatmul.mubr.bf16.gmra.mxu0 %v1436_v38  ;;  %693 = vmatmul.mubr.bf16.gmra.mxu1 %v1437_v39 }
  0x56   : > { %636 = vmatprep.mubr.bf16.mxu0 %v1438_v40  ;;  %700 = vmatprep.mubr.bf16.mxu1 %v1440_v41 }
  0x5d   : > { %637 = vmatmul.mubr.bf16.gmra.mxu0 %v1442_v42  ;;  %701 = vmatmul.mubr.bf16.gmra.mxu1 %v1443_v43 }
  0x5e   : > { %644 = vmatprep.mubr.bf16.mxu0 %v1444_v44  ;;  %708 = vmatprep.mubr.bf16.mxu1 %v1446_v45 }
  0x65   : > { %645 = vmatmul.mubr.bf16.gmra.mxu0 %v1448_v46  ;;  %709 = vmatmul.mubr.bf16.gmra.mxu1 %v1449_v47 }
  0xed   : > { %v1250_v48 = vpop.f32.mrf.mxu0  ;;  %v1298_v49 = vpop.f32.mrf.mxu1 }
  0xef   : > { %v1251_v50 = vpop.f32.mrf.mxu0  ;;  %v1299_v51 = vpop.f32.mrf.mxu1 }
  0xf0   : > { %v1252_v53 = vadd.f32 %v1251_v50, %v1250_v48  ;;  %v1300_v54 = vadd.f32 %v1299_v51, %v1298_v49 }
  0xf1   : > { %v1253_v55 = vpop.f32.mrf.mxu0  ;;  %v1301_v56 = vpop.f32.mrf.mxu1 }
  0xf2   : > { %v591_v57 = vadd.f32 %v1252_v53, %v1603_v52  ;;  %v655_v58 = vadd.f32 %v1300_v54, %v1603_v52 }
  0xf3   : > { %v1254_v59 = vpop.f32.mrf.mxu0  ;;  %v1302_v60 = vpop.f32.mrf.mxu1 }
  0xf4   : > { %v1255_v61 = vadd.f32 %v1254_v59, %v1253_v55  ;;  %v1303_v62 = vadd.f32 %v1302_v60, %v1301_v56  ;;  %v717_v3 = vmax.f32 %v591_v57, 0.0  ;;  %v733_v4 = vmax.f32 %v655_v58, 0.0 }
  0xf5   : > { %v1256_v63 = vpop.f32.mrf.mxu0  ;;  %v1304_v0 = vpop.f32.mrf.mxu1 }
  0xf6   : > { %v594_v1 = vadd.f32 %v1255_v61, %v1603_v52  ;;  %v658_v2 = vadd.f32 %v1303_v62, %v1603_v52 }
  0xf7   : > { %v1257_v5 = vpop.f32.mrf.mxu0  ;;  %v1305_v6 = vpop.f32.mrf.mxu1 }
  0xf8   : > { %v718_v7 = vmax.f32 %v594_v1, 0.0  ;;  %v734_v8 = vmax.f32 %v658_v2, 0.0  ;;  %v1258_v9 = vadd.f32 %v1257_v5, %v1256_v63  ;;  %v1306_v10 = vadd.f32 %v1305_v6, %v1304_v0 }
  0xf9   : > { %v1259_v11 = vpop.f32.mrf.mxu0  ;;  %v1307_v12 = vpop.f32.mrf.mxu1 }
  0xfa   : > { %v1142_v13 = vpack.c.bf16 %v718_v7, %v717_v3  ;;  %v1182_v14 = vpack.c.bf16 %v734_v8, %v733_v4  ;;  %v599_v15 = vadd.f32 %v1258_v9, %v1603_v52  ;;  %v663_v16 = vadd.f32 %v1306_v10, %v1603_v52 }
  0xfb   : > { %v1260_v17 = vpop.f32.mrf.mxu0  ;;  %v1308_v18 = vpop.f32.mrf.mxu1 }
  0xfc   : > { %1143 = vst [vmem:[%s1613_s8] sm:$0xff] %v1142_v13   ;;  %1226 = vst [vmem:[%s1613_s8 + $0x40] sm:$0xff] %v1182_v14   ;;  %v1261_v19 = vadd.f32 %v1260_v17, %v1259_v11  ;;  %v1309_v20 = vadd.f32 %v1308_v18, %v1307_v12  ;;  %v719_v25 = vmax.f32 %v599_v15, 0.0  ;;  %v735_v26 = vmax.f32 %v663_v16, 0.0 }
  0xfd   : > { %v1262_v21 = vpop.f32.mrf.mxu0  ;;  %v1310_v22 = vpop.f32.mrf.mxu1 }
  0xfe   : > { %v602_v23 = vadd.f32 %v1261_v19, %v1603_v52  ;;  %v666_v24 = vadd.f32 %v1309_v20, %v1603_v52 }
  0xff   : > { %v1263_v27 = vpop.f32.mrf.mxu0  ;;  %v1311_v28 = vpop.f32.mrf.mxu1 }
 0x100   : > { %v720_v29 = vmax.f32 %v602_v23, 0.0  ;;  %v736_v30 = vmax.f32 %v666_v24, 0.0  ;;  %v1264_v31 = vadd.f32 %v1263_v27, %v1262_v21  ;;  %v1312_v32 = vadd.f32 %v1311_v28, %v1310_v22 }
 0x101   : > { %v1265_v33 = vpop.f32.mrf.mxu0  ;;  %v1313_v34 = vpop.f32.mrf.mxu1 }
 0x102   : > { %v1147_v35 = vpack.c.bf16 %v720_v29, %v719_v25  ;;  %v1187_v36 = vpack.c.bf16 %v736_v30, %v735_v26  ;;  %v607_v37 = vadd.f32 %v1264_v31, %v1603_v52  ;;  %v671_v38 = vadd.f32 %v1312_v32, %v1603_v52 }
 0x103   : > { %v1266_v39 = vpop.f32.mrf.mxu0  ;;  %v1314_v40 = vpop.f32.mrf.mxu1 }
 0x104   : > { %1219 = vst [vmem:[%s1613_s8 + $0x8] sm:$0xff] %v1147_v35   ;;  %1227 = vst [vmem:[%s1613_s8 + $0x48] sm:$0xff] %v1187_v36   ;;  %v1267_v41 = vadd.f32 %v1266_v39, %v1265_v33  ;;  %v1315_v42 = vadd.f32 %v1314_v40, %v1313_v34  ;;  %v721_v47 = vmax.f32 %v607_v37, 0.0  ;;  %v737_v48 = vmax.f32 %v671_v38, 0.0 }
 0x105   : > { %v1268_v43 = vpop.f32.mrf.mxu0  ;;  %v1316_v44 = vpop.f32.mrf.mxu1 }
 0x106   : > { %v610_v45 = vadd.f32 %v1267_v41, %v1603_v52  ;;  %v674_v46 = vadd.f32 %v1315_v42, %v1603_v52 }
 0x107   : > { %v1269_v49 = vpop.f32.mrf.mxu0  ;;  %v1317_v50 = vpop.f32.mrf.mxu1 }
 0x108   : > { %v722_v51 = vmax.f32 %v610_v45, 0.0  ;;  %v738_v53 = vmax.f32 %v674_v46, 0.0  ;;  %v1270_v54 = vadd.f32 %v1269_v49, %v1268_v43  ;;  %v1318_v55 = vadd.f32 %v1317_v50, %v1316_v44 }
 0x109   : > { %v1271_v56 = vpop.f32.mrf.mxu0  ;;  %v1319_v57 = vpop.f32.mrf.mxu1 }
 0x10a   : > { %v1152_v58 = vpack.c.bf16 %v722_v51, %v721_v47  ;;  %v1192_v59 = vpack.c.bf16 %v738_v53, %v737_v48  ;;  %v615_v60 = vadd.f32 %v1270_v54, %v1603_v52  ;;  %v679_v61 = vadd.f32 %v1318_v55, %v1603_v52 }
 0x10b   : > { %v1272_v62 = vpop.f32.mrf.mxu0  ;;  %v1320_v63 = vpop.f32.mrf.mxu1 }
 0x10c   : > { %1220 = vst [vmem:[%s1613_s8 + $0x10] sm:$0xff] %v1152_v58   ;;  %1228 = vst [vmem:[%s1613_s8 + $0x50] sm:$0xff] %v1192_v59   ;;  %v1273_v0 = vadd.f32 %v1272_v62, %v1271_v56  ;;  %v1321_v1 = vadd.f32 %v1320_v63, %v1319_v57  ;;  %v723_v6 = vmax.f32 %v615_v60, 0.0  ;;  %v739_v7 = vmax.f32 %v679_v61, 0.0 }
 0x10d   : > { %v1274_v2 = vpop.f32.mrf.mxu0  ;;  %v1322_v3 = vpop.f32.mrf.mxu1 }
 0x10e   : > { %v618_v4 = vadd.f32 %v1273_v0, %v1603_v52  ;;  %v682_v5 = vadd.f32 %v1321_v1, %v1603_v52 }
 0x10f   : > { %v1275_v8 = vpop.f32.mrf.mxu0  ;;  %v1323_v9 = vpop.f32.mrf.mxu1 }
 0x110   : > { %v724_v10 = vmax.f32 %v618_v4, 0.0  ;;  %v740_v11 = vmax.f32 %v682_v5, 0.0  ;;  %v1276_v12 = vadd.f32 %v1275_v8, %v1274_v2  ;;  %v1324_v13 = vadd.f32 %v1323_v9, %v1322_v3 }
 0x111   : > { %v1277_v14 = vpop.f32.mrf.mxu0  ;;  %v1325_v15 = vpop.f32.mrf.mxu1 }
 0x112   : > { %v1157_v16 = vpack.c.bf16 %v724_v10, %v723_v6  ;;  %v1197_v17 = vpack.c.bf16 %v740_v11, %v739_v7  ;;  %v623_v18 = vadd.f32 %v1276_v12, %v1603_v52  ;;  %v687_v19 = vadd.f32 %v1324_v13, %v1603_v52 }
 0x113   : > { %v1278_v20 = vpop.f32.mrf.mxu0  ;;  %v1326_v21 = vpop.f32.mrf.mxu1 }
 0x114   : > { %1221 = vst [vmem:[%s1613_s8 + $0x18] sm:$0xff] %v1157_v16   ;;  %1229 = vst [vmem:[%s1613_s8 + $0x58] sm:$0xff] %v1197_v17   ;;  %v1279_v22 = vadd.f32 %v1278_v20, %v1277_v14  ;;  %v1327_v23 = vadd.f32 %v1326_v21, %v1325_v15  ;;  %v725_v28 = vmax.f32 %v623_v18, 0.0  ;;  %v741_v29 = vmax.f32 %v687_v19, 0.0 }
 0x115   : > { %v1280_v24 = vpop.f32.mrf.mxu0  ;;  %v1328_v25 = vpop.f32.mrf.mxu1 }
 0x116   : > { %v626_v26 = vadd.f32 %v1279_v22, %v1603_v52  ;;  %v690_v27 = vadd.f32 %v1327_v23, %v1603_v52 }
 0x117   : > { %v1281_v30 = vpop.f32.mrf.mxu0  ;;  %v1329_v31 = vpop.f32.mrf.mxu1 }
 0x118   : > { %v726_v32 = vmax.f32 %v626_v26, 0.0  ;;  %v742_v33 = vmax.f32 %v690_v27, 0.0  ;;  %v1282_v34 = vadd.f32 %v1281_v30, %v1280_v24  ;;  %v1330_v35 = vadd.f32 %v1329_v31, %v1328_v25 }
 0x119   : > { %v1283_v36 = vpop.f32.mrf.mxu0  ;;  %v1331_v37 = vpop.f32.mrf.mxu1 }
 0x11a   : > { %v1162_v38 = vpack.c.bf16 %v726_v32, %v725_v28  ;;  %v1202_v39 = vpack.c.bf16 %v742_v33, %v741_v29  ;;  %v631_v40 = vadd.f32 %v1282_v34, %v1603_v52  ;;  %v695_v41 = vadd.f32 %v1330_v35, %v1603_v52 }
 0x11b   : > { %v1284_v42 = vpop.f32.mrf.mxu0  ;;  %v1332_v43 = vpop.f32.mrf.mxu1 }
 0x11c   : > { %1222 = vst [vmem:[%s1613_s8 + $0x20] sm:$0xff] %v1162_v38   ;;  %1230 = vst [vmem:[%s1613_s8 + $0x60] sm:$0xff] %v1202_v39   ;;  %v1285_v44 = vadd.f32 %v1284_v42, %v1283_v36  ;;  %v1333_v45 = vadd.f32 %v1332_v43, %v1331_v37  ;;  %v727_v50 = vmax.f32 %v631_v40, 0.0  ;;  %v743_v51 = vmax.f32 %v695_v41, 0.0 }
 0x11d   : > { %v1286_v46 = vpop.f32.mrf.mxu0  ;;  %v1334_v47 = vpop.f32.mrf.mxu1 }
 0x11e   : > { %v634_v48 = vadd.f32 %v1285_v44, %v1603_v52  ;;  %v698_v49 = vadd.f32 %v1333_v45, %v1603_v52 }
 0x11f   : > { %v1287_v53 = vpop.f32.mrf.mxu0  ;;  %v1335_v54 = vpop.f32.mrf.mxu1 }
 0x120   : > { %v728_v55 = vmax.f32 %v634_v48, 0.0  ;;  %v744_v56 = vmax.f32 %v698_v49, 0.0  ;;  %v1288_v57 = vadd.f32 %v1287_v53, %v1286_v46  ;;  %v1336_v58 = vadd.f32 %v1335_v54, %v1334_v47 }
 0x121   : > { %v1289_v59 = vpop.f32.mrf.mxu0  ;;  %v1337_v60 = vpop.f32.mrf.mxu1 }
 0x122   : > { %v1167_v61 = vpack.c.bf16 %v728_v55, %v727_v50  ;;  %v1207_v62 = vpack.c.bf16 %v744_v56, %v743_v51  ;;  %v639_v63 = vadd.f32 %v1288_v57, %v1603_v52  ;;  %v703_v0 = vadd.f32 %v1336_v58, %v1603_v52 }
 0x123   : > { %v1290_v1 = vpop.f32.mrf.mxu0  ;;  %v1338_v2 = vpop.f32.mrf.mxu1 }
 0x124   : > { %1223 = vst [vmem:[%s1613_s8 + $0x28] sm:$0xff] %v1167_v61   ;;  %1231 = vst [vmem:[%s1613_s8 + $0x68] sm:$0xff] %v1207_v62   ;;  %v1291_v3 = vadd.f32 %v1290_v1, %v1289_v59  ;;  %v1339_v4 = vadd.f32 %v1338_v2, %v1337_v60  ;;  %v729_v9 = vmax.f32 %v639_v63, 0.0  ;;  %v745_v10 = vmax.f32 %v703_v0, 0.0 }
 0x125   : > { %v1292_v5 = vpop.f32.mrf.mxu0  ;;  %v1340_v6 = vpop.f32.mrf.mxu1 }
 0x126   : > { %v642_v7 = vadd.f32 %v1291_v3, %v1603_v52  ;;  %v706_v8 = vadd.f32 %v1339_v4, %v1603_v52 }
 0x127   : > { %v1293_v11 = vpop.f32.mrf.mxu0  ;;  %v1341_v12 = vpop.f32.mrf.mxu1 }
 0x128   : > { %v730_v13 = vmax.f32 %v642_v7, 0.0  ;;  %v746_v14 = vmax.f32 %v706_v8, 0.0  ;;  %v1294_v15 = vadd.f32 %v1293_v11, %v1292_v5  ;;  %v1342_v16 = vadd.f32 %v1341_v12, %v1340_v6 }
 0x129   : > { %v1295_v17 = vpop.f32.mrf.mxu0  ;;  %v1343_v18 = vpop.f32.mrf.mxu1 }
 0x12a   : > { %v1172_v19 = vpack.c.bf16 %v730_v13, %v729_v9  ;;  %v1212_v20 = vpack.c.bf16 %v746_v14, %v745_v10  ;;  %v647_v23 = vadd.f32 %v1294_v15, %v1603_v52  ;;  %v711_v24 = vadd.f32 %v1342_v16, %v1603_v52 }
 0x12b   : > { %v1296_v21 = vpop.f32.mrf.mxu0  ;;  %v1344_v22 = vpop.f32.mrf.mxu1 }
 0x12c   : > { %1224 = vst [vmem:[%s1613_s8 + $0x30] sm:$0xff] %v1172_v19   ;;  %1232 = vst [vmem:[%s1613_s8 + $0x70] sm:$0xff] %v1212_v20   ;;  %v1297_v25 = vadd.f32 %v1296_v21, %v1295_v17  ;;  %v1345_v26 = vadd.f32 %v1344_v22, %v1343_v18  ;;  %v731_v29 = vmax.f32 %v647_v23, 0.0  ;;  %v747_v30 = vmax.f32 %v711_v24, 0.0 }
 0x12e   : > { %v650_v27 = vadd.f32 %v1297_v25, %v1603_v52  ;;  %v714_v28 = vadd.f32 %v1345_v26, %v1603_v52 }
 0x130   : > { %v732_v31 = vmax.f32 %v650_v27, 0.0  ;;  %v748_v32 = vmax.f32 %v714_v28, 0.0 }
 0x132   : > { %v1177_v33 = vpack.c.bf16 %v732_v31, %v731_v29  ;;  %v1217_v34 = vpack.c.bf16 %v748_v32, %v747_v30 }
 0x134   : > { %1225 = vst [vmem:[%s1613_s8 + $0x38] sm:$0xff] %v1177_v33   ;;  %1233 = vst [vmem:[%s1613_s8 + $0x78] sm:$0xff] %v1217_v34  }
 0x135 PF: > { %s13_s14 = sadd.s32 1, %s1472_s14   ;;  %s1672_s12 = smov %s1468_s13 }
 0x136   : > { %p10_p5 = scmp.ge.s32.totalorder %s13_s14, 4   ;;  %s1673_s13 = smov %s1675_s15 }
 0x138   :  { %12 = sbr.rel (!%p10_p5) target bundleno = 2 (0x2), region = 68 }

// kernel: decoder_forward.9
= control target key start
LH: loop header
LB: loop body
LE: loop exit
PB: predicated region body
PF: predicated region fallthrough
CT: control target
= control target key end

     0   :  { %s3451_s12 = smov 0   ;;  %s3453_s13 = smov 0   ;;  %s3882_s0 = inlined_call_operand.vmem [shape: bf16[2048,128], index: 0, kind: input, shape index: {}]   ;;  %s3883_s1 = inlined_call_operand.vmem [shape: bf16[128,128], index: 1, kind: input, shape index: {}]   ;;  %s3884_s2 = inlined_call_operand.vmem [shape: f32[1,128], index: 2, kind: input, shape index: {}]   ;;  %s3885_s3 = inlined_call_operand.vmem [shape: f32[2048,128], index: 3, kind: output, shape index: {}]  }
   0x1   :  { %s3455_s14 = smov 0  }
   0x2 LB: > { %s25_s15 = sadd.s32 1, %s3425_s13  ;;  %p2358_p0 = scmp.ge.s32.totalorder %s3429_s14, 1  ;;  %s3429_s14 = sphi %s3455_s14, %s13_s14   ;;  %s3425_s13 = sphi %s3453_s13, %s3887_s13   ;;  %s3421_s12 = sphi %s3451_s12, %s3886_s12  }
   0x3   : > { %p27_p1 = scmp.ge.s32.totalorder %s25_s15, 2  ;;  %p169_p2 = scmp.lt.s32.totalorder %s3429_s14, 3 }
   0x5   : > { %s3889_s15 = smov (%p27_p1, %s25_s15), 0  ;;  %p170_p3 = pnand %p2358_p0, %p169_p2 }
   0x6   : > { %s2359_s18 = sshll.u32 (!%p170_p3), %s3421_s12, 7 }
   0x7   : > { %173 = sbr.rel (%p170_p3) target bundleno = 512 (0x200), region = 32  ;;  %p204_p4 = scmp.lt.s32.totalorder (!%p170_p3), %s2359_s18, 255 }
   0xc   : > { %v2822_v0 = vld [vmem:[%s3883_s1 + $0x38] sm:$0xff]   ;;  %v2823_v1 = vld [vmem:[%s3883_s1 + $0x30] sm:$0xff]   ;;  %s3891_s18 = smov (!%p204_p4, %s2359_s18), 255  ;;  %v2824_v2 = vld [vmem:[%s3883_s1 + $0x28] sm:$0xff]  }
   0xd   : > { %2638 = vmatprep.subr.bf16.mxu0 %v2822_v0  ;;  %2782 = vmatprep.subr.bf16.mxu1 %v2822_v0  ;;  %s2360_s23 = sshll.u32 %s3891_s18, 2  ;;  %v2825_v3 = vld [vmem:[%s3883_s1 + $0x20] sm:$0xff]   ;;  %v2826_v6 = vld [vmem:[%s3883_s1 + $0x18] sm:$0xff]   ;;  %v2827_v7 = vld [vmem:[%s3883_s1 + $0x10] sm:$0xff]   ;;  %s2362_s12 = sshll.u32 %s3891_s18, 3 }
   0xe   : > { %2639 = vmatpush3.bf16.msra.mxu0 %v2822_v0  ;;  %2790 = vmatpush3.bf16.msra.mxu1 %v2822_v0  ;;  %s3484_s26 = scalar_lea.vmem %s3882_s0, %s2360_s23  ;;  %v2828_v8 = vld [vmem:[%s3883_s1 + $0x8] sm:$0xff]   ;;  %v2829_v9 = vld [vmem:[%s3883_s1] sm:$0xff]   ;;  %s3593_s18 = scalar_lea.vmem %s3885_s3, %s2362_s12 }
   0xf   : > { %2640 = vmatprep.subr.bf16.mxu0 %v2823_v1  ;;  %2783 = vmatprep.subr.bf16.mxu1 %v2823_v1  ;;  %v2830_v4 = vld [vmem:[%s3484_s26] sm:$0xff]   ;;  %v2832_v10 = vld [vmem:[%s3484_s26 + $0x8] sm:$0xff]   ;;  %v2834_v12 = vld [vmem:[%s3484_s26 + $0x10] sm:$0xff]  }
  0x10   : > { %v2831_v5 = vld [vmem:[%s3484_s26 + $0x100] sm:$0xff]   ;;  %2654 = vmatprep.mubr.bf16.mxu0 %v2830_v4  ;;  %v2833_v11 = vld [vmem:[%s3484_s26 + $0x108] sm:$0xff]   ;;  %v2835_v13 = vld [vmem:[%s3484_s26 + $0x110] sm:$0xff]  }
  0x11   : > { %2718 = vmatprep.mubr.bf16.mxu1 %v2831_v5  ;;  %v2836_v14 = vld [vmem:[%s3484_s26 + $0x18] sm:$0xff]   ;;  %v2838_v16 = vld [vmem:[%s3484_s26 + $0x20] sm:$0xff]   ;;  %v2840_v18 = vld [vmem:[%s3484_s26 + $0x28] sm:$0xff]  }
  0x12   : > { %2641 = vmatpush3.bf16.msra.mxu0 %v2823_v1  ;;  %2791 = vmatpush3.bf16.msra.mxu1 %v2823_v1  ;;  %v2837_v15 = vld [vmem:[%s3484_s26 + $0x118] sm:$0xff]   ;;  %v2839_v17 = vld [vmem:[%s3484_s26 + $0x120] sm:$0xff]   ;;  %v2841_v19 = vld [vmem:[%s3484_s26 + $0x128] sm:$0xff]  }
  0x13   : > { %2642 = vmatprep.subr.bf16.mxu0 %v2824_v2  ;;  %2784 = vmatprep.subr.bf16.mxu1 %v2824_v2  ;;  %v2842_v20 = vld [vmem:[%s3484_s26 + $0x30] sm:$0xff]   ;;  %v2844_v22 = vld [vmem:[%s3484_s26 + $0x38] sm:$0xff]   ;;  %v2846_v24 = vld [vmem:[%s3484_s26 + $0x40] sm:$0xff]  }
  0x14   : > { %v2843_v21 = vld [vmem:[%s3484_s26 + $0x130] sm:$0xff]   ;;  %v2845_v23 = vld [vmem:[%s3484_s26 + $0x138] sm:$0xff]   ;;  %v2847_v25 = vld [vmem:[%s3484_s26 + $0x140] sm:$0xff]  }
  0x15   : > { %v2848_v26 = vld [vmem:[%s3484_s26 + $0x48] sm:$0xff]   ;;  %v2850_v28 = vld [vmem:[%s3484_s26 + $0x50] sm:$0xff]   ;;  %v2852_v30 = vld [vmem:[%s3484_s26 + $0x58] sm:$0xff]  }
  0x16   : > { %2643 = vmatpush3.bf16.msra.mxu0 %v2824_v2  ;;  %2792 = vmatpush3.bf16.msra.mxu1 %v2824_v2  ;;  %v2849_v27 = vld [vmem:[%s3484_s26 + $0x148] sm:$0xff]   ;;  %v2851_v29 = vld [vmem:[%s3484_s26 + $0x150] sm:$0xff]   ;;  %v2853_v31 = vld [vmem:[%s3484_s26 + $0x158] sm:$0xff]  }
  0x17   : > { %2644 = vmatprep.subr.bf16.mxu0 %v2825_v3  ;;  %2785 = vmatprep.subr.bf16.mxu1 %v2825_v3  ;;  %v2854_v32 = vld [vmem:[%s3484_s26 + $0x60] sm:$0xff]   ;;  %v2856_v34 = vld [vmem:[%s3484_s26 + $0x68] sm:$0xff]   ;;  %v2858_v36 = vld [vmem:[%s3484_s26 + $0x70] sm:$0xff]  }
  0x18   : > { %v2855_v33 = vld [vmem:[%s3484_s26 + $0x160] sm:$0xff]   ;;  %v2857_v35 = vld [vmem:[%s3484_s26 + $0x168] sm:$0xff]   ;;  %v2859_v37 = vld [vmem:[%s3484_s26 + $0x170] sm:$0xff]  }
  0x19   : > { %v2860_v38 = vld [vmem:[%s3484_s26 + $0x78] sm:$0xff]   ;;  %v2862_v40 = vld [vmem:[%s3484_s26 + $0x80] sm:$0xff]   ;;  %v2864_v42 = vld [vmem:[%s3484_s26 + $0x88] sm:$0xff]  }
  0x1a   : > { %2645 = vmatpush3.bf16.msra.mxu0 %v2825_v3  ;;  %2793 = vmatpush3.bf16.msra.mxu1 %v2825_v3  ;;  %v2861_v39 = vld [vmem:[%s3484_s26 + $0x178] sm:$0xff]   ;;  %v2863_v41 = vld [vmem:[%s3484_s26 + $0x180] sm:$0xff]   ;;  %v2865_v43 = vld [vmem:[%s3484_s26 + $0x188] sm:$0xff]  }
  0x1b   : > { %2646 = vmatprep.subr.bf16.mxu0 %v2826_v6  ;;  %2786 = vmatprep.subr.bf16.mxu1 %v2826_v6  ;;  %v2866_v44 = vld [vmem:[%s3484_s26 + $0x90] sm:$0xff]   ;;  %v2868_v46 = vld [vmem:[%s3484_s26 + $0x98] sm:$0xff]   ;;  %v2870_v48 = vld [vmem:[%s3484_s26 + $0xa0] sm:$0xff]  }
  0x1c   : > { %v2867_v45 = vld [vmem:[%s3484_s26 + $0x190] sm:$0xff]   ;;  %v2869_v47 = vld [vmem:[%s3484_s26 + $0x198] sm:$0xff]   ;;  %v2871_v49 = vld [vmem:[%s3484_s26 + $0x1a0] sm:$0xff]  }
  0x1d   : > { %v2872_v50 = vld [vmem:[%s3484_s26 + $0xa8] sm:$0xff]   ;;  %v2874_v52 = vld [vmem:[%s3484_s26 + $0xb0] sm:$0xff]   ;;  %v2876_v54 = vld [vmem:[%s3484_s26 + $0xb8] sm:$0xff]  }
  0x1e   : > { %2647 = vmatpush3.bf16.msra.mxu0 %v2826_v6  ;;  %2794 = vmatpush3.bf16.msra.mxu1 %v2826_v6  ;;  %v2873_v51 = vld [vmem:[%s3484_s26 + $0x1a8] sm:$0xff]   ;;  %v2875_v53 = vld [vmem:[%s3484_s26 + $0x1b0] sm:$0xff]   ;;  %v2877_v55 = vld [vmem:[%s3484_s26 + $0x1b8] sm:$0xff]  }
  0x1f   : > { %2648 = vmatprep.subr.bf16.mxu0 %v2827_v7  ;;  %2787 = vmatprep.subr.bf16.mxu1 %v2827_v7  ;;  %v2878_v56 = vld [vmem:[%s3484_s26 + $0xc0] sm:$0xff]   ;;  %v2880_v58 = vld [vmem:[%s3484_s26 + $0xc8] sm:$0xff]   ;;  %v2882_v60 = vld [vmem:[%s3484_s26 + $0xd0] sm:$0xff]  }
  0x20   : > { %v2879_v57 = vld [vmem:[%s3484_s26 + $0x1c0] sm:$0xff]   ;;  %v2881_v59 = vld [vmem:[%s3484_s26 + $0x1c8] sm:$0xff]   ;;  %v2883_v61 = vld [vmem:[%s3484_s26 + $0x1d0] sm:$0xff]  }
  0x21   : > { %v2884_v62 = vld [vmem:[%s3484_s26 + $0xd8] sm:$0xff]   ;;  %v2886_v0 = vld [vmem:[%s3484_s26 + $0xe0] sm:$0xff]   ;;  %v2888_v2 = vld [vmem:[%s3484_s26 + $0xe8] sm:$0xff]  }
  0x22   : > { %2649 = vmatpush3.bf16.msra.mxu0 %v2827_v7  ;;  %2795 = vmatpush3.bf16.msra.mxu1 %v2827_v7  ;;  %v2885_v63 = vld [vmem:[%s3484_s26 + $0x1d8] sm:$0xff]   ;;  %v2887_v1 = vld [vmem:[%s3484_s26 + $0x1e0] sm:$0xff]   ;;  %v2889_v3 = vld [vmem:[%s3484_s26 + $0x1e8] sm:$0xff]  }
  0x23   : > { %2650 = vmatprep.subr.bf16.mxu0 %v2828_v8  ;;  %2788 = vmatprep.subr.bf16.mxu1 %v2828_v8  ;;  %v2890_v4 = vld [vmem:[%s3484_s26 + $0xf0] sm:$0xff]   ;;  %v2892_v6 = vld [vmem:[%s3484_s26 + $0xf8] sm:$0xff]  }
  0x24   : > { %v2891_v5 = vld [vmem:[%s3484_s26 + $0x1f0] sm:$0xff]   ;;  %v2893_v7 = vld [vmem:[%s3484_s26 + $0x1f8] sm:$0xff]  }
  0x26   : > { %2651 = vmatpush3.bf16.msra.mxu0 %v2828_v8  ;;  %2796 = vmatpush3.bf16.msra.mxu1 %v2828_v8  ;;  %v3568_v8 = vld [vmem:[%s3884_s2] ss:$0 sm:$0xff] }
  0x27   : > { %2652 = vmatprep.subr.bf16.mxu0 %v2829_v9  ;;  %2789 = vmatprep.subr.bf16.mxu1 %v2829_v9 }
  0x2a   : > { %2653 = vmatpush3.bf16.msra.mxu0 %v2829_v9  ;;  %2797 = vmatpush3.bf16.msra.mxu1 %v2829_v9 }
  0x2d   : > { %2655 = vmatmul.mubr.bf16.vlgmr.msra.gmra.mxu0 %v2832_v10  ;;  %2719 = vmatmul.mubr.bf16.vlgmr.msra.gmra.mxu1 %v2833_v11 }
  0x2e   : > { %2658 = vmatprep.mubr.bf16.mxu0 %v2834_v12  ;;  %2722 = vmatprep.mubr.bf16.mxu1 %v2835_v13 }
  0x35   : > { %2659 = vmatmul.mubr.bf16.gmra.mxu0 %v2836_v14  ;;  %2723 = vmatmul.mubr.bf16.gmra.mxu1 %v2837_v15 }
  0x36   : > { %2662 = vmatprep.mubr.bf16.mxu0 %v2838_v16  ;;  %2726 = vmatprep.mubr.bf16.mxu1 %v2839_v17 }
  0x3d   : > { %2663 = vmatmul.mubr.bf16.gmra.mxu0 %v2840_v18  ;;  %2727 = vmatmul.mubr.bf16.gmra.mxu1 %v2841_v19 }
  0x3e   : > { %2666 = vmatprep.mubr.bf16.mxu0 %v2842_v20  ;;  %2730 = vmatprep.mubr.bf16.mxu1 %v2843_v21 }
  0x45   : > { %2667 = vmatmul.mubr.bf16.gmra.mxu0 %v2844_v22  ;;  %2731 = vmatmul.mubr.bf16.gmra.mxu1 %v2845_v23 }
  0x46   : > { %2670 = vmatprep.mubr.bf16.mxu0 %v2846_v24  ;;  %2734 = vmatprep.mubr.bf16.mxu1 %v2847_v25 }
  0x4d   : > { %2671 = vmatmul.mubr.bf16.gmra.mxu0 %v2848_v26  ;;  %2735 = vmatmul.mubr.bf16.gmra.mxu1 %v2849_v27 }
  0x4e   : > { %2674 = vmatprep.mubr.bf16.mxu0 %v2850_v28  ;;  %2738 = vmatprep.mubr.bf16.mxu1 %v2851_v29 }
  0x55   : > { %2675 = vmatmul.mubr.bf16.gmra.mxu0 %v2852_v30  ;;  %2739 = vmatmul.mubr.bf16.gmra.mxu1 %v2853_v31 }
  0x56   : > { %2678 = vmatprep.mubr.bf16.mxu0 %v2854_v32  ;;  %2742 = vmatprep.mubr.bf16.mxu1 %v2855_v33 }
  0x5d   : > { %2679 = vmatmul.mubr.bf16.gmra.mxu0 %v2856_v34  ;;  %2743 = vmatmul.mubr.bf16.gmra.mxu1 %v2857_v35 }
  0x5e   : > { %2682 = vmatprep.mubr.bf16.mxu0 %v2858_v36  ;;  %2746 = vmatprep.mubr.bf16.mxu1 %v2859_v37 }
  0x65   : > { %2683 = vmatmul.mubr.bf16.gmra.mxu0 %v2860_v38  ;;  %2747 = vmatmul.mubr.bf16.gmra.mxu1 %v2861_v39 }
  0x66   : > { %2686 = vmatprep.mubr.bf16.mxu0 %v2862_v40  ;;  %2750 = vmatprep.mubr.bf16.mxu1 %v2863_v41 }
  0x6d   : > { %2687 = vmatmul.mubr.bf16.gmra.mxu0 %v2864_v42  ;;  %2751 = vmatmul.mubr.bf16.gmra.mxu1 %v2865_v43 }
  0x6e   : > { %2690 = vmatprep.mubr.bf16.mxu0 %v2866_v44  ;;  %2754 = vmatprep.mubr.bf16.mxu1 %v2867_v45 }
  0x75   : > { %2691 = vmatmul.mubr.bf16.gmra.mxu0 %v2868_v46  ;;  %2755 = vmatmul.mubr.bf16.gmra.mxu1 %v2869_v47 }
  0x76   : > { %2694 = vmatprep.mubr.bf16.mxu0 %v2870_v48  ;;  %2758 = vmatprep.mubr.bf16.mxu1 %v2871_v49 }
  0x7d   : > { %2695 = vmatmul.mubr.bf16.gmra.mxu0 %v2872_v50  ;;  %2759 = vmatmul.mubr.bf16.gmra.mxu1 %v2873_v51 }
  0x7e   : > { %2698 = vmatprep.mubr.bf16.mxu0 %v2874_v52  ;;  %2762 = vmatprep.mubr.bf16.mxu1 %v2875_v53 }
  0x85   : > { %2699 = vmatmul.mubr.bf16.gmra.mxu0 %v2876_v54  ;;  %2763 = vmatmul.mubr.bf16.gmra.mxu1 %v2877_v55 }
  0x86   : > { %2702 = vmatprep.mubr.bf16.mxu0 %v2878_v56  ;;  %2766 = vmatprep.mubr.bf16.mxu1 %v2879_v57 }
  0x8d   : > { %2703 = vmatmul.mubr.bf16.gmra.mxu0 %v2880_v58  ;;  %2767 = vmatmul.mubr.bf16.gmra.mxu1 %v2881_v59 }
  0x8e   : > { %2706 = vmatprep.mubr.bf16.mxu0 %v2882_v60  ;;  %2770 = vmatprep.mubr.bf16.mxu1 %v2883_v61 }
  0x95   : > { %2707 = vmatmul.mubr.bf16.gmra.mxu0 %v2884_v62  ;;  %2771 = vmatmul.mubr.bf16.gmra.mxu1 %v2885_v63 }
  0x96   : > { %2710 = vmatprep.mubr.bf16.mxu0 %v2886_v0  ;;  %2774 = vmatprep.mubr.bf16.mxu1 %v2887_v1 }
  0x9d   : > { %2711 = vmatmul.mubr.bf16.gmra.mxu0 %v2888_v2  ;;  %2775 = vmatmul.mubr.bf16.gmra.mxu1 %v2889_v3 }
  0x9e   : > { %2714 = vmatprep.mubr.bf16.mxu0 %v2890_v4  ;;  %2778 = vmatprep.mubr.bf16.mxu1 %v2891_v5 }
  0xa5   : > { %2715 = vmatmul.mubr.bf16.gmra.mxu0 %v2892_v6  ;;  %2779 = vmatmul.mubr.bf16.gmra.mxu1 %v2893_v7 }
  0xed   : > { %v2656_v9 = vpop.f32.mrf.mxu0  ;;  %v2720_v10 = vpop.f32.mrf.mxu1 }
  0xee   : > { %v852_v11 = vadd.f32 %v2656_v9, %v3568_v8  ;;  %v1108_v12 = vadd.f32 %v2720_v10, %v3568_v8 }
  0xef   : > { %v843_v13 = vpop.f32.mrf.mxu0  ;;  %v1099_v14 = vpop.f32.mrf.mxu1 }
  0xf0   : > { %v2438_v15 = vmul.f32 -1.442695, %v852_v11  ;;  %v2502_v16 = vmul.f32 -1.442695, %v1108_v12  ;;  %v844_v17 = vadd.f32 %v3568_v8, %v843_v13  ;;  %v1100_v18 = vadd.f32 %v3568_v8, %v1099_v14 }
  0xf1   : > { %v2657_v19 = vpop.f32.mrf.mxu0  ;;  %v2721_v20 = vpop.f32.mrf.mxu1 }
  0xf2   : > { %2894 = vpow2.f32 %v2438_v15  ;;  %v2436_v21 = vmul.f32 -1.442695, %v844_v17  ;;  %v2500_v22 = vmul.f32 -1.442695, %v1100_v18  ;;  %v855_v23 = vadd.f32 %v2657_v19, %v3568_v8 }
  0xf3   : > { %2896 = vpow2.f32 %v2502_v16  ;;  %v1111_v24 = vadd.f32 %v2721_v20, %v3568_v8  ;;  %v846_v25 = vpop.f32.mrf.mxu0  ;;  %v1102_v26 = vpop.f32.mrf.mxu1 }
  0xf4   : > { %2898 = vpow2.f32 %v2436_v21  ;;  %v2439_v27 = vmul.f32 -1.442695, %v855_v23  ;;  %v847_v28 = vadd.f32 %v3568_v8, %v846_v25  ;;  %v1103_v29 = vadd.f32 %v3568_v8, %v1102_v26 }
  0xf5   : > { %2900 = vpow2.f32 %v2500_v22  ;;  %v2503_v30 = vmul.f32 -1.442695, %v1111_v24  ;;  %v2660_v31 = vpop.f32.mrf.mxu0  ;;  %v2724_v32 = vpop.f32.mrf.mxu1 }
  0xf6   : > { %2902 = vpow2.f32 %v2439_v27  ;;  %v2437_v33 = vmul.f32 -1.442695, %v847_v28  ;;  %v2501_v34 = vmul.f32 -1.442695, %v1103_v29  ;;  %v868_v35 = vadd.f32 %v2660_v31, %v3568_v8 }
  0xf7   : > { %2904 = vpow2.f32 %v2503_v30  ;;  %v1124_v36 = vadd.f32 %v2724_v32, %v3568_v8  ;;  %v859_v37 = vpop.f32.mrf.mxu0  ;;  %v1115_v38 = vpop.f32.mrf.mxu1 }
  0xf8   : > { %2906 = vpow2.f32 %v2437_v33  ;;  %v2442_v39 = vmul.f32 -1.442695, %v868_v35  ;;  %v860_v40 = vadd.f32 %v3568_v8, %v859_v37  ;;  %v1116_v41 = vadd.f32 %v3568_v8, %v1115_v38 }
  0xf9   : > { %2908 = vpow2.f32 %v2501_v34  ;;  %v2506_v42 = vmul.f32 -1.442695, %v1124_v36  ;;  %v2661_v43 = vpop.f32.mrf.mxu0  ;;  %v2725_v44 = vpop.f32.mrf.mxu1 }
  0xfa   : > { %2910 = vpow2.f32 %v2442_v39  ;;  %v2440_v45 = vmul.f32 -1.442695, %v860_v40  ;;  %v2504_v46 = vmul.f32 -1.442695, %v1116_v41  ;;  %v871_v47 = vadd.f32 %v2661_v43, %v3568_v8 }
  0xfb   : > { %2912 = vpow2.f32 %v2506_v42  ;;  %v1127_v48 = vadd.f32 %v2725_v44, %v3568_v8  ;;  %v862_v49 = vpop.f32.mrf.mxu0  ;;  %v1118_v50 = vpop.f32.mrf.mxu1 }
  0xfc   : > { %2914 = vpow2.f32 %v2440_v45  ;;  %v2443_v51 = vmul.f32 -1.442695, %v871_v47  ;;  %v863_v52 = vadd.f32 %v3568_v8, %v862_v49  ;;  %v1119_v53 = vadd.f32 %v3568_v8, %v1118_v50 }
  0xfd   : > { %2916 = vpow2.f32 %v2504_v46  ;;  %v2507_v54 = vmul.f32 -1.442695, %v1127_v48  ;;  %v2664_v55 = vpop.f32.mrf.mxu0  ;;  %v2728_v56 = vpop.f32.mrf.mxu1 }
  0xfe   : > { %2918 = vpow2.f32 %v2443_v51  ;;  %v2441_v57 = vmul.f32 -1.442695, %v863_v52  ;;  %v2505_v58 = vmul.f32 -1.442695, %v1119_v53  ;;  %v884_v26 = vadd.f32 %v2664_v55, %v3568_v8 }
  0xff   : > { %v2895_v59 = vpop.eup %2894  ;;  %2920 = vpow2.f32 %v2507_v54  ;;  %v875_v60 = vpop.f32.mrf.mxu0  ;;  %v1140_v30 = vadd.f32 %v2728_v56, %v3568_v8 }
 0x100   : > { %v1131_v61 = vpop.f32.mrf.mxu1  ;;  %v2897_v62 = vpop.eup %2896  ;;  %v1740_v63 = vadd.f32 1.0, %v2895_v59  ;;  %2922 = vpow2.f32 %v2441_v57  ;;  %v876_v33 = vadd.f32 %v3568_v8, %v875_v60  ;;  %v2446_v40 = vmul.f32 -1.442695, %v884_v26 }
 0x101   : > { %v2899_v0 = vpop.eup %2898  ;;  %v1804_v1 = vadd.f32 1.0, %v2897_v62  ;;  %2924 = vpow2.f32 %v2505_v58  ;;  %v2665_v2 = vpop.f32.mrf.mxu0  ;;  %v1132_v36 = vadd.f32 %v3568_v8, %v1131_v61  ;;  %v2510_v45 = vmul.f32 -1.442695, %v1140_v30 }
 0x102   : > { %v2901_v3 = vpop.eup %2900  ;;  %2926 = vrcp.f32 %v1740_v63  ;;  %v1738_v4 = vadd.f32 1.0, %v2899_v0  ;;  %v2729_v5 = vpop.f32.mrf.mxu1  ;;  %v887_v41 = vadd.f32 %v2665_v2, %v3568_v8  ;;  %v2444_v48 = vmul.f32 -1.442695, %v876_v33 }
 0x103   : > { %v2903_v6 = vpop.eup %2902  ;;  %2928 = vrcp.f32 %v1804_v1  ;;  %v1802_v7 = vadd.f32 1.0, %v2901_v3  ;;  %v878_v13 = vpop.f32.mrf.mxu0  ;;  %v1143_v46 = vadd.f32 %v2729_v5, %v3568_v8  ;;  %v2508_v51 = vmul.f32 -1.442695, %v1132_v36 }
 0x104   : > { %v2905_v9 = vpop.eup %2904  ;;  %2930 = vrcp.f32 %v1738_v4  ;;  %v1741_v10 = vadd.f32 1.0, %v2903_v6  ;;  %v1134_v16 = vpop.f32.mrf.mxu1  ;;  %v879_v49 = vadd.f32 %v3568_v8, %v878_v13  ;;  %v2447_v55 = vmul.f32 -1.442695, %v887_v41 }
 0x105   : > { %v2907_v11 = vpop.eup %2906  ;;  %2932 = vrcp.f32 %v1802_v7  ;;  %v1805_v12 = vadd.f32 1.0, %v2905_v9  ;;  %v2668_v23 = vpop.f32.mrf.mxu0  ;;  %v1135_v52 = vadd.f32 %v3568_v8, %v1134_v16  ;;  %v2511_v59 = vmul.f32 -1.442695, %v1143_v46 }
 0x106   : > { %v2909_v14 = vpop.eup %2908  ;;  %2934 = vrcp.f32 %v1741_v10  ;;  %v1739_v15 = vadd.f32 1.0, %v2907_v11  ;;  %v2732_v27 = vpop.f32.mrf.mxu1  ;;  %v900_v56 = vadd.f32 %v2668_v23, %v3568_v8  ;;  %v2445_v62 = vmul.f32 -1.442695, %v879_v49 }
 0x107   : > { %v2911_v17 = vpop.eup %2910  ;;  %2936 = vrcp.f32 %v1805_v12  ;;  %v1803_v18 = vadd.f32 1.0, %v2909_v14  ;;  %v891_v37 = vpop.f32.mrf.mxu0  ;;  %v1156_v60 = vadd.f32 %v2732_v27, %v3568_v8  ;;  %v2509_v1 = vmul.f32 -1.442695, %v1135_v52 }
 0x108   : > { %v2913_v19 = vpop.eup %2912  ;;  %2938 = vrcp.f32 %v1739_v15  ;;  %v1744_v20 = vadd.f32 1.0, %v2911_v17  ;;  %v1147_v42 = vpop.f32.mrf.mxu1  ;;  %v892_v63 = vadd.f32 %v3568_v8, %v891_v37  ;;  %v2450_v5 = vmul.f32 -1.442695, %v900_v56 }
 0x109   : > { %v2915_v21 = vpop.eup %2914  ;;  %2940 = vrcp.f32 %v1803_v18  ;;  %v1808_v22 = vadd.f32 1.0, %v2913_v19  ;;  %v2669_v53 = vpop.f32.mrf.mxu0  ;;  %v1148_v2 = vadd.f32 %v3568_v8, %v1147_v42  ;;  %v2514_v10 = vmul.f32 -1.442695, %v1156_v60 }
 0x10a   : > { %v2917_v24 = vpop.eup %2916  ;;  %2942 = vrcp.f32 %v1744_v20  ;;  %v1742_v25 = vadd.f32 1.0, %v2915_v21  ;;  %v2733_v57 = vpop.f32.mrf.mxu1  ;;  %v903_v6 = vadd.f32 %v2669_v53, %v3568_v8  ;;  %v2448_v13 = vmul.f32 -1.442695, %v892_v63 }
 0x10b   : > { %v2919_v28 = vpop.eup %2918  ;;  %2944 = vrcp.f32 %v1808_v22  ;;  %v1806_v29 = vadd.f32 1.0, %v2917_v24  ;;  %v894_v3 = vpop.f32.mrf.mxu0  ;;  %v1159_v11 = vadd.f32 %v2733_v57, %v3568_v8  ;;  %v2512_v16 = vmul.f32 -1.442695, %v1148_v2 }
 0x10c   : > { %v2921_v31 = vpop.eup %2920  ;;  %2946 = vrcp.f32 %v1742_v25  ;;  %v1745_v32 = vadd.f32 1.0, %v2919_v28  ;;  %v1150_v7 = vpop.f32.mrf.mxu1  ;;  %v895_v14 = vadd.f32 %v3568_v8, %v894_v3  ;;  %v2451_v20 = vmul.f32 -1.442695, %v903_v6 }
 0x10d   : > { %v2923_v34 = vpop.eup %2922  ;;  %2948 = vrcp.f32 %v1806_v29  ;;  %v1809_v35 = vadd.f32 1.0, %v2921_v31  ;;  %v1151_v17 = vadd.f32 %v3568_v8, %v1150_v7  ;;  %v3618_v18 = vpop.f32.mrf.mxu0  ;;  %v2515_v23 = vmul.f32 -1.442695, %v1159_v11 }
 0x10e   : > { %v2925_v38 = vpop.eup %2924  ;;  %2950 = vrcp.f32 %v1745_v32  ;;  %v1743_v39 = vadd.f32 1.0, %v2923_v34  ;;  %v3621_v21 = vpop.f32.mrf.mxu1  ;;  %v2449_v25 = vmul.f32 -1.442695, %v895_v14 }
 0x10f   : > { %v2927_v43 = vpop.eup %2926  ;;  %2952 = vrcp.f32 %v1809_v35  ;;  %v1807_v44 = vadd.f32 1.0, %v2925_v38  ;;  %v2513_v27 = vmul.f32 -1.442695, %v1151_v17  ;;  %v907_v28 = vpop.f32.mrf.mxu0  ;;  %v1172_v63 = vadd.f32 %v3621_v21, %v3568_v8 }
 0x110   : > { %v2929_v47 = vpop.eup %2928  ;;  %2124 = vst [vmem:[%s3593_s18 + $0x10] sm:$0xff] %v2927_v43  ;;  %2954 = vrcp.f32 %v1743_v39  ;;  %v1163_v30 = vpop.f32.mrf.mxu1  ;;  %v908_v2 = vadd.f32 %v3568_v8, %v907_v28 }
 0x111   : > { %v2931_v50 = vpop.eup %2930  ;;  %2188 = vst [vmem:[%s3593_s18 + $0x210] sm:$0xff] %v2929_v47  ;;  %2956 = vrcp.f32 %v1807_v44  ;;  %v2673_v36 = vpop.f32.mrf.mxu0 }
 0x112   : > { %v2933_v54 = vpop.eup %2932  ;;  %2122 = vst [vmem:[%s3593_s18] sm:$0xff] %v2931_v50  ;;  %2958 = vpow2.f32 %v2446_v40  ;;  %v2737_v39 = vpop.f32.mrf.mxu1  ;;  %v919_v11 = vadd.f32 %v2673_v36, %v3568_v8 }
 0x113   : > { %v2935_v58 = vpop.eup %2934  ;;  %2186 = vst [vmem:[%s3593_s18 + $0x200] sm:$0xff] %v2933_v54  ;;  %2960 = vpow2.f32 %v2510_v45  ;;  %v910_v46 = vpop.f32.mrf.mxu0 }
 0x114   : > { %v2937_v61 = vpop.eup %2936  ;;  %2125 = vst [vmem:[%s3593_s18 + $0x18] sm:$0xff] %v2935_v58  ;;  %2962 = vpow2.f32 %v2444_v48  ;;  %v1166_v49 = vpop.f32.mrf.mxu1 }
 0x115   : > { %v2939_v0 = vpop.eup %2938  ;;  %2189 = vst [vmem:[%s3593_s18 + $0x218] sm:$0xff] %v2937_v61  ;;  %2964 = vpow2.f32 %v2508_v51  ;;  %v2676_v56 = vpop.f32.mrf.mxu0 }
 0x116   : > { %v2941_v4 = vpop.eup %2940  ;;  %2123 = vst [vmem:[%s3593_s18 + $0x8] sm:$0xff] %v2939_v0  ;;  %2966 = vpow2.f32 %v2447_v55  ;;  %v2740_v60 = vpop.f32.mrf.mxu1 }
 0x117   : > { %v2943_v9 = vpop.eup %2942  ;;  %2187 = vst [vmem:[%s3593_s18 + $0x208] sm:$0xff] %v2941_v4  ;;  %2968 = vpow2.f32 %v2511_v59  ;;  %v916_v59 = vadd.f32 %v3618_v18, %v3568_v8  ;;  %v923_v6 = vpop.f32.mrf.mxu0  ;;  %v2452_v18 = vmul.f32 -1.442695, %v908_v2 }
 0x118   : > { %v2945_v12 = vpop.eup %2944  ;;  %2128 = vst [vmem:[%s3593_s18 + $0x30] sm:$0xff] %v2943_v9  ;;  %2970 = vpow2.f32 %v2445_v62 }
 0x119   : > { %v2947_v15 = vpop.eup %2946  ;;  %2192 = vst [vmem:[%s3593_s18 + $0x230] sm:$0xff] %v2945_v12  ;;  %2972 = vpow2.f32 %v2509_v1  ;;  %v1179_v12 = vpop.f32.mrf.mxu1 }
 0x11a   : > { %v2949_v19 = vpop.eup %2948  ;;  %2126 = vst [vmem:[%s3593_s18 + $0x20] sm:$0xff] %v2947_v15  ;;  %2974 = vpow2.f32 %v2450_v5  ;;  %v1164_v5 = vadd.f32 %v3568_v8, %v1163_v30  ;;  %v2518_v15 = vmul.f32 -1.442695, %v1172_v63  ;;  %v1188_v30 = vadd.f32 %v2740_v60, %v3568_v8 }
 0x11b   : > { %v2951_v22 = vpop.eup %2950  ;;  %2190 = vst [vmem:[%s3593_s18 + $0x220] sm:$0xff] %v2949_v19  ;;  %2976 = vpow2.f32 %v2514_v10  ;;  %v2454_v10 = vmul.f32 -1.442695, %v916_v59  ;;  %v911_v19 = vadd.f32 %v3568_v8, %v910_v46  ;;  %v1180_v36 = vadd.f32 %v3568_v8, %v1179_v12 }
 0x11c   : > { %v2953_v24 = vpop.eup %2952  ;;  %2129 = vst [vmem:[%s3593_s18 + $0x38] sm:$0xff] %v2951_v22  ;;  %2978 = vpow2.f32 %v2448_v13  ;;  %v2516_v21 = vmul.f32 -1.442695, %v1164_v5  ;;  %v1167_v22 = vadd.f32 %v3568_v8, %v1166_v49 }
 0x11d   : > { %v2955_v26 = vpop.eup %2954  ;;  %2193 = vst [vmem:[%s3593_s18 + $0x238] sm:$0xff] %v2953_v24  ;;  %2980 = vpow2.f32 %v2512_v16  ;;  %v1175_v16 = vadd.f32 %v2737_v39, %v3568_v8  ;;  %v2520_v49 = vmul.f32 -1.442695, %v1180_v36 }
 0x11e   : > { %v2957_v29 = vpop.eup %2956  ;;  %2127 = vst [vmem:[%s3593_s18 + $0x28] sm:$0xff] %v2955_v26  ;;  %2982 = vpow2.f32 %v2451_v20  ;;  %v932_v26 = vadd.f32 %v2676_v56, %v3568_v8 }
 0x11f   : > { %v2959_v31 = vpop.eup %2958  ;;  %2191 = vst [vmem:[%s3593_s18 + $0x228] sm:$0xff] %v2957_v29  ;;  %2984 = vpow2.f32 %v2515_v23  ;;  %v2677_v23 = vpop.f32.mrf.mxu0  ;;  %v2519_v29 = vmul.f32 -1.442695, %v1175_v16 }
 0x120   : > { %v2961_v32 = vpop.eup %2960  ;;  %v1748_v33 = vadd.f32 1.0, %v2959_v31  ;;  %2986 = vpow2.f32 %v2449_v25  ;;  %v2455_v25 = vmul.f32 -1.442695, %v919_v11  ;;  %v2458_v39 = vmul.f32 -1.442695, %v932_v26 }
 0x121   : > { %v2963_v34 = vpop.eup %2962  ;;  %v1812_v35 = vadd.f32 1.0, %v2961_v32  ;;  %2988 = vpow2.f32 %v2513_v27  ;;  %v2741_v27 = vpop.f32.mrf.mxu1  ;;  %v2453_v32 = vmul.f32 -1.442695, %v911_v19 }
 0x122   : > { %v2965_v37 = vpop.eup %2964  ;;  %2990 = vrcp.f32 %v1748_v33  ;;  %v1746_v38 = vadd.f32 1.0, %v2963_v34  ;;  %v924_v33 = vadd.f32 %v3568_v8, %v923_v6 }
 0x123   : > { %v2967_v40 = vpop.eup %2966  ;;  %2992 = vrcp.f32 %v1812_v35  ;;  %v1810_v41 = vadd.f32 1.0, %v2965_v37  ;;  %v2517_v35 = vmul.f32 -1.442695, %v1167_v22  ;;  %v926_v37 = vpop.f32.mrf.mxu0 }
 0x124   : > { %v2969_v42 = vpop.eup %2968  ;;  %2994 = vrcp.f32 %v1746_v38  ;;  %v1749_v43 = vadd.f32 1.0, %v2967_v40  ;;  %v935_v40 = vadd.f32 %v2677_v23, %v3568_v8  ;;  %v2456_v46 = vmul.f32 -1.442695, %v924_v33 }
 0x125   : > { %v2971_v44 = vpop.eup %2970  ;;  %2996 = vrcp.f32 %v1810_v41  ;;  %v1813_v45 = vadd.f32 1.0, %v2969_v42  ;;  %v1182_v41 = vpop.f32.mrf.mxu1 }
 0x126   : > { %v2973_v47 = vpop.eup %2972  ;;  %2998 = vrcp.f32 %v1749_v43  ;;  %v1747_v48 = vadd.f32 1.0, %v2971_v44  ;;  %v2522_v43 = vmul.f32 -1.442695, %v1188_v30  ;;  %v1191_v44 = vadd.f32 %v2741_v27, %v3568_v8 }
 0x127   : > { %v2975_v50 = vpop.eup %2974  ;;  %3000 = vrcp.f32 %v1813_v45  ;;  %v1811_v51 = vadd.f32 1.0, %v2973_v47  ;;  %v927_v47 = vadd.f32 %v3568_v8, %v926_v37 }
 0x128   : > { %v2977_v52 = vpop.eup %2976  ;;  %3002 = vrcp.f32 %v1747_v48  ;;  %v1752_v53 = vadd.f32 1.0, %v2975_v50  ;;  %v1183_v50 = vadd.f32 %v3568_v8, %v1182_v41  ;;  %v2523_v56 = vmul.f32 -1.442695, %v1191_v44 }
 0x129   : > { %v2979_v54 = vpop.eup %2978  ;;  %3004 = vrcp.f32 %v1811_v51  ;;  %v1816_v55 = vadd.f32 1.0, %v2977_v52  ;;  %v3656_v51 = vpop.f32.mrf.mxu0 }
 0x12a   : > { %v2981_v57 = vpop.eup %2980  ;;  %3006 = vrcp.f32 %v1752_v53  ;;  %v1750_v58 = vadd.f32 1.0, %v2979_v54  ;;  %v2459_v53 = vmul.f32 -1.442695, %v935_v40  ;;  %v3659_v54 = vpop.f32.mrf.mxu1  ;;  %v2521_v60 = vmul.f32 -1.442695, %v1183_v50 }
 0x12b   : > { %v2983_v61 = vpop.eup %2982  ;;  %3008 = vrcp.f32 %v1816_v55  ;;  %v1814_v62 = vadd.f32 1.0, %v2981_v57  ;;  %v1204_v33 = vadd.f32 %v3659_v54, %v3568_v8 }
 0x12c   : > { %v2985_v0 = vpop.eup %2984  ;;  %3010 = vrcp.f32 %v1750_v58  ;;  %v1753_v1 = vadd.f32 1.0, %v2983_v61  ;;  %v2457_v58 = vmul.f32 -1.442695, %v927_v47  ;;  %v939_v61 = vpop.f32.mrf.mxu0 }
 0x12d   : > { %v2987_v3 = vpop.eup %2986  ;;  %3012 = vrcp.f32 %v1814_v62  ;;  %v1817_v4 = vadd.f32 1.0, %v2985_v0  ;;  %v1195_v63 = vpop.f32.mrf.mxu1  ;;  %v940_v36 = vadd.f32 %v3568_v8, %v939_v61 }
 0x12e   : > { %v2989_v7 = vpop.eup %2988  ;;  %3014 = vrcp.f32 %v1753_v1  ;;  %v1751_v9 = vadd.f32 1.0, %v2987_v3  ;;  %v2681_v5 = vpop.f32.mrf.mxu0 }
 0x12f   : > { %v2991_v13 = vpop.eup %2990  ;;  %3016 = vrcp.f32 %v1817_v4  ;;  %v1815_v14 = vadd.f32 1.0, %v2989_v7  ;;  %v951_v44 = vadd.f32 %v2681_v5, %v3568_v8 }
 0x130   : > { %v2993_v17 = vpop.eup %2992  ;;  %2132 = vst [vmem:[%s3593_s18 + $0x50] sm:$0xff] %v2991_v13  ;;  %3018 = vrcp.f32 %v1751_v9  ;;  %v2745_v9 = vpop.f32.mrf.mxu1 }
 0x131   : > { %v2995_v20 = vpop.eup %2994  ;;  %2196 = vst [vmem:[%s3593_s18 + $0x250] sm:$0xff] %v2993_v17  ;;  %3020 = vrcp.f32 %v1815_v14  ;;  %v942_v16 = vpop.f32.mrf.mxu0 }
 0x132   : > { %v2997_v24 = vpop.eup %2996  ;;  %2130 = vst [vmem:[%s3593_s18 + $0x40] sm:$0xff] %v2995_v20  ;;  %3022 = vpow2.f32 %v2454_v10  ;;  %v1198_v19 = vpop.f32.mrf.mxu1 }
 0x133   : > { %v2999_v28 = vpop.eup %2998  ;;  %2194 = vst [vmem:[%s3593_s18 + $0x240] sm:$0xff] %v2997_v24  ;;  %3024 = vpow2.f32 %v2518_v15  ;;  %v2684_v26 = vpop.f32.mrf.mxu0 }
 0x134   : > { %v3001_v31 = vpop.eup %3000  ;;  %2133 = vst [vmem:[%s3593_s18 + $0x58] sm:$0xff] %v2999_v28  ;;  %3026 = vpow2.f32 %v2452_v18  ;;  %v2748_v30 = vpop.f32.mrf.mxu1 }
 0x135   : > { %v3003_v34 = vpop.eup %3002  ;;  %2197 = vst [vmem:[%s3593_s18 + $0x258] sm:$0xff] %v3001_v31  ;;  %3028 = vpow2.f32 %v2516_v21  ;;  %v955_v40 = vpop.f32.mrf.mxu0 }
 0x136   : > { %v3005_v38 = vpop.eup %3004  ;;  %2131 = vst [vmem:[%s3593_s18 + $0x48] sm:$0xff] %v3003_v34  ;;  %3030 = vpow2.f32 %v2455_v25 }
 0x137   : > { %v3007_v42 = vpop.eup %3006  ;;  %2195 = vst [vmem:[%s3593_s18 + $0x248] sm:$0xff] %v3005_v38  ;;  %3032 = vpow2.f32 %v2519_v29  ;;  %v948_v29 = vadd.f32 %v3656_v51, %v3568_v8  ;;  %v2460_v51 = vmul.f32 -1.442695, %v940_v36 }
 0x138   : > { %v3009_v45 = vpop.eup %3008  ;;  %2136 = vst [vmem:[%s3593_s18 + $0x70] sm:$0xff] %v3007_v42  ;;  %3034 = vpow2.f32 %v2453_v32 }
 0x139   : > { %v3011_v48 = vpop.eup %3010  ;;  %2200 = vst [vmem:[%s3593_s18 + $0x270] sm:$0xff] %v3009_v45  ;;  %3036 = vpow2.f32 %v2517_v35  ;;  %v1211_v45 = vpop.f32.mrf.mxu1 }
 0x13a   : > { %v3013_v52 = vpop.eup %3012  ;;  %2134 = vst [vmem:[%s3593_s18 + $0x60] sm:$0xff] %v3011_v48  ;;  %3038 = vpow2.f32 %v2458_v39  ;;  %v1196_v39 = vadd.f32 %v3568_v8, %v1195_v63  ;;  %v2526_v48 = vmul.f32 -1.442695, %v1204_v33  ;;  %v1220_v63 = vadd.f32 %v2748_v30, %v3568_v8 }
 0x13b   : > { %v3015_v55 = vpop.eup %3014  ;;  %2198 = vst [vmem:[%s3593_s18 + $0x260] sm:$0xff] %v3013_v52  ;;  %3040 = vpow2.f32 %v2522_v43  ;;  %v2462_v43 = vmul.f32 -1.442695, %v948_v29  ;;  %v943_v52 = vadd.f32 %v3568_v8, %v942_v16  ;;  %v1212_v5 = vadd.f32 %v3568_v8, %v1211_v45 }
 0x13c   : > { %v3017_v57 = vpop.eup %3016  ;;  %2137 = vst [vmem:[%s3593_s18 + $0x78] sm:$0xff] %v3015_v55  ;;  %3042 = vpow2.f32 %v2456_v46  ;;  %v2524_v54 = vmul.f32 -1.442695, %v1196_v39  ;;  %v1199_v55 = vadd.f32 %v3568_v8, %v1198_v19 }
 0x13d   : > { %v3019_v59 = vpop.eup %3018  ;;  %2201 = vst [vmem:[%s3593_s18 + $0x278] sm:$0xff] %v3017_v57  ;;  %3044 = vpow2.f32 %v2520_v49  ;;  %v1207_v49 = vadd.f32 %v2745_v9, %v3568_v8  ;;  %v2528_v19 = vmul.f32 -1.442695, %v1212_v5 }
 0x13e   : > { %v3021_v62 = vpop.eup %3020  ;;  %2135 = vst [vmem:[%s3593_s18 + $0x68] sm:$0xff] %v3019_v59  ;;  %3046 = vpow2.f32 %v2459_v53  ;;  %v964_v59 = vadd.f32 %v2684_v26, %v3568_v8 }
 0x13f   : > { %v3023_v0 = vpop.eup %3022  ;;  %2199 = vst [vmem:[%s3593_s18 + $0x268] sm:$0xff] %v3021_v62  ;;  %3048 = vpow2.f32 %v2523_v56  ;;  %v2685_v56 = vpop.f32.mrf.mxu0  ;;  %v2527_v62 = vmul.f32 -1.442695, %v1207_v49 }
 0x140   : > { %v3025_v1 = vpop.eup %3024  ;;  %v1756_v2 = vadd.f32 1.0, %v3023_v0  ;;  %3050 = vpow2.f32 %v2457_v58  ;;  %v2463_v58 = vmul.f32 -1.442695, %v951_v44  ;;  %v2466_v9 = vmul.f32 -1.442695, %v964_v59 }
 0x141   : > { %v3027_v3 = vpop.eup %3026  ;;  %v1820_v4 = vadd.f32 1.0, %v3025_v1  ;;  %3052 = vpow2.f32 %v2521_v60  ;;  %v2749_v60 = vpop.f32.mrf.mxu1  ;;  %v2461_v1 = vmul.f32 -1.442695, %v943_v52 }
 0x142   : > { %v3029_v6 = vpop.eup %3028  ;;  %3054 = vrcp.f32 %v1756_v2  ;;  %v1754_v7 = vadd.f32 1.0, %v3027_v3  ;;  %v956_v2 = vadd.f32 %v3568_v8, %v955_v40 }
 0x143   : > { %v3031_v10 = vpop.eup %3030  ;;  %3056 = vrcp.f32 %v1820_v4  ;;  %v1818_v11 = vadd.f32 1.0, %v3029_v6  ;;  %v2525_v4 = vmul.f32 -1.442695, %v1199_v55  ;;  %v958_v6 = vpop.f32.mrf.mxu0 }
 0x144   : > { %v3033_v12 = vpop.eup %3032  ;;  %3058 = vrcp.f32 %v1754_v7  ;;  %v1757_v13 = vadd.f32 1.0, %v3031_v10  ;;  %v967_v10 = vadd.f32 %v2685_v56, %v3568_v8  ;;  %v2464_v16 = vmul.f32 -1.442695, %v956_v2 }
 0x145   : > { %v3035_v14 = vpop.eup %3034  ;;  %3060 = vrcp.f32 %v1818_v11  ;;  %v1821_v15 = vadd.f32 1.0, %v3033_v12  ;;  %v1214_v11 = vpop.f32.mrf.mxu1 }
 0x146   : > { %v3037_v17 = vpop.eup %3036  ;;  %3062 = vrcp.f32 %v1757_v13  ;;  %v1755_v18 = vadd.f32 1.0, %v3035_v14  ;;  %v2530_v13 = vmul.f32 -1.442695, %v1220_v63  ;;  %v1223_v14 = vadd.f32 %v2749_v60, %v3568_v8 }
 0x147   : > { %v3039_v20 = vpop.eup %3038  ;;  %3064 = vrcp.f32 %v1821_v15  ;;  %v1819_v21 = vadd.f32 1.0, %v3037_v17  ;;  %v959_v17 = vadd.f32 %v3568_v8, %v958_v6 }
 0x148   : > { %v3041_v22 = vpop.eup %3040  ;;  %3066 = vrcp.f32 %v1755_v18  ;;  %v1760_v23 = vadd.f32 1.0, %v3039_v20  ;;  %v1215_v20 = vadd.f32 %v3568_v8, %v1214_v11  ;;  %v2531_v26 = vmul.f32 -1.442695, %v1223_v14 }
 0x149   : > { %v3043_v24 = vpop.eup %3042  ;;  %3068 = vrcp.f32 %v1819_v21  ;;  %v1824_v25 = vadd.f32 1.0, %v3041_v22  ;;  %v3694_v21 = vpop.f32.mrf.mxu0 }
 0x14a   : > { %v3045_v27 = vpop.eup %3044  ;;  %3070 = vrcp.f32 %v1760_v23  ;;  %v1758_v28 = vadd.f32 1.0, %v3043_v24  ;;  %v2467_v23 = vmul.f32 -1.442695, %v967_v10  ;;  %v3697_v24 = vpop.f32.mrf.mxu1  ;;  %v2529_v29 = vmul.f32 -1.442695, %v1215_v20 }
 0x14b   : > { %v3047_v31 = vpop.eup %3046  ;;  %3072 = vrcp.f32 %v1824_v25  ;;  %v1822_v32 = vadd.f32 1.0, %v3045_v27  ;;  %v971_v30 = vpop.f32.mrf.mxu0 }
 0x14c   : > { %v3049_v34 = vpop.eup %3048  ;;  %3074 = vrcp.f32 %v1758_v28  ;;  %v1761_v35 = vadd.f32 1.0, %v3047_v31  ;;  %v2465_v28 = vmul.f32 -1.442695, %v959_v17 }
 0x14d   : > { %v3051_v37 = vpop.eup %3050  ;;  %3076 = vrcp.f32 %v1822_v32  ;;  %v1825_v38 = vadd.f32 1.0, %v3049_v34  ;;  %v1227_v32 = vpop.f32.mrf.mxu1 }
 0x14e   : > { %v3053_v41 = vpop.eup %3052  ;;  %3078 = vrcp.f32 %v1761_v35  ;;  %v1759_v42 = vadd.f32 1.0, %v3051_v37 }
 0x14f   : > { %v3055_v46 = vpop.eup %3054  ;;  %3080 = vrcp.f32 %v1825_v38  ;;  %v1823_v47 = vadd.f32 1.0, %v3053_v41  ;;  %v2689_v38 = vpop.f32.mrf.mxu0 }
 0x150   : > { %v3057_v50 = vpop.eup %3056  ;;  %2140 = vst [vmem:[%s3593_s18 + $0x90] sm:$0xff] %v3055_v46  ;;  %3082 = vrcp.f32 %v1759_v42  ;;  %v2753_v41 = vpop.f32.mrf.mxu1 }
 0x151   : > { %v3059_v53 = vpop.eup %3058  ;;  %2204 = vst [vmem:[%s3593_s18 + $0x290] sm:$0xff] %v3057_v50  ;;  %3084 = vrcp.f32 %v1823_v47 }
 0x152   : > { %v3061_v57 = vpop.eup %3060  ;;  %2138 = vst [vmem:[%s3593_s18 + $0x80] sm:$0xff] %v3059_v53  ;;  %3086 = vpow2.f32 %v2462_v43 }
 0x153   : > { %v3063_v61 = vpop.eup %3062  ;;  %2202 = vst [vmem:[%s3593_s18 + $0x280] sm:$0xff] %v3061_v57  ;;  %3088 = vpow2.f32 %v2526_v48  ;;  %v974_v48 = vpop.f32.mrf.mxu0 }
 0x154   : > { %v3065_v0 = vpop.eup %3064  ;;  %2141 = vst [vmem:[%s3593_s18 + $0x98] sm:$0xff] %v3063_v61  ;;  %3090 = vpow2.f32 %v2460_v51  ;;  %v1230_v51 = vpop.f32.mrf.mxu1  ;;  %v3707_v61 = vld [vmem:[%s3884_s2] ss:$0 sm:$0xff] }
 0x155   : > { %v3067_v3 = vpop.eup %3066  ;;  %2205 = vst [vmem:[%s3593_s18 + $0x298] sm:$0xff] %v3065_v0  ;;  %3092 = vpow2.f32 %v2524_v54  ;;  %v1236_v2 = vadd.f32 %v3707_v61, %v3697_v24  ;;  %v972_v5 = vadd.f32 %v3707_v61, %v971_v30  ;;  %v983_v14 = vadd.f32 %v3707_v61, %v2689_v38 }
 0x156   : > { %v3069_v7 = vpop.eup %3068  ;;  %2139 = vst [vmem:[%s3593_s18 + $0x88] sm:$0xff] %v3067_v3  ;;  %3094 = vpow2.f32 %v2463_v58  ;;  %v2692_v58 = vpop.f32.mrf.mxu0 }
 0x157   : > { %v3071_v12 = vpop.eup %3070  ;;  %2203 = vst [vmem:[%s3593_s18 + $0x288] sm:$0xff] %v3069_v7  ;;  %3096 = vpow2.f32 %v2527_v62  ;;  %v980_v62 = vadd.f32 %v3707_v61, %v3694_v21  ;;  %v2756_v63 = vpop.f32.mrf.mxu1  ;;  %v2468_v21 = vmul.f32 -1.442695, %v972_v5 }
 0x158   : > { %v3073_v15 = vpop.eup %3072  ;;  %2144 = vst [vmem:[%s3593_s18 + $0xb0] sm:$0xff] %v3071_v12  ;;  %3098 = vpow2.f32 %v2461_v1  ;;  %v987_v10 = vpop.f32.mrf.mxu0 }
 0x159   : > { %v3075_v18 = vpop.eup %3074  ;;  %2208 = vst [vmem:[%s3593_s18 + $0x2b0] sm:$0xff] %v3073_v15  ;;  %3100 = vpow2.f32 %v2525_v4  ;;  %v1243_v15 = vpop.f32.mrf.mxu1 }
 0x15a   : > { %v3077_v22 = vpop.eup %3076  ;;  %2142 = vst [vmem:[%s3593_s18 + $0xa0] sm:$0xff] %v3075_v18  ;;  %3102 = vpow2.f32 %v2466_v9  ;;  %v1228_v9 = vadd.f32 %v3707_v61, %v1227_v32  ;;  %v2534_v18 = vmul.f32 -1.442695, %v1236_v2  ;;  %v1252_v32 = vadd.f32 %v3707_v61, %v2756_v63 }
 0x15b   : > { %v3079_v25 = vpop.eup %3078  ;;  %2206 = vst [vmem:[%s3593_s18 + $0x2a0] sm:$0xff] %v3077_v22  ;;  %3104 = vpow2.f32 %v2530_v13  ;;  %v2470_v13 = vmul.f32 -1.442695, %v980_v62  ;;  %v975_v22 = vadd.f32 %v3707_v61, %v974_v48  ;;  %v1244_v38 = vadd.f32 %v3707_v61, %v1243_v15 }
 0x15c   : > { %v3081_v27 = vpop.eup %3080  ;;  %2145 = vst [vmem:[%s3593_s18 + $0xb8] sm:$0xff] %v3079_v25  ;;  %3106 = vpow2.f32 %v2464_v16  ;;  %v2532_v24 = vmul.f32 -1.442695, %v1228_v9  ;;  %v1231_v25 = vadd.f32 %v3707_v61, %v1230_v51 }
 0x15d   : > { %v3083_v8 = vpop.eup %3082  ;;  %2209 = vst [vmem:[%s3593_s18 + $0x2b8] sm:$0xff] %v3081_v27  ;;  %3108 = vpow2.f32 %v2528_v19  ;;  %v1239_v19 = vadd.f32 %v3707_v61, %v2753_v41  ;;  %v2536_v51 = vmul.f32 -1.442695, %v1244_v38 }
 0x15e   : > { %v3085_v31 = vpop.eup %3084  ;;  %2143 = vst [vmem:[%s3593_s18 + $0xa8] sm:$0xff] %v3083_v8  ;;  %3110 = vpow2.f32 %v2467_v23  ;;  %v996_v8 = vadd.f32 %v3707_v61, %v2692_v58 }
 0x15f   : > { %v3087_v33 = vpop.eup %3086  ;;  %2207 = vst [vmem:[%s3593_s18 + $0x2a8] sm:$0xff] %v3085_v31  ;;  %3112 = vpow2.f32 %v2531_v26  ;;  %v2693_v26 = vpop.f32.mrf.mxu0  ;;  %v2535_v31 = vmul.f32 -1.442695, %v1239_v19 }
 0x160   : > { %v3089_v34 = vpop.eup %3088  ;;  %v1764_v35 = vadd.f32 1.0, %v3087_v33  ;;  %3114 = vpow2.f32 %v2465_v28  ;;  %v2471_v28 = vmul.f32 -1.442695, %v983_v14  ;;  %v2474_v41 = vmul.f32 -1.442695, %v996_v8 }
 0x161   : > { %v3091_v36 = vpop.eup %3090  ;;  %v1828_v37 = vadd.f32 1.0, %v3089_v34  ;;  %3116 = vpow2.f32 %v2529_v29  ;;  %v2757_v29 = vpop.f32.mrf.mxu1  ;;  %v2469_v34 = vmul.f32 -1.442695, %v975_v22 }
 0x162   : > { %v3093_v39 = vpop.eup %3092  ;;  %3118 = vrcp.f32 %v1764_v35  ;;  %v1762_v40 = vadd.f32 1.0, %v3091_v36  ;;  %v988_v35 = vadd.f32 %v3707_v61, %v987_v10 }
 0x163   : > { %v3095_v42 = vpop.eup %3094  ;;  %3120 = vrcp.f32 %v1828_v37  ;;  %v1826_v43 = vadd.f32 1.0, %v3093_v39  ;;  %v2533_v37 = vmul.f32 -1.442695, %v1231_v25  ;;  %v990_v39 = vpop.f32.mrf.mxu0 }
 0x164   : > { %v3097_v44 = vpop.eup %3096  ;;  %3122 = vrcp.f32 %v1762_v40  ;;  %v1765_v45 = vadd.f32 1.0, %v3095_v42  ;;  %v999_v42 = vadd.f32 %v3707_v61, %v2693_v26  ;;  %v2472_v48 = vmul.f32 -1.442695, %v988_v35 }
 0x165   : > { %v3099_v46 = vpop.eup %3098  ;;  %3124 = vrcp.f32 %v1826_v43  ;;  %v1829_v47 = vadd.f32 1.0, %v3097_v44  ;;  %v1246_v43 = vpop.f32.mrf.mxu1 }
 0x166   : > { %v3101_v49 = vpop.eup %3100  ;;  %3126 = vrcp.f32 %v1765_v45  ;;  %v1763_v50 = vadd.f32 1.0, %v3099_v46  ;;  %v2538_v45 = vmul.f32 -1.442695, %v1252_v32  ;;  %v1255_v46 = vadd.f32 %v3707_v61, %v2757_v29 }
 0x167   : > { %v3103_v52 = vpop.eup %3102  ;;  %3128 = vrcp.f32 %v1829_v47  ;;  %v1827_v53 = vadd.f32 1.0, %v3101_v49  ;;  %v991_v49 = vadd.f32 %v3707_v61, %v990_v39 }
 0x168   : > { %v3105_v54 = vpop.eup %3104  ;;  %3130 = vrcp.f32 %v1763_v50  ;;  %v1768_v55 = vadd.f32 1.0, %v3103_v52  ;;  %v1247_v52 = vadd.f32 %v3707_v61, %v1246_v43  ;;  %v2539_v58 = vmul.f32 -1.442695, %v1255_v46 }
 0x169   : > { %v3107_v56 = vpop.eup %3106  ;;  %3132 = vrcp.f32 %v1827_v53  ;;  %v1832_v57 = vadd.f32 1.0, %v3105_v54  ;;  %v3737_v53 = vpop.f32.mrf.mxu0 }
 0x16a   : > { %v3109_v59 = vpop.eup %3108  ;;  %3134 = vrcp.f32 %v1768_v55  ;;  %v1766_v60 = vadd.f32 1.0, %v3107_v56  ;;  %v2475_v55 = vmul.f32 -1.442695, %v999_v42  ;;  %v3740_v56 = vpop.f32.mrf.mxu1  ;;  %v2537_v63 = vmul.f32 -1.442695, %v1247_v52 }
 0x16b   : > { %v3111_v0 = vpop.eup %3110  ;;  %3136 = vrcp.f32 %v1832_v57  ;;  %v1830_v1 = vadd.f32 1.0, %v3109_v59  ;;  %v1268_v35 = vadd.f32 %v3707_v61, %v3740_v56 }
 0x16c   : > { %v3113_v3 = vpop.eup %3112  ;;  %3138 = vrcp.f32 %v1766_v60  ;;  %v1769_v4 = vadd.f32 1.0, %v3111_v0  ;;  %v2473_v60 = vmul.f32 -1.442695, %v991_v49  ;;  %v1003_v0 = vpop.f32.mrf.mxu0 }
 0x16d   : > { %v3115_v6 = vpop.eup %3114  ;;  %3140 = vrcp.f32 %v1830_v1  ;;  %v1833_v7 = vadd.f32 1.0, %v3113_v3  ;;  %v1259_v2 = vpop.f32.mrf.mxu1  ;;  %v1004_v38 = vadd.f32 %v3707_v61, %v1003_v0 }
 0x16e   : > { %v3117_v11 = vpop.eup %3116  ;;  %3142 = vrcp.f32 %v1769_v4  ;;  %v1767_v12 = vadd.f32 1.0, %v3115_v6  ;;  %v2697_v9 = vpop.f32.mrf.mxu0 }
 0x16f   : > { %v3119_v16 = vpop.eup %3118  ;;  %3144 = vrcp.f32 %v1833_v7  ;;  %v1831_v17 = vadd.f32 1.0, %v3117_v11  ;;  %v1015_v46 = vadd.f32 %v3707_v61, %v2697_v9 }
 0x170   : > { %v3121_v20 = vpop.eup %3120  ;;  %2148 = vst [vmem:[%s3593_s18 + $0xd0] sm:$0xff] %v3119_v16  ;;  %3146 = vrcp.f32 %v1767_v12  ;;  %v2761_v12 = vpop.f32.mrf.mxu1 }
 0x171   : > { %v3123_v23 = vpop.eup %3122  ;;  %2212 = vst [vmem:[%s3593_s18 + $0x2d0] sm:$0xff] %v3121_v20  ;;  %3148 = vrcp.f32 %v1831_v17  ;;  %v1006_v19 = vpop.f32.mrf.mxu0 }
 0x172   : > { %v3125_v27 = vpop.eup %3124  ;;  %2146 = vst [vmem:[%s3593_s18 + $0xc0] sm:$0xff] %v3123_v23  ;;  %3150 = vpow2.f32 %v2470_v13  ;;  %v1262_v22 = vpop.f32.mrf.mxu1 }
 0x173   : > { %v3127_v30 = vpop.eup %3126  ;;  %2210 = vst [vmem:[%s3593_s18 + $0x2c0] sm:$0xff] %v3125_v27  ;;  %3152 = vpow2.f32 %v2534_v18  ;;  %v2700_v8 = vpop.f32.mrf.mxu0 }
 0x174   : > { %v3129_v33 = vpop.eup %3128  ;;  %2149 = vst [vmem:[%s3593_s18 + $0xd8] sm:$0xff] %v3127_v30  ;;  %3154 = vpow2.f32 %v2468_v21  ;;  %v2764_v32 = vpop.f32.mrf.mxu1 }
 0x175   : > { %v3131_v36 = vpop.eup %3130  ;;  %2213 = vst [vmem:[%s3593_s18 + $0x2d8] sm:$0xff] %v3129_v33  ;;  %3156 = vpow2.f32 %v2532_v24  ;;  %v1019_v42 = vpop.f32.mrf.mxu0 }
 0x176   : > { %v3133_v40 = vpop.eup %3132  ;;  %2147 = vst [vmem:[%s3593_s18 + $0xc8] sm:$0xff] %v3131_v36  ;;  %3158 = vpow2.f32 %v2471_v28 }
 0x177   : > { %v3135_v44 = vpop.eup %3134  ;;  %2211 = vst [vmem:[%s3593_s18 + $0x2c8] sm:$0xff] %v3133_v40  ;;  %3160 = vpow2.f32 %v2535_v31  ;;  %v1012_v31 = vadd.f32 %v3707_v61, %v3737_v53  ;;  %v2476_v53 = vmul.f32 -1.442695, %v1004_v38 }
 0x178   : > { %v3137_v47 = vpop.eup %3136  ;;  %2152 = vst [vmem:[%s3593_s18 + $0xf0] sm:$0xff] %v3135_v44  ;;  %3162 = vpow2.f32 %v2469_v34 }
 0x179   : > { %v3139_v50 = vpop.eup %3138  ;;  %2216 = vst [vmem:[%s3593_s18 + $0x2f0] sm:$0xff] %v3137_v47  ;;  %3164 = vpow2.f32 %v2533_v37  ;;  %v1275_v47 = vpop.f32.mrf.mxu1 }
 0x17a   : > { %v3141_v54 = vpop.eup %3140  ;;  %2150 = vst [vmem:[%s3593_s18 + $0xe0] sm:$0xff] %v3139_v50  ;;  %3166 = vpow2.f32 %v2474_v41  ;;  %v1260_v41 = vadd.f32 %v3707_v61, %v1259_v2  ;;  %v2542_v50 = vmul.f32 -1.442695, %v1268_v35  ;;  %v1284_v2 = vadd.f32 %v3707_v61, %v2764_v32 }
 0x17b   : > { %v3143_v57 = vpop.eup %3142  ;;  %2214 = vst [vmem:[%s3593_s18 + $0x2e0] sm:$0xff] %v3141_v54  ;;  %3168 = vpow2.f32 %v2538_v45  ;;  %v2478_v45 = vmul.f32 -1.442695, %v1012_v31  ;;  %v1007_v54 = vadd.f32 %v3707_v61, %v1006_v19  ;;  %v1276_v9 = vadd.f32 %v3707_v61, %v1275_v47 }
 0x17c   : > { %v3145_v59 = vpop.eup %3144  ;;  %2153 = vst [vmem:[%s3593_s18 + $0xf8] sm:$0xff] %v3143_v57  ;;  %3170 = vpow2.f32 %v2472_v48  ;;  %v2540_v56 = vmul.f32 -1.442695, %v1260_v41  ;;  %v1263_v57 = vadd.f32 %v3707_v61, %v1262_v22 }
 0x17d   : > { %v3147_v62 = vpop.eup %3146  ;;  %2217 = vst [vmem:[%s3593_s18 + $0x2f8] sm:$0xff] %v3145_v59  ;;  %3172 = vpow2.f32 %v2536_v51  ;;  %v1271_v51 = vadd.f32 %v3707_v61, %v2761_v12  ;;  %v2544_v22 = vmul.f32 -1.442695, %v1276_v9 }
 0x17e   : > { %v3149_v1 = vpop.eup %3148  ;;  %2151 = vst [vmem:[%s3593_s18 + $0xe8] sm:$0xff] %v3147_v62  ;;  %3174 = vpow2.f32 %v2475_v55  ;;  %v1028_v62 = vadd.f32 %v3707_v61, %v2700_v8 }
 0x17f   : > { %v3151_v3 = vpop.eup %3150  ;;  %2215 = vst [vmem:[%s3593_s18 + $0x2e8] sm:$0xff] %v3149_v1  ;;  %3176 = vpow2.f32 %v2539_v58  ;;  %v2701_v58 = vpop.f32.mrf.mxu0  ;;  %v2543_v1 = vmul.f32 -1.442695, %v1271_v51 }
 0x180   : > { %v3153_v4 = vpop.eup %3152  ;;  %v1772_v5 = vadd.f32 1.0, %v3151_v3  ;;  %3178 = vpow2.f32 %v2473_v60  ;;  %v2479_v60 = vmul.f32 -1.442695, %v1015_v46  ;;  %v2482_v12 = vmul.f32 -1.442695, %v1028_v62 }
 0x181   : > { %v3155_v6 = vpop.eup %3154  ;;  %v1836_v7 = vadd.f32 1.0, %v3153_v4  ;;  %3180 = vpow2.f32 %v2537_v63  ;;  %v2765_v63 = vpop.f32.mrf.mxu1  ;;  %v2477_v4 = vmul.f32 -1.442695, %v1007_v54 }
 0x182   : > { %v3157_v10 = vpop.eup %3156  ;;  %3182 = vrcp.f32 %v1772_v5  ;;  %v1770_v11 = vadd.f32 1.0, %v3155_v6  ;;  %v1020_v5 = vadd.f32 %v3707_v61, %v1019_v42 }
 0x183   : > { %v3159_v13 = vpop.eup %3158  ;;  %3184 = vrcp.f32 %v1836_v7  ;;  %v1834_v14 = vadd.f32 1.0, %v3157_v10  ;;  %v2541_v7 = vmul.f32 -1.442695, %v1263_v57  ;;  %v1022_v10 = vpop.f32.mrf.mxu0 }
 0x184   : > { %v3161_v15 = vpop.eup %3160  ;;  %3186 = vrcp.f32 %v1770_v11  ;;  %v1773_v16 = vadd.f32 1.0, %v3159_v13  ;;  %v1031_v13 = vadd.f32 %v3707_v61, %v2701_v58  ;;  %v2480_v19 = vmul.f32 -1.442695, %v1020_v5 }
 0x185   : > { %v3163_v17 = vpop.eup %3162  ;;  %3188 = vrcp.f32 %v1834_v14  ;;  %v1837_v18 = vadd.f32 1.0, %v3161_v15  ;;  %v1278_v14 = vpop.f32.mrf.mxu1 }
 0x186   : > { %v3165_v20 = vpop.eup %3164  ;;  %3190 = vrcp.f32 %v1773_v16  ;;  %v1771_v21 = vadd.f32 1.0, %v3163_v17  ;;  %v2546_v16 = vmul.f32 -1.442695, %v1284_v2  ;;  %v1287_v17 = vadd.f32 %v3707_v61, %v2765_v63 }
 0x187   : > { %v3167_v23 = vpop.eup %3166  ;;  %3192 = vrcp.f32 %v1837_v18  ;;  %v1835_v24 = vadd.f32 1.0, %v3165_v20  ;;  %v1023_v20 = vadd.f32 %v3707_v61, %v1022_v10 }
 0x188   : > { %v3169_v25 = vpop.eup %3168  ;;  %3194 = vrcp.f32 %v1771_v21  ;;  %v1776_v26 = vadd.f32 1.0, %v3167_v23  ;;  %v1279_v23 = vadd.f32 %v3707_v61, %v1278_v14  ;;  %v2547_v8 = vmul.f32 -1.442695, %v1287_v17 }
 0x189   : > { %v3171_v27 = vpop.eup %3170  ;;  %3196 = vrcp.f32 %v1835_v24  ;;  %v1840_v28 = vadd.f32 1.0, %v3169_v25  ;;  %v3775_v24 = vpop.f32.mrf.mxu0 }
 0x18a   : > { %v3173_v29 = vpop.eup %3172  ;;  %3198 = vrcp.f32 %v1776_v26  ;;  %v1774_v30 = vadd.f32 1.0, %v3171_v27  ;;  %v2483_v26 = vmul.f32 -1.442695, %v1031_v13  ;;  %v3778_v27 = vpop.f32.mrf.mxu1  ;;  %v2545_v32 = vmul.f32 -1.442695, %v1279_v23 }
 0x18b   : > { %v3175_v33 = vpop.eup %3174  ;;  %3200 = vrcp.f32 %v1840_v28  ;;  %v1838_v34 = vadd.f32 1.0, %v3173_v29  ;;  %v1300_v5 = vadd.f32 %v3707_v61, %v3778_v27 }
 0x18c   : > { %v3177_v36 = vpop.eup %3176  ;;  %3202 = vrcp.f32 %v1774_v30  ;;  %v1777_v37 = vadd.f32 1.0, %v3175_v33  ;;  %v2481_v30 = vmul.f32 -1.442695, %v1023_v20  ;;  %v1035_v33 = vpop.f32.mrf.mxu0 }
 0x18d   : > { %v3179_v39 = vpop.eup %3178  ;;  %3204 = vrcp.f32 %v1838_v34  ;;  %v1841_v40 = vadd.f32 1.0, %v3177_v36  ;;  %v1291_v35 = vpop.f32.mrf.mxu1  ;;  %v1036_v9 = vadd.f32 %v3707_v61, %v1035_v33 }
 0x18e   : > { %v3181_v43 = vpop.eup %3180  ;;  %3206 = vrcp.f32 %v1777_v37  ;;  %v1775_v44 = vadd.f32 1.0, %v3179_v39  ;;  %v2705_v41 = vpop.f32.mrf.mxu0 }
 0x18f   : > { %v3183_v48 = vpop.eup %3182  ;;  %3208 = vrcp.f32 %v1841_v40  ;;  %v1839_v49 = vadd.f32 1.0, %v3181_v43  ;;  %v1047_v17 = vadd.f32 %v3707_v61, %v2705_v41 }
 0x190   : > { %v3185_v52 = vpop.eup %3184  ;;  %2156 = vst [vmem:[%s3593_s18 + $0x110] sm:$0xff] %v3183_v48  ;;  %3210 = vrcp.f32 %v1775_v44  ;;  %v2769_v44 = vpop.f32.mrf.mxu1 }
 0x191   : > { %v3187_v55 = vpop.eup %3186  ;;  %2220 = vst [vmem:[%s3593_s18 + $0x310] sm:$0xff] %v3185_v52  ;;  %3212 = vrcp.f32 %v1839_v49  ;;  %v1038_v51 = vpop.f32.mrf.mxu0 }
 0x192   : > { %v3189_v59 = vpop.eup %3188  ;;  %2154 = vst [vmem:[%s3593_s18 + $0x100] sm:$0xff] %v3187_v55  ;;  %3214 = vpow2.f32 %v2478_v45  ;;  %v1294_v54 = vpop.f32.mrf.mxu1 }
 0x193   : > { %v3191_v0 = vpop.eup %3190  ;;  %2218 = vst [vmem:[%s3593_s18 + $0x300] sm:$0xff] %v3189_v59  ;;  %3216 = vpow2.f32 %v2542_v50  ;;  %v2708_v62 = vpop.f32.mrf.mxu0 }
 0x194   : > { %v3193_v3 = vpop.eup %3192  ;;  %2157 = vst [vmem:[%s3593_s18 + $0x118] sm:$0xff] %v3191_v0  ;;  %3218 = vpow2.f32 %v2476_v53  ;;  %v2772_v2 = vpop.f32.mrf.mxu1 }
 0x195   : > { %v3195_v6 = vpop.eup %3194  ;;  %2221 = vst [vmem:[%s3593_s18 + $0x318] sm:$0xff] %v3193_v3  ;;  %3220 = vpow2.f32 %v2540_v56  ;;  %v1051_v13 = vpop.f32.mrf.mxu0 }
 0x196   : > { %v3197_v11 = vpop.eup %3196  ;;  %2155 = vst [vmem:[%s3593_s18 + $0x108] sm:$0xff] %v3195_v6  ;;  %3222 = vpow2.f32 %v2479_v60 }
 0x197   : > { %v3199_v15 = vpop.eup %3198  ;;  %2219 = vst [vmem:[%s3593_s18 + $0x308] sm:$0xff] %v3197_v11  ;;  %3224 = vpow2.f32 %v2543_v1  ;;  %v1044_v1 = vadd.f32 %v3707_v61, %v3775_v24  ;;  %v2484_v24 = vmul.f32 -1.442695, %v1036_v9 }
 0x198   : > { %v3201_v18 = vpop.eup %3200  ;;  %2160 = vst [vmem:[%s3593_s18 + $0x130] sm:$0xff] %v3199_v15  ;;  %3226 = vpow2.f32 %v2477_v4 }
 0x199   : > { %v3203_v21 = vpop.eup %3202  ;;  %2224 = vst [vmem:[%s3593_s18 + $0x330] sm:$0xff] %v3201_v18  ;;  %3228 = vpow2.f32 %v2541_v7  ;;  %v1307_v18 = vpop.f32.mrf.mxu1 }
 0x19a   : > { %v3205_v25 = vpop.eup %3204  ;;  %2158 = vst [vmem:[%s3593_s18 + $0x120] sm:$0xff] %v3203_v21  ;;  %3230 = vpow2.f32 %v2482_v12  ;;  %v1292_v12 = vadd.f32 %v3707_v61, %v1291_v35  ;;  %v2550_v21 = vmul.f32 -1.442695, %v1300_v5  ;;  %v1316_v35 = vadd.f32 %v3707_v61, %v2772_v2 }
 0x19b   : > { %v3207_v28 = vpop.eup %3206  ;;  %2222 = vst [vmem:[%s3593_s18 + $0x320] sm:$0xff] %v3205_v25  ;;  %3232 = vpow2.f32 %v2546_v16  ;;  %v2486_v16 = vmul.f32 -1.442695, %v1044_v1  ;;  %v1039_v25 = vadd.f32 %v3707_v61, %v1038_v51  ;;  %v1308_v41 = vadd.f32 %v3707_v61, %v1307_v18 }
 0x19c   : > { %v3209_v29 = vpop.eup %3208  ;;  %2161 = vst [vmem:[%s3593_s18 + $0x138] sm:$0xff] %v3207_v28  ;;  %3234 = vpow2.f32 %v2480_v19  ;;  %v2548_v27 = vmul.f32 -1.442695, %v1292_v12  ;;  %v1295_v28 = vadd.f32 %v3707_v61, %v1294_v54 }
 0x19d   : > { %v3211_v31 = vpop.eup %3210  ;;  %2225 = vst [vmem:[%s3593_s18 + $0x338] sm:$0xff] %v3209_v29  ;;  %3236 = vpow2.f32 %v2544_v22  ;;  %v1303_v22 = vadd.f32 %v3707_v61, %v2769_v44  ;;  %v2552_v54 = vmul.f32 -1.442695, %v1308_v41 }
 0x19e   : > { %v3213_v34 = vpop.eup %3212  ;;  %2159 = vst [vmem:[%s3593_s18 + $0x128] sm:$0xff] %v3211_v31  ;;  %3238 = vpow2.f32 %v2483_v26  ;;  %v1060_v31 = vadd.f32 %v3707_v61, %v2708_v62 }
 0x19f   : > { %v3215_v36 = vpop.eup %3214  ;;  %2223 = vst [vmem:[%s3593_s18 + $0x328] sm:$0xff] %v3213_v34  ;;  %3240 = vpow2.f32 %v2547_v8  ;;  %v2709_v8 = vpop.f32.mrf.mxu0  ;;  %v2551_v34 = vmul.f32 -1.442695, %v1303_v22 }
 0x1a0   : > { %v3217_v37 = vpop.eup %3216  ;;  %v1780_v38 = vadd.f32 1.0, %v3215_v36  ;;  %3242 = vpow2.f32 %v2481_v30  ;;  %v2487_v30 = vmul.f32 -1.442695, %v1047_v17  ;;  %v2490_v44 = vmul.f32 -1.442695, %v1060_v31 }
 0x1a1   : > { %v3219_v39 = vpop.eup %3218  ;;  %v1844_v40 = vadd.f32 1.0, %v3217_v37  ;;  %3244 = vpow2.f32 %v2545_v32  ;;  %v2773_v32 = vpop.f32.mrf.mxu1  ;;  %v2485_v37 = vmul.f32 -1.442695, %v1039_v25 }
 0x1a2   : > { %v3221_v42 = vpop.eup %3220  ;;  %3246 = vrcp.f32 %v1780_v38  ;;  %v1778_v43 = vadd.f32 1.0, %v3219_v39  ;;  %v1052_v38 = vadd.f32 %v3707_v61, %v1051_v13 }
 0x1a3   : > { %v3223_v45 = vpop.eup %3222  ;;  %3248 = vrcp.f32 %v1844_v40  ;;  %v1842_v46 = vadd.f32 1.0, %v3221_v42  ;;  %v2549_v40 = vmul.f32 -1.442695, %v1295_v28  ;;  %v1054_v42 = vpop.f32.mrf.mxu0 }
 0x1a4   : > { %v3225_v47 = vpop.eup %3224  ;;  %3250 = vrcp.f32 %v1778_v43  ;;  %v1781_v48 = vadd.f32 1.0, %v3223_v45  ;;  %v1063_v45 = vadd.f32 %v3707_v61, %v2709_v8  ;;  %v2488_v51 = vmul.f32 -1.442695, %v1052_v38 }
 0x1a5   : > { %v3227_v49 = vpop.eup %3226  ;;  %3252 = vrcp.f32 %v1842_v46  ;;  %v1845_v50 = vadd.f32 1.0, %v3225_v47  ;;  %v1310_v46 = vpop.f32.mrf.mxu1 }
 0x1a6   : > { %v3229_v52 = vpop.eup %3228  ;;  %3254 = vrcp.f32 %v1781_v48  ;;  %v1779_v53 = vadd.f32 1.0, %v3227_v49  ;;  %v2554_v48 = vmul.f32 -1.442695, %v1316_v35  ;;  %v1319_v49 = vadd.f32 %v3707_v61, %v2773_v32 }
 0x1a7   : > { %v3231_v55 = vpop.eup %3230  ;;  %3256 = vrcp.f32 %v1845_v50  ;;  %v1843_v56 = vadd.f32 1.0, %v3229_v52  ;;  %v1055_v52 = vadd.f32 %v3707_v61, %v1054_v42 }
 0x1a8   : > { %v3233_v57 = vpop.eup %3232  ;;  %3258 = vrcp.f32 %v1779_v53  ;;  %v1784_v58 = vadd.f32 1.0, %v3231_v55  ;;  %v1311_v55 = vadd.f32 %v3707_v61, %v1310_v46  ;;  %v2555_v62 = vmul.f32 -1.442695, %v1319_v49 }
 0x1a9   : > { %v3235_v59 = vpop.eup %3234  ;;  %3260 = vrcp.f32 %v1843_v56  ;;  %v1848_v60 = vadd.f32 1.0, %v3233_v57  ;;  %v3813_v56 = vpop.f32.mrf.mxu0 }
 0x1aa   : > { %v3237_v63 = vpop.eup %3236  ;;  %3262 = vrcp.f32 %v1784_v58  ;;  %v1782_v0 = vadd.f32 1.0, %v3235_v59  ;;  %v2491_v58 = vmul.f32 -1.442695, %v1063_v45  ;;  %v3816_v59 = vpop.f32.mrf.mxu1  ;;  %v2553_v2 = vmul.f32 -1.442695, %v1311_v55 }
 0x1ab   : > { %v3239_v3 = vpop.eup %3238  ;;  %3264 = vrcp.f32 %v1848_v60  ;;  %v1846_v4 = vadd.f32 1.0, %v3237_v63  ;;  %v1332_v38 = vadd.f32 %v3707_v61, %v3816_v59 }
 0x1ac   : > { %v3241_v6 = vpop.eup %3240  ;;  %3266 = vrcp.f32 %v1782_v0  ;;  %v1785_v7 = vadd.f32 1.0, %v3239_v3  ;;  %v2489_v0 = vmul.f32 -1.442695, %v1055_v52  ;;  %v1067_v3 = vpop.f32.mrf.mxu0 }
 0x1ad   : > { %v3243_v10 = vpop.eup %3242  ;;  %3268 = vrcp.f32 %v1846_v4  ;;  %v1849_v11 = vadd.f32 1.0, %v3241_v6  ;;  %v1323_v5 = vpop.f32.mrf.mxu1  ;;  %v1068_v41 = vadd.f32 %v3707_v61, %v1067_v3 }
 0x1ae   : > { %v3245_v14 = vpop.eup %3244  ;;  %3270 = vrcp.f32 %v1785_v7  ;;  %v1783_v15 = vadd.f32 1.0, %v3243_v10  ;;  %v2713_v12 = vpop.f32.mrf.mxu0 }
 0x1af   : > { %v3247_v19 = vpop.eup %3246  ;;  %3272 = vrcp.f32 %v1849_v11  ;;  %v1847_v20 = vadd.f32 1.0, %v3245_v14  ;;  %v1079_v49 = vadd.f32 %v3707_v61, %v2713_v12 }
 0x1b0   : > { %v3249_v23 = vpop.eup %3248  ;;  %2164 = vst [vmem:[%s3593_s18 + $0x150] sm:$0xff] %v3247_v19  ;;  %3274 = vrcp.f32 %v1783_v15  ;;  %v2777_v15 = vpop.f32.mrf.mxu1 }
 0x1b1   : > { %v3251_v26 = vpop.eup %3250  ;;  %2228 = vst [vmem:[%s3593_s18 + $0x350] sm:$0xff] %v3249_v23  ;;  %3276 = vrcp.f32 %v1847_v20  ;;  %v1070_v22 = vpop.f32.mrf.mxu0 }
 0x1b2   : > { %v3253_v29 = vpop.eup %3252  ;;  %2162 = vst [vmem:[%s3593_s18 + $0x140] sm:$0xff] %v3251_v26  ;;  %3278 = vpow2.f32 %v2486_v16  ;;  %v1326_v25 = vpop.f32.mrf.mxu1 }
 0x1b3   : > { %v3255_v33 = vpop.eup %3254  ;;  %2226 = vst [vmem:[%s3593_s18 + $0x340] sm:$0xff] %v3253_v29  ;;  %3280 = vpow2.f32 %v2550_v21  ;;  %v2716_v31 = vpop.f32.mrf.mxu0 }
 0x1b4   : > { %v3257_v36 = vpop.eup %3256  ;;  %2165 = vst [vmem:[%s3593_s18 + $0x158] sm:$0xff] %v3255_v33  ;;  %3282 = vpow2.f32 %v2484_v24  ;;  %v2780_v35 = vpop.f32.mrf.mxu1 }
 0x1b5   : > { %v3259_v39 = vpop.eup %3258  ;;  %2229 = vst [vmem:[%s3593_s18 + $0x358] sm:$0xff] %v3257_v36  ;;  %3284 = vpow2.f32 %v2548_v27  ;;  %v1083_v45 = vpop.f32.mrf.mxu0 }
 0x1b6   : > { %v3261_v43 = vpop.eup %3260  ;;  %2163 = vst [vmem:[%s3593_s18 + $0x148] sm:$0xff] %v3259_v39  ;;  %3286 = vpow2.f32 %v2487_v30 }
 0x1b7   : > { %v3263_v47 = vpop.eup %3262  ;;  %2227 = vst [vmem:[%s3593_s18 + $0x348] sm:$0xff] %v3261_v43  ;;  %3288 = vpow2.f32 %v2551_v34  ;;  %v1076_v34 = vadd.f32 %v3707_v61, %v3813_v56  ;;  %v2492_v56 = vmul.f32 -1.442695, %v1068_v41 }
 0x1b8   : > { %v3265_v50 = vpop.eup %3264  ;;  %2168 = vst [vmem:[%s3593_s18 + $0x170] sm:$0xff] %v3263_v47  ;;  %3290 = vpow2.f32 %v2485_v37 }
 0x1b9   : > { %v3267_v53 = vpop.eup %3266  ;;  %2232 = vst [vmem:[%s3593_s18 + $0x370] sm:$0xff] %v3265_v50  ;;  %3292 = vpow2.f32 %v2549_v40  ;;  %v1339_v50 = vpop.f32.mrf.mxu1 }
 0x1ba   : > { %v3269_v57 = vpop.eup %3268  ;;  %2166 = vst [vmem:[%s3593_s18 + $0x160] sm:$0xff] %v3267_v53  ;;  %3294 = vpow2.f32 %v2490_v44  ;;  %v1324_v44 = vadd.f32 %v3707_v61, %v1323_v5  ;;  %v2558_v53 = vmul.f32 -1.442695, %v1332_v38  ;;  %v1348_v5 = vadd.f32 %v3707_v61, %v2780_v35 }
 0x1bb   : > { %v3271_v60 = vpop.eup %3270  ;;  %2230 = vst [vmem:[%s3593_s18 + $0x360] sm:$0xff] %v3269_v57  ;;  %3296 = vpow2.f32 %v2554_v48  ;;  %v2494_v48 = vmul.f32 -1.442695, %v1076_v34  ;;  %v1071_v57 = vadd.f32 %v3707_v61, %v1070_v22  ;;  %v1340_v12 = vadd.f32 %v3707_v61, %v1339_v50 }
 0x1bc   : > { %v3273_v63 = vpop.eup %3272  ;;  %2169 = vst [vmem:[%s3593_s18 + $0x178] sm:$0xff] %v3271_v60  ;;  %3298 = vpow2.f32 %v2488_v51  ;;  %v2556_v59 = vmul.f32 -1.442695, %v1324_v44  ;;  %v1327_v60 = vadd.f32 %v3707_v61, %v1326_v25 }
 0x1bd   : > { %v3275_v1 = vpop.eup %3274  ;;  %2233 = vst [vmem:[%s3593_s18 + $0x378] sm:$0xff] %v3273_v63  ;;  %3300 = vpow2.f32 %v2552_v54  ;;  %v1335_v54 = vadd.f32 %v3707_v61, %v2777_v15  ;;  %v2560_v25 = vmul.f32 -1.442695, %v1340_v12 }
 0x1be   : > { %v3277_v4 = vpop.eup %3276  ;;  %2167 = vst [vmem:[%s3593_s18 + $0x168] sm:$0xff] %v3275_v1  ;;  %3302 = vpow2.f32 %v2491_v58  ;;  %v1092_v1 = vadd.f32 %v3707_v61, %v2716_v31 }
 0x1bf   : > { %v3279_v6 = vpop.eup %3278  ;;  %2231 = vst [vmem:[%s3593_s18 + $0x368] sm:$0xff] %v3277_v4  ;;  %3304 = vpow2.f32 %v2555_v62  ;;  %v2717_v62 = vpop.f32.mrf.mxu0  ;;  %v2559_v4 = vmul.f32 -1.442695, %v1335_v54 }
 0x1c0   : > { %v3281_v7 = vpop.eup %3280  ;;  %v1788_v9 = vadd.f32 1.0, %v3279_v6  ;;  %3306 = vpow2.f32 %v2489_v0  ;;  %v2495_v0 = vmul.f32 -1.442695, %v1079_v49  ;;  %v2498_v15 = vmul.f32 -1.442695, %v1092_v1 }
 0x1c1   : > { %v3283_v10 = vpop.eup %3282  ;;  %v1852_v11 = vadd.f32 1.0, %v3281_v7  ;;  %3308 = vpow2.f32 %v2553_v2  ;;  %v2781_v2 = vpop.f32.mrf.mxu1  ;;  %v2493_v7 = vmul.f32 -1.442695, %v1071_v57 }
 0x1c2   : > { %v3285_v13 = vpop.eup %3284  ;;  %3310 = vrcp.f32 %v1788_v9  ;;  %v1786_v14 = vadd.f32 1.0, %v3283_v10  ;;  %v1084_v9 = vadd.f32 %v3707_v61, %v1083_v45 }
 0x1c3   : > { %v3287_v16 = vpop.eup %3286  ;;  %3312 = vrcp.f32 %v1852_v11  ;;  %v1850_v17 = vadd.f32 1.0, %v3285_v13  ;;  %v2557_v11 = vmul.f32 -1.442695, %v1327_v60  ;;  %v1086_v13 = vpop.f32.mrf.mxu0 }
 0x1c4   : > { %v3289_v18 = vpop.eup %3288  ;;  %3314 = vrcp.f32 %v1786_v14  ;;  %v1789_v19 = vadd.f32 1.0, %v3287_v16  ;;  %v1095_v16 = vadd.f32 %v3707_v61, %v2717_v62  ;;  %v2496_v22 = vmul.f32 -1.442695, %v1084_v9 }
 0x1c5   : > { %v3291_v20 = vpop.eup %3290  ;;  %3316 = vrcp.f32 %v1850_v17  ;;  %v1853_v21 = vadd.f32 1.0, %v3289_v18  ;;  %v1342_v17 = vpop.f32.mrf.mxu1 }
 0x1c6   : > { %v3293_v23 = vpop.eup %3292  ;;  %3318 = vrcp.f32 %v1789_v19  ;;  %v1787_v24 = vadd.f32 1.0, %v3291_v20  ;;  %v2562_v19 = vmul.f32 -1.442695, %v1348_v5  ;;  %v1351_v20 = vadd.f32 %v3707_v61, %v2781_v2 }
 0x1c7   : > { %v3295_v26 = vpop.eup %3294  ;;  %3320 = vrcp.f32 %v1853_v21  ;;  %v1851_v27 = vadd.f32 1.0, %v3293_v23  ;;  %v1087_v23 = vadd.f32 %v3707_v61, %v1086_v13 }
 0x1c8   : > { %v3297_v28 = vpop.eup %3296  ;;  %3322 = vrcp.f32 %v1787_v24  ;;  %v1792_v8 = vadd.f32 1.0, %v3295_v26  ;;  %v1343_v26 = vadd.f32 %v3707_v61, %v1342_v17 }
 0x1c9   : > { %v3299_v29 = vpop.eup %3298  ;;  %3324 = vrcp.f32 %v1851_v27  ;;  %v1856_v30 = vadd.f32 1.0, %v3297_v28  ;;  %v2499_v28 = vmul.f32 -1.442695, %v1095_v16  ;;  %v2497_v31 = vmul.f32 -1.442695, %v1087_v23 }
 0x1ca   : > { %v3301_v32 = vpop.eup %3300  ;;  %3326 = vrcp.f32 %v1792_v8  ;;  %v1790_v33 = vadd.f32 1.0, %v3299_v29  ;;  %v2563_v29 = vmul.f32 -1.442695, %v1351_v20 }
 0x1cb   : > { %v3303_v36 = vpop.eup %3302  ;;  %3328 = vrcp.f32 %v1856_v30  ;;  %v1854_v37 = vadd.f32 1.0, %v3301_v32 }
 0x1cc   : > { %v3305_v39 = vpop.eup %3304  ;;  %3330 = vrcp.f32 %v1790_v33  ;;  %v1793_v40 = vadd.f32 1.0, %v3303_v36  ;;  %v2561_v33 = vmul.f32 -1.442695, %v1343_v26 }
 0x1cd   : > { %v3307_v42 = vpop.eup %3306  ;;  %3332 = vrcp.f32 %v1854_v37  ;;  %v1857_v43 = vadd.f32 1.0, %v3305_v39 }
 0x1ce   : > { %v3309_v46 = vpop.eup %3308  ;;  %3334 = vrcp.f32 %v1793_v40  ;;  %v1791_v47 = vadd.f32 1.0, %v3307_v42 }
 0x1cf   : > { %v3311_v51 = vpop.eup %3310  ;;  %3336 = vrcp.f32 %v1857_v43  ;;  %v1855_v52 = vadd.f32 1.0, %v3309_v46 }
 0x1d0   : > { %v3313_v55 = vpop.eup %3312  ;;  %2172 = vst [vmem:[%s3593_s18 + $0x190] sm:$0xff] %v3311_v51  ;;  %3338 = vrcp.f32 %v1791_v47 }
 0x1d1   : > { %v3315_v58 = vpop.eup %3314  ;;  %2236 = vst [vmem:[%s3593_s18 + $0x390] sm:$0xff] %v3313_v55  ;;  %3340 = vrcp.f32 %v1855_v52 }
 0x1d2   : > { %v3317_v63 = vpop.eup %3316  ;;  %2170 = vst [vmem:[%s3593_s18 + $0x180] sm:$0xff] %v3315_v58  ;;  %3342 = vpow2.f32 %v2494_v48 }
 0x1d3   : > { %v3319_v3 = vpop.eup %3318  ;;  %2234 = vst [vmem:[%s3593_s18 + $0x380] sm:$0xff] %v3317_v63  ;;  %3344 = vpow2.f32 %v2558_v53 }
 0x1d4   : > { %v3321_v6 = vpop.eup %3320  ;;  %2173 = vst [vmem:[%s3593_s18 + $0x198] sm:$0xff] %v3319_v3  ;;  %3346 = vpow2.f32 %v2492_v56 }
 0x1d5   : > { %v3323_v10 = vpop.eup %3322  ;;  %2237 = vst [vmem:[%s3593_s18 + $0x398] sm:$0xff] %v3321_v6  ;;  %3348 = vpow2.f32 %v2556_v59 }
 0x1d6   : > { %v3325_v14 = vpop.eup %3324  ;;  %2171 = vst [vmem:[%s3593_s18 + $0x188] sm:$0xff] %v3323_v10  ;;  %3350 = vpow2.f32 %v2495_v0 }
 0x1d7   : > { %v3327_v18 = vpop.eup %3326  ;;  %2235 = vst [vmem:[%s3593_s18 + $0x388] sm:$0xff] %v3325_v14  ;;  %3352 = vpow2.f32 %v2559_v4 }
 0x1d8   : > { %v3329_v21 = vpop.eup %3328  ;;  %2176 = vst [vmem:[%s3593_s18 + $0x1b0] sm:$0xff] %v3327_v18  ;;  %3354 = vpow2.f32 %v2493_v7 }
 0x1d9   : > { %v3331_v24 = vpop.eup %3330  ;;  %2240 = vst [vmem:[%s3593_s18 + $0x3b0] sm:$0xff] %v3329_v21  ;;  %3356 = vpow2.f32 %v2557_v11 }
 0x1da   : > { %v3333_v27 = vpop.eup %3332  ;;  %2174 = vst [vmem:[%s3593_s18 + $0x1a0] sm:$0xff] %v3331_v24  ;;  %3358 = vpow2.f32 %v2498_v15 }
 0x1db   : > { %v3335_v8 = vpop.eup %3334  ;;  %2238 = vst [vmem:[%s3593_s18 + $0x3a0] sm:$0xff] %v3333_v27  ;;  %3360 = vpow2.f32 %v2562_v19 }
 0x1dc   : > { %v3337_v30 = vpop.eup %3336  ;;  %2177 = vst [vmem:[%s3593_s18 + $0x1b8] sm:$0xff] %v3335_v8  ;;  %3362 = vpow2.f32 %v2496_v22 }
 0x1dd   : > { %v3339_v32 = vpop.eup %3338  ;;  %2241 = vst [vmem:[%s3593_s18 + $0x3b8] sm:$0xff] %v3337_v30  ;;  %3364 = vpow2.f32 %v2560_v25 }
 0x1de   : > { %v3341_v34 = vpop.eup %3340  ;;  %2175 = vst [vmem:[%s3593_s18 + $0x1a8] sm:$0xff] %v3339_v32  ;;  %3366 = vpow2.f32 %v2499_v28 }
 0x1df   : > { %v3343_v61 = vpop.eup %3342  ;;  %2239 = vst [vmem:[%s3593_s18 + $0x3a8] sm:$0xff] %v3341_v34  ;;  %3368 = vpow2.f32 %v2563_v29 }
 0x1e0   : > { %v3345_v35 = vpop.eup %3344  ;;  %v1796_v36 = vadd.f32 1.0, %v3343_v61  ;;  %3370 = vpow2.f32 %v2497_v31 }
 0x1e1   : > { %v3347_v37 = vpop.eup %3346  ;;  %v1860_v38 = vadd.f32 1.0, %v3345_v35  ;;  %3372 = vpow2.f32 %v2561_v33 }
 0x1e2   : > { %v3349_v39 = vpop.eup %3348  ;;  %3374 = vrcp.f32 %v1796_v36  ;;  %v1794_v40 = vadd.f32 1.0, %v3347_v37 }
 0x1e3   : > { %v3351_v41 = vpop.eup %3350  ;;  %3376 = vrcp.f32 %v1860_v38  ;;  %v1858_v42 = vadd.f32 1.0, %v3349_v39 }
 0x1e4   : > { %v3353_v43 = vpop.eup %3352  ;;  %3378 = vrcp.f32 %v1794_v40  ;;  %v1797_v44 = vadd.f32 1.0, %v3351_v41 }
 0x1e5   : > { %v3355_v45 = vpop.eup %3354  ;;  %3380 = vrcp.f32 %v1858_v42  ;;  %v1861_v46 = vadd.f32 1.0, %v3353_v43 }
 0x1e6   : > { %v3357_v47 = vpop.eup %3356  ;;  %3382 = vrcp.f32 %v1797_v44  ;;  %v1795_v48 = vadd.f32 1.0, %v3355_v45 }
 0x1e7   : > { %v3359_v49 = vpop.eup %3358  ;;  %3384 = vrcp.f32 %v1861_v46  ;;  %v1859_v50 = vadd.f32 1.0, %v3357_v47 }
 0x1e8   : > { %v3361_v51 = vpop.eup %3360  ;;  %3386 = vrcp.f32 %v1795_v48  ;;  %v1800_v52 = vadd.f32 1.0, %v3359_v49 }
 0x1e9   : > { %v3363_v53 = vpop.eup %3362  ;;  %3388 = vrcp.f32 %v1859_v50  ;;  %v1864_v54 = vadd.f32 1.0, %v3361_v51 }
 0x1ea   : > { %v3365_v55 = vpop.eup %3364  ;;  %3390 = vrcp.f32 %v1800_v52  ;;  %v1798_v56 = vadd.f32 1.0, %v3363_v53 }
 0x1eb   : > { %v3367_v57 = vpop.eup %3366  ;;  %3392 = vrcp.f32 %v1864_v54  ;;  %v1862_v58 = vadd.f32 1.0, %v3365_v55 }
 0x1ec   : > { %v3369_v59 = vpop.eup %3368  ;;  %3394 = vrcp.f32 %v1798_v56  ;;  %v1801_v60 = vadd.f32 1.0, %v3367_v57 }
 0x1ed   : > { %v3371_v62 = vpop.eup %3370  ;;  %3396 = vrcp.f32 %v1862_v58  ;;  %v1865_v63 = vadd.f32 1.0, %v3369_v59 }
 0x1ee   : > { %v3373_v0 = vpop.eup %3372  ;;  %3398 = vrcp.f32 %v1801_v60  ;;  %v1799_v1 = vadd.f32 1.0, %v3371_v62 }
 0x1ef   : > { %v3375_v2 = vpop.eup %3374  ;;  %3400 = vrcp.f32 %v1865_v63  ;;  %v1863_v3 = vadd.f32 1.0, %v3373_v0 }
 0x1f0   : > { %v3377_v4 = vpop.eup %3376  ;;  %2180 = vst [vmem:[%s3593_s18 + $0x1d0] sm:$0xff] %v3375_v2  ;;  %3402 = vrcp.f32 %v1799_v1 }
 0x1f1   : > { %v3379_v5 = vpop.eup %3378  ;;  %2244 = vst [vmem:[%s3593_s18 + $0x3d0] sm:$0xff] %v3377_v4  ;;  %3404 = vrcp.f32 %v1863_v3 }
 0x1f2   : > { %v3381_v6 = vpop.eup %3380  ;;  %2178 = vst [vmem:[%s3593_s18 + $0x1c0] sm:$0xff] %v3379_v5 }
 0x1f3   : > { %v3383_v7 = vpop.eup %3382  ;;  %2242 = vst [vmem:[%s3593_s18 + $0x3c0] sm:$0xff] %v3381_v6 }
 0x1f4   : > { %v3385_v9 = vpop.eup %3384  ;;  %2181 = vst [vmem:[%s3593_s18 + $0x1d8] sm:$0xff] %v3383_v7 }
 0x1f5   : > { %v3387_v10 = vpop.eup %3386  ;;  %2245 = vst [vmem:[%s3593_s18 + $0x3d8] sm:$0xff] %v3385_v9 }
 0x1f6   : > { %v3389_v11 = vpop.eup %3388  ;;  %2179 = vst [vmem:[%s3593_s18 + $0x1c8] sm:$0xff] %v3387_v10 }
 0x1f7   : > { %v3391_v12 = vpop.eup %3390  ;;  %2243 = vst [vmem:[%s3593_s18 + $0x3c8] sm:$0xff] %v3389_v11 }
 0x1f8   : > { %v3393_v13 = vpop.eup %3392  ;;  %2184 = vst [vmem:[%s3593_s18 + $0x1f0] sm:$0xff] %v3391_v12 }
 0x1f9   : > { %v3395_v14 = vpop.eup %3394  ;;  %2248 = vst [vmem:[%s3593_s18 + $0x3f0] sm:$0xff] %v3393_v13 }
 0x1fa   : > { %v3397_v15 = vpop.eup %3396  ;;  %2182 = vst [vmem:[%s3593_s18 + $0x1e0] sm:$0xff] %v3395_v14 }
 0x1fb   : > { %v3399_v16 = vpop.eup %3398  ;;  %2246 = vst [vmem:[%s3593_s18 + $0x3e0] sm:$0xff] %v3397_v15 }
 0x1fc   : > { %v3401_v17 = vpop.eup %3400  ;;  %2185 = vst [vmem:[%s3593_s18 + $0x1f8] sm:$0xff] %v3399_v16 }
 0x1fd   : > { %v3403_v18 = vpop.eup %3402  ;;  %2249 = vst [vmem:[%s3593_s18 + $0x3f8] sm:$0xff] %v3401_v17 }
 0x1fe   : > { %v3405_v19 = vpop.eup %3404  ;;  %2183 = vst [vmem:[%s3593_s18 + $0x1e8] sm:$0xff] %v3403_v18 }
 0x1ff   : > { %2247 = vst [vmem:[%s3593_s18 + $0x3e8] sm:$0xff] %v3405_v19 }
 0x200 PF: > { %s13_s14 = sadd.s32 1, %s3429_s14   ;;  %s3886_s12 = smov %s3425_s13 }
 0x201   : > { %p10_p5 = scmp.ge.s32.totalorder %s13_s14, 4   ;;  %s3887_s13 = smov %s3889_s15 }
 0x203   :  { %12 = sbr.rel (!%p10_p5) target bundleno = 2 (0x2), region = 68 }

</bundles_post_ra>
